<compile_context>
chip_gen: v7x
topology: tpu7x:2x2x1
jax: 0.10.0
libtpu: 0.0.40
codegen_flags: <defaults>
</compile_context>

<pallas_src>
import functools
import math

import jax
import jax.numpy as jnp
from jax.experimental import pallas as pl
from jax.experimental.pallas import tpu as pltpu

_LN_EPS = 1e-5
_INV_SQRT2 = 1.0 / math.sqrt(2.0)


# ------------------------------ kernel helpers ------------------------------ #

def _gelu(x):
    # exact (erf-based) GELU, matches torch nn.GELU default
    return 0.5 * x * (1.0 + jax.lax.erf(x * _INV_SQRT2))


def _layernorm(x, g, b, eps=_LN_EPS):
    mu = jnp.mean(x, axis=-1, keepdims=True)
    d = x - mu
    var = jnp.mean(d * d, axis=-1, keepdims=True)
    return d * jax.lax.rsqrt(var + eps) * g + b


# --------------------------- single fused kernel ----------------------------- #

def _fused_kernel(
        # grid-resident constant inputs
        flat_ref, patch_w_ref, patch_b_ref, pos_ref, seg_ref,
        eff_w1_ref, eff_b1_ref, eff_w2_ref, eff_b2_ref,
        # per-block stacked weights (sliced by the grid index)
        in_w_ref, in_b_ref, out_w_ref, out_b_ref,
        ln1_g_ref, ln1_b_ref,
        mlp_w1_ref, mlp_b1_ref, mlp_w2_ref, mlp_b2_ref,
        ln2_g_ref, ln2_b_ref,
        # final norm + classifier head
        fin_g_ref, fin_b_ref,
        cls_w1a_hbm, cls_w1b_hbm, cls_w2_hbm, cls_w3_hbm,   # HBM (manual DMA)
        cls_b1_ref, cls_b2_ref, cls_b3_ref,
        # output
        o_ref,
        # scratch
        z_ref, eff_ref, w1a_vmem, w1b_vmem, w2_vmem, w3_vmem, head_sem,
        *, B, N, E):
    i = pl.program_id(0)

    def _head_dmas():
        return (pltpu.make_async_copy(cls_w1a_hbm, w1a_vmem, head_sem.at[0]),
                pltpu.make_async_copy(cls_w1b_hbm, w1b_vmem, head_sem.at[1]),
                pltpu.make_async_copy(cls_w2_hbm, w2_vmem, head_sem.at[2]),
                pltpu.make_async_copy(cls_w3_hbm, w3_vmem, head_sem.at[3]))

    # ---- grid step 0: start head-weight DMA, patch embed + pos, eff branch ---
    @pl.when(i == 0)
    def _():
        # Kick off the classifier-head weight fetch so it overlaps all 6 blocks.
        for cp in _head_dmas():
            cp.start()

        fb = flat_ref[...].astype(jnp.bfloat16)

        # patch embedding (Conv2d k=4, s=4 as a matmul) + positional embedding
        pe = jnp.dot(fb, patch_w_ref[...],
                     preferred_element_type=jnp.float32) + patch_b_ref[...]
        z_ref[...] = (pe.reshape(B, N, E) + pos_ref[...][None]).reshape(B * N, E)

        # EfficientNet-B3 stand-in: linear + SiLU -> global avg pool -> linear
        h = jnp.dot(fb, eff_w1_ref[...],
                    preferred_element_type=jnp.float32) + eff_b1_ref[...]
        h = h * jax.nn.sigmoid(h)                       # SiLU
        g = jnp.mean(h.reshape(B, N, h.shape[1]), axis=1)          # (B, hidden)
        e = jnp.dot(g.astype(jnp.bfloat16), eff_w2_ref[...],
                    preferred_element_type=jnp.float32) + eff_b2_ref[...]
        eff_ref[...] = jnp.clip(e, -10000.0, 10000.0)

    # ---- one SwinTransformerBlock per grid step (z stays resident in VMEM) ---
    z = z_ref[...]                                       # (B*N, E) f32
    zb = z.astype(jnp.bfloat16)

    qkv = jnp.dot(zb, in_w_ref[0], preferred_element_type=jnp.float32) + in_b_ref[0]
    # torch batch_first=False quirk: attention runs over the batch axis
    # (length B); patches act as the attention "batch".  The 1/sqrt(head_dim)
    # scale is folded into the Q projection at init.
    q = qkv[:, :E].reshape(B, N, E)
    k = qkv[:, E:2 * E].reshape(B, N, E)
    v = qkv[:, 2 * E:].reshape(B, N, E)

    # Per-head q.k dot products for all (query pos, key pos) pairs in ONE
    # lane-dense matmul: stacked elementwise products (B*B*N, E) hit the
    # block-diagonal head selector (segmented reduce + per-head broadcast).
    prod = (q[:, None] * k[None, :]).reshape(B * B * N, E)
    scores = jnp.dot(prod.astype(jnp.bfloat16), seg_ref[...],
                     preferred_element_type=jnp.float32).reshape(B, B, N, E)

    m = jnp.max(scores, axis=1, keepdims=True)
    es = jnp.exp(scores - m)                            # (B, B, N, E)
    den = jnp.sum(es, axis=1)                           # (B, N, E)
    ctx = jnp.sum(es * v[None, :], axis=1)              # (B, N, E)
    attn = (ctx / den).reshape(B * N, E)

    attn = jnp.dot(attn.astype(jnp.bfloat16), out_w_ref[0],
                   preferred_element_type=jnp.float32) + out_b_ref[0]

    # post-norm residual: norm1(x + attn)
    z1 = _layernorm(z + attn, ln1_g_ref[0], ln1_b_ref[0])

    # MLP: Linear(E, 4E) -> GELU -> Linear(4E, E), hidden stays in VMEM
    h = jnp.dot(z1.astype(jnp.bfloat16), mlp_w1_ref[0],
                preferred_element_type=jnp.float32) + mlp_b1_ref[0]
    h = _gelu(h)
    h = jnp.dot(h.astype(jnp.bfloat16), mlp_w2_ref[0],
                preferred_element_type=jnp.float32) + mlp_b2_ref[0]

    z2 = _layernorm(z1 + h, ln2_g_ref[0], ln2_b_ref[0])
    z_ref[...] = z2

    # ---- last grid step: final LN + mean + clamp, then the classifier head ---
    @pl.when(i == pl.num_programs(0) - 1)
    def _():
        y = _layernorm(z2, fin_g_ref[...], fin_b_ref[...])
        swin = jnp.clip(jnp.mean(y.reshape(B, N, E), axis=1), -10000.0, 10000.0)

        for cp in _head_dmas():          # weights were fetched behind the blocks
            cp.wait()

        # concat(eff, swin) @ W1 expressed as a split matmul (no concat)
        h1 = (jnp.dot(eff_ref[...].astype(jnp.bfloat16), w1a_vmem[...],
                      preferred_element_type=jnp.float32)
              + jnp.dot(swin.astype(jnp.bfloat16), w1b_vmem[...],
                        preferred_element_type=jnp.float32)
              + cls_b1_ref[...])
        h1 = jnp.maximum(h1, 0.0)
        h2 = jnp.dot(h1.astype(jnp.bfloat16), w2_vmem[...],
                     preferred_element_type=jnp.float32) + cls_b2_ref[...]
        h2 = jnp.maximum(h2, 0.0)
        # final layer padded to a lane-dense 128-wide output; sliced outside
        o_ref[...] = jnp.dot(h2.astype(jnp.bfloat16), w3_vmem[...],
                             preferred_element_type=jnp.float32) + cls_b3_ref[...]


def _fused_forward(flat, params, B, Np):
    E = params["patch_w"].shape[1]
    blk = params["blocks"]
    n_blocks = blk["in_w"].shape[0]
    M = B * Np
    Kp = flat.shape[1]
    eff_hid = params["eff_w1"].shape[1]
    eff_dim = params["eff_w2"].shape[1]
    hid1 = params["cls_w2"].shape[0]
    hid2 = params["cls_w2"].shape[1]
    npad = params["cls_w3"].shape[1]

    c2 = lambda i: (0, 0)        # constant 2-D block: fetched once, stays resident
    s3 = lambda i: (i, 0, 0)     # per-block slice of the stacked 3-D weights
    any_spec = pl.BlockSpec(memory_space=pl.ANY)   # stays in HBM, manual DMA

    grid_spec = pltpu.PrefetchScalarGridSpec(
        num_scalar_prefetch=0,
        grid=(n_blocks,),
        in_specs=[
            pl.BlockSpec((M, Kp), c2),                # flat patches
            pl.BlockSpec((Kp, E), c2),                # patch_w
            pl.BlockSpec((1, E), c2),                 # patch_b
            pl.BlockSpec((Np, E), c2),                # pos embed (broadcast in-kernel)
            pl.BlockSpec((E, E), c2),                 # head selector
            pl.BlockSpec((Kp, eff_hid), c2),          # eff_w1
            pl.BlockSpec((1, eff_hid), c2),           # eff_b1
            pl.BlockSpec((eff_hid, eff_dim), c2),     # eff_w2
            pl.BlockSpec((1, eff_dim), c2),           # eff_b2
            pl.BlockSpec((1, E, 3 * E), s3),          # in_proj_w
            pl.BlockSpec((1, 1, 3 * E), s3),          # in_proj_b
            pl.BlockSpec((1, E, E), s3),              # out_proj_w
            pl.BlockSpec((1, 1, E), s3),              # out_proj_b
            pl.BlockSpec((1, 1, E), s3),              # ln1_g
            pl.BlockSpec((1, 1, E), s3),              # ln1_b
            pl.BlockSpec((1, E, 4 * E), s3),          # mlp_w1
            pl.BlockSpec((1, 1, 4 * E), s3),          # mlp_b1
            pl.BlockSpec((1, 4 * E, E), s3),          # mlp_w2
            pl.BlockSpec((1, 1, E), s3),              # mlp_b2
            pl.BlockSpec((1, 1, E), s3),              # ln2_g
            pl.BlockSpec((1, 1, E), s3),              # ln2_b
            pl.BlockSpec((1, E), c2),                 # final_ln_g
            pl.BlockSpec((1, E), c2),                 # final_ln_b
            any_spec, any_spec, any_spec, any_spec,   # cls_w1a / w1b / w2 / w3
            pl.BlockSpec((1, hid1), c2),              # cls_b1
            pl.BlockSpec((1, hid2), c2),              # cls_b2
            pl.BlockSpec((1, npad), c2),              # cls_b3
        ],
        out_specs=pl.BlockSpec((B, npad), c2),
        scratch_shapes=[
            pltpu.VMEM((M, E), jnp.float32),                    # token state z
            pltpu.VMEM((B, eff_dim), jnp.float32),              # eff features
            pltpu.VMEM(params["cls_w1a"].shape, jnp.bfloat16),  # head weights
            pltpu.VMEM(params["cls_w1b"].shape, jnp.bfloat16),
            pltpu.VMEM(params["cls_w2"].shape, jnp.bfloat16),
            pltpu.VMEM(params["cls_w3"].shape, jnp.bfloat16),
            pltpu.SemaphoreType.DMA((4,)),
        ],
    )
    return pl.pallas_call(
        functools.partial(_fused_kernel, B=B, N=Np, E=E),
        out_shape=jax.ShapeDtypeStruct((B, npad), jnp.float32),
        grid_spec=grid_spec,
        compiler_params=pltpu.CompilerParams(dimension_semantics=("arbitrary",)),
    )(flat, params["patch_w"], params["patch_b"], params["pos_embed"],
      params["head_seg"],
      params["eff_w1"], params["eff_b1"], params["eff_w2"], params["eff_b2"],
      blk["in_w"], blk["in_b"], blk["out_w"], blk["out_b"],
      blk["ln1_g"], blk["ln1_b"],
      blk["mlp_w1"], blk["mlp_b1"], blk["mlp_w2"], blk["mlp_b2"],
      blk["ln2_g"], blk["ln2_b"],
      params["final_ln_g"], params["final_ln_b"],
      params["cls_w1a"], params["cls_w1b"], params["cls_w2"], params["cls_w3"],
      params["cls_b1"], params["cls_b2"], params["cls_b3"])


# --------------------------------- forward ----------------------------------- #

def extract_patches(x, p):
    """NCHW -> (B, Hp*Wp, C*p*p) with (C, kh, kw) flattening (matches Conv2d k=s=4)."""
    B, C, H, W = x.shape
    Hp, Wp = H // p, W // p
    x = x.reshape(B, C, Hp, p, Wp, p)
    x = x.transpose(0, 2, 4, 1, 3, 5)
    return x.reshape(B, Hp * Wp, C * p * p)


def _forward(params, x, *, num_classes=10):
    """DiseaseAwareHVT.forward (inference). x: NCHW (B, 3, H, W) float32."""
    B, C, H, W = x.shape
    patches = extract_patches(x, 4)                     # (B, Np, 48)
    Np = patches.shape[1]
    flat = patches.reshape(B * Np, C * 16)
    logits_pad = _fused_forward(flat, params, B, Np)    # (B, 128) padded logits
    return logits_pad[:, :num_classes]


forward = jax.jit(_forward, static_argnames=("num_classes",))


# ------------------------------ init (synthetic) ----------------------------- #

def init_params(key, img_size=(16, 16), num_classes=10, embed_dim=128, num_heads=4):
    H, W = img_size
    Np = (H // 4) * (W // 4)
    E = embed_dim
    assert E % num_heads == 0
    Dh = E // num_heads
    keys = iter(jax.random.split(key, 64))

    def xav(fan_in, fan_out):
        # torch xavier_uniform_ on a (fan_out, fan_in) Linear weight, stored (in, out)
        limit = math.sqrt(6.0 / (fan_in + fan_out))
        return jax.random.uniform(next(keys), (fan_in, fan_out), jnp.float32,
                                  -limit, limit)

    p = {}
    # patch_embed: Conv2d(3, 128, 4, 4) -> kaiming_normal fan_out, zero bias
    std = math.sqrt(2.0 / (E * 4 * 4))
    p["patch_w"] = (jax.random.normal(next(keys), (48, E), jnp.float32) * std
                    ).astype(jnp.bfloat16)
    p["patch_b"] = jnp.zeros((1, E), jnp.float32)
    p["pos_embed"] = jnp.zeros((Np, E), jnp.float32)

    n_blocks = 6
    q_scale = 1.0 / math.sqrt(Dh)

    def stack(make):
        return jnp.stack([make() for _ in range(n_blocks)], axis=0)

    def in_proj():
        w = xav(E, 3 * E)
        # fold the 1/sqrt(head_dim) attention scale into the Q projection
        # (q bias is zero at init, so only the weight columns need scaling)
        return w.at[:, :E].multiply(q_scale).astype(jnp.bfloat16)

    p["blocks"] = {
        "in_w": stack(in_proj),                                   # (6, E, 3E) bf16
        "in_b": jnp.zeros((n_blocks, 1, 3 * E), jnp.float32),
        "out_w": stack(lambda: xav(E, E).astype(jnp.bfloat16)),
        "out_b": jnp.zeros((n_blocks, 1, E), jnp.float32),
        "ln1_g": jnp.ones((n_blocks, 1, E), jnp.float32),
        "ln1_b": jnp.zeros((n_blocks, 1, E), jnp.float32),
        "mlp_w1": stack(lambda: xav(E, 4 * E).astype(jnp.bfloat16)),
        "mlp_b1": jnp.zeros((n_blocks, 1, 4 * E), jnp.float32),
        "mlp_w2": stack(lambda: xav(4 * E, E).astype(jnp.bfloat16)),
        "mlp_b2": jnp.zeros((n_blocks, 1, E), jnp.float32),
        "ln2_g": jnp.ones((n_blocks, 1, E), jnp.float32),
        "ln2_b": jnp.zeros((n_blocks, 1, E), jnp.float32),
    }
    p["final_ln_g"] = jnp.ones((1, E), jnp.float32)
    p["final_ln_b"] = jnp.zeros((1, E), jnp.float32)

    # block-diagonal per-head selector: seg[d, d'] = 1 iff head(d) == head(d')
    lane = jnp.arange(E)
    p["head_seg"] = (lane[:, None] // Dh == lane[None, :] // Dh).astype(jnp.bfloat16)

    # EfficientNet-B3 stand-in projection weights (deterministic)
    # TODO(synk): the pretrained torchvision efficientnet_b3 backbone (MBConv stack +
    # IMAGENET1K_V1 weights) cannot be reproduced in-script; a deterministic stand-in
    # (patchify -> linear+SiLU -> GAP -> linear to 1536) is used instead.
    p["eff_w1"] = xav(48, 256).astype(jnp.bfloat16)
    p["eff_b1"] = jnp.zeros((1, 256), jnp.float32)
    p["eff_w2"] = xav(256, 1536).astype(jnp.bfloat16)
    p["eff_b2"] = jnp.zeros((1, 1536), jnp.float32)

    # classifier: (1536 + 128) -> 1024 -> 512 -> num_classes (padded to 128 lanes)
    w1 = xav(1536 + E, 1024)
    p["cls_w1a"] = w1[:1536].astype(jnp.bfloat16)
    p["cls_w1b"] = w1[1536:].astype(jnp.bfloat16)
    p["cls_b1"] = jnp.zeros((1, 1024), jnp.float32)
    p["cls_w2"] = xav(1024, 512).astype(jnp.bfloat16)
    p["cls_b2"] = jnp.zeros((1, 512), jnp.float32)
    npad = ((num_classes + 127) // 128) * 128
    w3 = xav(512, num_classes)
    p["cls_w3"] = (jnp.zeros((512, npad), jnp.float32)
                   .at[:, :num_classes].set(w3).astype(jnp.bfloat16))
    p["cls_b3"] = jnp.zeros((1, npad), jnp.float32)
    return p


# ----------------------------------- main ------------------------------------ #

if __name__ == "__main__":
    key = jax.random.PRNGKey(0)
    pkey, xkey = jax.random.split(key)

    img_size = (16, 16)
    num_classes = 10
    params = init_params(pkey, img_size=img_size, num_classes=num_classes,
                         num_heads=4)

    x = jax.random.normal(xkey, (2, 3, img_size[0], img_size[1]), jnp.float32)

    logits = forward(params, x, num_classes=num_classes)
    jax.block_until_ready(logits)

    assert logits.shape == (2, num_classes), logits.shape
    assert bool(jnp.all(jnp.isfinite(logits)))
    print("KERNEL_OK")
</pallas_src>

<mosaic_0001>
module attributes {stable_mosaic.version = 11 : i64} {
  func.func @_fused_kernel(%arg0: i32, %arg1: memref<32x48xf32, #tpu.memory_space<vmem>>, %arg2: memref<48x128xbf16, #tpu.memory_space<vmem>>, %arg3: memref<1x128xf32, #tpu.memory_space<vmem>>, %arg4: memref<16x128xf32, #tpu.memory_space<vmem>>, %arg5: memref<128x128xbf16, #tpu.memory_space<vmem>>, %arg6: memref<48x256xbf16, #tpu.memory_space<vmem>>, %arg7: memref<1x256xf32, #tpu.memory_space<vmem>>, %arg8: memref<256x1536xbf16, #tpu.memory_space<vmem>>, %arg9: memref<1x1536xf32, #tpu.memory_space<vmem>>, %arg10: memref<1x128x384xbf16, #tpu.memory_space<vmem>>, %arg11: memref<1x1x384xf32, #tpu.memory_space<vmem>>, %arg12: memref<1x128x128xbf16, #tpu.memory_space<vmem>>, %arg13: memref<1x1x128xf32, #tpu.memory_space<vmem>>, %arg14: memref<1x1x128xf32, #tpu.memory_space<vmem>>, %arg15: memref<1x1x128xf32, #tpu.memory_space<vmem>>, %arg16: memref<1x128x512xbf16, #tpu.memory_space<vmem>>, %arg17: memref<1x1x512xf32, #tpu.memory_space<vmem>>, %arg18: memref<1x512x128xbf16, #tpu.memory_space<vmem>>, %arg19: memref<1x1x128xf32, #tpu.memory_space<vmem>>, %arg20: memref<1x1x128xf32, #tpu.memory_space<vmem>>, %arg21: memref<1x1x128xf32, #tpu.memory_space<vmem>>, %arg22: memref<1x128xf32, #tpu.memory_space<vmem>>, %arg23: memref<1x128xf32, #tpu.memory_space<vmem>>, %arg24: memref<1536x1024xbf16, #tpu.memory_space<any>>, %arg25: memref<128x1024xbf16, #tpu.memory_space<any>>, %arg26: memref<1024x512xbf16, #tpu.memory_space<any>>, %arg27: memref<512x128xbf16, #tpu.memory_space<any>>, %arg28: memref<1x1024xf32, #tpu.memory_space<vmem>>, %arg29: memref<1x512xf32, #tpu.memory_space<vmem>>, %arg30: memref<1x128xf32, #tpu.memory_space<vmem>>, %arg31: memref<2x128xf32, #tpu.memory_space<vmem>>, %arg32: memref<32x128xf32, #tpu.memory_space<vmem>>, %arg33: memref<2x1536xf32, #tpu.memory_space<vmem>>, %arg34: memref<1536x1024xbf16, #tpu.memory_space<vmem>>, %arg35: memref<128x1024xbf16, #tpu.memory_space<vmem>>, %arg36: memref<1024x512xbf16, #tpu.memory_space<vmem>>, %arg37: memref<512x128xbf16, #tpu.memory_space<vmem>>, %arg38: memref<4x!tpu.dma_semaphore, #tpu.memory_space<semaphore_mem>>) attributes {dimension_semantics = [#tpu.dimension_semantics<arbitrary>], iteration_bounds = array<i64: 6>, scalar_prefetch = 0 : i64, scratch_operands = 7 : i64, tpu.core_type = #tpu.core_type<tc>, window_params = [{pipeline_mode = #tpu.pipeline_mode<synchronous>, transform_indices = @transform_0, window_bounds = array<i64: 32, 48>}, {pipeline_mode = #tpu.pipeline_mode<synchronous>, transform_indices = @transform_1, window_bounds = array<i64: 48, 128>}, {pipeline_mode = #tpu.pipeline_mode<synchronous>, transform_indices = @transform_2, window_bounds = array<i64: 1, 128>}, {pipeline_mode = #tpu.pipeline_mode<synchronous>, transform_indices = @transform_3, window_bounds = array<i64: 16, 128>}, {pipeline_mode = #tpu.pipeline_mode<synchronous>, transform_indices = @transform_4, window_bounds = array<i64: 128, 128>}, {pipeline_mode = #tpu.pipeline_mode<synchronous>, transform_indices = @transform_5, window_bounds = array<i64: 48, 256>}, {pipeline_mode = #tpu.pipeline_mode<synchronous>, transform_indices = @transform_6, window_bounds = array<i64: 1, 256>}, {pipeline_mode = #tpu.pipeline_mode<synchronous>, transform_indices = @transform_7, window_bounds = array<i64: 256, 1536>}, {pipeline_mode = #tpu.pipeline_mode<synchronous>, transform_indices = @transform_8, window_bounds = array<i64: 1, 1536>}, {transform_indices = @transform_9, window_bounds = array<i64: 1, 128, 384>}, {transform_indices = @transform_10, window_bounds = array<i64: 1, 1, 384>}, {transform_indices = @transform_11, window_bounds = array<i64: 1, 128, 128>}, {transform_indices = @transform_12, window_bounds = array<i64: 1, 1, 128>}, {transform_indices = @transform_13, window_bounds = array<i64: 1, 1, 128>}, {transform_indices = @transform_14, window_bounds = array<i64: 1, 1, 128>}, {transform_indices = @transform_15, window_bounds = array<i64: 1, 128, 512>}, {transform_indices = @transform_16, window_bounds = array<i64: 1, 1, 512>}, {transform_indices = @transform_17, window_bounds = array<i64: 1, 512, 128>}, {transform_indices = @transform_18, window_bounds = array<i64: 1, 1, 128>}, {transform_indices = @transform_19, window_bounds = array<i64: 1, 1, 128>}, {transform_indices = @transform_20, window_bounds = array<i64: 1, 1, 128>}, {pipeline_mode = #tpu.pipeline_mode<synchronous>, transform_indices = @transform_21, window_bounds = array<i64: 1, 128>}, {pipeline_mode = #tpu.pipeline_mode<synchronous>, transform_indices = @transform_22, window_bounds = array<i64: 1, 128>}, {}, {}, {}, {}, {pipeline_mode = #tpu.pipeline_mode<synchronous>, transform_indices = @transform_27, window_bounds = array<i64: 1, 1024>}, {pipeline_mode = #tpu.pipeline_mode<synchronous>, transform_indices = @transform_28, window_bounds = array<i64: 1, 512>}, {pipeline_mode = #tpu.pipeline_mode<synchronous>, transform_indices = @transform_29, window_bounds = array<i64: 1, 128>}, {pipeline_mode = #tpu.pipeline_mode<synchronous>, transform_indices = @transform_30, window_bounds = array<i64: 2, 128>}]} {
    %c0_i32 = arith.constant 0 : i32
    %0 = arith.cmpi eq, %arg0, %c0_i32 : i32
    %1 = arith.extui %0 : i1 to i32
    %c0_i32_0 = arith.constant 0 : i32
    %2 = arith.cmpi ne, %1, %c0_i32_0 : i32
    scf.if %2 {
      %c0_i32_63 = arith.constant 0 : i32
      %126 = tpu.memref_slice %arg38[%c0_i32_63] : memref<4x!tpu.dma_semaphore, #tpu.memory_space<semaphore_mem>> -> memref<1x!tpu.dma_semaphore, #tpu.memory_space<semaphore_mem>>
      %127 = tpu.memref_squeeze %126 : memref<1x!tpu.dma_semaphore, #tpu.memory_space<semaphore_mem>> -> memref<!tpu.dma_semaphore, #tpu.memory_space<semaphore_mem>>
      tpu.enqueue_dma source(%arg24 : memref<1536x1024xbf16, #tpu.memory_space<any>>) target(%arg34 : memref<1536x1024xbf16, #tpu.memory_space<vmem>>) target_semaphore(%127 : memref<!tpu.dma_semaphore, #tpu.memory_space<semaphore_mem>>)
      %c1_i32 = arith.constant 1 : i32
      %128 = tpu.memref_slice %arg38[%c1_i32] : memref<4x!tpu.dma_semaphore, #tpu.memory_space<semaphore_mem>> -> memref<1x!tpu.dma_semaphore, #tpu.memory_space<semaphore_mem>>
      %129 = tpu.memref_squeeze %128 : memref<1x!tpu.dma_semaphore, #tpu.memory_space<semaphore_mem>> -> memref<!tpu.dma_semaphore, #tpu.memory_space<semaphore_mem>>
      tpu.enqueue_dma source(%arg25 : memref<128x1024xbf16, #tpu.memory_space<any>>) target(%arg35 : memref<128x1024xbf16, #tpu.memory_space<vmem>>) target_semaphore(%129 : memref<!tpu.dma_semaphore, #tpu.memory_space<semaphore_mem>>)
      %c2_i32 = arith.constant 2 : i32
      %130 = tpu.memref_slice %arg38[%c2_i32] : memref<4x!tpu.dma_semaphore, #tpu.memory_space<semaphore_mem>> -> memref<1x!tpu.dma_semaphore, #tpu.memory_space<semaphore_mem>>
      %131 = tpu.memref_squeeze %130 : memref<1x!tpu.dma_semaphore, #tpu.memory_space<semaphore_mem>> -> memref<!tpu.dma_semaphore, #tpu.memory_space<semaphore_mem>>
      tpu.enqueue_dma source(%arg26 : memref<1024x512xbf16, #tpu.memory_space<any>>) target(%arg36 : memref<1024x512xbf16, #tpu.memory_space<vmem>>) target_semaphore(%131 : memref<!tpu.dma_semaphore, #tpu.memory_space<semaphore_mem>>)
      %c3_i32 = arith.constant 3 : i32
      %132 = tpu.memref_slice %arg38[%c3_i32] : memref<4x!tpu.dma_semaphore, #tpu.memory_space<semaphore_mem>> -> memref<1x!tpu.dma_semaphore, #tpu.memory_space<semaphore_mem>>
      %133 = tpu.memref_squeeze %132 : memref<1x!tpu.dma_semaphore, #tpu.memory_space<semaphore_mem>> -> memref<!tpu.dma_semaphore, #tpu.memory_space<semaphore_mem>>
      tpu.enqueue_dma source(%arg27 : memref<512x128xbf16, #tpu.memory_space<any>>) target(%arg37 : memref<512x128xbf16, #tpu.memory_space<vmem>>) target_semaphore(%133 : memref<!tpu.dma_semaphore, #tpu.memory_space<semaphore_mem>>)
      %c0_64 = arith.constant 0 : index
      %c0_65 = arith.constant 0 : index
      %134 = vector.load %arg1[%c0_64, %c0_65] : memref<32x48xf32, #tpu.memory_space<vmem>>, vector<32x48xf32>
      %135 = arith.truncf %134 : vector<32x48xf32> to vector<32x48xbf16>
      %c0_66 = arith.constant 0 : index
      %c0_67 = arith.constant 0 : index
      %136 = vector.load %arg2[%c0_66, %c0_67] : memref<48x128xbf16, #tpu.memory_space<vmem>>, vector<48x128xbf16>
      %cst_68 = arith.constant dense<0.000000e+00> : vector<32x128xf32>
      %137 = tpu.matmul %135, %136, %cst_68 {dimension_numbers = #tpu.dot_dimension_numbers<[1], [0], [0], [1], [0, 0, 1, 1], [], []>} : vector<32x48xbf16>, vector<48x128xbf16>, vector<32x128xf32> -> vector<32x128xf32>
      %c0_69 = arith.constant 0 : index
      %c0_70 = arith.constant 0 : index
      %138 = vector.load %arg3[%c0_69, %c0_70] : memref<1x128xf32, #tpu.memory_space<vmem>>, vector<1x128xf32>
      %139 = vector.broadcast %138 : vector<1x128xf32> to vector<32x128xf32>
      %140 = arith.addf %137, %139 : vector<32x128xf32>
      %141 = vector.shape_cast %140 : vector<32x128xf32> to vector<2x16x128xf32>
      %c0_71 = arith.constant 0 : index
      %c0_72 = arith.constant 0 : index
      %142 = vector.load %arg4[%c0_71, %c0_72] : memref<16x128xf32, #tpu.memory_space<vmem>>, vector<16x128xf32>
      %143 = vector.shape_cast %142 : vector<16x128xf32> to vector<1x16x128xf32>
      %144 = vector.broadcast %143 : vector<1x16x128xf32> to vector<2x16x128xf32>
      %145 = arith.addf %141, %144 : vector<2x16x128xf32>
      %146 = vector.shape_cast %145 : vector<2x16x128xf32> to vector<32x128xf32>
      %c0_73 = arith.constant 0 : index
      %c0_74 = arith.constant 0 : index
      %147 = vector.load %arg32[%c0_73, %c0_74] : memref<32x128xf32, #tpu.memory_space<vmem>>, vector<32x128xf32>
      tpu.vector_store %arg32[%c0_73, %c0_74], %146 {strides = array<i32>} : memref<32x128xf32, #tpu.memory_space<vmem>>, vector<32x128xf32>,
      %c0_75 = arith.constant 0 : index
      %c0_76 = arith.constant 0 : index
      %148 = vector.load %arg6[%c0_75, %c0_76] : memref<48x256xbf16, #tpu.memory_space<vmem>>, vector<48x256xbf16>
      %cst_77 = arith.constant dense<0.000000e+00> : vector<32x256xf32>
      %149 = tpu.matmul %135, %148, %cst_77 {dimension_numbers = #tpu.dot_dimension_numbers<[1], [0], [0], [1], [0, 0, 1, 1], [], []>} : vector<32x48xbf16>, vector<48x256xbf16>, vector<32x256xf32> -> vector<32x256xf32>
      %c0_78 = arith.constant 0 : index
      %c0_79 = arith.constant 0 : index
      %150 = vector.load %arg7[%c0_78, %c0_79] : memref<1x256xf32, #tpu.memory_space<vmem>>, vector<1x256xf32>
      %151 = vector.broadcast %150 : vector<1x256xf32> to vector<32x256xf32>
      %152 = arith.addf %149, %151 : vector<32x256xf32>
      %153 = arith.negf %152 : vector<32x256xf32>
      %154 = math.exp %153 : vector<32x256xf32>
      %cst_80 = arith.constant 1.000000e+00 : f32
      %155 = vector.broadcast %cst_80 : f32 to vector<32x256xf32>
      %156 = arith.addf %155, %154 : vector<32x256xf32>
      %157 = arith.divf %155, %156 : vector<32x256xf32>
      %158 = arith.mulf %152, %157 : vector<32x256xf32>
      %159 = vector.shape_cast %158 : vector<32x256xf32> to vector<2x16x256xf32>
      %cst_81 = arith.constant dense<0.000000e+00> : vector<2x256xf32>
      %160 = vector.multi_reduction <add>, %159, %cst_81 [1] : vector<2x16x256xf32> to vector<2x256xf32>
      %cst_82 = arith.constant 1.600000e+01 : f32
      %161 = vector.broadcast %cst_82 : f32 to vector<2x256xf32>
      %162 = arith.divf %160, %161 : vector<2x256xf32>
      %163 = arith.truncf %162 : vector<2x256xf32> to vector<2x256xbf16>
      %c0_83 = arith.constant 0 : index
      %c0_84 = arith.constant 0 : index
      %164 = vector.load %arg8[%c0_83, %c0_84] : memref<256x1536xbf16, #tpu.memory_space<vmem>>, vector<256x1536xbf16>
      %cst_85 = arith.constant dense<0.000000e+00> : vector<2x1536xf32>
      %165 = tpu.matmul %163, %164, %cst_85 {dimension_numbers = #tpu.dot_dimension_numbers<[1], [0], [0], [1], [0, 0, 1, 1], [], []>} : vector<2x256xbf16>, vector<256x1536xbf16>, vector<2x1536xf32> -> vector<2x1536xf32>
      %c0_86 = arith.constant 0 : index
      %c0_87 = arith.constant 0 : index
      %166 = vector.load %arg9[%c0_86, %c0_87] : memref<1x1536xf32, #tpu.memory_space<vmem>>, vector<1x1536xf32>
      %167 = vector.broadcast %166 : vector<1x1536xf32> to vector<2x1536xf32>
      %168 = arith.addf %165, %167 : vector<2x1536xf32>
      %cst_88 = arith.constant -1.000000e+04 : f32
      %cst_89 = arith.constant 1.000000e+04 : f32
      %169 = vector.broadcast %cst_88 : f32 to vector<2x1536xf32>
      %170 = arith.maximumf %169, %168 : vector<2x1536xf32>
      %171 = vector.broadcast %cst_89 : f32 to vector<2x1536xf32>
      %172 = arith.minimumf %171, %170 : vector<2x1536xf32>
      %c0_90 = arith.constant 0 : index
      %c0_91 = arith.constant 0 : index
      %173 = vector.load %arg33[%c0_90, %c0_91] : memref<2x1536xf32, #tpu.memory_space<vmem>>, vector<2x1536xf32>
      tpu.vector_store %arg33[%c0_90, %c0_91], %172 {strides = array<i32>} : memref<2x1536xf32, #tpu.memory_space<vmem>>, vector<2x1536xf32>,
    } else {
    }
    %c0 = arith.constant 0 : index
    %c0_1 = arith.constant 0 : index
    %3 = vector.load %arg32[%c0, %c0_1] : memref<32x128xf32, #tpu.memory_space<vmem>>, vector<32x128xf32>
    %4 = arith.truncf %3 : vector<32x128xf32> to vector<32x128xbf16>
    %c0_2 = arith.constant 0 : index
    %c0_3 = arith.constant 0 : index
    %c0_4 = arith.constant 0 : index
    %5 = vector.load %arg10[%c0_2, %c0_3, %c0_4] : memref<1x128x384xbf16, #tpu.memory_space<vmem>>, vector<1x128x384xbf16>
    %6 = vector.shape_cast %5 : vector<1x128x384xbf16> to vector<128x384xbf16>
    %cst = arith.constant dense<0.000000e+00> : vector<32x384xf32>
    %7 = tpu.matmul %4, %6, %cst {dimension_numbers = #tpu.dot_dimension_numbers<[1], [0], [0], [1], [0, 0, 1, 1], [], []>} : vector<32x128xbf16>, vector<128x384xbf16>, vector<32x384xf32> -> vector<32x384xf32>
    %c0_5 = arith.constant 0 : index
    %c0_6 = arith.constant 0 : index
    %c0_7 = arith.constant 0 : index
    %8 = vector.load %arg11[%c0_5, %c0_6, %c0_7] : memref<1x1x384xf32, #tpu.memory_space<vmem>>, vector<1x1x384xf32>
    %9 = vector.shape_cast %8 : vector<1x1x384xf32> to vector<1x384xf32>
    %10 = vector.broadcast %9 : vector<1x384xf32> to vector<32x384xf32>
    %11 = arith.addf %7, %10 : vector<32x384xf32>
    %12 = vector.extract_strided_slice %11 {offsets = [0, 0], sizes = [32, 128], strides = [1, 1]} : vector<32x384xf32> to vector<32x128xf32>
    %13 = vector.shape_cast %12 : vector<32x128xf32> to vector<2x16x128xf32>
    %14 = vector.extract_strided_slice %11 {offsets = [0, 128], sizes = [32, 128], strides = [1, 1]} : vector<32x384xf32> to vector<32x128xf32>
    %15 = vector.shape_cast %14 : vector<32x128xf32> to vector<2x16x128xf32>
    %16 = vector.extract_strided_slice %11 {offsets = [0, 256], sizes = [32, 128], strides = [1, 1]} : vector<32x384xf32> to vector<32x128xf32>
    %17 = vector.shape_cast %16 : vector<32x128xf32> to vector<2x16x128xf32>
    %18 = vector.shape_cast %13 : vector<2x16x128xf32> to vector<2x1x16x128xf32>
    %19 = vector.shape_cast %15 : vector<2x16x128xf32> to vector<1x2x16x128xf32>
    %20 = vector.broadcast %18 : vector<2x1x16x128xf32> to vector<2x2x16x128xf32>
    %21 = vector.broadcast %19 : vector<1x2x16x128xf32> to vector<2x2x16x128xf32>
    %22 = arith.mulf %20, %21 : vector<2x2x16x128xf32>
    %23 = vector.shape_cast %22 : vector<2x2x16x128xf32> to vector<64x128xf32>
    %24 = arith.truncf %23 : vector<64x128xf32> to vector<64x128xbf16>
    %c0_8 = arith.constant 0 : index
    %c0_9 = arith.constant 0 : index
    %25 = vector.load %arg5[%c0_8, %c0_9] : memref<128x128xbf16, #tpu.memory_space<vmem>>, vector<128x128xbf16>
    %cst_10 = arith.constant dense<0.000000e+00> : vector<64x128xf32>
    %26 = tpu.matmul %24, %25, %cst_10 {dimension_numbers = #tpu.dot_dimension_numbers<[1], [0], [0], [1], [0, 0, 1, 1], [], []>} : vector<64x128xbf16>, vector<128x128xbf16>, vector<64x128xf32> -> vector<64x128xf32>
    %27 = vector.shape_cast %26 : vector<64x128xf32> to vector<2x2x16x128xf32>
    %cst_11 = arith.constant dense<0xFF800000> : vector<2x16x128xf32>
    %28 = vector.multi_reduction <maximumf>, %27, %cst_11 [1] : vector<2x2x16x128xf32> to vector<2x16x128xf32>
    %29 = vector.shape_cast %28 : vector<2x16x128xf32> to vector<2x1x16x128xf32>
    %30 = vector.broadcast %29 : vector<2x1x16x128xf32> to vector<2x2x16x128xf32>
    %31 = arith.subf %27, %30 : vector<2x2x16x128xf32>
    %32 = math.exp %31 : vector<2x2x16x128xf32>
    %cst_12 = arith.constant dense<0.000000e+00> : vector<2x16x128xf32>
    %33 = vector.multi_reduction <add>, %32, %cst_12 [1] : vector<2x2x16x128xf32> to vector<2x16x128xf32>
    %34 = vector.shape_cast %17 : vector<2x16x128xf32> to vector<1x2x16x128xf32>
    %35 = vector.broadcast %34 : vector<1x2x16x128xf32> to vector<2x2x16x128xf32>
    %36 = arith.mulf %32, %35 : vector<2x2x16x128xf32>
    %cst_13 = arith.constant dense<0.000000e+00> : vector<2x16x128xf32>
    %37 = vector.multi_reduction <add>, %36, %cst_13 [1] : vector<2x2x16x128xf32> to vector<2x16x128xf32>
    %38 = arith.divf %37, %33 : vector<2x16x128xf32>
    %39 = vector.shape_cast %38 : vector<2x16x128xf32> to vector<32x128xf32>
    %40 = arith.truncf %39 : vector<32x128xf32> to vector<32x128xbf16>
    %c0_14 = arith.constant 0 : index
    %c0_15 = arith.constant 0 : index
    %c0_16 = arith.constant 0 : index
    %41 = vector.load %arg12[%c0_14, %c0_15, %c0_16] : memref<1x128x128xbf16, #tpu.memory_space<vmem>>, vector<1x128x128xbf16>
    %42 = vector.shape_cast %41 : vector<1x128x128xbf16> to vector<128x128xbf16>
    %cst_17 = arith.constant dense<0.000000e+00> : vector<32x128xf32>
    %43 = tpu.matmul %40, %42, %cst_17 {dimension_numbers = #tpu.dot_dimension_numbers<[1], [0], [0], [1], [0, 0, 1, 1], [], []>} : vector<32x128xbf16>, vector<128x128xbf16>, vector<32x128xf32> -> vector<32x128xf32>
    %c0_18 = arith.constant 0 : index
    %c0_19 = arith.constant 0 : index
    %c0_20 = arith.constant 0 : index
    %44 = vector.load %arg13[%c0_18, %c0_19, %c0_20] : memref<1x1x128xf32, #tpu.memory_space<vmem>>, vector<1x1x128xf32>
    %45 = vector.shape_cast %44 : vector<1x1x128xf32> to vector<1x128xf32>
    %46 = vector.broadcast %45 : vector<1x128xf32> to vector<32x128xf32>
    %47 = arith.addf %43, %46 : vector<32x128xf32>
    %48 = arith.addf %3, %47 : vector<32x128xf32>
    %c0_21 = arith.constant 0 : index
    %c0_22 = arith.constant 0 : index
    %c0_23 = arith.constant 0 : index
    %49 = vector.load %arg14[%c0_21, %c0_22, %c0_23] : memref<1x1x128xf32, #tpu.memory_space<vmem>>, vector<1x1x128xf32>
    %50 = vector.shape_cast %49 : vector<1x1x128xf32> to vector<1x128xf32>
    %c0_24 = arith.constant 0 : index
    %c0_25 = arith.constant 0 : index
    %c0_26 = arith.constant 0 : index
    %51 = vector.load %arg15[%c0_24, %c0_25, %c0_26] : memref<1x1x128xf32, #tpu.memory_space<vmem>>, vector<1x1x128xf32>
    %52 = vector.shape_cast %51 : vector<1x1x128xf32> to vector<1x128xf32>
    %cst_27 = arith.constant dense<0.000000e+00> : vector<32xf32>
    %53 = vector.multi_reduction <add>, %48, %cst_27 [1] : vector<32x128xf32> to vector<32xf32>
    %54 = vector.shape_cast %53 : vector<32xf32> to vector<32x1xf32>
    %cst_28 = arith.constant 1.280000e+02 : f32
    %55 = vector.broadcast %cst_28 : f32 to vector<32x1xf32>
    %56 = arith.divf %54, %55 : vector<32x1xf32>
    %57 = vector.broadcast %56 : vector<32x1xf32> to vector<32x128xf32>
    %58 = arith.subf %48, %57 : vector<32x128xf32>
    %59 = arith.mulf %58, %58 : vector<32x128xf32>
    %cst_29 = arith.constant dense<0.000000e+00> : vector<32xf32>
    %60 = vector.multi_reduction <add>, %59, %cst_29 [1] : vector<32x128xf32> to vector<32xf32>
    %61 = vector.shape_cast %60 : vector<32xf32> to vector<32x1xf32>
    %cst_30 = arith.constant 1.280000e+02 : f32
    %62 = vector.broadcast %cst_30 : f32 to vector<32x1xf32>
    %63 = arith.divf %61, %62 : vector<32x1xf32>
    %cst_31 = arith.constant 9.99999974E-6 : f32
    %64 = vector.broadcast %cst_31 : f32 to vector<32x1xf32>
    %65 = arith.addf %63, %64 : vector<32x1xf32>
    %66 = math.rsqrt %65 : vector<32x1xf32>
    %67 = vector.broadcast %66 : vector<32x1xf32> to vector<32x128xf32>
    %68 = arith.mulf %58, %67 : vector<32x128xf32>
    %69 = vector.broadcast %50 : vector<1x128xf32> to vector<32x128xf32>
    %70 = arith.mulf %68, %69 : vector<32x128xf32>
    %71 = vector.broadcast %52 : vector<1x128xf32> to vector<32x128xf32>
    %72 = arith.addf %70, %71 : vector<32x128xf32>
    %73 = arith.truncf %72 : vector<32x128xf32> to vector<32x128xbf16>
    %c0_32 = arith.constant 0 : index
    %c0_33 = arith.constant 0 : index
    %c0_34 = arith.constant 0 : index
    %74 = vector.load %arg16[%c0_32, %c0_33, %c0_34] : memref<1x128x512xbf16, #tpu.memory_space<vmem>>, vector<1x128x512xbf16>
    %75 = vector.shape_cast %74 : vector<1x128x512xbf16> to vector<128x512xbf16>
    %cst_35 = arith.constant dense<0.000000e+00> : vector<32x512xf32>
    %76 = tpu.matmul %73, %75, %cst_35 {dimension_numbers = #tpu.dot_dimension_numbers<[1], [0], [0], [1], [0, 0, 1, 1], [], []>} : vector<32x128xbf16>, vector<128x512xbf16>, vector<32x512xf32> -> vector<32x512xf32>
    %c0_36 = arith.constant 0 : index
    %c0_37 = arith.constant 0 : index
    %c0_38 = arith.constant 0 : index
    %77 = vector.load %arg17[%c0_36, %c0_37, %c0_38] : memref<1x1x512xf32, #tpu.memory_space<vmem>>, vector<1x1x512xf32>
    %78 = vector.shape_cast %77 : vector<1x1x512xf32> to vector<1x512xf32>
    %79 = vector.broadcast %78 : vector<1x512xf32> to vector<32x512xf32>
    %80 = arith.addf %76, %79 : vector<32x512xf32>
    %cst_39 = arith.constant 5.000000e-01 : f32
    %81 = vector.broadcast %cst_39 : f32 to vector<32x512xf32>
    %82 = arith.mulf %81, %80 : vector<32x512xf32>
    %cst_40 = arith.constant 0.707106769 : f32
    %83 = vector.broadcast %cst_40 : f32 to vector<32x512xf32>
    %84 = arith.mulf %80, %83 : vector<32x512xf32>
    %85 = math.erf %84 : vector<32x512xf32>
    %cst_41 = arith.constant 1.000000e+00 : f32
    %86 = vector.broadcast %cst_41 : f32 to vector<32x512xf32>
    %87 = arith.addf %86, %85 : vector<32x512xf32>
    %88 = arith.mulf %82, %87 : vector<32x512xf32>
    %89 = arith.truncf %88 : vector<32x512xf32> to vector<32x512xbf16>
    %c0_42 = arith.constant 0 : index
    %c0_43 = arith.constant 0 : index
    %c0_44 = arith.constant 0 : index
    %90 = vector.load %arg18[%c0_42, %c0_43, %c0_44] : memref<1x512x128xbf16, #tpu.memory_space<vmem>>, vector<1x512x128xbf16>
    %91 = vector.shape_cast %90 : vector<1x512x128xbf16> to vector<512x128xbf16>
    %cst_45 = arith.constant dense<0.000000e+00> : vector<32x128xf32>
    %92 = tpu.matmul %89, %91, %cst_45 {dimension_numbers = #tpu.dot_dimension_numbers<[1], [0], [0], [1], [0, 0, 1, 1], [], []>} : vector<32x512xbf16>, vector<512x128xbf16>, vector<32x128xf32> -> vector<32x128xf32>
    %c0_46 = arith.constant 0 : index
    %c0_47 = arith.constant 0 : index
    %c0_48 = arith.constant 0 : index
    %93 = vector.load %arg19[%c0_46, %c0_47, %c0_48] : memref<1x1x128xf32, #tpu.memory_space<vmem>>, vector<1x1x128xf32>
    %94 = vector.shape_cast %93 : vector<1x1x128xf32> to vector<1x128xf32>
    %95 = vector.broadcast %94 : vector<1x128xf32> to vector<32x128xf32>
    %96 = arith.addf %92, %95 : vector<32x128xf32>
    %97 = arith.addf %72, %96 : vector<32x128xf32>
    %c0_49 = arith.constant 0 : index
    %c0_50 = arith.constant 0 : index
    %c0_51 = arith.constant 0 : index
    %98 = vector.load %arg20[%c0_49, %c0_50, %c0_51] : memref<1x1x128xf32, #tpu.memory_space<vmem>>, vector<1x1x128xf32>
    %99 = vector.shape_cast %98 : vector<1x1x128xf32> to vector<1x128xf32>
    %c0_52 = arith.constant 0 : index
    %c0_53 = arith.constant 0 : index
    %c0_54 = arith.constant 0 : index
    %100 = vector.load %arg21[%c0_52, %c0_53, %c0_54] : memref<1x1x128xf32, #tpu.memory_space<vmem>>, vector<1x1x128xf32>
    %101 = vector.shape_cast %100 : vector<1x1x128xf32> to vector<1x128xf32>
    %cst_55 = arith.constant dense<0.000000e+00> : vector<32xf32>
    %102 = vector.multi_reduction <add>, %97, %cst_55 [1] : vector<32x128xf32> to vector<32xf32>
    %103 = vector.shape_cast %102 : vector<32xf32> to vector<32x1xf32>
    %cst_56 = arith.constant 1.280000e+02 : f32
    %104 = vector.broadcast %cst_56 : f32 to vector<32x1xf32>
    %105 = arith.divf %103, %104 : vector<32x1xf32>
    %106 = vector.broadcast %105 : vector<32x1xf32> to vector<32x128xf32>
    %107 = arith.subf %97, %106 : vector<32x128xf32>
    %108 = arith.mulf %107, %107 : vector<32x128xf32>
    %cst_57 = arith.constant dense<0.000000e+00> : vector<32xf32>
    %109 = vector.multi_reduction <add>, %108, %cst_57 [1] : vector<32x128xf32> to vector<32xf32>
    %110 = vector.shape_cast %109 : vector<32xf32> to vector<32x1xf32>
    %cst_58 = arith.constant 1.280000e+02 : f32
    %111 = vector.broadcast %cst_58 : f32 to vector<32x1xf32>
    %112 = arith.divf %110, %111 : vector<32x1xf32>
    %cst_59 = arith.constant 9.99999974E-6 : f32
    %113 = vector.broadcast %cst_59 : f32 to vector<32x1xf32>
    %114 = arith.addf %112, %113 : vector<32x1xf32>
    %115 = math.rsqrt %114 : vector<32x1xf32>
    %116 = vector.broadcast %115 : vector<32x1xf32> to vector<32x128xf32>
    %117 = arith.mulf %107, %116 : vector<32x128xf32>
    %118 = vector.broadcast %99 : vector<1x128xf32> to vector<32x128xf32>
    %119 = arith.mulf %117, %118 : vector<32x128xf32>
    %120 = vector.broadcast %101 : vector<1x128xf32> to vector<32x128xf32>
    %121 = arith.addf %119, %120 : vector<32x128xf32>
    %c0_60 = arith.constant 0 : index
    %c0_61 = arith.constant 0 : index
    %122 = vector.load %arg32[%c0_60, %c0_61] : memref<32x128xf32, #tpu.memory_space<vmem>>, vector<32x128xf32>
    tpu.vector_store %arg32[%c0_60, %c0_61], %121 {strides = array<i32>} : memref<32x128xf32, #tpu.memory_space<vmem>>, vector<32x128xf32>,
    %c5_i32 = arith.constant 5 : i32
    %123 = arith.cmpi eq, %arg0, %c5_i32 : i32
    %124 = arith.extui %123 : i1 to i32
    %c0_i32_62 = arith.constant 0 : i32
    %125 = arith.cmpi ne, %124, %c0_i32_62 : i32
    scf.if %125 {
      %c0_63 = arith.constant 0 : index
      %c0_64 = arith.constant 0 : index
      %126 = vector.load %arg22[%c0_63, %c0_64] : memref<1x128xf32, #tpu.memory_space<vmem>>, vector<1x128xf32>
      %c0_65 = arith.constant 0 : index
      %c0_66 = arith.constant 0 : index
      %127 = vector.load %arg23[%c0_65, %c0_66] : memref<1x128xf32, #tpu.memory_space<vmem>>, vector<1x128xf32>
      %cst_67 = arith.constant dense<0.000000e+00> : vector<32xf32>
      %128 = vector.multi_reduction <add>, %121, %cst_67 [1] : vector<32x128xf32> to vector<32xf32>
      %129 = vector.shape_cast %128 : vector<32xf32> to vector<32x1xf32>
      %cst_68 = arith.constant 1.280000e+02 : f32
      %130 = vector.broadcast %cst_68 : f32 to vector<32x1xf32>
      %131 = arith.divf %129, %130 : vector<32x1xf32>
      %132 = vector.broadcast %131 : vector<32x1xf32> to vector<32x128xf32>
      %133 = arith.subf %121, %132 : vector<32x128xf32>
      %134 = arith.mulf %133, %133 : vector<32x128xf32>
      %cst_69 = arith.constant dense<0.000000e+00> : vector<32xf32>
      %135 = vector.multi_reduction <add>, %134, %cst_69 [1] : vector<32x128xf32> to vector<32xf32>
      %136 = vector.shape_cast %135 : vector<32xf32> to vector<32x1xf32>
      %cst_70 = arith.constant 1.280000e+02 : f32
      %137 = vector.broadcast %cst_70 : f32 to vector<32x1xf32>
      %138 = arith.divf %136, %137 : vector<32x1xf32>
      %cst_71 = arith.constant 9.99999974E-6 : f32
      %139 = vector.broadcast %cst_71 : f32 to vector<32x1xf32>
      %140 = arith.addf %138, %139 : vector<32x1xf32>
      %141 = math.rsqrt %140 : vector<32x1xf32>
      %142 = vector.broadcast %141 : vector<32x1xf32> to vector<32x128xf32>
      %143 = arith.mulf %133, %142 : vector<32x128xf32>
      %144 = vector.broadcast %126 : vector<1x128xf32> to vector<32x128xf32>
      %145 = arith.mulf %143, %144 : vector<32x128xf32>
      %146 = vector.broadcast %127 : vector<1x128xf32> to vector<32x128xf32>
      %147 = arith.addf %145, %146 : vector<32x128xf32>
      %148 = vector.shape_cast %147 : vector<32x128xf32> to vector<2x16x128xf32>
      %cst_72 = arith.constant dense<0.000000e+00> : vector<2x128xf32>
      %149 = vector.multi_reduction <add>, %148, %cst_72 [1] : vector<2x16x128xf32> to vector<2x128xf32>
      %cst_73 = arith.constant 1.600000e+01 : f32
      %150 = vector.broadcast %cst_73 : f32 to vector<2x128xf32>
      %151 = arith.divf %149, %150 : vector<2x128xf32>
      %cst_74 = arith.constant -1.000000e+04 : f32
      %cst_75 = arith.constant 1.000000e+04 : f32
      %152 = vector.broadcast %cst_74 : f32 to vector<2x128xf32>
      %153 = arith.maximumf %152, %151 : vector<2x128xf32>
      %154 = vector.broadcast %cst_75 : f32 to vector<2x128xf32>
      %155 = arith.minimumf %154, %153 : vector<2x128xf32>
      %c0_i32_76 = arith.constant 0 : i32
      %156 = tpu.memref_slice %arg38[%c0_i32_76] : memref<4x!tpu.dma_semaphore, #tpu.memory_space<semaphore_mem>> -> memref<1x!tpu.dma_semaphore, #tpu.memory_space<semaphore_mem>>
      %157 = tpu.memref_squeeze %156 : memref<1x!tpu.dma_semaphore, #tpu.memory_space<semaphore_mem>> -> memref<!tpu.dma_semaphore, #tpu.memory_space<semaphore_mem>>
      tpu.wait_dma2 semaphore(%157 : memref<!tpu.dma_semaphore, #tpu.memory_space<semaphore_mem>>) src(%arg24 : memref<1536x1024xbf16, #tpu.memory_space<any>>) dst(%arg34 : memref<1536x1024xbf16, #tpu.memory_space<vmem>>)
      %c1_i32 = arith.constant 1 : i32
      %158 = tpu.memref_slice %arg38[%c1_i32] : memref<4x!tpu.dma_semaphore, #tpu.memory_space<semaphore_mem>> -> memref<1x!tpu.dma_semaphore, #tpu.memory_space<semaphore_mem>>
      %159 = tpu.memref_squeeze %158 : memref<1x!tpu.dma_semaphore, #tpu.memory_space<semaphore_mem>> -> memref<!tpu.dma_semaphore, #tpu.memory_space<semaphore_mem>>
      tpu.wait_dma2 semaphore(%159 : memref<!tpu.dma_semaphore, #tpu.memory_space<semaphore_mem>>) src(%arg25 : memref<128x1024xbf16, #tpu.memory_space<any>>) dst(%arg35 : memref<128x1024xbf16, #tpu.memory_space<vmem>>)
      %c2_i32 = arith.constant 2 : i32
      %160 = tpu.memref_slice %arg38[%c2_i32] : memref<4x!tpu.dma_semaphore, #tpu.memory_space<semaphore_mem>> -> memref<1x!tpu.dma_semaphore, #tpu.memory_space<semaphore_mem>>
      %161 = tpu.memref_squeeze %160 : memref<1x!tpu.dma_semaphore, #tpu.memory_space<semaphore_mem>> -> memref<!tpu.dma_semaphore, #tpu.memory_space<semaphore_mem>>
      tpu.wait_dma2 semaphore(%161 : memref<!tpu.dma_semaphore, #tpu.memory_space<semaphore_mem>>) src(%arg26 : memref<1024x512xbf16, #tpu.memory_space<any>>) dst(%arg36 : memref<1024x512xbf16, #tpu.memory_space<vmem>>)
      %c3_i32 = arith.constant 3 : i32
      %162 = tpu.memref_slice %arg38[%c3_i32] : memref<4x!tpu.dma_semaphore, #tpu.memory_space<semaphore_mem>> -> memref<1x!tpu.dma_semaphore, #tpu.memory_space<semaphore_mem>>
      %163 = tpu.memref_squeeze %162 : memref<1x!tpu.dma_semaphore, #tpu.memory_space<semaphore_mem>> -> memref<!tpu.dma_semaphore, #tpu.memory_space<semaphore_mem>>
      tpu.wait_dma2 semaphore(%163 : memref<!tpu.dma_semaphore, #tpu.memory_space<semaphore_mem>>) src(%arg27 : memref<512x128xbf16, #tpu.memory_space<any>>) dst(%arg37 : memref<512x128xbf16, #tpu.memory_space<vmem>>)
      %c0_77 = arith.constant 0 : index
      %c0_78 = arith.constant 0 : index
      %164 = vector.load %arg33[%c0_77, %c0_78] : memref<2x1536xf32, #tpu.memory_space<vmem>>, vector<2x1536xf32>
      %165 = arith.truncf %164 : vector<2x1536xf32> to vector<2x1536xbf16>
      %c0_79 = arith.constant 0 : index
      %c0_80 = arith.constant 0 : index
      %166 = vector.load %arg34[%c0_79, %c0_80] : memref<1536x1024xbf16, #tpu.memory_space<vmem>>, vector<1536x1024xbf16>
      %cst_81 = arith.constant dense<0.000000e+00> : vector<2x1024xf32>
      %167 = tpu.matmul %165, %166, %cst_81 {dimension_numbers = #tpu.dot_dimension_numbers<[1], [0], [0], [1], [0, 0, 1, 1], [], []>} : vector<2x1536xbf16>, vector<1536x1024xbf16>, vector<2x1024xf32> -> vector<2x1024xf32>
      %168 = arith.truncf %155 : vector<2x128xf32> to vector<2x128xbf16>
      %c0_82 = arith.constant 0 : index
      %c0_83 = arith.constant 0 : index
      %169 = vector.load %arg35[%c0_82, %c0_83] : memref<128x1024xbf16, #tpu.memory_space<vmem>>, vector<128x1024xbf16>
      %cst_84 = arith.constant dense<0.000000e+00> : vector<2x1024xf32>
      %170 = tpu.matmul %168, %169, %cst_84 {dimension_numbers = #tpu.dot_dimension_numbers<[1], [0], [0], [1], [0, 0, 1, 1], [], []>} : vector<2x128xbf16>, vector<128x1024xbf16>, vector<2x1024xf32> -> vector<2x1024xf32>
      %171 = arith.addf %167, %170 : vector<2x1024xf32>
      %c0_85 = arith.constant 0 : index
      %c0_86 = arith.constant 0 : index
      %172 = vector.load %arg28[%c0_85, %c0_86] : memref<1x1024xf32, #tpu.memory_space<vmem>>, vector<1x1024xf32>
      %173 = vector.broadcast %172 : vector<1x1024xf32> to vector<2x1024xf32>
      %174 = arith.addf %171, %173 : vector<2x1024xf32>
      %cst_87 = arith.constant 0.000000e+00 : f32
      %175 = vector.broadcast %cst_87 : f32 to vector<2x1024xf32>
      %176 = arith.maximumf %174, %175 : vector<2x1024xf32>
      %177 = arith.truncf %176 : vector<2x1024xf32> to vector<2x1024xbf16>
      %c0_88 = arith.constant 0 : index
      %c0_89 = arith.constant 0 : index
      %178 = vector.load %arg36[%c0_88, %c0_89] : memref<1024x512xbf16, #tpu.memory_space<vmem>>, vector<1024x512xbf16>
      %cst_90 = arith.constant dense<0.000000e+00> : vector<2x512xf32>
      %179 = tpu.matmul %177, %178, %cst_90 {dimension_numbers = #tpu.dot_dimension_numbers<[1], [0], [0], [1], [0, 0, 1, 1], [], []>} : vector<2x1024xbf16>, vector<1024x512xbf16>, vector<2x512xf32> -> vector<2x512xf32>
      %c0_91 = arith.constant 0 : index
      %c0_92 = arith.constant 0 : index
      %180 = vector.load %arg29[%c0_91, %c0_92] : memref<1x512xf32, #tpu.memory_space<vmem>>, vector<1x512xf32>
      %181 = vector.broadcast %180 : vector<1x512xf32> to vector<2x512xf32>
      %182 = arith.addf %179, %181 : vector<2x512xf32>
      %cst_93 = arith.constant 0.000000e+00 : f32
      %183 = vector.broadcast %cst_93 : f32 to vector<2x512xf32>
      %184 = arith.maximumf %182, %183 : vector<2x512xf32>
      %185 = arith.truncf %184 : vector<2x512xf32> to vector<2x512xbf16>
      %c0_94 = arith.constant 0 : index
      %c0_95 = arith.constant 0 : index
      %186 = vector.load %arg37[%c0_94, %c0_95] : memref<512x128xbf16, #tpu.memory_space<vmem>>, vector<512x128xbf16>
      %cst_96 = arith.constant dense<0.000000e+00> : vector<2x128xf32>
      %187 = tpu.matmul %185, %186, %cst_96 {dimension_numbers = #tpu.dot_dimension_numbers<[1], [0], [0], [1], [0, 0, 1, 1], [], []>} : vector<2x512xbf16>, vector<512x128xbf16>, vector<2x128xf32> -> vector<2x128xf32>
      %c0_97 = arith.constant 0 : index
      %c0_98 = arith.constant 0 : index
      %188 = vector.load %arg30[%c0_97, %c0_98] : memref<1x128xf32, #tpu.memory_space<vmem>>, vector<1x128xf32>
      %189 = vector.broadcast %188 : vector<1x128xf32> to vector<2x128xf32>
      %190 = arith.addf %187, %189 : vector<2x128xf32>
      %c0_99 = arith.constant 0 : index
      %c0_100 = arith.constant 0 : index
      %191 = vector.load %arg31[%c0_99, %c0_100] : memref<2x128xf32, #tpu.memory_space<vmem>>, vector<2x128xf32>
      tpu.vector_store %arg31[%c0_99, %c0_100], %190 {strides = array<i32>} : memref<2x128xf32, #tpu.memory_space<vmem>>, vector<2x128xf32>,
    } else {
    }
    return
  }
  func.func @transform_0(%arg0: i32) -> (i32, i32) {
    %c0_i32 = arith.constant 0 : i32
    %c0_i32_0 = arith.constant 0 : i32
    %c0_i32_1 = arith.constant 0 : i32
    return %c0_i32, %c0_i32_0 : i32, i32
  }
  func.func @transform_1(%arg0: i32) -> (i32, i32) {
    %c0_i32 = arith.constant 0 : i32
    %c0_i32_0 = arith.constant 0 : i32
    %c0_i32_1 = arith.constant 0 : i32
    return %c0_i32, %c0_i32_0 : i32, i32
  }
  func.func @transform_2(%arg0: i32) -> (i32, i32) {
    %c0_i32 = arith.constant 0 : i32
    %c0_i32_0 = arith.constant 0 : i32
    %c0_i32_1 = arith.constant 0 : i32
    return %c0_i32, %c0_i32_0 : i32, i32
  }
  func.func @transform_3(%arg0: i32) -> (i32, i32) {
    %c0_i32 = arith.constant 0 : i32
    %c0_i32_0 = arith.constant 0 : i32
    %c0_i32_1 = arith.constant 0 : i32
    return %c0_i32, %c0_i32_0 : i32, i32
  }
  func.func @transform_4(%arg0: i32) -> (i32, i32) {
    %c0_i32 = arith.constant 0 : i32
    %c0_i32_0 = arith.constant 0 : i32
    %c0_i32_1 = arith.constant 0 : i32
    return %c0_i32, %c0_i32_0 : i32, i32
  }
  func.func @transform_5(%arg0: i32) -> (i32, i32) {
    %c0_i32 = arith.constant 0 : i32
    %c0_i32_0 = arith.constant 0 : i32
    %c0_i32_1 = arith.constant 0 : i32
    return %c0_i32, %c0_i32_0 : i32, i32
  }
  func.func @transform_6(%arg0: i32) -> (i32, i32) {
    %c0_i32 = arith.constant 0 : i32
    %c0_i32_0 = arith.constant 0 : i32
    %c0_i32_1 = arith.constant 0 : i32
    return %c0_i32, %c0_i32_0 : i32, i32
  }
  func.func @transform_7(%arg0: i32) -> (i32, i32) {
    %c0_i32 = arith.constant 0 : i32
    %c0_i32_0 = arith.constant 0 : i32
    %c0_i32_1 = arith.constant 0 : i32
    return %c0_i32, %c0_i32_0 : i32, i32
  }
  func.func @transform_8(%arg0: i32) -> (i32, i32) {
    %c0_i32 = arith.constant 0 : i32
    %c0_i32_0 = arith.constant 0 : i32
    %c0_i32_1 = arith.constant 0 : i32
    return %c0_i32, %c0_i32_0 : i32, i32
  }
  func.func @transform_9(%arg0: i32) -> (i32, i32, i32) {
    %c0_i32 = arith.constant 0 : i32
    %c0_i32_0 = arith.constant 0 : i32
    %c0_i32_1 = arith.constant 0 : i32
    return %arg0, %c0_i32, %c0_i32_0 : i32, i32, i32
  }
  func.func @transform_10(%arg0: i32) -> (i32, i32, i32) {
    %c0_i32 = arith.constant 0 : i32
    %c0_i32_0 = arith.constant 0 : i32
    %c0_i32_1 = arith.constant 0 : i32
    return %arg0, %c0_i32, %c0_i32_0 : i32, i32, i32
  }
  func.func @transform_11(%arg0: i32) -> (i32, i32, i32) {
    %c0_i32 = arith.constant 0 : i32
    %c0_i32_0 = arith.constant 0 : i32
    %c0_i32_1 = arith.constant 0 : i32
    return %arg0, %c0_i32, %c0_i32_0 : i32, i32, i32
  }
  func.func @transform_12(%arg0: i32) -> (i32, i32, i32) {
    %c0_i32 = arith.constant 0 : i32
    %c0_i32_0 = arith.constant 0 : i32
    %c0_i32_1 = arith.constant 0 : i32
    return %arg0, %c0_i32, %c0_i32_0 : i32, i32, i32
  }
  func.func @transform_13(%arg0: i32) -> (i32, i32, i32) {
    %c0_i32 = arith.constant 0 : i32
    %c0_i32_0 = arith.constant 0 : i32
    %c0_i32_1 = arith.constant 0 : i32
    return %arg0, %c0_i32, %c0_i32_0 : i32, i32, i32
  }
  func.func @transform_14(%arg0: i32) -> (i32, i32, i32) {
    %c0_i32 = arith.constant 0 : i32
    %c0_i32_0 = arith.constant 0 : i32
    %c0_i32_1 = arith.constant 0 : i32
    return %arg0, %c0_i32, %c0_i32_0 : i32, i32, i32
  }
  func.func @transform_15(%arg0: i32) -> (i32, i32, i32) {
    %c0_i32 = arith.constant 0 : i32
    %c0_i32_0 = arith.constant 0 : i32
    %c0_i32_1 = arith.constant 0 : i32
    return %arg0, %c0_i32, %c0_i32_0 : i32, i32, i32
  }
  func.func @transform_16(%arg0: i32) -> (i32, i32, i32) {
    %c0_i32 = arith.constant 0 : i32
    %c0_i32_0 = arith.constant 0 : i32
    %c0_i32_1 = arith.constant 0 : i32
    return %arg0, %c0_i32, %c0_i32_0 : i32, i32, i32
  }
  func.func @transform_17(%arg0: i32) -> (i32, i32, i32) {
    %c0_i32 = arith.constant 0 : i32
    %c0_i32_0 = arith.constant 0 : i32
    %c0_i32_1 = arith.constant 0 : i32
    return %arg0, %c0_i32, %c0_i32_0 : i32, i32, i32
  }
  func.func @transform_18(%arg0: i32) -> (i32, i32, i32) {
    %c0_i32 = arith.constant 0 : i32
    %c0_i32_0 = arith.constant 0 : i32
    %c0_i32_1 = arith.constant 0 : i32
    return %arg0, %c0_i32, %c0_i32_0 : i32, i32, i32
  }
  func.func @transform_19(%arg0: i32) -> (i32, i32, i32) {
    %c0_i32 = arith.constant 0 : i32
    %c0_i32_0 = arith.constant 0 : i32
    %c0_i32_1 = arith.constant 0 : i32
    return %arg0, %c0_i32, %c0_i32_0 : i32, i32, i32
  }
  func.func @transform_20(%arg0: i32) -> (i32, i32, i32) {
    %c0_i32 = arith.constant 0 : i32
    %c0_i32_0 = arith.constant 0 : i32
    %c0_i32_1 = arith.constant 0 : i32
    return %arg0, %c0_i32, %c0_i32_0 : i32, i32, i32
  }
  func.func @transform_21(%arg0: i32) -> (i32, i32) {
    %c0_i32 = arith.constant 0 : i32
    %c0_i32_0 = arith.constant 0 : i32
    %c0_i32_1 = arith.constant 0 : i32
    return %c0_i32, %c0_i32_0 : i32, i32
  }
  func.func @transform_22(%arg0: i32) -> (i32, i32) {
    %c0_i32 = arith.constant 0 : i32
    %c0_i32_0 = arith.constant 0 : i32
    %c0_i32_1 = arith.constant 0 : i32
    return %c0_i32, %c0_i32_0 : i32, i32
  }
  func.func @transform_27(%arg0: i32) -> (i32, i32) {
    %c0_i32 = arith.constant 0 : i32
    %c0_i32_0 = arith.constant 0 : i32
    %c0_i32_1 = arith.constant 0 : i32
    return %c0_i32, %c0_i32_0 : i32, i32
  }
  func.func @transform_28(%arg0: i32) -> (i32, i32) {
    %c0_i32 = arith.constant 0 : i32
    %c0_i32_0 = arith.constant 0 : i32
    %c0_i32_1 = arith.constant 0 : i32
    return %c0_i32, %c0_i32_0 : i32, i32
  }
  func.func @transform_29(%arg0: i32) -> (i32, i32) {
    %c0_i32 = arith.constant 0 : i32
    %c0_i32_0 = arith.constant 0 : i32
    %c0_i32_1 = arith.constant 0 : i32
    return %c0_i32, %c0_i32_0 : i32, i32
  }
  func.func @transform_30(%arg0: i32) -> (i32, i32) {
    %c0_i32 = arith.constant 0 : i32
    %c0_i32_0 = arith.constant 0 : i32
    %c0_i32_1 = arith.constant 0 : i32
    return %c0_i32, %c0_i32_0 : i32, i32
  }
}

</mosaic_0001>

<bundles_post_ra>
// kernel: _forward.1
= control target key start
LH: loop header
LB: loop body
LE: loop exit
PB: predicated region body
PF: predicated region fallthrough
CT: control target
= control target key end

     0   :  { %s10652_s6 = smov 1   ;;  %s10653_s10 = smov 2   ;;  %s12074_s0 = inlined_call_operand.smem [shape: u32[31], index: -1, kind: input, shape index: {}] }
   0x1   :  { %s10749_s5 = sld [smem:[%s12074_s0]]   ;;  %s10654_s14 = smov 3  }
   0x2   :  { %s10754_s9 = sld [smem:[%s12074_s0 + %s10652_s6]]   ;;  %s10655_s18 = smov 4  }
   0x3   :  { %s10759_s13 = sld [smem:[%s12074_s0 + %s10653_s10]]   ;;  %s10656_s22 = smov 5  }
   0x4   :  { %s10764_s17 = sld [smem:[%s12074_s0 + %s10654_s14]]   ;;  %s10657_s26 = smov 6  }
   0x5   :  { %s10769_s21 = sld [smem:[%s12074_s0 + %s10655_s18]]   ;;  %s10658_s30 = smov 7  }
   0x6   :  { %s10774_s25 = sld [smem:[%s12074_s0 + %s10656_s22]]   ;;  %s10659_s4 = smov 8  }
   0x7   :  { %12146 = sst [smem:[#allocation68_spill]] %s10749_s5  ;;  %s10660_s10 = smov 9  }
   0x8   :  { %12147 = sst [smem:[#allocation69_spill]] %s10754_s9  ;;  %s10661_s15 = smov 10  }
   0x9   :  { %12148 = sst [smem:[#allocation70_spill]] %s10759_s13  ;;  %s10662_s20 = smov 11  }
   0xa   :  { %12149 = sst [smem:[#allocation71_spill]] %s10764_s17  ;;  %s10664_s1 = smov 13  }
   0xb   :  { %s10779_s29 = sld [smem:[%s12074_s0 + %s10657_s26]]   ;;  %s10663_s26 = smov 12  }
   0xc   :  { %12150 = sst [smem:[#allocation72_spill]] %s10774_s25  ;;  %s10665_s7 = smov 14  }
   0xd   :  { %s10784_s3 = sld [smem:[%s12074_s0 + %s10658_s30]]   ;;  %s10667_s22 = smov 16  }
   0xe   :  { %s10789_s8 = sld [smem:[%s12074_s0 + %s10659_s4]]   ;;  %s10668_s28 = smov 17  }
   0xf   :  { %s10794_s14 = sld [smem:[%s12074_s0 + %s10660_s10]]  }
  0x10   :  { %s10799_s19 = sld [smem:[%s12074_s0 + %s10661_s15]]   ;;  %s10666_s15 = smov 15  }
  0x11   :  { %12151 = sst [smem:[#allocation73_spill]] %s10779_s29 }
  0x12   :  { %s10804_s24 = sld [smem:[%s12074_s0 + %s10662_s20]]  }
  0x13   :  { %12152 = sst [smem:[#allocation74_spill]] %s10784_s3 }
  0x14   :  { %12153 = sst [smem:[#allocation75_spill]] %s10789_s8 }
  0x15   :  { %12154 = sst [smem:[#allocation76_spill]] %s10794_s14 }
  0x16   :  { %12155 = sst [smem:[#allocation77_spill]] %s10799_s19 }
  0x17   :  { %s10809_s30 = sld [smem:[%s12074_s0 + %s10663_s26]]  }
  0x18   :  { %s10814_s6 = sld [smem:[%s12074_s0 + %s10664_s1]]  }
  0x19   :  { %s10819_s12 = sld [smem:[%s12074_s0 + %s10665_s7]]   ;;  %s10669_s7 = smov 18  }
  0x1a   :  { %s10824_s20 = sld [smem:[%s12074_s0 + %s10666_s15]]   ;;  %s10670_s15 = smov 19  }
  0x1b   :  { %s10829_s27 = sld [smem:[%s12074_s0 + %s10667_s22]]   ;;  %s10671_s22 = smov 20  }
  0x1c   :  { %s10834_s4 = sld [smem:[%s12074_s0 + %s10668_s28]]   ;;  %s10672_s28 = smov 21  }
  0x1d   :  { %s10839_s5 = sld [smem:[%s12074_s0 + %s10669_s7]]   ;;  %s10673_s7 = smov 22  }
  0x1e   :  { %12156 = sst [smem:[#allocation78_spill]] %s10814_s6 }
  0x1f   :  { %12157 = sst [smem:[#allocation79_spill]] %s10819_s12 }
  0x20   :  { %12158 = sst [smem:[#allocation80_spill]] %s10824_s20 }
  0x21   :  { %s10844_s8 = sld [smem:[%s12074_s0 + %s10670_s15]]   ;;  %s10674_s15 = smov 23  }
  0x22   :  { %12159 = sst [smem:[#allocation81_spill]] %s10834_s4 }
  0x23   :  { %12160 = sst [smem:[#allocation82_spill]] %s10839_s5 }
  0x24   :  { %s10849_s3 = sld [smem:[%s12074_s0 + %s10671_s22]]   ;;  %s10675_s22 = smov 24  }
  0x25   :  { %s10854_s25 = sld [smem:[%s12074_s0 + %s10672_s28]]   ;;  %s10676_s28 = smov 25  }
  0x26   :  { %s10859_s17 = sld [smem:[%s12074_s0 + %s10673_s7]]   ;;  %s10677_s7 = smov 26  }
  0x27   :  { %12161 = sst [smem:[#allocation83_spill]] %s10844_s8 }
  0x28   :  { %s10864_s8 = sld [smem:[%s12074_s0 + %s10674_s15]]   ;;  %s10678_s15 = smov 27  }
  0x2a   :  { %12162 = sst [smem:[#allocation84_spill]] %s10849_s3 }
  0x2b   :  { %12163 = sst [smem:[#allocation85_spill]] %s10854_s25 }
  0x2c   :  { %12164 = sst [smem:[#allocation86_spill]] %s10859_s17 }
  0x2d   :  { %s10869_s3 = sld [smem:[%s12074_s0 + %s10675_s22]]   ;;  %s10679_s22 = smov 28  }
  0x2e   :  { %12165 = sst [smem:[#allocation87_spill]] %s10864_s8 }
  0x2f   :  { %s10874_s25 = sld [smem:[%s12074_s0 + %s10676_s28]]   ;;  %s10680_s28 = smov 29  }
  0x30   :  { %s10879_s17 = sld [smem:[%s12074_s0 + %s10677_s7]]   ;;  %s10681_s7 = smov 30  }
  0x31   :  { %s10884_s8 = sld [smem:[%s12074_s0 + %s10678_s15]]  }
  0x33   :  { %12166 = sst [smem:[#allocation88_spill]] %s10869_s3 }
  0x34   :  { %s10889_s3 = sld [smem:[%s12074_s0 + %s10679_s22]]  }
  0x35   :  { %12167 = sst [smem:[#allocation89_spill]] %s10874_s25 }
  0x36   :  { %12168 = sst [smem:[#allocation90_spill]] %s10879_s17 }
  0x37   :  { %12169 = sst [smem:[#allocation91_spill]] %s10884_s8 }
  0x38   :  { %s10894_s25 = sld [smem:[%s12074_s0 + %s10680_s28]]  }
  0x39   :  { %s10899_s17 = sld [smem:[%s12074_s0 + %s10681_s7]]  }
  0x3a   :  { %12170 = sst [smem:[#allocation92_spill]] %s10889_s3 }
  0x3e   :  { %12171 = sst [smem:[#allocation93_spill]] %s10894_s25 }
  0x3f   :  { %12172 = sst [smem:[#allocation94_spill]] %s10899_s17 }
  0x40   :  { %66 = vsyncpa [#allocation10], 0 }
  0x41   :  { %67 = vsyncpa [#allocation13], 0 }
  0x42   :  { %68 = vsyncpa [#allocation16], 0 }
  0x43   :  { %69 = vsyncpa [#allocation19], 0 }
  0x44   :  { %70 = vsyncpa [#allocation22], 0 }
  0x45   :  { %71 = vsyncpa [#allocation40], 0 }
  0x46   :  { %72 = vsyncpa [#allocation11], 0  ;;  %s10901_s15 = smov 0   ;;  %s10903_s16 = smov 0  }
  0x47   :  { %s10905_s18 = smov 0   ;;  %s10907_s22 = smov 0  }
  0x48 LB: > { %s12173_s20 = sld [smem:[#allocation80_spill]]  ;;  %s12174_s19 = sld [smem:[#allocation77_spill]]  ;;  %s10638_s15 = sphi %s10901_s15, %s12277_s15   ;;  %s10650_s22 = sphi %s10907_s22, %s12276_s22   ;;  %s10646_s18 = sphi %s10905_s18, %s12279_s18   ;;  %s10642_s16 = sphi %s10903_s16, %s12278_s16  }
  0x49   : > { %s12175_s13 = sld [smem:[#allocation70_spill]]  ;;  %s12176_s12 = sld [smem:[#allocation79_spill]] }
  0x4a   : > { %s12177_s5 = sld [smem:[#allocation82_spill]]  ;;  %s12178_s4 = sld [smem:[#allocation81_spill]] }
  0x4b   : > { %s12179_s6 = sld [smem:[#allocation78_spill]]  ;;  %s12180_s14 = sld [smem:[#allocation76_spill]] }
  0x4c   : > { %s12181_s9 = sld [smem:[#allocation69_spill]]  ;;  %12182 = sst [smem:[#allocation95_spill]] %s10642_s16 }
  0x4d   : > { %12183 = sst [smem:[#allocation96_spill]] %s10646_s18  ;;  %s10682_s0 = smov [#allocation9]  }
  0x4e   : > { %s725_s23 = sshll.u32 %s10682_s0, 4  ;;  %s10922_s26 = sadd.s32 4294967295, %s10650_s22   ;;  %s726_s23 = int_to_ptr.vmem [resolvable:$true] %s725_s23 }
  0x4f   : > { %12184 = sst [smem:[#allocation97_spill]] %s10922_s26  ;;  %p8294_p0 = scmp.ge.s32.totalorder %s10650_s22, 1 }
  0x50   : > { %p12085_p1 = scmp.eq.s32.totalorder %s10922_s26, 0  ;;  %p710_p2 = scmp.lt.s32.totalorder %s10650_s22, 7 }
  0x51   : > { %s10941_s2 = sadd.s32 1, %s10650_s22  }
  0x52   : > { %p10928_p4 = pnand %p8294_p0, %p710_p2  ;;  %12188 = sst [smem:[#allocation99_spill]] %s10941_s2 }
  0x53   : > { %s9792_s7 = scalar_lea.hbm %s12181_s9, 384 }
  0x54   : > { %s12185_s28 = scalar_select %p10928_p4, 1, 0 }
  0x55   : > { %p9033_p5 = pneg %p10928_p4  ;;  %p9793_p7 = scmp.ne.s32.totalorder %s12181_s9, %s9792_s7 }
  0x56   : > { %12186 = sst [smem:[#allocation98_spill]] %s12185_s28  ;;  %p9799_p11 = scmp.lt.u32.totalorder %s9792_s7, %s12181_s9 }
  0x57   : > { %p10936_p6 = pnand %p9033_p5, %p12085_p1 }
  0x59   : > { %s12187_s1 = scalar_select %p10936_p6, 1, 0 }
  0x5a   : > { %p10947_p8 = pneg %p10936_p6 }
  0x5c   : > { %s12189_s10 = scalar_select %p10947_p8, 1, 0 }
  0x5d   : > { %p9795_p9 = pnand %p10947_p8, %p9793_p7 }
  0x5f   : > { %p9796_p10 = pneg %p9795_p9 }
  0x61   : > { %p9801_p12 = pnand %p9799_p11, %p9796_p10 }
  0x63   : > { %9804 = shalt.err (!%p9801_p12)
}
  0x64   : > { %s9805_s11 = scalar_lea.vmem %s726_s23, 384  ;;  %p9813_p5 = scmp.lt.s32.totalorder %s726_s23, %s726_s23 }
  0x65   : > { %p9806_p13 = scmp.ne.s32.totalorder %s726_s23, %s9805_s11  ;;  %p9814_p3 = scmp.lt.s32.totalorder %s9805_s11, %s9805_s11 }
  0x67   : > { %p9808_p0 = pnand %p9806_p13, %p10947_p8  ;;  %p9815_p1 = por %p9814_p3, %p9813_p5 }
  0x69   : > { %p9809_p2 = pneg %p9808_p0 }
  0x6b   : > { %p9816_p4 = pnand %p9815_p1, %p9809_p2 }
  0x6d   : > { %9819 = shalt.err (!%p9816_p4)
}
  0x6e   : > { %s12091_s0 = smov 64   ;;  %s12093_s7 = smov 4  }
  0x6f   : > { %9036 = dma.hbm_to_vmem [thread:$0]  (!%p10936_p6), %s12181_s9, 384, %s726_s23, [#allocation10], %s12091_s0, %s12091_s0, %s12093_s7  }
  0x70   : > { %s271_s11 = ssub.s32 %s10650_s22, %s10941_s2  ;;  %s274_s17 = sadd.s32 1, %s10646_s18 }
  0x71   : > { %p272_p1 = scmp.eq.s32.totalorder %s271_s11, 0  ;;  %p281_p3 = scmp.ne.s32.totalorder %s10646_s18, %s10642_s16 }
  0x72   : > { %p282_p4 = scmp.eq.s32.totalorder %s10650_s22, 0  ;;  %p287_p7 = scmp.ne.s32.totalorder %s10642_s16, %s10638_s15 }
  0x73   : > { %s10971_s28 = scalar_select %p272_p1, %s10646_s18, %s274_s17  }
  0x74   : > { %p283_p9 = por %p282_p4, %p281_p3  ;;  %p12191_p10 = scmp.eq.s32.totalorder %s10922_s26, 0 }
  0x75   : > { %12190 = sst [smem:[#allocation100_spill]] %s10971_s28  ;;  %p9123_p12 = scmp.lt.s32.totalorder %s10650_s22, 6 }
  0x76   : > { %p10975_p11 = por %p12191_p10, %p287_p7  ;;  %s879_s3 = sand.u32 1, %s10650_s22  }
  0x77   : > { %s10982_s23 = sand.u32 1, %s10646_s18   ;;  %p10985_p13 = pnand %p9123_p12, %p283_p9 }
  0x78   : > { %s12192_s25 = scalar_select %p10975_p11, 1, 0 }
  0x79   : > { %s8947_s0 = smul.u32 192, %s10982_s23  ;;  %s10995_s28 = scalar_lea.sflag [#allocation10], %s879_s3 }
  0x7a   : > { %12193 = sst [smem:[#allocation101_spill]] %s12192_s25  ;;  %s8948_s17 = smul.u32 3072, %s10650_s22 }
  0x7b   : > { %s12194_s11 = scalar_select %p10985_p13, 1, 0 }
  0x7c   : > { %s10991_s15 = scalar_lea.hbm %s12180_s14, %s8948_s17  ;;  %s883_s7 = scalar_lea.vmem [#allocation23], %s8947_s0 }
  0x7d   : > { %s890_s9 = sshll.u32 %s883_s7, 4  ;;  %s9820_s18 = scalar_lea.hbm %s10991_s15, 3072  ;;  %s10993_s9 = int_to_ptr.vmem [resolvable:$true] %s890_s9 }
  0x7e   : > { %p9821_p0 = scmp.ne.s32.totalorder %s10991_s15, %s9820_s18  ;;  %p11001_p2 = pneg %p10985_p13 }
  0x7f   : > { %s9825_s17 = scalar_lea.hbm %s12180_s14, 18432  ;;  %p9826_p3 = scmp.lt.u32.totalorder %s10991_s15, %s12180_s14 }
  0x80   : > { %s12195_s2 = scalar_select %p11001_p2, 1, 0 }
  0x81   : > { %p9823_p5 = pnand %p11001_p2, %p9821_p0  ;;  %p9827_p4 = scmp.lt.u32.totalorder %s9825_s17, %s9820_s18 }
  0x82   : > { %p9829_p9 = scmp.lt.u32.totalorder %s9820_s18, %s10991_s15 }
  0x83   : > { %p9824_p1 = pneg %p9823_p5  ;;  %p9828_p7 = por %p9827_p4, %p9826_p3 }
  0x85   : > { %p9830_p10 = por %p9829_p9, %p9828_p7 }
  0x87   : > { %p9831_p12 = pnand %p9830_p10, %p9824_p1 }
  0x89   : > { %9834 = shalt.err (!%p9831_p12)
}
  0x8a   : > { %s9835_s3 = scalar_lea.vmem %s10993_s9, 3072  ;;  %s10685_s0 = smov [#allocation23]  }
  0x8b   : > { %p9836_p11 = scmp.ne.s32.totalorder %s10993_s9, %s9835_s3  ;;  %s9840_s7 = sshll.u32 %s10685_s0, 4  ;;  %s9841_s7 = int_to_ptr.vmem [resolvable:$false] %s9840_s7 }
  0x8c   : > { %s9842_s25 = scalar_lea.vmem %s9841_s7, 6144  ;;  %p9843_p0 = scmp.lt.s32.totalorder %s10993_s9, %s9841_s7 }
  0x8d   : > { %p9838_p6 = pnand %p9836_p11, %p11001_p2  ;;  %p9844_p5 = scmp.lt.s32.totalorder %s9842_s25, %s9835_s3 }
  0x8f   : > { %p9839_p8 = pneg %p9838_p6  ;;  %p9845_p3 = por %p9844_p5, %p9843_p0 }
  0x91   : > { %p9846_p4 = pnand %p9845_p3, %p9839_p8 }
  0x93   : > { %9849 = shalt.err (!%p9846_p4)
}
  0x94   : > { %s10686_s18 = smov 192   ;;  %s10687_s17 = smov 12  }
  0x95   : > { %9076 = dma.hbm_to_vmem [thread:$0]  (!%p10985_p13), %s10991_s15, 3072, %s10993_s9, %s10995_s28, %s10686_s18, %s10686_s18, %s10687_s17  }
  0x96   : > { %s8949_s25 = smul.u32 3, %s10982_s23  ;;  %s8311_s3 = sshll.u32 %s10982_s23, 6 }
  0x97   : > { %s8950_s0 = smul.u32 48, %s10650_s22  ;;  %s8704_s7 = sshll.u32 %s10650_s22, 10 }
  0x98   : > { %s904_s16 = scalar_lea.vmem [#allocation24], %s8949_s25  ;;  %s11029_s8 = scalar_lea.hbm %s10804_s24, %s8704_s7 }
  0x99   : > { %s11026_s14 = scalar_lea.hbm %s12174_s19, %s8950_s0  ;;  %s912_s26 = sshll.u32 %s904_s16, 4  ;;  %s913_s26 = int_to_ptr.vmem [resolvable:$true] %s912_s26 }
  0x9a   : > { %s9850_s29 = scalar_lea.hbm %s11026_s14, 48  ;;  %s9855_s9 = scalar_lea.hbm %s12174_s19, 288 }
  0x9b   : > { %p9851_p6 = scmp.ne.s32.totalorder %s11026_s14, %s9850_s29  ;;  %p9856_p1 = scmp.lt.u32.totalorder %s11026_s14, %s12174_s19 }
  0x9c   : > { %p9857_p7 = scmp.lt.u32.totalorder %s9855_s9, %s9850_s29  ;;  %p9859_p10 = scmp.lt.u32.totalorder %s9850_s29, %s11026_s14 }
  0x9d   : > { %p9853_p8 = pnand %p9851_p6, %p11001_p2 }
  0x9e   : > { %p9858_p9 = por %p9857_p7, %p9856_p1 }
  0x9f   : > { %p9854_p11 = pneg %p9853_p8 }
  0xa0   : > { %p9860_p12 = por %p9859_p10, %p9858_p9 }
  0xa2   : > { %p9861_p0 = pnand %p9860_p12, %p9854_p11 }
  0xa4   : > { %9864 = shalt.err (!%p9861_p0)
}
  0xa5   : > { %s9865_s15 = scalar_lea.vmem %s913_s26, 48  ;;  %s10688_s16 = smov [#allocation24]  }
  0xa6   : > { %p9866_p5 = scmp.ne.s32.totalorder %s913_s26, %s9865_s15  ;;  %s9870_s18 = sshll.u32 %s10688_s16, 4  ;;  %s9871_s18 = int_to_ptr.vmem [resolvable:$false] %s9870_s18 }
  0xa7   : > { %s9872_s17 = scalar_lea.vmem %s9871_s18, 96  ;;  %p9873_p6 = scmp.lt.s32.totalorder %s913_s26, %s9871_s18 }
  0xa8   : > { %p9868_p3 = pnand %p9866_p5, %p11001_p2  ;;  %p9874_p8 = scmp.lt.s32.totalorder %s9872_s17, %s9865_s15 }
  0xaa   : > { %p9869_p4 = pneg %p9868_p3  ;;  %p9875_p13 = por %p9874_p8, %p9873_p6 }
  0xac   : > { %p9876_p1 = pnand %p9875_p13, %p9869_p4 }
  0xae   : > { %9879 = shalt.err (!%p9876_p1)
}
  0xaf   : > { %p12196_p7 = scmp.ne.s32.totalorder %s12194_s11, 0  ;;  %s923_s29 = scalar_lea.vmem [#allocation25], %s8311_s3 }
  0xb0   : > { %s930_s25 = sshll.u32 %s923_s29, 4  ;;  %s11050_s0 = sshll.u32 %s10650_s22, 4  ;;  %s11047_s25 = int_to_ptr.vmem [resolvable:$true] %s930_s25 }
  0xb1   : > { %9079 = dma.hbm_to_vmem [thread:$0]  (!%p12196_p7), %s11026_s14, 48, %s913_s26, %s10995_s28  }
  0xb2   : > { %s9880_s7 = scalar_lea.hbm %s11029_s8, 1024  ;;  %s9885_s9 = scalar_lea.hbm %s10804_s24, 6144 }
  0xb3   : > { %p9881_p13 = scmp.ne.s32.totalorder %s11029_s8, %s9880_s7  ;;  %p9886_p10 = scmp.lt.u32.totalorder %s11029_s8, %s10804_s24 }
  0xb4   : > { %p9887_p12 = scmp.lt.u32.totalorder %s9885_s9, %s9880_s7  ;;  %p9889_p5 = scmp.lt.u32.totalorder %s9880_s7, %s11029_s8 }
  0xb5   : > { %p9883_p11 = pnand %p9881_p13, %p11001_p2 }
  0xb6   : > { %p9888_p0 = por %p9887_p12, %p9886_p10 }
  0xb7   : > { %p9884_p9 = pneg %p9883_p11 }
  0xb8   : > { %p9890_p3 = por %p9889_p5, %p9888_p0 }
  0xba   : > { %p9891_p4 = pnand %p9890_p3, %p9884_p9 }
  0xbc   : > { %9894 = shalt.err (!%p9891_p4)
}
  0xbd   : > { %s9895_s14 = scalar_lea.vmem %s11047_s25, 1024  ;;  %s10689_s26 = smov [#allocation25]  }
  0xbe   : > { %p9896_p6 = scmp.ne.s32.totalorder %s11047_s25, %s9895_s14  ;;  %s9900_s3 = sshll.u32 %s10689_s26, 4  ;;  %s9901_s3 = int_to_ptr.vmem [resolvable:$false] %s9900_s3 }
  0xbf   : > { %s9902_s15 = scalar_lea.vmem %s9901_s3, 2048  ;;  %p9903_p13 = scmp.lt.s32.totalorder %s11047_s25, %s9901_s3 }
  0xc0   : > { %p9898_p8 = pnand %p9896_p6, %p11001_p2  ;;  %p9904_p11 = scmp.lt.s32.totalorder %s9902_s15, %s9895_s14 }
  0xc2   : > { %p9899_p1 = pneg %p9898_p8  ;;  %p9905_p10 = por %p9904_p11, %p9903_p13 }
  0xc4   : > { %p9906_p12 = pnand %p9905_p10, %p9899_p1 }
  0xc6   : > { %9909 = shalt.err (!%p9906_p12)
}
  0xc7   : > { %s12197_s16 = smov 4   ;;  %s12198_s18 = smov 64  }
  0xc8   : > { %9082 = dma.hbm_to_vmem [thread:$0]  (!%p12196_p7), %s11029_s8, 1024, %s11047_s25, %s10995_s28, %s12198_s18, %s12198_s18, %s12197_s16  }
  0xc9   : > { %s11075_s17 = scalar_lea.hbm %s10809_s30, %s11050_s0  ;;  %s943_s29 = scalar_lea.vmem [#allocation26], %s10982_s23 }
  0xca   : > { %s950_s7 = sshll.u32 %s943_s29, 4  ;;  %s9910_s9 = scalar_lea.hbm %s11075_s17, 16  ;;  %s951_s7 = int_to_ptr.vmem [resolvable:$true] %s950_s7 }
  0xcb   : > { %p9911_p9 = scmp.ne.s32.totalorder %s11075_s17, %s9910_s9  ;;  %s9915_s14 = scalar_lea.hbm %s10809_s30, 96 }
  0xcc   : > { %p9916_p3 = scmp.lt.u32.totalorder %s11075_s17, %s10809_s30  ;;  %p9917_p4 = scmp.lt.u32.totalorder %s9915_s14, %s9910_s9 }
  0xcd   : > { %p9913_p0 = pnand %p9911_p9, %p11001_p2  ;;  %p9919_p8 = scmp.lt.u32.totalorder %s9910_s9, %s11075_s17 }
  0xce   : > { %p9918_p6 = por %p9917_p4, %p9916_p3 }
  0xcf   : > { %p9914_p5 = pneg %p9913_p0 }
  0xd0   : > { %p9920_p1 = por %p9919_p8, %p9918_p6 }
  0xd2   : > { %p9921_p13 = pnand %p9920_p1, %p9914_p5 }
  0xd4   : > { %9924 = shalt.err (!%p9921_p13)
}
  0xd5   : > { %s9925_s8 = scalar_lea.vmem %s951_s7, 16  ;;  %s10690_s25 = smov [#allocation26]  }
  0xd6   : > { %p9926_p11 = scmp.ne.s32.totalorder %s951_s7, %s9925_s8  ;;  %s9930_s26 = sshll.u32 %s10690_s25, 4  ;;  %s9931_s26 = int_to_ptr.vmem [resolvable:$false] %s9930_s26 }
  0xd7   : > { %s9932_s3 = scalar_lea.vmem %s9931_s26, 32  ;;  %p9933_p9 = scmp.lt.s32.totalorder %s951_s7, %s9931_s26 }
  0xd8   : > { %p9928_p10 = pnand %p9926_p11, %p11001_p2  ;;  %p9934_p0 = scmp.lt.s32.totalorder %s9932_s3, %s9925_s8 }
  0xda   : > { %p9929_p12 = pneg %p9928_p10  ;;  %p9935_p7 = por %p9934_p0, %p9933_p9 }
  0xdc   : > { %p9936_p3 = pnand %p9935_p7, %p9929_p12 }
  0xde   : > { %9939 = shalt.err (!%p9936_p3)
}
  0xdf   : > { %p12199_p4 = scmp.ne.s32.totalorder %s12194_s11, 0  ;;  %s11094_s15 = scalar_lea.hbm %s12179_s6, %s11050_s0 }
  0xe0   : > { %s960_s29 = scalar_lea.vmem [#allocation27], %s10982_s23  ;;  %s9940_s14 = scalar_lea.hbm %s11094_s15, 16 }
  0xe1   : > { %9085 = dma.hbm_to_vmem [thread:$0]  (!%p12199_p4), %s11075_s17, 16, %s951_s7, %s10995_s28  }
  0xe2   : > { %s967_s9 = sshll.u32 %s960_s29, 4  ;;  %p9941_p7 = scmp.ne.s32.totalorder %s11094_s15, %s9940_s14  ;;  %s968_s9 = int_to_ptr.vmem [resolvable:$true] %s967_s9 }
  0xe3   : > { %s9945_s8 = scalar_lea.hbm %s12179_s6, 96  ;;  %p9946_p8 = scmp.lt.u32.totalorder %s11094_s15, %s12179_s6 }
  0xe4   : > { %p9943_p5 = pnand %p9941_p7, %p11001_p2  ;;  %p9947_p1 = scmp.lt.u32.totalorder %s9945_s8, %s9940_s14 }
  0xe5   : > { %p9949_p11 = scmp.lt.u32.totalorder %s9940_s14, %s11094_s15 }
  0xe6   : > { %p9944_p6 = pneg %p9943_p5  ;;  %p9948_p13 = por %p9947_p1, %p9946_p8 }
  0xe8   : > { %p9950_p10 = por %p9949_p11, %p9948_p13 }
  0xea   : > { %p9951_p12 = pnand %p9950_p10, %p9944_p6 }
  0xec   : > { %9954 = shalt.err (!%p9951_p12)
}
  0xed   : > { %s9955_s17 = scalar_lea.vmem %s968_s9, 16  ;;  %s10691_s7 = smov [#allocation27]  }
  0xee   : > { %p9956_p9 = scmp.ne.s32.totalorder %s968_s9, %s9955_s17  ;;  %s9960_s25 = sshll.u32 %s10691_s7, 4  ;;  %s9961_s25 = int_to_ptr.vmem [resolvable:$false] %s9960_s25 }
  0xef   : > { %s9962_s26 = scalar_lea.vmem %s9961_s25, 32  ;;  %p9963_p7 = scmp.lt.s32.totalorder %s968_s9, %s9961_s25 }
  0xf0   : > { %p9958_p0 = pnand %p9956_p9, %p11001_p2  ;;  %p9964_p5 = scmp.lt.s32.totalorder %s9962_s26, %s9955_s17 }
  0xf2   : > { %p9959_p3 = pneg %p9958_p0  ;;  %p9965_p4 = por %p9964_p5, %p9963_p7 }
  0xf4   : > { %p9966_p1 = pnand %p9965_p4, %p9959_p3 }
  0xf6   : > { %9969 = shalt.err (!%p9966_p1)
}
  0xf7   : > { %p12200_p8 = scmp.ne.s32.totalorder %s12194_s11, 0  ;;  %s11113_s3 = scalar_lea.hbm %s12176_s12, %s11050_s0 }
  0xf8   : > { %s977_s29 = scalar_lea.vmem [#allocation28], %s10982_s23  ;;  %s12116_s8 = sshll.u32 %s10982_s23, 8 }
  0xf9   : > { %9088 = dma.hbm_to_vmem [thread:$0]  (!%p12200_p8), %s11094_s15, 16, %s968_s9, %s10995_s28  }
  0xfa   : > { %s984_s14 = sshll.u32 %s977_s29, 4  ;;  %s9970_s17 = scalar_lea.hbm %s11113_s3, 16  ;;  %s985_s14 = int_to_ptr.vmem [resolvable:$true] %s984_s14 }
  0xfb   : > { %p9971_p4 = scmp.ne.s32.totalorder %s11113_s3, %s9970_s17  ;;  %s9975_s7 = scalar_lea.hbm %s12176_s12, 96 }
  0xfc   : > { %p9976_p11 = scmp.lt.u32.totalorder %s11113_s3, %s12176_s12  ;;  %p9977_p10 = scmp.lt.u32.totalorder %s9975_s7, %s9970_s17 }
  0xfd   : > { %p9973_p6 = pnand %p9971_p4, %p11001_p2  ;;  %p9979_p9 = scmp.lt.u32.totalorder %s9970_s17, %s11113_s3 }
  0xfe   : > { %p9978_p12 = por %p9977_p10, %p9976_p11 }
  0xff   : > { %p9974_p13 = pneg %p9973_p6 }
 0x100   : > { %p9980_p0 = por %p9979_p9, %p9978_p12 }
 0x102   : > { %p9981_p3 = pnand %p9980_p0, %p9974_p13 }
 0x104   : > { %9984 = shalt.err (!%p9981_p3)
}
 0x105   : > { %s9985_s15 = scalar_lea.vmem %s985_s14, 16  ;;  %s10692_s9 = smov [#allocation28]  }
 0x106   : > { %p9986_p7 = scmp.ne.s32.totalorder %s985_s14, %s9985_s15  ;;  %s9990_s25 = sshll.u32 %s10692_s9, 4  ;;  %s9991_s25 = int_to_ptr.vmem [resolvable:$false] %s9990_s25 }
 0x107   : > { %s9992_s26 = scalar_lea.vmem %s9991_s25, 32  ;;  %p9993_p4 = scmp.lt.s32.totalorder %s985_s14, %s9991_s25 }
 0x108   : > { %p9988_p5 = pnand %p9986_p7, %p11001_p2  ;;  %p9994_p6 = scmp.lt.s32.totalorder %s9992_s26, %s9985_s15 }
 0x10a   : > { %p9989_p1 = pneg %p9988_p5  ;;  %p9995_p8 = por %p9994_p6, %p9993_p4 }
 0x10c   : > { %p9996_p10 = pnand %p9995_p8, %p9989_p1 }
 0x10e   : > { %9999 = shalt.err (!%p9996_p10)
}
 0x10f   : > { %p12201_p11 = scmp.ne.s32.totalorder %s12194_s11, 0  ;;  %s12117_s29 = sshll.u32 %s10650_s22, 12 }
 0x110   : > { %s11135_s17 = scalar_lea.hbm %s12173_s20, %s12117_s29  ;;  %s995_s7 = scalar_lea.vmem [#allocation29], %s12116_s8 }
 0x111   : > { %9091 = dma.hbm_to_vmem [thread:$0]  (!%p12201_p11), %s11113_s3, 16, %s985_s14, %s10995_s28  }
 0x112   : > { %s1002_s15 = sshll.u32 %s995_s7, 4  ;;  %s8320_s9 = sshll.u32 %s10982_s23, 2  ;;  %s11139_s15 = int_to_ptr.vmem [resolvable:$true] %s1002_s15 }
 0x113   : > { %s10000_s25 = scalar_lea.hbm %s11135_s17, 4096  ;;  %s10005_s3 = scalar_lea.hbm %s12173_s20, 24576 }
 0x114   : > { %p10001_p8 = scmp.ne.s32.totalorder %s11135_s17, %s10000_s25  ;;  %p10006_p9 = scmp.lt.u32.totalorder %s11135_s17, %s12173_s20 }
 0x115   : > { %p10007_p0 = scmp.lt.u32.totalorder %s10005_s3, %s10000_s25  ;;  %p10009_p7 = scmp.lt.u32.totalorder %s10000_s25, %s11135_s17 }
 0x116   : > { %p10003_p13 = pnand %p10001_p8, %p11001_p2 }
 0x117   : > { %p10008_p3 = por %p10007_p0, %p10006_p9 }
 0x118   : > { %p10004_p12 = pneg %p10003_p13 }
 0x119   : > { %p10010_p5 = por %p10009_p7, %p10008_p3 }
 0x11b   : > { %p10011_p1 = pnand %p10010_p5, %p10004_p12 }
 0x11d   : > { %10014 = shalt.err (!%p10011_p1)
}
 0x11e   : > { %s10015_s14 = scalar_lea.vmem %s11139_s15, 4096  ;;  %s10693_s26 = smov [#allocation29]  }
 0x11f   : > { %p10016_p4 = scmp.ne.s32.totalorder %s11139_s15, %s10015_s14  ;;  %s10020_s7 = sshll.u32 %s10693_s26, 4  ;;  %s10021_s7 = int_to_ptr.vmem [resolvable:$false] %s10020_s7 }
 0x120   : > { %s10022_s8 = scalar_lea.vmem %s10021_s7, 8192  ;;  %p10023_p8 = scmp.lt.s32.totalorder %s11139_s15, %s10021_s7 }
 0x121   : > { %p10018_p6 = pnand %p10016_p4, %p11001_p2  ;;  %p10024_p13 = scmp.lt.s32.totalorder %s10022_s8, %s10015_s14 }
 0x123   : > { %p10019_p10 = pneg %p10018_p6  ;;  %p10025_p9 = por %p10024_p13, %p10023_p8 }
 0x125   : > { %p10026_p0 = pnand %p10025_p9, %p10019_p10 }
 0x127   : > { %10029 = shalt.err (!%p10026_p0)
}
 0x128   : > { %s10694_s25 = smov 256   ;;  %s10695_s3 = smov 16  }
 0x129   : > { %9094 = dma.hbm_to_vmem [thread:$0]  (!%p12201_p11), %s11135_s17, 4096, %s11139_s15, %s10995_s28, %s10694_s25, %s10694_s25, %s10695_s3  }
 0x12a   : > { %s8706_s26 = sshll.u32 %s10650_s22, 6  ;;  %s1016_s8 = scalar_lea.vmem [#allocation30], %s8320_s9 }
 0x12b   : > { %s11162_s7 = scalar_lea.hbm %s10829_s27, %s8706_s26  ;;  %s1024_s14 = sshll.u32 %s1016_s8, 4  ;;  %s1025_s14 = int_to_ptr.vmem [resolvable:$true] %s1024_s14 }
 0x12c   : > { %s10030_s29 = scalar_lea.hbm %s11162_s7, 64  ;;  %s10035_s6 = scalar_lea.hbm %s10829_s27, 384 }
 0x12d   : > { %p10031_p12 = scmp.ne.s32.totalorder %s11162_s7, %s10030_s29  ;;  %p10036_p5 = scmp.lt.u32.totalorder %s11162_s7, %s10829_s27 }
 0x12e   : > { %p10037_p1 = scmp.lt.u32.totalorder %s10035_s6, %s10030_s29  ;;  %p10039_p6 = scmp.lt.u32.totalorder %s10030_s29, %s11162_s7 }
 0x12f   : > { %p10033_p3 = pnand %p10031_p12, %p11001_p2 }
 0x130   : > { %p10038_p4 = por %p10037_p1, %p10036_p5 }
 0x131   : > { %p10034_p7 = pneg %p10033_p3 }
 0x132   : > { %p10040_p10 = por %p10039_p6, %p10038_p4 }
 0x134   : > { %p10041_p8 = pnand %p10040_p10, %p10034_p7 }
 0x136   : > { %10044 = shalt.err (!%p10041_p8)
}
 0x137   : > { %s10045_s17 = scalar_lea.vmem %s1025_s14, 64  ;;  %s10696_s15 = smov [#allocation30]  }
 0x138   : > { %p10046_p13 = scmp.ne.s32.totalorder %s1025_s14, %s10045_s17  ;;  %s10050_s9 = sshll.u32 %s10696_s15, 4  ;;  %s10051_s9 = int_to_ptr.vmem [resolvable:$false] %s10050_s9 }
 0x139   : > { %s10052_s25 = scalar_lea.vmem %s10051_s9, 128  ;;  %p10053_p12 = scmp.lt.s32.totalorder %s1025_s14, %s10051_s9 }
 0x13a   : > { %p10048_p9 = pnand %p10046_p13, %p11001_p2  ;;  %p10054_p3 = scmp.lt.s32.totalorder %s10052_s25, %s10045_s17 }
 0x13c   : > { %p10049_p0 = pneg %p10048_p9  ;;  %p10055_p11 = por %p10054_p3, %p10053_p12 }
 0x13e   : > { %p10056_p1 = pnand %p10055_p11, %p10049_p0 }
 0x140   : > { %10059 = shalt.err (!%p10056_p1)
}
 0x141   : > { %p12202_p5 = scmp.ne.s32.totalorder %s12194_s11, 0  ;;  %s12203_s6 = sshll.u32 %s10650_s22, 12 }
 0x142   : > { %s11183_s29 = scalar_lea.hbm %s12178_s4, %s12203_s6  ;;  %s12204_s3 = sshll.u32 %s10982_s23, 8 }
 0x143   : > { %9097 = dma.hbm_to_vmem [thread:$0]  (!%p12202_p5), %s11162_s7, 64, %s1025_s14, %s10995_s28  }
 0x144   : > { %s1035_s26 = scalar_lea.vmem [#allocation31], %s12204_s3  ;;  %s10060_s17 = scalar_lea.hbm %s11183_s29, 4096 }
 0x145   : > { %s1042_s8 = sshll.u32 %s1035_s26, 4  ;;  %p10061_p11 = scmp.ne.s32.totalorder %s11183_s29, %s10060_s17  ;;  %s11187_s8 = int_to_ptr.vmem [resolvable:$true] %s1042_s8 }
 0x146   : > { %s10065_s15 = scalar_lea.hbm %s12178_s4, 24576  ;;  %p10066_p6 = scmp.lt.u32.totalorder %s11183_s29, %s12178_s4 }
 0x147   : > { %p10063_p7 = pnand %p10061_p11, %p11001_p2  ;;  %p10067_p10 = scmp.lt.u32.totalorder %s10065_s15, %s10060_s17 }
 0x148   : > { %p10069_p13 = scmp.lt.u32.totalorder %s10060_s17, %s11183_s29 }
 0x149   : > { %p10064_p4 = pneg %p10063_p7  ;;  %p10068_p8 = por %p10067_p10, %p10066_p6 }
 0x14b   : > { %p10070_p9 = por %p10069_p13, %p10068_p8 }
 0x14d   : > { %p10071_p0 = pnand %p10070_p9, %p10064_p4 }
 0x14f   : > { %10074 = shalt.err (!%p10071_p0)
}
 0x150   : > { %s10075_s22 = scalar_lea.vmem %s11187_s8, 4096  ;;  %s10697_s7 = smov [#allocation31]  }
 0x151   : > { %p10076_p12 = scmp.ne.s32.totalorder %s11187_s8, %s10075_s22  ;;  %s10080_s14 = sshll.u32 %s10697_s7, 4  ;;  %s10081_s14 = int_to_ptr.vmem [resolvable:$false] %s10080_s14 }
 0x152   : > { %s10082_s9 = scalar_lea.vmem %s10081_s14, 8192  ;;  %p10083_p11 = scmp.lt.s32.totalorder %s11187_s8, %s10081_s14 }
 0x153   : > { %p10078_p3 = pnand %p10076_p12, %p11001_p2  ;;  %p10084_p7 = scmp.lt.s32.totalorder %s10082_s9, %s10075_s22 }
 0x155   : > { %p10079_p1 = pneg %p10078_p3  ;;  %p10085_p6 = por %p10084_p7, %p10083_p11 }
 0x157   : > { %p10086_p10 = pnand %p10085_p6, %p10079_p1 }
 0x159   : > { %10089 = shalt.err (!%p10086_p10)
}
 0x15a   : > { %9100 = dma.hbm_to_vmem [thread:$0]  (!%p12202_p5), %s11183_s29, 4096, %s11187_s8, %s10995_s28, %s12198_s18, %s12198_s18, %s12197_s16  }
 0x15b   : > { %s10698_s25 = smov [#allocation12]   ;;  %s10699_s3 = smov [#allocation15]  }
 0x15c   : > { %s739_s6 = sshll.u32 %s10698_s25, 4  ;;  %s762_s26 = sshll.u32 %s10699_s3, 4  ;;  %s740_s6 = int_to_ptr.vmem [resolvable:$true] %s739_s6  ;;  %s763_s26 = int_to_ptr.vmem [resolvable:$true] %s762_s26 }
 0x15d   : > { %s10090_s17 = scalar_lea.hbm %s12175_s13, 16  ;;  %p12205_p8 = scmp.ne.s32.totalorder %s12189_s10, 0 }
 0x15e   : > { %p10091_p4 = scmp.ne.s32.totalorder %s12175_s13, %s10090_s17  ;;  %p10097_p0 = scmp.lt.u32.totalorder %s10090_s17, %s12175_s13 }
 0x160   : > { %p10093_p13 = pnand %p10091_p4, %p12205_p8 }
 0x162   : > { %p10094_p9 = pneg %p10093_p13 }
 0x164   : > { %p10099_p12 = pnand %p10097_p0, %p10094_p9 }
 0x166   : > { %10102 = shalt.err (!%p10099_p12)
}
 0x167   : > { %s10103_s15 = scalar_lea.vmem %s740_s6, 16  ;;  %s10110_s29 = scalar_lea.vmem %s740_s6, 32 }
 0x168   : > { %p10104_p3 = scmp.ne.s32.totalorder %s740_s6, %s10103_s15  ;;  %p10111_p7 = scmp.lt.s32.totalorder %s740_s6, %s740_s6 }
 0x169   : > { %p10112_p6 = scmp.lt.s32.totalorder %s10110_s29, %s10103_s15 }
 0x16a   : > { %p10106_p1 = pnand %p10104_p3, %p12205_p8 }
 0x16b   : > { %p10113_p10 = por %p10112_p6, %p10111_p7 }
 0x16c   : > { %p10107_p11 = pneg %p10106_p1 }
 0x16e   : > { %p10114_p5 = pnand %p10113_p10, %p10107_p11 }
 0x170   : > { %10117 = shalt.err (!%p10114_p5)
}
 0x171   : > { %p12206_p2 = scmp.ne.s32.totalorder %s12187_s1, 0  ;;  %s10118_s8 = scalar_lea.hbm %s10769_s21, 1024 }
 0x172   : > { %p10119_p4 = scmp.ne.s32.totalorder %s10769_s21, %s10118_s8  ;;  %p10125_p0 = scmp.lt.u32.totalorder %s10118_s8, %s10769_s21 }
 0x173   : > { %9039 = dma.hbm_to_vmem [thread:$0]  (!%p12206_p2), %s12175_s13, 16, %s740_s6, [#allocation13]  }
 0x174   : > { %p10121_p13 = pnand %p10119_p4, %p12205_p8 }
 0x176   : > { %p10122_p9 = pneg %p10121_p13 }
 0x178   : > { %p10127_p12 = pnand %p10125_p0, %p10122_p9 }
 0x17a   : > { %10130 = shalt.err (!%p10127_p12)
}
 0x17b   : > { %s10131_s22 = scalar_lea.vmem %s763_s26, 1024  ;;  %p10139_p11 = scmp.lt.s32.totalorder %s763_s26, %s763_s26 }
 0x17c   : > { %p10132_p5 = scmp.ne.s32.totalorder %s763_s26, %s10131_s22  ;;  %p10140_p7 = scmp.lt.s32.totalorder %s10131_s22, %s10131_s22 }
 0x17e   : > { %p10134_p3 = pnand %p10132_p5, %p12205_p8  ;;  %p10141_p6 = por %p10140_p7, %p10139_p11 }
 0x180   : > { %p10135_p1 = pneg %p10134_p3 }
 0x182   : > { %p10142_p10 = pnand %p10141_p6, %p10135_p1 }
 0x184   : > { %10145 = shalt.err (!%p10142_p10)
}
 0x185   : > { %s12207_s7 = sld [smem:[#allocation73_spill]]  ;;  %s10700_s14 = smov [#allocation18]  }
 0x186   : > { %9045 = dma.hbm_to_vmem [thread:$0]  (!%p12206_p2), %s10769_s21, 1024, %s763_s26, [#allocation16], %s12198_s18, %s12198_s18, %s12197_s16  }
 0x187   : > { %s789_s9 = sshll.u32 %s10700_s14, 4  ;;  %s11235_s25 = scalar_lea.hbm %s12177_s5, %s11050_s0  ;;  %s790_s9 = int_to_ptr.vmem [resolvable:$true] %s789_s9 }
 0x18b   : > { %s10146_s6 = scalar_lea.hbm %s12207_s7, 32 }
 0x18c   : > { %p10147_p4 = scmp.ne.s32.totalorder %s12207_s7, %s10146_s6  ;;  %p10153_p0 = scmp.lt.u32.totalorder %s10146_s6, %s12207_s7 }
 0x18e   : > { %p10149_p13 = pnand %p10147_p4, %p12205_p8 }
 0x190   : > { %p10150_p9 = pneg %p10149_p13 }
 0x192   : > { %p10155_p12 = pnand %p10153_p0, %p10150_p9 }
 0x194   : > { %10158 = shalt.err (!%p10155_p12)
}
 0x195   : > { %s10159_s3 = scalar_lea.vmem %s790_s9, 32  ;;  %p10167_p11 = scmp.lt.s32.totalorder %s790_s9, %s790_s9 }
 0x196   : > { %p10160_p5 = scmp.ne.s32.totalorder %s790_s9, %s10159_s3  ;;  %p10168_p7 = scmp.lt.s32.totalorder %s10159_s3, %s10159_s3 }
 0x198   : > { %p10162_p3 = pnand %p10160_p5, %p12205_p8  ;;  %p10169_p6 = por %p10168_p7, %p10167_p11 }
 0x19a   : > { %p10163_p1 = pneg %p10162_p3 }
 0x19c   : > { %p10170_p10 = pnand %p10169_p6, %p10163_p1 }
 0x19e   : > { %10173 = shalt.err (!%p10170_p10)
}
 0x19f   : > { %9051 = dma.hbm_to_vmem [thread:$0]  (!%p12206_p2), %s12207_s7, 32, %s790_s9, [#allocation19]  }
 0x1a0   : > { %s1055_s16 = scalar_lea.vmem [#allocation32], %s10982_s23  ;;  %s10701_s26 = smov [#allocation14]  }
 0x1a1   : > { %s1062_s18 = sshll.u32 %s1055_s16, 4  ;;  %s749_s17 = sshll.u32 %s10701_s26, 4  ;;  %s11248_s18 = int_to_ptr.vmem [resolvable:$true] %s1062_s18  ;;  %s750_s17 = int_to_ptr.vmem [resolvable:$true] %s749_s17 }
 0x1a2   : > { %s10174_s15 = scalar_lea.hbm %s11235_s25, 16  ;;  %p12208_p13 = scmp.ne.s32.totalorder %s12195_s2, 0 }
 0x1a3   : > { %p10175_p4 = scmp.ne.s32.totalorder %s11235_s25, %s10174_s15  ;;  %s10179_s29 = scalar_lea.hbm %s12177_s5, 96 }
 0x1a4   : > { %p10180_p12 = scmp.lt.u32.totalorder %s11235_s25, %s12177_s5  ;;  %p10181_p5 = scmp.lt.u32.totalorder %s10179_s29, %s10174_s15 }
 0x1a5   : > { %p10177_p9 = pnand %p10175_p4, %p12208_p13  ;;  %p10183_p1 = scmp.lt.u32.totalorder %s10174_s15, %s11235_s25 }
 0x1a6   : > { %p10182_p3 = por %p10181_p5, %p10180_p12 }
 0x1a7   : > { %p10178_p0 = pneg %p10177_p9 }
 0x1a8   : > { %p10184_p11 = por %p10183_p1, %p10182_p3 }
 0x1aa   : > { %p10185_p7 = pnand %p10184_p11, %p10178_p0 }
 0x1ac   : > { %10188 = shalt.err (!%p10185_p7)
}
 0x1ad   : > { %s10189_s8 = scalar_lea.vmem %s11248_s18, 16  ;;  %s10702_s22 = smov [#allocation32]  }
 0x1ae   : > { %p10190_p6 = scmp.ne.s32.totalorder %s11248_s18, %s10189_s8  ;;  %s10194_s14 = sshll.u32 %s10702_s22, 4  ;;  %s10195_s14 = int_to_ptr.vmem [resolvable:$false] %s10194_s14 }
 0x1af   : > { %s10196_s9 = scalar_lea.vmem %s10195_s14, 32  ;;  %p10197_p4 = scmp.lt.s32.totalorder %s11248_s18, %s10195_s14 }
 0x1b0   : > { %p10192_p10 = pnand %p10190_p6, %p12208_p13  ;;  %p10198_p9 = scmp.lt.s32.totalorder %s10196_s9, %s10189_s8 }
 0x1b2   : > { %p10193_p2 = pneg %p10192_p10  ;;  %p10199_p12 = por %p10198_p9, %p10197_p4 }
 0x1b4   : > { %p10200_p5 = pnand %p10199_p12, %p10193_p2 }
 0x1b6   : > { %10203 = shalt.err (!%p10200_p5)
}
 0x1b7   : > { %p12209_p0 = scmp.ne.s32.totalorder %s12194_s11, 0  ;;  %s12210_s6 = sld [smem:[#allocation71_spill]] }
 0x1b9   : > { %9103 = dma.hbm_to_vmem [thread:$0]  (!%p12209_p0), %s11235_s25, 16, %s11248_s18, %s10995_s28  }
 0x1bd   : > { %s10204_s3 = scalar_lea.hbm %s12210_s6, 256 }
 0x1be   : > { %p10205_p3 = scmp.ne.s32.totalorder %s12210_s6, %s10204_s3  ;;  %p10211_p7 = scmp.lt.u32.totalorder %s10204_s3, %s12210_s6 }
 0x1c0   : > { %p10207_p1 = pnand %p10205_p3, %p12205_p8 }
 0x1c2   : > { %p10208_p11 = pneg %p10207_p1 }
 0x1c4   : > { %p10213_p6 = pnand %p10211_p7, %p10208_p11 }
 0x1c6   : > { %10216 = shalt.err (!%p10213_p6)
}
 0x1c7   : > { %s10217_s16 = scalar_lea.vmem %s750_s17, 256  ;;  %p10225_p9 = scmp.lt.s32.totalorder %s750_s17, %s750_s17 }
 0x1c8   : > { %p10218_p2 = scmp.ne.s32.totalorder %s750_s17, %s10217_s16  ;;  %p10226_p12 = scmp.lt.s32.totalorder %s10217_s16, %s10217_s16 }
 0x1ca   : > { %p10220_p10 = pnand %p10218_p2, %p12205_p8  ;;  %p10227_p5 = por %p10226_p12, %p10225_p9 }
 0x1cc   : > { %p10221_p4 = pneg %p10220_p10 }
 0x1ce   : > { %p10228_p13 = pnand %p10227_p5, %p10221_p4 }
 0x1d0   : > { %10231 = shalt.err (!%p10228_p13)
}
 0x1d1   : > { %s10703_s25 = smov 128   ;;  %s12211_s18 = sld [smem:[#allocation72_spill]] }
 0x1d2   : > { %s10704_s15 = smov 8   ;;  %p12213_p3 = scmp.ne.s32.totalorder %s12187_s1, 0 }
 0x1d3   : > { %s10705_s29 = smov [#allocation17]   ;;  %s10706_s22 = smov [#allocation20]  }
 0x1d4   : > { %9042 = dma.hbm_to_vmem [thread:$0]  (!%p12213_p3), %s12210_s6, 256, %s750_s17, [#allocation13], %s10703_s25, %s10703_s25, %s10704_s15  }
 0x1d5   : > { %s775_s8 = sshll.u32 %s10705_s29, 4  ;;  %s799_s14 = sshll.u32 %s10706_s22, 4  ;;  %s776_s8 = int_to_ptr.vmem [resolvable:$true] %s775_s8  ;;  %s800_s14 = int_to_ptr.vmem [resolvable:$true] %s799_s14 }
 0x1d7   : > { %s12212_s26 = smov %s12211_s18  ;;  %s10232_s9 = scalar_lea.hbm %s12211_s18, 768 }
 0x1d8   : > { %p10233_p1 = scmp.ne.s32.totalorder %s12212_s26, %s10232_s9  ;;  %p10239_p7 = scmp.lt.u32.totalorder %s10232_s9, %s12212_s26 }
 0x1da   : > { %p10235_p11 = pnand %p10233_p1, %p12205_p8 }
 0x1dc   : > { %p10236_p13 = pneg %p10235_p11 }
 0x1de   : > { %p10241_p6 = pnand %p10239_p7, %p10236_p13 }
 0x1e0   : > { %10244 = shalt.err (!%p10241_p6)
}
 0x1e1   : > { %s10245_s3 = scalar_lea.vmem %s776_s8, 768  ;;  %p10253_p9 = scmp.lt.s32.totalorder %s776_s8, %s776_s8 }
 0x1e2   : > { %p10246_p2 = scmp.ne.s32.totalorder %s776_s8, %s10245_s3  ;;  %p10254_p12 = scmp.lt.s32.totalorder %s10245_s3, %s10245_s3 }
 0x1e4   : > { %p10248_p10 = pnand %p10246_p2, %p12205_p8  ;;  %p10255_p5 = por %p10254_p12, %p10253_p9 }
 0x1e6   : > { %p10249_p4 = pneg %p10248_p10 }
 0x1e8   : > { %p10256_p0 = pnand %p10255_p5, %p10249_p4 }
 0x1ea   : > { %10259 = shalt.err (!%p10256_p0)
}
 0x1eb   : > { %s12214_s17 = sld [smem:[#allocation74_spill]] }
 0x1ec   : > { %9048 = dma.hbm_to_vmem [thread:$0]  (!%p12213_p3), %s12212_s26, 768, %s776_s8, [#allocation16], %s10703_s25, %s10703_s25, %s10704_s15  }
 0x1f1   : > { %s10260_s16 = scalar_lea.hbm %s12214_s17, 24576 }
 0x1f2   : > { %p10261_p1 = scmp.ne.s32.totalorder %s12214_s17, %s10260_s16  ;;  %p10267_p7 = scmp.lt.u32.totalorder %s10260_s16, %s12214_s17 }
 0x1f4   : > { %p10263_p11 = pnand %p10261_p1, %p12205_p8 }
 0x1f6   : > { %p10264_p13 = pneg %p10263_p11 }
 0x1f8   : > { %p10269_p6 = pnand %p10267_p7, %p10264_p13 }
 0x1fa   : > { %10272 = shalt.err (!%p10269_p6)
}
 0x1fb   : > { %s10273_s18 = scalar_lea.vmem %s800_s14, 24576  ;;  %p10281_p4 = scmp.lt.s32.totalorder %s800_s14, %s800_s14 }
 0x1fc   : > { %p10274_p0 = scmp.ne.s32.totalorder %s800_s14, %s10273_s18  ;;  %p10282_p9 = scmp.lt.s32.totalorder %s10273_s18, %s10273_s18 }
 0x1fe   : > { %p10276_p2 = pnand %p10274_p0, %p12205_p8  ;;  %p10283_p12 = por %p10282_p9, %p10281_p4 }
 0x200   : > { %p10277_p10 = pneg %p10276_p2 }
 0x202   : > { %p10284_p5 = pnand %p10283_p12, %p10277_p10 }
 0x204   : > { %10287 = shalt.err (!%p10284_p5)
}
 0x205   : > { %s10707_s25 = smov 768   ;;  %s12215_s15 = sld [smem:[#allocation83_spill]] }
 0x206   : > { %s12217_s8 = sld [smem:[#allocation75_spill]]  ;;  %s10708_s22 = smov 48  }
 0x207   : > { %9054 = dma.hbm_to_vmem [thread:$0]  (!%p12213_p3), %s12214_s17, 24576, %s800_s14, [#allocation19], %s10707_s25, %s10707_s25, %s10708_s22  }
 0x208   : > { %s10709_s9 = smov [#allocation21]  }
 0x209   : > { %s813_s3 = sshll.u32 %s10709_s9, 4  ;;  %s814_s3 = int_to_ptr.vmem [resolvable:$true] %s813_s3 }
 0x20b   : > { %s12216_s29 = smov %s12215_s15  ;;  %s11300_s16 = scalar_lea.hbm %s12215_s15, %s11050_s0 }
 0x20c   : > { %s10288_s18 = scalar_lea.hbm %s12217_s8, 192 }
 0x20d   : > { %p10289_p1 = scmp.ne.s32.totalorder %s12217_s8, %s10288_s18  ;;  %p10295_p7 = scmp.lt.u32.totalorder %s10288_s18, %s12217_s8 }
 0x20f   : > { %p10291_p11 = pnand %p10289_p1, %p12205_p8 }
 0x211   : > { %p10292_p13 = pneg %p10291_p11 }
 0x213   : > { %p10297_p6 = pnand %p10295_p7, %p10292_p13 }
 0x215   : > { %10300 = shalt.err (!%p10297_p6)
}
 0x216   : > { %s10301_s4 = scalar_lea.vmem %s814_s3, 192  ;;  %p10309_p4 = scmp.lt.s32.totalorder %s814_s3, %s814_s3 }
 0x217   : > { %p10302_p0 = scmp.ne.s32.totalorder %s814_s3, %s10301_s4  ;;  %p10310_p9 = scmp.lt.s32.totalorder %s10301_s4, %s10301_s4 }
 0x219   : > { %p10304_p2 = pnand %p10302_p0, %p12205_p8  ;;  %p10311_p12 = por %p10310_p9, %p10309_p4 }
 0x21b   : > { %p10305_p10 = pneg %p10304_p2 }
 0x21d   : > { %p10312_p5 = pnand %p10311_p12, %p10305_p10 }
 0x21f   : > { %10315 = shalt.err (!%p10312_p5)
}
 0x220   : > { %9057 = dma.hbm_to_vmem [thread:$0]  (!%p12213_p3), %s12217_s8, 192, %s814_s3, [#allocation22]  }
 0x221   : > { %s1072_s14 = scalar_lea.vmem [#allocation33], %s10982_s23  ;;  %s10710_s4 = smov [#allocation35]  }
 0x222   : > { %s1079_s25 = sshll.u32 %s1072_s14, 4  ;;  %s824_s15 = sshll.u32 %s10710_s4, 4  ;;  %s11313_s25 = int_to_ptr.vmem [resolvable:$true] %s1079_s25  ;;  %s825_s15 = int_to_ptr.vmem [resolvable:$true] %s824_s15 }
 0x223   : > { %s10316_s22 = scalar_lea.hbm %s11300_s16, 16  ;;  %p12218_p11 = scmp.ne.s32.totalorder %s12195_s2, 0 }
 0x224   : > { %p10317_p1 = scmp.ne.s32.totalorder %s11300_s16, %s10316_s22  ;;  %s10321_s9 = scalar_lea.hbm %s12216_s29, 96 }
 0x225   : > { %p10322_p6 = scmp.lt.u32.totalorder %s11300_s16, %s12216_s29  ;;  %p10323_p0 = scmp.lt.u32.totalorder %s10321_s9, %s10316_s22 }
 0x226   : > { %p10319_p13 = pnand %p10317_p1, %p12218_p11  ;;  %p10325_p10 = scmp.lt.u32.totalorder %s10316_s22, %s11300_s16 }
 0x227   : > { %p10324_p2 = por %p10323_p0, %p10322_p6 }
 0x228   : > { %p10320_p7 = pneg %p10319_p13 }
 0x229   : > { %p10326_p4 = por %p10325_p10, %p10324_p2 }
 0x22b   : > { %p10327_p9 = pnand %p10326_p4, %p10320_p7 }
 0x22d   : > { %10330 = shalt.err (!%p10327_p9)
}
 0x22e   : > { %s10331_s3 = scalar_lea.vmem %s11313_s25, 16  ;;  %s10711_s18 = smov [#allocation33]  }
 0x22f   : > { %p10332_p12 = scmp.ne.s32.totalorder %s11313_s25, %s10331_s3  ;;  %s10336_s14 = sshll.u32 %s10711_s18, 4  ;;  %s10337_s14 = int_to_ptr.vmem [resolvable:$false] %s10336_s14 }
 0x230   : > { %s10338_s4 = scalar_lea.vmem %s10337_s14, 32  ;;  %p10339_p1 = scmp.lt.s32.totalorder %s11313_s25, %s10337_s14 }
 0x231   : > { %p10334_p5 = pnand %p10332_p12, %p12218_p11  ;;  %p10340_p13 = scmp.lt.s32.totalorder %s10338_s4, %s10331_s3 }
 0x233   : > { %p10335_p3 = pneg %p10334_p5  ;;  %p10341_p6 = por %p10340_p13, %p10339_p1 }
 0x235   : > { %p10342_p0 = pnand %p10341_p6, %p10335_p3 }
 0x237   : > { %10345 = shalt.err (!%p10342_p0)
}
 0x238   : > { %p12219_p7 = scmp.ne.s32.totalorder %s12194_s11, 0  ;;  %s12220_s22 = sld [smem:[#allocation85_spill]] }
 0x23a   : > { %9106 = dma.hbm_to_vmem [thread:$0]  (!%p12219_p7), %s11300_s16, 16, %s11313_s25, %s10995_s28  }
 0x23e   : > { %s12221_s9 = smov %s12220_s22  ;;  %s10346_s5 = scalar_lea.hbm %s12220_s22, 16 }
 0x23f   : > { %p10347_p2 = scmp.ne.s32.totalorder %s12221_s9, %s10346_s5  ;;  %p10353_p9 = scmp.lt.u32.totalorder %s10346_s5, %s12221_s9 }
 0x241   : > { %p10349_p10 = pnand %p10347_p2, %p12205_p8 }
 0x243   : > { %p10350_p4 = pneg %p10349_p10 }
 0x245   : > { %p10355_p12 = pnand %p10353_p9, %p10350_p4 }
 0x247   : > { %10358 = shalt.err (!%p10355_p12)
}
 0x248   : > { %s10359_s3 = scalar_lea.vmem %s825_s15, 16  ;;  %s10366_s18 = scalar_lea.vmem %s825_s15, 32 }
 0x249   : > { %p10360_p3 = scmp.ne.s32.totalorder %s825_s15, %s10359_s3  ;;  %p10367_p13 = scmp.lt.s32.totalorder %s825_s15, %s825_s15 }
 0x24a   : > { %p10368_p6 = scmp.lt.s32.totalorder %s10366_s18, %s10359_s3 }
 0x24b   : > { %p10362_p5 = pnand %p10360_p3, %p12205_p8 }
 0x24c   : > { %p10369_p0 = por %p10368_p6, %p10367_p13 }
 0x24d   : > { %p10363_p1 = pneg %p10362_p5 }
 0x24f   : > { %p10370_p7 = pnand %p10369_p0, %p10363_p1 }
 0x251   : > { %10373 = shalt.err (!%p10370_p7)
}
 0x252   : > { %p12222_p11 = scmp.ne.s32.totalorder %s12187_s1, 0  ;;  %s12223_s16 = sld [smem:[#allocation86_spill]] }
 0x253   : > { %s10712_s5 = smov [#allocation36]   ;;  %s10713_s4 = smov [#allocation37]  }
 0x254   : > { %9060 = dma.hbm_to_vmem [thread:$0]  (!%p12222_p11), %s12221_s9, 16, %s825_s15, [#allocation13]  }
 0x255   : > { %s835_s14 = sshll.u32 %s10712_s5, 4  ;;  %s846_s22 = sshll.u32 %s10713_s4, 4  ;;  %s836_s14 = int_to_ptr.vmem [resolvable:$true] %s835_s14  ;;  %s847_s22 = int_to_ptr.vmem [resolvable:$true] %s846_s22 }
 0x258   : > { %s12224_s25 = smov %s12223_s16  ;;  %s10374_s6 = scalar_lea.hbm %s12223_s16, 16 }
 0x259   : > { %p10375_p2 = scmp.ne.s32.totalorder %s12224_s25, %s10374_s6  ;;  %p10381_p9 = scmp.lt.u32.totalorder %s10374_s6, %s12224_s25 }
 0x25b   : > { %p10377_p10 = pnand %p10375_p2, %p12205_p8 }
 0x25d   : > { %p10378_p4 = pneg %p10377_p10 }
 0x25f   : > { %p10383_p7 = pnand %p10381_p9, %p10378_p4 }
 0x261   : > { %10386 = shalt.err (!%p10383_p7)
}
 0x262   : > { %s10387_s3 = scalar_lea.vmem %s836_s14, 16  ;;  %s10394_s15 = scalar_lea.vmem %s836_s14, 32 }
 0x263   : > { %p10388_p12 = scmp.ne.s32.totalorder %s836_s14, %s10387_s3  ;;  %p10395_p1 = scmp.lt.s32.totalorder %s836_s14, %s836_s14 }
 0x264   : > { %p10396_p13 = scmp.lt.s32.totalorder %s10394_s15, %s10387_s3 }
 0x265   : > { %p10390_p3 = pnand %p10388_p12, %p12205_p8 }
 0x266   : > { %p10397_p6 = por %p10396_p13, %p10395_p1 }
 0x267   : > { %p10391_p5 = pneg %p10390_p3 }
 0x269   : > { %p10398_p0 = pnand %p10397_p6, %p10391_p5 }
 0x26b   : > { %10401 = shalt.err (!%p10398_p0)
}
 0x26c   : > { %s12225_s18 = sld [smem:[#allocation91_spill]] }
 0x26d   : > { %9063 = dma.hbm_to_vmem [thread:$0]  (!%p12222_p11), %s12224_s25, 16, %s836_s14, [#allocation16]  }
 0x272   : > { %s12226_s5 = smov %s12225_s18  ;;  %s10402_s6 = scalar_lea.hbm %s12225_s18, 128 }
 0x273   : > { %p10403_p2 = scmp.ne.s32.totalorder %s12226_s5, %s10402_s6  ;;  %p10409_p9 = scmp.lt.u32.totalorder %s10402_s6, %s12226_s5 }
 0x275   : > { %p10405_p10 = pnand %p10403_p2, %p12205_p8 }
 0x277   : > { %p10406_p4 = pneg %p10405_p10 }
 0x279   : > { %p10411_p7 = pnand %p10409_p9, %p10406_p4 }
 0x27b   : > { %10414 = shalt.err (!%p10411_p7)
}
 0x27c   : > { %s10415_s16 = scalar_lea.vmem %s847_s22, 128  ;;  %p10423_p1 = scmp.lt.s32.totalorder %s847_s22, %s847_s22 }
 0x27d   : > { %p10416_p12 = scmp.ne.s32.totalorder %s847_s22, %s10415_s16  ;;  %p10424_p13 = scmp.lt.s32.totalorder %s10415_s16, %s10415_s16 }
 0x27f   : > { %p10418_p3 = pnand %p10416_p12, %p12205_p8  ;;  %p10425_p6 = por %p10424_p13, %p10423_p1 }
 0x281   : > { %p10419_p5 = pneg %p10418_p3 }
 0x283   : > { %p10426_p0 = pnand %p10425_p6, %p10419_p5 }
 0x285   : > { %10429 = shalt.err (!%p10426_p0)
}
 0x286   : > { %s12227_s14 = sld [smem:[#allocation92_spill]]  ;;  %s10714_s4 = smov [#allocation38]  }
 0x287   : > { %9066 = dma.hbm_to_vmem [thread:$0]  (!%p12222_p11), %s12226_s5, 128, %s847_s22, [#allocation19]  }
 0x288   : > { %s857_s3 = sshll.u32 %s10714_s4, 4  ;;  %s10715_s15 = smov [#allocation39]   ;;  %s858_s3 = int_to_ptr.vmem [resolvable:$true] %s857_s3 }
 0x289   : > { %s868_s18 = sshll.u32 %s10715_s15, 4  ;;  %s869_s18 = int_to_ptr.vmem [resolvable:$true] %s868_s18 }
 0x28c   : > { %s10430_s6 = scalar_lea.hbm %s12227_s14, 64 }
 0x28d   : > { %p10431_p2 = scmp.ne.s32.totalorder %s12227_s14, %s10430_s6  ;;  %p10437_p9 = scmp.lt.u32.totalorder %s10430_s6, %s12227_s14 }
 0x28f   : > { %p10433_p10 = pnand %p10431_p2, %p12205_p8 }
 0x291   : > { %p10434_p4 = pneg %p10433_p10 }
 0x293   : > { %p10439_p7 = pnand %p10437_p9, %p10434_p4 }
 0x295   : > { %10442 = shalt.err (!%p10439_p7)
}
 0x296   : > { %s10443_s16 = scalar_lea.vmem %s858_s3, 64  ;;  %p10451_p1 = scmp.lt.s32.totalorder %s858_s3, %s858_s3 }
 0x297   : > { %p10444_p12 = scmp.ne.s32.totalorder %s858_s3, %s10443_s16  ;;  %p10452_p13 = scmp.lt.s32.totalorder %s10443_s16, %s10443_s16 }
 0x299   : > { %p10446_p3 = pnand %p10444_p12, %p12205_p8  ;;  %p10453_p6 = por %p10452_p13, %p10451_p1 }
 0x29b   : > { %p10447_p5 = pneg %p10446_p3 }
 0x29d   : > { %p10454_p0 = pnand %p10453_p6, %p10447_p5 }
 0x29f   : > { %10457 = shalt.err (!%p10454_p0)
}
 0x2a0   : > { %s12228_s22 = sld [smem:[#allocation93_spill]] }
 0x2a1   : > { %9069 = dma.hbm_to_vmem [thread:$0]  (!%p12222_p11), %s12227_s14, 64, %s858_s3, [#allocation22]  }
 0x2a6   : > { %s12229_s4 = smov %s12228_s22  ;;  %s10458_s15 = scalar_lea.hbm %s12228_s22, 16 }
 0x2a7   : > { %p10459_p2 = scmp.ne.s32.totalorder %s12229_s4, %s10458_s15  ;;  %p10465_p9 = scmp.lt.u32.totalorder %s10458_s15, %s12229_s4 }
 0x2a9   : > { %p10461_p10 = pnand %p10459_p2, %p12205_p8 }
 0x2ab   : > { %p10462_p4 = pneg %p10461_p10 }
 0x2ad   : > { %p10467_p7 = pnand %p10465_p9, %p10462_p4 }
 0x2af   : > { %10470 = shalt.err (!%p10467_p7)
}
 0x2b0   : > { %s10471_s6 = scalar_lea.vmem %s869_s18, 16  ;;  %s10478_s16 = scalar_lea.vmem %s869_s18, 32 }
 0x2b1   : > { %p10472_p12 = scmp.ne.s32.totalorder %s869_s18, %s10471_s6  ;;  %p10479_p1 = scmp.lt.s32.totalorder %s869_s18, %s869_s18 }
 0x2b2   : > { %p10480_p13 = scmp.lt.s32.totalorder %s10478_s16, %s10471_s6 }
 0x2b3   : > { %p10474_p3 = pnand %p10472_p12, %p12205_p8 }
 0x2b4   : > { %p10481_p6 = por %p10480_p13, %p10479_p1 }
 0x2b5   : > { %p10475_p5 = pneg %p10474_p3 }
 0x2b7   : > { %p10482_p0 = pnand %p10481_p6, %p10475_p5 }
 0x2b9   : > { %10485 = shalt.err (!%p10482_p0)
}
 0x2ba   : > { %s12230_s3 = sld [smem:[#allocation84_spill]]  ;;  %s1089_s10 = scalar_lea.vmem [#allocation34], %s10982_s23 }
 0x2bb   : > { %9072 = dma.hbm_to_vmem [thread:$0]  (!%p12222_p11), %s12229_s4, 16, %s869_s18, [#allocation40]  }
 0x2bc   : > { %s1096_s15 = sshll.u32 %s1089_s10, 4  ;;  %p12231_p2 = scmp.ne.s32.totalorder %s12195_s2, 0  ;;  %s1097_s15 = int_to_ptr.vmem [resolvable:$true] %s1096_s15 }
 0x2c0   : > { %s11385_s22 = scalar_lea.hbm %s12230_s3, %s11050_s0  ;;  %s10491_s1 = scalar_lea.hbm %s12230_s3, 96 }
 0x2c1   : > { %s10486_s6 = scalar_lea.hbm %s11385_s22, 16  ;;  %p10492_p9 = scmp.lt.u32.totalorder %s11385_s22, %s12230_s3 }
 0x2c2   : > { %p10487_p8 = scmp.ne.s32.totalorder %s11385_s22, %s10486_s6  ;;  %p10493_p7 = scmp.lt.u32.totalorder %s10491_s1, %s10486_s6 }
 0x2c3   : > { %p10495_p3 = scmp.lt.u32.totalorder %s10486_s6, %s11385_s22 }
 0x2c4   : > { %p10489_p10 = pnand %p10487_p8, %p12231_p2  ;;  %p10494_p12 = por %p10493_p7, %p10492_p9 }
 0x2c6   : > { %p10490_p4 = pneg %p10489_p10  ;;  %p10496_p11 = por %p10495_p3, %p10494_p12 }
 0x2c8   : > { %p10497_p5 = pnand %p10496_p11, %p10490_p4 }
 0x2ca   : > { %10500 = shalt.err (!%p10497_p5)
}
 0x2cb   : > { %s10501_s0 = scalar_lea.vmem %s1097_s15, 16  ;;  %s10716_s23 = smov [#allocation34]  }
 0x2cc   : > { %p10502_p1 = scmp.ne.s32.totalorder %s1097_s15, %s10501_s0  ;;  %s10506_s18 = sshll.u32 %s10716_s23, 4  ;;  %s10507_s18 = int_to_ptr.vmem [resolvable:$false] %s10506_s18 }
 0x2cd   : > { %s10508_s16 = scalar_lea.vmem %s10507_s18, 32  ;;  %p10509_p0 = scmp.lt.s32.totalorder %s1097_s15, %s10507_s18 }
 0x2ce   : > { %p10504_p13 = pnand %p10502_p1, %p12231_p2  ;;  %p10510_p8 = scmp.lt.s32.totalorder %s10508_s16, %s10501_s0 }
 0x2d0   : > { %p10505_p6 = pneg %p10504_p13  ;;  %p10511_p10 = por %p10510_p8, %p10509_p0 }
 0x2d2   : > { %p10512_p7 = pnand %p10511_p10, %p10505_p6 }
 0x2d4   : > { %10515 = shalt.err (!%p10512_p7)
}
 0x2d5   : > { %p12232_p9 = scmp.ne.s32.totalorder %s12194_s11, 0  ;;  %s12233_s10 = sld [smem:[#allocation98_spill]] }
 0x2d7   : > { %9109 = dma.hbm_to_vmem [thread:$0]  (!%p12232_p9), %s11385_s22, 16, %s1097_s15, %s10995_s28  }
 0x2db   : > { %p12234_p4 = scmp.ne.s32.totalorder %s12233_s10, 0 }
 0x2dc   : > { %s12235_s2 = sld [smem:[#allocation97_spill]] (!%p12234_p4) }
 0x2dd   : > { %1105 = sbr.rel (%p12234_p4) target bundleno = 5207 (0x1457), region = 124 }
 0x2e2   : > { %p12236_p2 = scmp.eq.s32.totalorder (!%p12234_p4), %s12235_s2, 0 }
 0x2e4   : > { %10581 = dma.done.wait (%p12236_p2), [#allocation10], 384   ;;  %p12237_p12 = pmov %p12236_p2 }
 0x2e5   : > { %p12238_p3 = pmov %p12236_p2 }
 0x2e6   : > { %10583 = vsyncadd (%p12237_p12), [#allocation10], 4294966912 }
 0x2e7   : > { %10585 = dma.done.wait (%p12238_p3), [#allocation13], 272   ;;  %p12239_p11 = pmov %p12236_p2 }
 0x2e8   : > { %p12240_p5 = pmov %p12236_p2 }
 0x2e9   : > { %10587 = vsyncadd (%p12239_p11), [#allocation13], 4294967024 }
 0x2ea   : > { %10589 = dma.done.wait (%p12240_p5), [#allocation16], 1792   ;;  %p12241_p1 = pmov %p12236_p2 }
 0x2ec   : > { %10591 = vsyncadd (%p12241_p1), [#allocation16], 4294965504  ;;  %p12242_p13 = pmov %p12241_p1 }
 0x2ed   : > { %p12243_p6 = pmov %p12241_p1 }
 0x2ee   : > { %10593 = dma.done.wait (%p12242_p13), [#allocation19], 24608  }
 0x2ef   : > { %10595 = vsyncadd (%p12243_p6), [#allocation19], 4294942688  ;;  %p12244_p0 = pmov %p12241_p1 }
 0x2f1   : > { %10597 = dma.done.wait (%p12244_p0), [#allocation22], 192   ;;  %p12245_p8 = pmov %p12244_p0 }
 0x2f2   : > { %s12246_s28 = sld [smem:[#allocation95_spill]]  ;;  %s12247_s11 = sld [smem:[#allocation101_spill]] }
 0x2f3   : > { %10599 = vsyncadd (%p12245_p8), [#allocation22], 4294967104  ;;  %s1139_s22 = sand.u32 1, %s12235_s2  }
 0x2f4   : > { %s1140_s1 = scalar_lea.sflag [#allocation10], %s1139_s22 }
 0x2f8   : > { %s11426_s15 = sand.u32 1, %s12246_s28   ;;  %p12248_p10 = scmp.ne.s32.totalorder %s12247_s11, 0 }
 0x2f9   : > { %s8951_s6 = smul.u32 192, %s11426_s15 }
 0x2fb   : > { %s11429_s0 = scalar_lea.vmem [#allocation23], %s8951_s6 }
 0x2fc   : > { %10601 = dma.done.wait (%p12248_p10), %s1140_s1, 12496  }
 0x2fd   : > { %10603 = vsyncadd (%p12248_p10), %s1140_s1, 4294954800  ;;  %s8952_s23 = smul.u32 3, %s11426_s15  ;;  %s8338_s18 = sshll.u32 %s11426_s15, 6 }
 0x2fe   : > { %s8339_s16 = sshll.u32 %s11426_s15, 8  ;;  %s8340_s10 = sshll.u32 %s11426_s15, 2 }
 0x2ff   : > { %s11439_s28 = scalar_lea.vmem [#allocation24], %s8952_s23  ;;  %s11441_s22 = scalar_lea.vmem [#allocation25], %s8338_s18 }
 0x300   : > { %s11446_s3 = scalar_lea.vmem [#allocation29], %s8339_s16  ;;  %s11448_s4 = scalar_lea.vmem [#allocation30], %s8340_s10 }
 0x301   : > { %s11450_s5 = scalar_lea.vmem [#allocation31], %s8339_s16  ;;  %p12249_p7 = pmov %p12244_p0 }
 0x302   : > { %p12250_p9 = pmov %p12244_p0 }
 0x303   : > { %10605 = dma.done.wait (%p12249_p7), [#allocation13], 16  }
 0x304   : > { %10607 = vsyncadd (%p12250_p9), [#allocation13], 4294967280  ;;  %p12251_p4 = pmov %p12244_p0 }
 0x305   : > { %p12252_p2 = pmov %p12244_p0 }
 0x306   : > { %10609 = dma.done.wait (%p12251_p4), [#allocation16], 16  }
 0x307   : > { %10611 = vsyncadd (%p12252_p2), [#allocation16], 4294967280  ;;  %p12253_p12 = pmov %p12244_p0 }
 0x308   : > { %p12254_p3 = pmov %p12244_p0 }
 0x309   : > { %10613 = dma.done.wait (%p12253_p12), [#allocation19], 128  }
 0x30a   : > { %10615 = vsyncadd (%p12254_p3), [#allocation19], 4294967168  ;;  %p12255_p11 = pmov %p12244_p0 }
 0x30b   : > { %p12256_p5 = pmov %p12244_p0 }
 0x30c   : > { %10617 = dma.done.wait (%p12255_p11), [#allocation22], 64  }
 0x30d   : > { %10619 = vsyncadd (%p12256_p5), [#allocation22], 4294967232  ;;  %p12257_p1 = pmov %p12244_p0 }
 0x30e   : > { %p12258_p13 = pmov %p12244_p0 }
 0x30f   : > { %10621 = dma.done.wait (%p12257_p1), [#allocation40], 16  }
 0x310   : > { %10623 = vsyncadd (%p12258_p13), [#allocation40], 4294967280  ;;  %p12259_p6 = scmp.ne.s32.totalorder %s12235_s2, 0 }
 0x312   : > { %1373 = sbr.rel (%p12259_p6) target bundleno = 1470 (0x5be), region = 228 }
 0x319   : > { %s1378_s23 = sld [smem:[#allocation0]]   ;;  %s10717_s18 = smov [#allocation4]   ;;  %v10718_v0 = vmov 0   ;;  %vm1528_vm0 = vcmask 392192   ;;  %vm2052_vm1 = vcmask 1041409  }
 0x31a   : > { %s1386_s16 = sshll.u32 %s10717_s18, 4  ;;  %1674 = vmatprep.mubr.bf16.mxu1 %v10718_v0  ;;  %s10719_s10 = smov 1024   ;;  %s1387_s16 = int_to_ptr.vmem [resolvable:$true] %s1386_s16 }
 0x31b   : > { %1390 = sst [smem:[#allocation43]] %s10719_s10  ;;  %s10720_s9 = smov 8  }
 0x31c   : > { %1392 = sst [smem:[#allocation43 + $0x1]] %s10719_s10  ;;  %s12260_s8 = sld [smem:[#allocation87_spill]] }
 0x31d   : > { %1394 = sst [smem:[#allocation43 + $0x2]] %s10720_s9  ;;  %s10721_s7 = smov 64  }
 0x31e   : > { %1396 = sst [smem:[#allocation43 + $0x3]] %s10721_s7  ;;  %s12139_s6 = smov 128  }
 0x31f   : > { %s8348_s1 = sshll.u32 %s1378_s23, 26  ;;  %1398 = sst [smem:[#allocation43 + $0x4]] %s12139_s6 }
 0x320   : > { %s11480_s2 = sadd.s32 134217728, %s8348_s1  ;;  %s12141_s18 = smov 2  }
 0x321   : > { %1400 = sst [smem:[#allocation43 + $0x5]] %s12141_s18  ;;  %s10724_s11 = smov 512  }
 0x322   : > { %1402 = sst [smem:[#allocation43 + $0x6]] %s10724_s11  ;;  %s10725_s12 = smov 4  }
 0x323   : > { %1404 = sst [smem:[#allocation43 + $0x7]] %s10721_s7  ;;  %s10726_s13 = smov [#allocation8]  }
 0x324   : > { %1406 = sst [smem:[#allocation43 + $0x8]] %s10725_s12  ;;  %s10727_s14 = smov [#allocation42]  }
 0x325   : > { %s12261_s23 = sld [smem:[#allocation88_spill]]  ;;  %s10728_s1 = smov [#allocation5]  }
 0x326   : > { %1408 = dma.general %s12260_s8, 98304, %s1387_s16, %s10726_s13, %s10727_s14, [#allocation43], %s11480_s2, 0  }
 0x327   : > { %1425 = sst [smem:[#allocation45]] %s10719_s10  ;;  %s1421_s6 = sshll.u32 %s10728_s1, 4  ;;  %s1422_s6 = int_to_ptr.vmem [resolvable:$true] %s1421_s6 }
 0x328   : > { %1427 = sst [smem:[#allocation45 + $0x1]] %s10719_s10  ;;  %s12262_s18 = smov 128  }
 0x329   : > { %1429 = sst [smem:[#allocation45 + $0x2]] %s10720_s9  ;;  %s12263_s17 = smov 2  }
 0x32a   : > { %1431 = sst [smem:[#allocation45 + $0x3]] %s10721_s7  ;;  %s10729_s19 = smov [#allocation8 + $0x1]  }
 0x32b   : > { %1433 = sst [smem:[#allocation45 + $0x4]] %s12262_s18  ;;  %s10730_s20 = smov [#allocation44]  }
 0x32c   : > { %1435 = sst [smem:[#allocation45 + $0x5]] %s12263_s17  ;;  %s10731_s8 = smov [#allocation6]  }
 0x32d   : > { %1437 = sst [smem:[#allocation45 + $0x6]] %s10724_s11  ;;  %s1456_s9 = sshll.u32 %s10731_s8, 4  ;;  %s1457_s9 = int_to_ptr.vmem [resolvable:$true] %s1456_s9 }
 0x32e   : > { %1439 = sst [smem:[#allocation45 + $0x7]] %s10721_s7  ;;  %s10732_s16 = smov 256  }
 0x32f   : > { %1441 = sst [smem:[#allocation45 + $0x8]] %s10725_s12 }
 0x330   : > { %1443 = dma.general %s12261_s23, 8192, %s1422_s6, %s10729_s19, %s10730_s20, [#allocation45], %s11480_s2, 0  }
 0x331   : > { %s12264_s13 = sld [smem:[#allocation89_spill]]  ;;  %1460 = sst [smem:[#allocation47]] %s10724_s11 }
 0x332   : > { %1462 = sst [smem:[#allocation47 + $0x1]] %s10724_s11  ;;  %s12265_s14 = sld [smem:[#allocation68_spill]] }
 0x333   : > { %1464 = sst [smem:[#allocation47 + $0x2]] %s10725_s12  ;;  %s10733_s19 = smov [#allocation8 + $0x2]  }
 0x334   : > { %1466 = sst [smem:[#allocation47 + $0x3]] %s10721_s7  ;;  %s10734_s20 = smov [#allocation46]  }
 0x335   : > { %1468 = sst [smem:[#allocation47 + $0x4]] %s12262_s18 }
 0x336   : > { %1470 = sst [smem:[#allocation47 + $0x5]] %s12263_s17 }
 0x337   : > { %1472 = sst [smem:[#allocation47 + $0x6]] %s10732_s16 }
 0x338   : > { %1474 = sst [smem:[#allocation47 + $0x7]] %s10721_s7  ;;  %s10736_s7 = smov [#allocation7]  }
 0x339   : > { %1476 = sst [smem:[#allocation47 + $0x8]] %s10725_s12  ;;  %s1487_s17 = sshll.u32 %s10736_s7, 4  ;;  %s1488_s17 = int_to_ptr.vmem [resolvable:$true] %s1487_s17 }
 0x33a   : > { %1478 = dma.general %s12264_s13, 32768, %s1457_s9, %s10733_s19, %s10734_s20, [#allocation47], %s11480_s2, 0  }
 0x33b   : > { %v9248_v1 = vld [vmem:[#allocation17 + $0x4] ss:$8 sps:$4 sm:$0xff]   ;;  %v9250_v2 = vld [vmem:[#allocation17] ss:$8 sps:$4 sm:$0xff]   ;;  %v9251_v3 = vld [vmem:[#allocation17 + $0x14] ss:$8 sps:$4 sm:$0xff]  }
 0x33c   : > { %1642 = vmatprep.subr.bf16.mxu1 %v9248_v1  ;;  %v9253_v4 = vld [vmem:[#allocation17 + $0x10] ss:$8 sps:$4 sm:$0xff]   ;;  %v9254_v5 = vld [vmem:[#allocation17 + $0x24] ss:$8 sps:$4 sm:$0xff]   ;;  %v9256_v8 = vld [vmem:[#allocation17 + $0x20] ss:$8 sps:$4 sm:$0xff]  }
 0x33d   : > { %1643 = vmatpush1.bf16.msra.mxu1 %v9250_v2  ;;  %v1491_v6 = vld [vmem:[%s12265_s14] sm:$0xff]  ;;  %v1492_v7 = vld [vmem:[%s12265_s14 + $0x8] sm:$0xff]  ;;  %v9257_v10 = vld [vmem:[#allocation9] sm:$0xff]   ;;  %s12266_s12 = sld [smem:[#allocation90_spill]] }
 0x33e   : > { %1644 = vmatprep.subr.bf16.mxu1 %v9251_v3  ;;  %v1495_v9 = vpack.c.bf16 %v1492_v7, %v1491_v6  ;;  %v9258_v11 = vld [vmem:[#allocation9 + $0x8] sm:$0xff]   ;;  %8845 = vmatprep.subr.bf16.mxu0 %v9257_v10  ;;  %v9259_v12 = vld [vmem:[#allocation9 + $0x10] sm:$0xff]   ;;  %v1493_v13 = vld [vmem:[%s12265_s14 + $0x10] sm:$0xff] }
 0x33f   : > { %8846 = vmatpush3.bf16.msra.mxu0 %v9257_v10  ;;  %v1494_v14 = vld [vmem:[%s12265_s14 + $0x18] sm:$0xff]  ;;  %v9265_v17 = vld [vmem:[#allocation20 + $0xc] ss:$48 sps:$4 sm:$0xff]   ;;  %v9260_v18 = vld [vmem:[#allocation20] ss:$48 sps:$4 sm:$0xff]  }
 0x340   : > { %8851 = vmatprep.mubr.msk.bf16.mxu0 %vm1528_vm0, %v1495_v9  ;;  %8847 = vmatprep.subr.bf16.mxu0 %v9258_v11  ;;  %v1496_v15 = vpack.c.bf16 %v1494_v14, %v1493_v13  ;;  %v9262_v16 = vld [vmem:[#allocation20 + $0x4] ss:$48 sps:$4 sm:$0xff]   ;;  %v9263_v19 = vld [vmem:[#allocation20 + $0x8] ss:$48 sps:$4 sm:$0xff]   ;;  %v9271_v21 = vld [vmem:[#allocation20 + $0x6c] ss:$48 sps:$4 sm:$0xff]  }
 0x341   : > { %1645 = vmatpush1.bf16.msra.mxu1 %v9253_v4  ;;  %v9268_v20 = vld [vmem:[#allocation20 + $0x64] ss:$48 sps:$4 sm:$0xff]   ;;  %v9266_v22 = vld [vmem:[#allocation20 + $0x60] ss:$48 sps:$4 sm:$0xff]   ;;  %v9269_v23 = vld [vmem:[#allocation20 + $0x68] ss:$48 sps:$4 sm:$0xff]  }
 0x342   : > { %1646 = vmatprep.subr.bf16.mxu1 %v9254_v5  ;;  %v9274_v24 = vld [vmem:[#allocation20 + $0xc4] ss:$48 sps:$4 sm:$0xff]   ;;  %v9277_v25 = vld [vmem:[#allocation20 + $0xcc] ss:$48 sps:$4 sm:$0xff]   ;;  %v9272_v26 = vld [vmem:[#allocation20 + $0xc0] ss:$48 sps:$4 sm:$0xff]  }
 0x343   : > { %8848 = vmatpush3.bf16.msra.mxu0 %v9258_v11  ;;  %v9275_v27 = vld [vmem:[#allocation20 + $0xc8] ss:$48 sps:$4 sm:$0xff]   ;;  %v9280_v28 = vld [vmem:[#allocation20 + $0x124] ss:$48 sps:$4 sm:$0xff]   ;;  %v9283_v29 = vld [vmem:[#allocation20 + $0x12c] ss:$48 sps:$4 sm:$0xff]  }
 0x344   : > { %8849 = vmatprep.subr.bf16.mxu0 %v9259_v12  ;;  %v9278_v30 = vld [vmem:[#allocation20 + $0x120] ss:$48 sps:$4 sm:$0xff]   ;;  %v9281_v31 = vld [vmem:[#allocation20 + $0x128] ss:$48 sps:$4 sm:$0xff]   ;;  %v9286_v32 = vld [vmem:[#allocation20 + $0x184] ss:$48 sps:$4 sm:$0xff]  }
 0x345   : > { %1647 = vmatpush1.bf16.msra.mxu1 %v9256_v8  ;;  %v9289_v33 = vld [vmem:[#allocation20 + $0x18c] ss:$48 sps:$4 sm:$0xff]   ;;  %v9284_v34 = vld [vmem:[#allocation20 + $0x180] ss:$48 sps:$4 sm:$0xff]   ;;  %v9287_v35 = vld [vmem:[#allocation20 + $0x188] ss:$48 sps:$4 sm:$0xff]  }
 0x346   : > { %3060 = vmatprep.subr.bf16.mxu1 %v9265_v17  ;;  %v9292_v36 = vld [vmem:[#allocation20 + $0x1e4] ss:$48 sps:$4 sm:$0xff]   ;;  %v9295_v37 = vld [vmem:[#allocation20 + $0x1ec] ss:$48 sps:$4 sm:$0xff]   ;;  %v9290_v38 = vld [vmem:[#allocation20 + $0x1e0] ss:$48 sps:$4 sm:$0xff]  }
 0x347   : > { %8850 = vmatpush3.bf16.msra.mxu0 %v9259_v12  ;;  %v9293_v39 = vld [vmem:[#allocation20 + $0x1e8] ss:$48 sps:$4 sm:$0xff]   ;;  %v9298_v40 = vld [vmem:[#allocation20 + $0x244] ss:$48 sps:$4 sm:$0xff]   ;;  %v9301_v41 = vld [vmem:[#allocation20 + $0x24c] ss:$48 sps:$4 sm:$0xff]  }
 0x348   : > { %8366 = vmatmul.mubr.msk.bf16.vlgmr.msra.gmra.mrb[0].mxu1 %vm1528_vm0, %v1495_v9  ;;  %3019 = vmatprep.subr.bf16.mxu0 %v9262_v16  ;;  %v9296_v42 = vld [vmem:[#allocation20 + $0x240] ss:$48 sps:$4 sm:$0xff]   ;;  %v9299_v43 = vld [vmem:[#allocation20 + $0x248] ss:$48 sps:$4 sm:$0xff]   ;;  %v9304_v44 = vld [vmem:[#allocation20 + $0x2a4] ss:$48 sps:$4 sm:$0xff]  }
 0x349   : > { %1684 = vmatprep.mubr.bf16.mxu1 %v10718_v0  ;;  %3061 = vmatpush1.bf16.msra.mxu1 %v9263_v19  ;;  %v9307_v45 = vld [vmem:[#allocation20 + $0x2ac] ss:$48 sps:$4 sm:$0xff]   ;;  %v9302_v46 = vld [vmem:[#allocation20 + $0x2a0] ss:$48 sps:$4 sm:$0xff]   ;;  %v9305_v47 = vld [vmem:[#allocation20 + $0x2a8] ss:$48 sps:$4 sm:$0xff]  }
 0x34a   : > { %8852 = vmatmul.mubr.msk.bf16.vlgmr.msra.gmra.mrb[0].mxu0 %vm1528_vm0, %v1496_v15  ;;  %3062 = vmatprep.subr.bf16.mxu1 %v9271_v21  ;;  %v9310_v48 = vld [vmem:[#allocation20 + $0x304] ss:$48 sps:$4 sm:$0xff]   ;;  %v9313_v49 = vld [vmem:[#allocation20 + $0x30c] ss:$48 sps:$4 sm:$0xff]   ;;  %v9308_v50 = vld [vmem:[#allocation20 + $0x300] ss:$48 sps:$4 sm:$0xff]  }
 0x34b   : > { %3020 = vmatpush1.bf16.msra.mxu0 %v9260_v18  ;;  %v9311_v51 = vld [vmem:[#allocation20 + $0x308] ss:$48 sps:$4 sm:$0xff]   ;;  %v9316_v52 = vld [vmem:[#allocation20 + $0x364] ss:$48 sps:$4 sm:$0xff]   ;;  %v9319_v53 = vld [vmem:[#allocation20 + $0x36c] ss:$48 sps:$4 sm:$0xff]   ;;  %v1602_v18 = vlaneseq }
 0x34c   : > { %3021 = vmatprep.subr.bf16.mxu0 %v9268_v20  ;;  %v9314_v54 = vld [vmem:[#allocation20 + $0x360] ss:$48 sps:$4 sm:$0xff]   ;;  %v9317_v55 = vld [vmem:[#allocation20 + $0x368] ss:$48 sps:$4 sm:$0xff]   ;;  %v9322_v56 = vld [vmem:[#allocation20 + $0x3c4] ss:$48 sps:$4 sm:$0xff]  }
 0x34d   : > { %3063 = vmatpush1.bf16.msra.mxu1 %v9269_v23  ;;  %v9325_v57 = vld [vmem:[#allocation20 + $0x3cc] ss:$48 sps:$4 sm:$0xff]   ;;  %v9320_v58 = vld [vmem:[#allocation20 + $0x3c0] ss:$48 sps:$4 sm:$0xff]   ;;  %v9323_v59 = vld [vmem:[#allocation20 + $0x3c8] ss:$48 sps:$4 sm:$0xff]  }
 0x34e   : > { %3064 = vmatprep.subr.bf16.mxu1 %v9277_v25  ;;  %v9328_v60 = vld [vmem:[#allocation20 + $0x424] ss:$48 sps:$4 sm:$0xff]   ;;  %v9331_v61 = vld [vmem:[#allocation20 + $0x42c] ss:$48 sps:$4 sm:$0xff]   ;;  %v9326_v62 = vld [vmem:[#allocation20 + $0x420] ss:$48 sps:$4 sm:$0xff]  }
 0x34f   : > { %3022 = vmatpush1.bf16.msra.mxu0 %v9266_v22  ;;  %v9329_v63 = vld [vmem:[#allocation20 + $0x428] ss:$48 sps:$4 sm:$0xff]   ;;  %v9334_v0 = vld [vmem:[#allocation20 + $0x484] ss:$48 sps:$4 sm:$0xff]   ;;  %v9337_v1 = vld [vmem:[#allocation20 + $0x48c] ss:$48 sps:$4 sm:$0xff]  }
 0x350   : > { %8367 = vmatmul.mubr.msk.bf16.gmra.mrb[4].mxu1 %vm1528_vm0, %v1496_v15  ;;  %3023 = vmatprep.subr.bf16.mxu0 %v9274_v24  ;;  %v9332_v2 = vld [vmem:[#allocation20 + $0x480] ss:$48 sps:$4 sm:$0xff]   ;;  %v9335_v3 = vld [vmem:[#allocation20 + $0x488] ss:$48 sps:$4 sm:$0xff]   ;;  %v9340_v4 = vld [vmem:[#allocation20 + $0x4e4] ss:$48 sps:$4 sm:$0xff]  }
 0x351   : > { %3065 = vmatpush1.bf16.msra.mxu1 %v9275_v27  ;;  %v9343_v5 = vld [vmem:[#allocation20 + $0x4ec] ss:$48 sps:$4 sm:$0xff]   ;;  %v9338_v6 = vld [vmem:[#allocation20 + $0x4e0] ss:$48 sps:$4 sm:$0xff]   ;;  %v9341_v7 = vld [vmem:[#allocation20 + $0x4e8] ss:$48 sps:$4 sm:$0xff]  }
 0x352   : > { %3066 = vmatprep.subr.bf16.mxu1 %v9283_v29  ;;  %v9346_v8 = vld [vmem:[#allocation20 + $0x544] ss:$48 sps:$4 sm:$0xff]   ;;  %v9349_v9 = vld [vmem:[#allocation20 + $0x54c] ss:$48 sps:$4 sm:$0xff]   ;;  %v9344_v10 = vld [vmem:[#allocation20 + $0x540] ss:$48 sps:$4 sm:$0xff]  }
 0x353   : > { %3024 = vmatpush1.bf16.msra.mxu0 %v9272_v26  ;;  %v9347_v11 = vld [vmem:[#allocation20 + $0x548] ss:$48 sps:$4 sm:$0xff]   ;;  %v9352_v12 = vld [vmem:[#allocation20 + $0x5a4] ss:$48 sps:$4 sm:$0xff]   ;;  %v9355_v13 = vld [vmem:[#allocation20 + $0x5ac] ss:$48 sps:$4 sm:$0xff]  }
 0x354   : > { %3025 = vmatprep.subr.bf16.mxu0 %v9280_v28  ;;  %v9350_v14 = vld [vmem:[#allocation20 + $0x5a0] ss:$48 sps:$4 sm:$0xff]   ;;  %v9353_v15 = vld [vmem:[#allocation20 + $0x5a8] ss:$48 sps:$4 sm:$0xff]   ;;  %v9358_v16 = vld [vmem:[#allocation20 + $0x14] ss:$48 sps:$4 sm:$0xff]  }
 0x355   : > { %3067 = vmatpush1.bf16.msra.mxu1 %v9281_v31  ;;  %v9361_v17 = vld [vmem:[#allocation20 + $0x1c] ss:$48 sps:$4 sm:$0xff]   ;;  %v11511_v19 = vshrl.u32 %v1602_v18, 7  ;;  %s10516_s11 = scalar_lea.hbm %s12266_s12, 4096 }
 0x356   : > { %3068 = vmatprep.subr.bf16.mxu1 %v9289_v33  ;;  %v1600_v21 = vld [vmem:[#allocation18] sm:$0x3]  ;;  %p10517_p0 = scmp.ne.s32.totalorder %s12266_s12, %s10516_s11  ;;  %p10520_p8 = scmp.lt.u32.totalorder %s10516_s11, %s12266_s12 }
 0x357   : > { %3026 = vmatpush1.bf16.msra.mxu0 %v9278_v30  ;;  %v11514_v20 = vsub.s32 0, %v11511_v19  ;;  %v11517_v22 = vsub.s32 1, %v11511_v19 }
 0x358   : > { %3027 = vmatprep.subr.bf16.mxu0 %v9286_v32  ;;  %p10522_p10 = pnand %p10520_p8, %p10517_p0 }
 0x359   : > { %3069 = vmatpush1.bf16.msra.mxu1 %v9287_v35  ;;  %v1605_v23 = vrot.slane %v1600_v21, %v11514_v20  ;;  %v1609_v24 = vrot.slane %v1600_v21, %v11517_v22 }
 0x35a   : > { %3070 = vmatprep.subr.bf16.mxu1 %v9295_v37 }
 0x35b   : > { %3028 = vmatpush1.bf16.msra.mxu0 %v9284_v34 }
 0x35c   : > { %3029 = vmatprep.subr.bf16.mxu0 %v9292_v36 }
 0x35d   : > { %3071 = vmatpush1.bf16.msra.mxu1 %v9293_v39 }
 0x35e   : > { %3072 = vmatprep.subr.bf16.mxu1 %v9301_v41 }
 0x35f   : > { %3030 = vmatpush1.bf16.msra.mxu0 %v9290_v38 }
 0x360   : > { %3031 = vmatprep.subr.bf16.mxu0 %v9298_v40 }
 0x361   : > { %3073 = vmatpush1.bf16.msra.mxu1 %v9299_v43 }
 0x362   : > { %3074 = vmatprep.subr.bf16.mxu1 %v9307_v45 }
 0x363   : > { %3032 = vmatpush1.bf16.msra.mxu0 %v9296_v42 }
 0x364   : > { %3033 = vmatprep.subr.bf16.mxu0 %v9304_v44 }
 0x365   : > { %3075 = vmatpush1.bf16.msra.mxu1 %v9305_v47 }
 0x366   : > { %3076 = vmatprep.subr.bf16.mxu1 %v9313_v49 }
 0x367   : > { %3034 = vmatpush1.bf16.msra.mxu0 %v9302_v46 }
 0x368   : > { %3035 = vmatprep.subr.bf16.mxu0 %v9310_v48 }
 0x369   : > { %3077 = vmatpush1.bf16.msra.mxu1 %v9311_v51 }
 0x36a   : > { %3078 = vmatprep.subr.bf16.mxu1 %v9319_v53 }
 0x36b   : > { %3036 = vmatpush1.bf16.msra.mxu0 %v9308_v50 }
 0x36c   : > { %3037 = vmatprep.subr.bf16.mxu0 %v9316_v52 }
 0x36d   : > { %3079 = vmatpush1.bf16.msra.mxu1 %v9317_v55 }
 0x36e   : > { %3080 = vmatprep.subr.bf16.mxu1 %v9325_v57 }
 0x36f   : > { %3038 = vmatpush1.bf16.msra.mxu0 %v9314_v54 }
 0x370   : > { %3039 = vmatprep.subr.bf16.mxu0 %v9322_v56 }
 0x371   : > { %3081 = vmatpush1.bf16.msra.mxu1 %v9323_v59 }
 0x372   : > { %3082 = vmatprep.subr.bf16.mxu1 %v9331_v61 }
 0x373   : > { %3040 = vmatpush1.bf16.msra.mxu0 %v9320_v58 }
 0x374   : > { %3041 = vmatprep.subr.bf16.mxu0 %v9328_v60 }
 0x375   : > { %3083 = vmatpush1.bf16.msra.mxu1 %v9329_v63 }
 0x376   : > { %3084 = vmatprep.subr.bf16.mxu1 %v9337_v1 }
 0x377   : > { %3042 = vmatpush1.bf16.msra.mxu0 %v9326_v62 }
 0x378   : > { %3043 = vmatprep.subr.bf16.mxu0 %v9334_v0 }
 0x379   : > { %3085 = vmatpush1.bf16.msra.mxu1 %v9335_v3 }
 0x37a   : > { %3086 = vmatprep.subr.bf16.mxu1 %v9343_v5 }
 0x37b   : > { %3044 = vmatpush1.bf16.msra.mxu0 %v9332_v2 }
 0x37c   : > { %3045 = vmatprep.subr.bf16.mxu0 %v9340_v4 }
 0x37d   : > { %3087 = vmatpush1.bf16.msra.mxu1 %v9341_v7 }
 0x37e   : > { %3088 = vmatprep.subr.bf16.mxu1 %v9349_v9 }
 0x37f   : > { %3046 = vmatpush1.bf16.msra.mxu0 %v9338_v6 }
 0x380   : > { %3047 = vmatprep.subr.bf16.mxu0 %v9346_v8 }
 0x381   : > { %3089 = vmatpush1.bf16.msra.mxu1 %v9347_v11 }
 0x382   : > { %3090 = vmatprep.subr.bf16.mxu1 %v9355_v13 }
 0x383   : > { %3048 = vmatpush1.bf16.msra.mxu0 %v9344_v10 }
 0x384   : > { %3049 = vmatprep.subr.bf16.mxu0 %v9352_v12 }
 0x385   : > { %3091 = vmatpush1.bf16.msra.mxu1 %v9353_v15 }
 0x386   : > { %3142 = vmatprep.subr.bf16.mxu1 %v9361_v17 }
 0x387   : > { %3050 = vmatpush1.bf16.msra.mxu0 %v9350_v14 }
 0x388   : > { %3101 = vmatprep.subr.bf16.mxu0 %v9358_v16 }
 0x41b   : > { %v1676_v25 = vpop.f32.mrb[0].mxu1 }
 0x41c   : > { %v1677_v26 = vadd.f32 %v1676_v25, %v1605_v23  ;;  %v1678_v27 = vpop.f32.mrb[1].mxu1 }
 0x41d   : > { %v1679_v28 = vadd.f32 %v1678_v27, %v1609_v24  ;;  %v1680_v29 = vpop.f32.mrb[2].mxu1 }
 0x41e   : > { %v8368_v30 = vmul.f32 -1.442695, %v1677_v26  ;;  %v1681_v31 = vadd.f32 %v1680_v29, %v1605_v23  ;;  %v1682_v32 = vpop.f32.mrb[3].mxu1 }
 0x41f   : > { %v8369_v33 = vmul.f32 -1.442695, %v1679_v28  ;;  %v1683_v34 = vadd.f32 %v1682_v32, %v1609_v24 }
 0x420   : > { %9548 = vpow2.f32 %v8368_v30  ;;  %v8370_v35 = vmul.f32 -1.442695, %v1681_v31 }
 0x421   : > { %9550 = vpow2.f32 %v8369_v33  ;;  %v8371_v36 = vmul.f32 -1.442695, %v1683_v34 }
 0x422   : > { %9552 = vpow2.f32 %v8370_v35 }
 0x423   : > { %9554 = vpow2.f32 %v8371_v36  ;;  %v1686_v37 = vpop.f32.mrb[4].mxu1 }
 0x424   : > { %v1687_v38 = vadd.f32 %v1686_v37, %v1605_v23  ;;  %v1688_v39 = vpop.f32.mrb[5].mxu1 }
 0x425   : > { %v1689_v40 = vadd.f32 %v1688_v39, %v1609_v24  ;;  %v1690_v41 = vpop.f32.mrb[6].mxu1 }
 0x426   : > { %v8372_v42 = vmul.f32 -1.442695, %v1687_v38  ;;  %v1691_v43 = vadd.f32 %v1690_v41, %v1605_v23  ;;  %v1692_v44 = vpop.f32.mrb[7].mxu1 }
 0x427   : > { %v8373_v45 = vmul.f32 -1.442695, %v1689_v40  ;;  %v1693_v46 = vadd.f32 %v1692_v44, %v1609_v24 }
 0x428   : > { %9556 = vpow2.f32 %v8372_v42  ;;  %v8374_v47 = vmul.f32 -1.442695, %v1691_v43 }
 0x429   : > { %9558 = vpow2.f32 %v8373_v45  ;;  %v8375_v48 = vmul.f32 -1.442695, %v1693_v46 }
 0x42a   : > { %v9549_v49 = vpop.eup %9548  ;;  %9560 = vpow2.f32 %v8374_v47 }
 0x42b   : > { %v9551_v50 = vpop.eup %9550  ;;  %v1719_v51 = vadd.f32 1.0, %v9549_v49  ;;  %9562 = vpow2.f32 %v8375_v48 }
 0x42c   : > { %v9553_v52 = vpop.eup %9552  ;;  %v1720_v53 = vadd.f32 1.0, %v9551_v50 }
 0x42d   : > { %v9555_v54 = vpop.eup %9554  ;;  %9564 = vrcp.f32 %v1719_v51  ;;  %v1721_v55 = vadd.f32 1.0, %v9553_v52 }
 0x42e   : > { %9566 = vrcp.f32 %v1720_v53  ;;  %v1722_v56 = vadd.f32 1.0, %v9555_v54 }
 0x42f   : > { %9568 = vrcp.f32 %v1721_v55 }
 0x430   : > { %9570 = vrcp.f32 %v1722_v56 }
 0x432   : > { %v9557_v57 = vpop.eup %9556 }
 0x433   : > { %v9559_v58 = vpop.eup %9558  ;;  %v1723_v59 = vadd.f32 1.0, %v9557_v57 }
 0x434   : > { %v9561_v60 = vpop.eup %9560  ;;  %v1724_v61 = vadd.f32 1.0, %v9559_v58 }
 0x435   : > { %v9563_v62 = vpop.eup %9562  ;;  %9572 = vrcp.f32 %v1723_v59  ;;  %v1725_v63 = vadd.f32 1.0, %v9561_v60 }
 0x436   : > { %9574 = vrcp.f32 %v1724_v61  ;;  %v1726_v0 = vadd.f32 1.0, %v9563_v62 }
 0x437   : > { %v9565_v1 = vpop.eup %9564  ;;  %9576 = vrcp.f32 %v1725_v63  ;;  %v9356_v63 = vld [vmem:[#allocation20 + $0x10] ss:$48 sps:$4 sm:$0xff]  }
 0x438   : > { %v9567_v2 = vpop.eup %9566  ;;  %9578 = vrcp.f32 %v1726_v0  ;;  %v1743_v5 = vmul.f32 %v9565_v1, %v1677_v26  ;;  %v9359_v0 = vld [vmem:[#allocation20 + $0x18] ss:$48 sps:$4 sm:$0xff]  }
 0x439   : > { %v9569_v3 = vpop.eup %9568  ;;  %v1744_v7 = vmul.f32 %v9567_v2, %v1679_v28  ;;  %v9364_v2 = vld [vmem:[#allocation20 + $0x74] ss:$48 sps:$4 sm:$0xff]  }
 0x43a   : > { %v9571_v4 = vpop.eup %9570  ;;  %v1745_v6 = vmul.f32 %v9569_v3, %v1681_v31  ;;  %v9367_v3 = vld [vmem:[#allocation20 + $0x7c] ss:$48 sps:$4 sm:$0xff]  }
 0x43b   : > { %v1746_v8 = vmul.f32 %v9571_v4, %v1683_v34  ;;  %v9362_v4 = vld [vmem:[#allocation20 + $0x70] ss:$48 sps:$4 sm:$0xff]  }
 0x43c   : > { %v1751_v9 = vadd.f32 %v1745_v6, %v1743_v5  ;;  %v9365_v5 = vld [vmem:[#allocation20 + $0x78] ss:$48 sps:$4 sm:$0xff]   ;;  %v8853_v6 = vpop.f32.mrb[0].mxu0 }
 0x43d   : > { %v1758_v10 = vadd.f32 %v1746_v8, %v1744_v7  ;;  %v8354_v7 = vld [vmem:[#allocation12] ss:$0 sm:$0xff]  ;;  %v1584_v8 = vld [vmem:[#allocation14] sm:$0xff] }
 0x43e   : > { %v1752_v11 = vrot.slane %v1751_v9, 4 }
 0x43f   : > { %v9573_v12 = vpop.eup %9572  ;;  %v1759_v13 = vrot.slane %v1758_v10, 4 }
 0x440   : > { %v9575_v14 = vpop.eup %9574  ;;  %v1753_v15 = vadd.f32 %v1752_v11, %v1751_v9  ;;  %v1747_v23 = vmul.f32 %v9573_v12, %v1687_v38  ;;  %v9370_v9 = vld [vmem:[#allocation20 + $0xd4] ss:$48 sps:$4 sm:$0xff]   ;;  %v1578_v11 = vadd.f32 %v8853_v6, %v8354_v7  ;;  %v1569_v12 = vpop.f32.mrb[1].mxu0 }
 0x441   : > { %v9577_v16 = vpop.eup %9576  ;;  %v1760_v17 = vadd.f32 %v1759_v13, %v1758_v10  ;;  %v1748_v27 = vmul.f32 %v9575_v14, %v1689_v40  ;;  %v9373_v10 = vld [vmem:[#allocation20 + $0xdc] ss:$48 sps:$4 sm:$0xff]   ;;  %v1570_v13 = vadd.f32 %v8354_v7, %v1569_v12  ;;  %v8854_v14 = vpop.f32.mrb[2].mxu0  ;;  %v9436_v6 = vld [vmem:[#allocation20 + $0x4f4] ss:$48 sps:$4 sm:$0xff]  }
 0x442   : > { %v9579_v18 = vpop.eup %9578  ;;  %v1754_v21 = vrot.slane %v1753_v15, 2  ;;  %v1749_v24 = vmul.f32 %v9577_v16, %v1691_v43  ;;  %v1588_v16 = vadd.f32 %v1584_v8, %v1578_v11  ;;  %v9445_v11 = vld [vmem:[#allocation20 + $0x55c] ss:$48 sps:$4 sm:$0xff]   ;;  %v9440_v12 = vld [vmem:[#allocation20 + $0x550] ss:$48 sps:$4 sm:$0xff]  }
 0x443   : > { %v1761_v25 = vrot.slane %v1760_v17, 2  ;;  %v1750_v29 = vmul.f32 %v9579_v18, %v1693_v46  ;;  %v1572_v18 = vpop.f32.mrb[3].mxu0 }
 0x444   : > { %v1755_v26 = vadd.f32 %v1754_v21, %v1753_v15  ;;  %v1765_v30 = vadd.f32 %v1749_v24, %v1747_v23  ;;  %v1585_v15 = vld [vmem:[#allocation14 + $0x8] sm:$0xff]  ;;  %v9368_v21 = vld [vmem:[#allocation20 + $0xd0] ss:$48 sps:$4 sm:$0xff]   ;;  %v1586_v24 = vadd.f32 %v1584_v8, %v1570_v13  ;;  %1592 = vst [vmem:[#allocation2 + $0x10] sm:$0xff] %v1588_v16 }
 0x445   : > { %v1762_v28 = vadd.f32 %v1761_v25, %v1760_v17  ;;  %v1772_v31 = vadd.f32 %v1750_v29, %v1748_v27  ;;  %v1581_v17 = vadd.f32 %v8854_v14, %v8354_v7  ;;  %v9371_v23 = vld [vmem:[#allocation20 + $0xd8] ss:$48 sps:$4 sm:$0xff]   ;;  %v1573_v25 = vadd.f32 %v8354_v7, %v1572_v18  ;;  %v9376_v27 = vld [vmem:[#allocation20 + $0x134] ss:$48 sps:$4 sm:$0xff]   ;;  %v9379_v29 = vld [vmem:[#allocation20 + $0x13c] ss:$48 sps:$4 sm:$0xff]  }
 0x446   : > { %v1756_v32 = vrot.slane %v1755_v26, 1  ;;  %v1766_v33 = vrot.slane %v1765_v30, 4  ;;  %1590 = vst [vmem:[#allocation2] sm:$0xff] %v1586_v24  ;;  %v9439_v7 = vld [vmem:[#allocation20 + $0x4fc] ss:$48 sps:$4 sm:$0xff]  }
 0x447   : > { %v1763_v34 = vrot.slane %v1762_v28, 1  ;;  %v1773_v35 = vrot.slane %v1772_v31, 4  ;;  %v9434_v8 = vld [vmem:[#allocation20 + $0x4f0] ss:$48 sps:$4 sm:$0xff]   ;;  %v9443_v13 = vld [vmem:[#allocation20 + $0x558] ss:$48 sps:$4 sm:$0xff]  }
 0x448   : > { %v1767_v36 = vadd.f32 %v1766_v33, %v1765_v30  ;;  %v1757_v39 = vadd.f32 %v1756_v32, %v1755_v26  ;;  %v1589_v26 = vadd.f32 %v1585_v15, %v1581_v17  ;;  %v1587_v30 = vadd.f32 %v1585_v15, %v1573_v25  ;;  %v9382_v32 = vld [vmem:[#allocation20 + $0x194] ss:$48 sps:$4 sm:$0xff]   ;;  %v9385_v33 = vld [vmem:[#allocation20 + $0x19c] ss:$48 sps:$4 sm:$0xff]   ;;  %v9446_v16 = vld [vmem:[#allocation20 + $0x5b0] ss:$48 sps:$4 sm:$0xff]  }
 0x449   : > { %v1774_v37 = vadd.f32 %v1773_v35, %v1772_v31  ;;  %v1764_v42 = vadd.f32 %v1763_v34, %v1762_v28  ;;  %v9374_v28 = vld [vmem:[#allocation20 + $0x130] ss:$48 sps:$4 sm:$0xff]   ;;  %v9377_v31 = vld [vmem:[#allocation20 + $0x138] ss:$48 sps:$4 sm:$0xff]   ;;  %v9448_v14 = vld [vmem:[#allocation20 + $0x5b4] ss:$48 sps:$4 sm:$0xff]  }
 0x44a   : > { %v1768_v41 = vrot.slane %v1767_v36, 2  ;;  %v1780_v43 = vmul.f32 0.0625, %v1757_v39  ;;  %1593 = vst [vmem:[#allocation2 + $0x18] sm:$0xff] %v1589_v26  ;;  %1591 = vst [vmem:[#allocation2 + $0x8] sm:$0xff] %v1587_v30  ;;  %v9380_v34 = vld [vmem:[#allocation20 + $0x190] ss:$48 sps:$4 sm:$0xff]  }
 0x44b   : > { %v1775_v44 = vrot.slane %v1774_v37, 2  ;;  %v1781_v40 = vmul.f32 0.0625, %v1764_v42  ;;  %v9383_v35 = vld [vmem:[#allocation20 + $0x198] ss:$48 sps:$4 sm:$0xff]   ;;  %v9386_v39 = vld [vmem:[#allocation20 + $0x1f0] ss:$48 sps:$4 sm:$0xff]  }
 0x44c   : > { %v1769_v45 = vadd.f32 %v1768_v41, %v1767_v36  ;;  %v1784_v50 = vpack.c.bf16 %v1780_v43, %v1780_v43  ;;  %v9388_v36 = vld [vmem:[#allocation20 + $0x1f4] ss:$48 sps:$4 sm:$0xff]   ;;  %v9389_v41 = vld [vmem:[#allocation20 + $0x1f8] ss:$48 sps:$4 sm:$0xff]   ;;  %v9451_v15 = vld [vmem:[#allocation20 + $0x5bc] ss:$48 sps:$4 sm:$0xff]  }
 0x44d   : > { %v1776_v38 = vadd.f32 %v1775_v44, %v1774_v37  ;;  %v1785_v52 = vpack.c.bf16 %v1781_v40, %v1781_v40  ;;  %v9391_v37 = vld [vmem:[#allocation20 + $0x1fc] ss:$48 sps:$4 sm:$0xff]   ;;  %v9394_v42 = vld [vmem:[#allocation20 + $0x254] ss:$48 sps:$4 sm:$0xff]   ;;  %v9398_v40 = vld [vmem:[#allocation20 + $0x2b0] ss:$48 sps:$4 sm:$0xff]  }
 0x44e   : > { %v1770_v47 = vrot.slane %v1769_v45, 1  ;;  %v2048_v56 = vunpack.c.l.b16 %v1784_v50  ;;  %v9397_v44 = vld [vmem:[#allocation20 + $0x25c] ss:$48 sps:$4 sm:$0xff]   ;;  %v9400_v43 = vld [vmem:[#allocation20 + $0x2b4] ss:$48 sps:$4 sm:$0xff]  }
 0x44f   : > { %v1777_v46 = vrot.slane %v1776_v38, 1  ;;  %v2049_v58 = vunpack.c.l.b16 %v1785_v52  ;;  %v9404_v50 = vld [vmem:[#allocation20 + $0x310] ss:$48 sps:$4 sm:$0xff]   ;;  %v9412_v52 = vld [vmem:[#allocation20 + $0x374] ss:$48 sps:$4 sm:$0xff]  }
 0x450   : > { %v1771_v48 = vadd.f32 %v1770_v47, %v1769_v45  ;;  %v9392_v45 = vld [vmem:[#allocation20 + $0x250] ss:$48 sps:$4 sm:$0xff]   ;;  %v9403_v47 = vld [vmem:[#allocation20 + $0x2bc] ss:$48 sps:$4 sm:$0xff]   ;;  %v9449_v17 = vld [vmem:[#allocation20 + $0x5b8] ss:$48 sps:$4 sm:$0xff]  }
 0x451   : > { %v1778_v49 = vadd.f32 %v1777_v46, %v1776_v38  ;;  %v9395_v38 = vld [vmem:[#allocation20 + $0x258] ss:$48 sps:$4 sm:$0xff]   ;;  %v9454_v18 = vld [vmem:[#allocation20 + $0x24] ss:$48 sps:$4 sm:$0xff]  }
 0x452   : > { %v1782_v51 = vmul.f32 0.0625, %v1771_v48  ;;  %v9401_v46 = vld [vmem:[#allocation20 + $0x2b8] ss:$48 sps:$4 sm:$0xff]   ;;  %v9406_v48 = vld [vmem:[#allocation20 + $0x314] ss:$48 sps:$4 sm:$0xff]  }
 0x453   : > { %v1783_v53 = vmul.f32 0.0625, %v1778_v49  ;;  %v9409_v49 = vld [vmem:[#allocation20 + $0x31c] ss:$48 sps:$4 sm:$0xff]   ;;  %v9455_v24 = vld [vmem:[#allocation20 + $0x28] ss:$48 sps:$4 sm:$0xff]  }
 0x454   : > { %v1786_v54 = vpack.c.bf16 %v1782_v51, %v1782_v51  ;;  %v9407_v51 = vld [vmem:[#allocation20 + $0x318] ss:$48 sps:$4 sm:$0xff]   ;;  %v9460_v25 = vld [vmem:[#allocation20 + $0x84] ss:$48 sps:$4 sm:$0xff]  }
 0x455   : > { %v1787_v55 = vpack.c.bf16 %v1783_v53, %v1783_v53  ;;  %v9415_v53 = vld [vmem:[#allocation20 + $0x37c] ss:$48 sps:$4 sm:$0xff]   ;;  %v9461_v26 = vld [vmem:[#allocation20 + $0x88] ss:$48 sps:$4 sm:$0xff]   ;;  %v9466_v30 = vld [vmem:[#allocation20 + $0xe4] ss:$48 sps:$4 sm:$0xff]  }
 0x456   : > { %v2050_v57 = vunpack.c.l.b16 %v1786_v54  ;;  %v9410_v54 = vld [vmem:[#allocation20 + $0x370] ss:$48 sps:$4 sm:$0xff]  }
 0x457   : > { %v2051_v59 = vunpack.c.l.b16 %v1787_v55  ;;  %v9413_v55 = vld [vmem:[#allocation20 + $0x378] ss:$48 sps:$4 sm:$0xff]  }
 0x458   : > { %v2053_v60 = vsel %vm2052_vm1, %v2050_v57, %v2048_v56  ;;  %v9418_v56 = vld [vmem:[#allocation20 + $0x3d4] ss:$48 sps:$4 sm:$0xff]   ;;  %v9421_v57 = vld [vmem:[#allocation20 + $0x3dc] ss:$48 sps:$4 sm:$0xff]  }
 0x459   : > { %v2054_v61 = vsel %vm2052_vm1, %v2051_v59, %v2049_v58  ;;  %v11523_v1 = vpack.c.b16 %v2053_v60, %v2053_v60  ;;  %v9416_v58 = vld [vmem:[#allocation20 + $0x3d0] ss:$48 sps:$4 sm:$0xff]   ;;  %v9419_v59 = vld [vmem:[#allocation20 + $0x3d8] ss:$48 sps:$4 sm:$0xff]   ;;  %v9424_v60 = vld [vmem:[#allocation20 + $0x434] ss:$48 sps:$4 sm:$0xff]  }
 0x45a   : > { %v11521_v62 = vpack.c.b16 %v2054_v61, %v2054_v61  ;;  %v9427_v61 = vld [vmem:[#allocation20 + $0x43c] ss:$48 sps:$4 sm:$0xff]  }
 0x45c   : > { %3051 = vmatprep.mubr.bf16.mxu0 %v11521_v62  ;;  %3092 = vmatprep.mubr.bf16.mxu1 %v11521_v62 }
 0x45d   : > { %3052 = vmatmul.mubr.bf16.vlgmr.msra.gmra.mrb[4].mxu0 %v11523_v1  ;;  %3093 = vmatmul.mubr.bf16.vlgmr.msra.gmra.mrb[8].mxu1 %v11523_v1 }
 0x45e   : > { %3102 = vmatpush1.bf16.msra.mxu0 %v9356_v63  ;;  %3143 = vmatpush1.bf16.msra.mxu1 %v9359_v0  ;;  %v9422_v63 = vld [vmem:[#allocation20 + $0x430] ss:$48 sps:$4 sm:$0xff]   ;;  %v9425_v0 = vld [vmem:[#allocation20 + $0x438] ss:$48 sps:$4 sm:$0xff]  }
 0x45f   : > { %3133 = vmatprep.mubr.bf16.mxu0 %v11521_v62  ;;  %3174 = vmatprep.mubr.bf16.mxu1 %v11521_v62 }
 0x460   : > { %3103 = vmatprep.subr.bf16.mxu0 %v9364_v2  ;;  %3144 = vmatprep.subr.bf16.mxu1 %v9367_v3  ;;  %v9430_v2 = vld [vmem:[#allocation20 + $0x494] ss:$48 sps:$4 sm:$0xff]   ;;  %v9433_v3 = vld [vmem:[#allocation20 + $0x49c] ss:$48 sps:$4 sm:$0xff]  }
 0x462   : > { %3104 = vmatpush1.bf16.msra.mxu0 %v9362_v4  ;;  %3145 = vmatpush1.bf16.msra.mxu1 %v9365_v5  ;;  %v9428_v4 = vld [vmem:[#allocation20 + $0x490] ss:$48 sps:$4 sm:$0xff]   ;;  %v9431_v5 = vld [vmem:[#allocation20 + $0x498] ss:$48 sps:$4 sm:$0xff]  }
 0x463   : > { %3105 = vmatprep.subr.bf16.mxu0 %v9370_v9  ;;  %3146 = vmatprep.subr.bf16.mxu1 %v9373_v10  ;;  %v9437_v9 = vld [vmem:[#allocation20 + $0x4f8] ss:$48 sps:$4 sm:$0xff]   ;;  %v9442_v10 = vld [vmem:[#allocation20 + $0x554] ss:$48 sps:$4 sm:$0xff]  }
 0x466   : > { %3106 = vmatpush1.bf16.msra.mxu0 %v9368_v21  ;;  %3147 = vmatpush1.bf16.msra.mxu1 %v9371_v23  ;;  %v9457_v21 = vld [vmem:[#allocation20 + $0x2c] ss:$48 sps:$4 sm:$0xff]   ;;  %v9452_v23 = vld [vmem:[#allocation20 + $0x20] ss:$48 sps:$4 sm:$0xff]  }
 0x467   : > { %3107 = vmatprep.subr.bf16.mxu0 %v9376_v27  ;;  %3148 = vmatprep.subr.bf16.mxu1 %v9379_v29  ;;  %v9463_v27 = vld [vmem:[#allocation20 + $0x8c] ss:$48 sps:$4 sm:$0xff]   ;;  %v9458_v29 = vld [vmem:[#allocation20 + $0x80] ss:$48 sps:$4 sm:$0xff]  }
 0x46a   : > { %3108 = vmatpush1.bf16.msra.mxu0 %v9374_v28  ;;  %3149 = vmatpush1.bf16.msra.mxu1 %v9377_v31  ;;  %v9469_v28 = vld [vmem:[#allocation20 + $0xec] ss:$48 sps:$4 sm:$0xff]   ;;  %v9464_v31 = vld [vmem:[#allocation20 + $0xe0] ss:$48 sps:$4 sm:$0xff]  }
 0x46b   : > { %3109 = vmatprep.subr.bf16.mxu0 %v9382_v32  ;;  %3150 = vmatprep.subr.bf16.mxu1 %v9385_v33  ;;  %v9467_v32 = vld [vmem:[#allocation20 + $0xe8] ss:$48 sps:$4 sm:$0xff]   ;;  %v9472_v33 = vld [vmem:[#allocation20 + $0x144] ss:$48 sps:$4 sm:$0xff]  }
 0x46e   : > { %3110 = vmatpush1.bf16.msra.mxu0 %v9380_v34  ;;  %3151 = vmatpush1.bf16.msra.mxu1 %v9383_v35  ;;  %v9475_v34 = vld [vmem:[#allocation20 + $0x14c] ss:$48 sps:$4 sm:$0xff]   ;;  %v9470_v35 = vld [vmem:[#allocation20 + $0x140] ss:$48 sps:$4 sm:$0xff]  }
 0x46f   : > { %3111 = vmatprep.subr.bf16.mxu0 %v9388_v36  ;;  %3152 = vmatprep.subr.bf16.mxu1 %v9391_v37  ;;  %v9473_v36 = vld [vmem:[#allocation20 + $0x148] ss:$48 sps:$4 sm:$0xff]   ;;  %v9478_v37 = vld [vmem:[#allocation20 + $0x1a4] ss:$48 sps:$4 sm:$0xff]  }
 0x472   : > { %3112 = vmatpush1.bf16.msra.mxu0 %v9386_v39  ;;  %3153 = vmatpush1.bf16.msra.mxu1 %v9389_v41  ;;  %v9476_v39 = vld [vmem:[#allocation20 + $0x1a0] ss:$48 sps:$4 sm:$0xff]   ;;  %v9479_v41 = vld [vmem:[#allocation20 + $0x1a8] ss:$48 sps:$4 sm:$0xff]  }
 0x473   : > { %3113 = vmatprep.subr.bf16.mxu0 %v9394_v42  ;;  %3154 = vmatprep.subr.bf16.mxu1 %v9397_v44  ;;  %v9484_v42 = vld [vmem:[#allocation20 + $0x204] ss:$48 sps:$4 sm:$0xff]   ;;  %v9487_v44 = vld [vmem:[#allocation20 + $0x20c] ss:$48 sps:$4 sm:$0xff]  }
 0x476   : > { %3114 = vmatpush1.bf16.msra.mxu0 %v9392_v45  ;;  %3155 = vmatpush1.bf16.msra.mxu1 %v9395_v38  ;;  %v9482_v45 = vld [vmem:[#allocation20 + $0x200] ss:$48 sps:$4 sm:$0xff]   ;;  %v9485_v38 = vld [vmem:[#allocation20 + $0x208] ss:$48 sps:$4 sm:$0xff]  }
 0x477   : > { %3115 = vmatprep.subr.bf16.mxu0 %v9400_v43  ;;  %3156 = vmatprep.subr.bf16.mxu1 %v9403_v47  ;;  %v9490_v43 = vld [vmem:[#allocation20 + $0x264] ss:$48 sps:$4 sm:$0xff]   ;;  %v9493_v47 = vld [vmem:[#allocation20 + $0x26c] ss:$48 sps:$4 sm:$0xff]  }
 0x47a   : > { %3116 = vmatpush1.bf16.msra.mxu0 %v9398_v40  ;;  %3157 = vmatpush1.bf16.msra.mxu1 %v9401_v46  ;;  %v9488_v40 = vld [vmem:[#allocation20 + $0x260] ss:$48 sps:$4 sm:$0xff]   ;;  %v9491_v46 = vld [vmem:[#allocation20 + $0x268] ss:$48 sps:$4 sm:$0xff]  }
 0x47b   : > { %3117 = vmatprep.subr.bf16.mxu0 %v9406_v48  ;;  %3158 = vmatprep.subr.bf16.mxu1 %v9409_v49  ;;  %v9496_v48 = vld [vmem:[#allocation20 + $0x2c4] ss:$48 sps:$4 sm:$0xff]   ;;  %v9499_v49 = vld [vmem:[#allocation20 + $0x2cc] ss:$48 sps:$4 sm:$0xff]  }
 0x47e   : > { %3118 = vmatpush1.bf16.msra.mxu0 %v9404_v50  ;;  %3159 = vmatpush1.bf16.msra.mxu1 %v9407_v51  ;;  %v9494_v50 = vld [vmem:[#allocation20 + $0x2c0] ss:$48 sps:$4 sm:$0xff]   ;;  %v9497_v51 = vld [vmem:[#allocation20 + $0x2c8] ss:$48 sps:$4 sm:$0xff]  }
 0x47f   : > { %3119 = vmatprep.subr.bf16.mxu0 %v9412_v52  ;;  %3160 = vmatprep.subr.bf16.mxu1 %v9415_v53  ;;  %v9502_v52 = vld [vmem:[#allocation20 + $0x324] ss:$48 sps:$4 sm:$0xff]   ;;  %v9505_v53 = vld [vmem:[#allocation20 + $0x32c] ss:$48 sps:$4 sm:$0xff]  }
 0x482   : > { %3120 = vmatpush1.bf16.msra.mxu0 %v9410_v54  ;;  %3161 = vmatpush1.bf16.msra.mxu1 %v9413_v55  ;;  %v9500_v54 = vld [vmem:[#allocation20 + $0x320] ss:$48 sps:$4 sm:$0xff]   ;;  %v9503_v55 = vld [vmem:[#allocation20 + $0x328] ss:$48 sps:$4 sm:$0xff]  }
 0x483   : > { %3121 = vmatprep.subr.bf16.mxu0 %v9418_v56  ;;  %3162 = vmatprep.subr.bf16.mxu1 %v9421_v57  ;;  %v9508_v56 = vld [vmem:[#allocation20 + $0x384] ss:$48 sps:$4 sm:$0xff]   ;;  %v9511_v57 = vld [vmem:[#allocation20 + $0x38c] ss:$48 sps:$4 sm:$0xff]  }
 0x486   : > { %3122 = vmatpush1.bf16.msra.mxu0 %v9416_v58  ;;  %3163 = vmatpush1.bf16.msra.mxu1 %v9419_v59  ;;  %v9506_v58 = vld [vmem:[#allocation20 + $0x380] ss:$48 sps:$4 sm:$0xff]   ;;  %v9509_v59 = vld [vmem:[#allocation20 + $0x388] ss:$48 sps:$4 sm:$0xff]  }
 0x487   : > { %3123 = vmatprep.subr.bf16.mxu0 %v9424_v60  ;;  %3164 = vmatprep.subr.bf16.mxu1 %v9427_v61  ;;  %v9514_v60 = vld [vmem:[#allocation20 + $0x3e4] ss:$48 sps:$4 sm:$0xff]   ;;  %v9517_v61 = vld [vmem:[#allocation20 + $0x3ec] ss:$48 sps:$4 sm:$0xff]  }
 0x48a   : > { %3124 = vmatpush1.bf16.msra.mxu0 %v9422_v63  ;;  %3165 = vmatpush1.bf16.msra.mxu1 %v9425_v0  ;;  %v9512_v63 = vld [vmem:[#allocation20 + $0x3e0] ss:$48 sps:$4 sm:$0xff]   ;;  %v9515_v0 = vld [vmem:[#allocation20 + $0x3e8] ss:$48 sps:$4 sm:$0xff]  }
 0x48b   : > { %3125 = vmatprep.subr.bf16.mxu0 %v9430_v2  ;;  %3166 = vmatprep.subr.bf16.mxu1 %v9433_v3  ;;  %v9520_v2 = vld [vmem:[#allocation20 + $0x444] ss:$48 sps:$4 sm:$0xff]   ;;  %v9523_v3 = vld [vmem:[#allocation20 + $0x44c] ss:$48 sps:$4 sm:$0xff]  }
 0x48e   : > { %3126 = vmatpush1.bf16.msra.mxu0 %v9428_v4  ;;  %3167 = vmatpush1.bf16.msra.mxu1 %v9431_v5  ;;  %v9518_v4 = vld [vmem:[#allocation20 + $0x440] ss:$48 sps:$4 sm:$0xff]   ;;  %v9521_v5 = vld [vmem:[#allocation20 + $0x448] ss:$48 sps:$4 sm:$0xff]  }
 0x48f   : > { %3127 = vmatprep.subr.bf16.mxu0 %v9436_v6  ;;  %3168 = vmatprep.subr.bf16.mxu1 %v9439_v7  ;;  %v9526_v6 = vld [vmem:[#allocation20 + $0x4a4] ss:$48 sps:$4 sm:$0xff]   ;;  %v9529_v7 = vld [vmem:[#allocation20 + $0x4ac] ss:$48 sps:$4 sm:$0xff]  }
 0x492   : > { %3128 = vmatpush1.bf16.msra.mxu0 %v9434_v8  ;;  %3169 = vmatpush1.bf16.msra.mxu1 %v9437_v9  ;;  %v9524_v8 = vld [vmem:[#allocation20 + $0x4a0] ss:$48 sps:$4 sm:$0xff]   ;;  %v9527_v9 = vld [vmem:[#allocation20 + $0x4a8] ss:$48 sps:$4 sm:$0xff]  }
 0x493   : > { %3129 = vmatprep.subr.bf16.mxu0 %v9442_v10  ;;  %3170 = vmatprep.subr.bf16.mxu1 %v9445_v11  ;;  %v9532_v10 = vld [vmem:[#allocation20 + $0x504] ss:$48 sps:$4 sm:$0xff]   ;;  %v9535_v11 = vld [vmem:[#allocation20 + $0x50c] ss:$48 sps:$4 sm:$0xff]  }
 0x496   : > { %3130 = vmatpush1.bf16.msra.mxu0 %v9440_v12  ;;  %3171 = vmatpush1.bf16.msra.mxu1 %v9443_v13  ;;  %v9530_v12 = vld [vmem:[#allocation20 + $0x500] ss:$48 sps:$4 sm:$0xff]   ;;  %v9533_v13 = vld [vmem:[#allocation20 + $0x508] ss:$48 sps:$4 sm:$0xff]  }
 0x497   : > { %3131 = vmatprep.subr.bf16.mxu0 %v9448_v14  ;;  %3172 = vmatprep.subr.bf16.mxu1 %v9451_v15  ;;  %v9538_v14 = vld [vmem:[#allocation20 + $0x564] ss:$48 sps:$4 sm:$0xff]   ;;  %v9541_v15 = vld [vmem:[#allocation20 + $0x56c] ss:$48 sps:$4 sm:$0xff]  }
 0x49a   : > { %3132 = vmatpush1.bf16.msra.mxu0 %v9446_v16  ;;  %3173 = vmatpush1.bf16.msra.mxu1 %v9449_v17  ;;  %v9536_v16 = vld [vmem:[#allocation20 + $0x560] ss:$48 sps:$4 sm:$0xff]   ;;  %v9539_v17 = vld [vmem:[#allocation20 + $0x568] ss:$48 sps:$4 sm:$0xff]  }
 0x49b   : > { %3183 = vmatprep.subr.bf16.mxu0 %v9454_v18  ;;  %3224 = vmatprep.subr.bf16.mxu1 %v9457_v21  ;;  %v9544_v18 = vld [vmem:[#allocation20 + $0x5c4] ss:$48 sps:$4 sm:$0xff]   ;;  %v9547_v21 = vld [vmem:[#allocation20 + $0x5cc] ss:$48 sps:$4 sm:$0xff]  }
 0x49d   : > { %3134 = vmatmul.mubr.bf16.vlgmr.msra.gmra.mrb[8].mxu0 %v11523_v1  ;;  %3175 = vmatmul.mubr.bf16.vlgmr.msra.gmra.mrb[12].mxu1 %v11523_v1 }
 0x49e   : > { %3184 = vmatpush1.bf16.msra.mxu0 %v9452_v23  ;;  %3215 = vmatprep.mubr.bf16.mxu0 %v11521_v62  ;;  %v9542_v23 = vld [vmem:[#allocation20 + $0x5c0] ss:$48 sps:$4 sm:$0xff]  }
 0x49f   : > { %3225 = vmatpush1.bf16.msra.mxu1 %v9455_v24  ;;  %3256 = vmatprep.mubr.bf16.mxu1 %v11521_v62  ;;  %v9481_v62 = vld [vmem:[#allocation20 + $0x1ac] ss:$48 sps:$4 sm:$0xff]   ;;  %v9545_v24 = vld [vmem:[#allocation20 + $0x5c8] ss:$48 sps:$4 sm:$0xff]  }
 0x4a0   : > { %3185 = vmatprep.subr.bf16.mxu0 %v9460_v25  ;;  %3226 = vmatprep.subr.bf16.mxu1 %v9463_v27  ;;  %v1994_v25 = vsub.s32 2, %v11511_v19  ;;  %v1980_v27 = vld [vmem:[#allocation21] sm:$0xff] }
 0x4a2   : > { %3186 = vmatpush1.bf16.msra.mxu0 %v9458_v29  ;;  %v1998_v29 = vsub.s32 3, %v11511_v19 }
 0x4a3   : > { %3227 = vmatpush1.bf16.msra.mxu1 %v9461_v26  ;;  %3187 = vmatprep.subr.bf16.mxu0 %v9466_v30  ;;  %v10735_v26 = vmov 1983009808  }
 0x4a4   : > { %3228 = vmatprep.subr.bf16.mxu1 %v9469_v28  ;;  %v3304_v30 = vunpack.c.l.s4 %v10735_v26  ;;  %v1987_v28 = vrot.slane %v1980_v27, %v11514_v20 }
 0x4a6   : > { %3188 = vmatpush1.bf16.msra.mxu0 %v9464_v31  ;;  %v1995_v31 = vrot.slane %v1980_v27, %v1994_v25 }
 0x4a7   : > { %3229 = vmatpush1.bf16.msra.mxu1 %v9467_v32  ;;  %3189 = vmatprep.subr.bf16.mxu0 %v9472_v33  ;;  %v1991_v32 = vrot.slane %v1980_v27, %v11517_v22  ;;  %v1999_v33 = vrot.slane %v1980_v27, %v1998_v29 }
 0x4a8   : > { %3230 = vmatprep.subr.bf16.mxu1 %v9475_v34 }
 0x4aa   : > { %3190 = vmatpush1.bf16.msra.mxu0 %v9470_v35 }
 0x4ab   : > { %3231 = vmatpush1.bf16.msra.mxu1 %v9473_v36  ;;  %3191 = vmatprep.subr.bf16.mxu0 %v9478_v37 }
 0x4ac   : > { %3232 = vmatprep.subr.bf16.mxu1 %v9481_v62 }
 0x4ae   : > { %3192 = vmatpush1.bf16.msra.mxu0 %v9476_v39 }
 0x4af   : > { %3233 = vmatpush1.bf16.msra.mxu1 %v9479_v41  ;;  %3193 = vmatprep.subr.bf16.mxu0 %v9484_v42 }
 0x4b0   : > { %3234 = vmatprep.subr.bf16.mxu1 %v9487_v44 }
 0x4b2   : > { %3194 = vmatpush1.bf16.msra.mxu0 %v9482_v45 }
 0x4b3   : > { %3235 = vmatpush1.bf16.msra.mxu1 %v9485_v38  ;;  %3195 = vmatprep.subr.bf16.mxu0 %v9490_v43 }
 0x4b4   : > { %3236 = vmatprep.subr.bf16.mxu1 %v9493_v47 }
 0x4b6   : > { %3196 = vmatpush1.bf16.msra.mxu0 %v9488_v40 }
 0x4b7   : > { %3237 = vmatpush1.bf16.msra.mxu1 %v9491_v46  ;;  %3197 = vmatprep.subr.bf16.mxu0 %v9496_v48 }
 0x4b8   : > { %3238 = vmatprep.subr.bf16.mxu1 %v9499_v49 }
 0x4ba   : > { %3198 = vmatpush1.bf16.msra.mxu0 %v9494_v50 }
 0x4bb   : > { %3239 = vmatpush1.bf16.msra.mxu1 %v9497_v51  ;;  %3199 = vmatprep.subr.bf16.mxu0 %v9502_v52 }
 0x4bc   : > { %3240 = vmatprep.subr.bf16.mxu1 %v9505_v53 }
 0x4be   : > { %3200 = vmatpush1.bf16.msra.mxu0 %v9500_v54 }
 0x4bf   : > { %3241 = vmatpush1.bf16.msra.mxu1 %v9503_v55  ;;  %3201 = vmatprep.subr.bf16.mxu0 %v9508_v56 }
 0x4c0   : > { %3242 = vmatprep.subr.bf16.mxu1 %v9511_v57 }
 0x4c2   : > { %3202 = vmatpush1.bf16.msra.mxu0 %v9506_v58 }
 0x4c3   : > { %3243 = vmatpush1.bf16.msra.mxu1 %v9509_v59  ;;  %3203 = vmatprep.subr.bf16.mxu0 %v9514_v60 }
 0x4c4   : > { %3244 = vmatprep.subr.bf16.mxu1 %v9517_v61 }
 0x4c6   : > { %3204 = vmatpush1.bf16.msra.mxu0 %v9512_v63 }
 0x4c7   : > { %3245 = vmatpush1.bf16.msra.mxu1 %v9515_v0  ;;  %3205 = vmatprep.subr.bf16.mxu0 %v9520_v2 }
 0x4c8   : > { %3246 = vmatprep.subr.bf16.mxu1 %v9523_v3 }
 0x4ca   : > { %3206 = vmatpush1.bf16.msra.mxu0 %v9518_v4 }
 0x4cb   : > { %3247 = vmatpush1.bf16.msra.mxu1 %v9521_v5  ;;  %3207 = vmatprep.subr.bf16.mxu0 %v9526_v6 }
 0x4cc   : > { %3248 = vmatprep.subr.bf16.mxu1 %v9529_v7 }
 0x4ce   : > { %3208 = vmatpush1.bf16.msra.mxu0 %v9524_v8 }
 0x4cf   : > { %3249 = vmatpush1.bf16.msra.mxu1 %v9527_v9  ;;  %3209 = vmatprep.subr.bf16.mxu0 %v9532_v10 }
 0x4d0   : > { %3250 = vmatprep.subr.bf16.mxu1 %v9535_v11 }
 0x4d2   : > { %3210 = vmatpush1.bf16.msra.mxu0 %v9530_v12 }
 0x4d3   : > { %3251 = vmatpush1.bf16.msra.mxu1 %v9533_v13  ;;  %3211 = vmatprep.subr.bf16.mxu0 %v9538_v14 }
 0x4d4   : > { %3252 = vmatprep.subr.bf16.mxu1 %v9541_v15 }
 0x4d6   : > { %3212 = vmatpush1.bf16.msra.mxu0 %v9536_v16 }
 0x4d7   : > { %3253 = vmatpush1.bf16.msra.mxu1 %v9539_v17  ;;  %3213 = vmatprep.subr.bf16.mxu0 %v9544_v18 }
 0x4d8   : > { %3254 = vmatprep.subr.bf16.mxu1 %v9547_v21 }
 0x4da   : > { %3214 = vmatpush1.bf16.msra.mxu0 %v9542_v23 }
 0x4db   : > { %3255 = vmatpush1.bf16.msra.mxu1 %v9545_v24 }
 0x4dd   : > { %3216 = vmatmul.mubr.bf16.vlgmr.msra.gmra.mrb[12].mxu0 %v11523_v1 }
 0x4de   : > { %3257 = vmatmul.mubr.bf16.vlgmr.msra.gmra.mrb[16].mxu1 %v11523_v1  ;;  %v3305_v1 = vunpack.c.0.s8 %v3304_v30 }
 0x4e0   : > { %v11546_v48 = vsub.s32 %v3305_v1, %v11511_v19 }
 0x530   : > { %v3053_v34 = vpop.f32.mrb[4].mxu0  ;;  %v3094_v35 = vpop.f32.mrb[8].mxu1 }
 0x531   : > { %v3054_v36 = vadd.f32 %v3053_v34, %v1987_v28  ;;  %v3095_v37 = vadd.f32 %v3094_v35, %v1995_v31  ;;  %v3055_v62 = vpop.f32.mrb[5].mxu0  ;;  %v3096_v39 = vpop.f32.mrb[9].mxu1 }
 0x532   : > { %v3056_v41 = vadd.f32 %v3055_v62, %v1991_v32  ;;  %v3097_v42 = vadd.f32 %v3096_v39, %v1999_v33  ;;  %v3057_v44 = vpop.f32.mrb[6].mxu0  ;;  %v3098_v45 = vpop.f32.mrb[10].mxu1 }
 0x533   : > { %v8568_v38 = vclamps-f32 %v3054_v36, 10000.0  ;;  %v8570_v43 = vclamps-f32 %v3095_v37, 10000.0  ;;  %v3058_v47 = vpop.f32.mrb[7].mxu0  ;;  %v3099_v40 = vpop.f32.mrb[11].mxu1 }
 0x534   : > { %v8569_v46 = vclamps-f32 %v3056_v41, 10000.0  ;;  %v8571_v49 = vclamps-f32 %v3097_v42, 10000.0 }
 0x536   : > { %v3301_v50 = vcombine.low %v8568_v38, %v8569_v46  ;;  %v3302_v51 = vcombine.low %v8570_v43, %v8571_v49 }
 0x538   : > { %v3309_v52 = vrot.slane %v3301_v50, %v11546_v48  ;;  %v3316_v53 = vrot.slane %v3302_v51, %v11546_v48 }
 0x53a   : > { %v3317_v54 = vcombine.low %v3309_v52, %v3316_v53 }
 0x53c   : > { %3355 = vst [vmem:[#allocation3] sm:$0xff] %v3317_v54 }
 0x53d   : > { %10525 = shalt.err (!%p10522_p10)  }
 0x53e   : > { %s10526_s6 = scalar_lea.vmem %s1488_s17, 4096  ;;  %p10531_p9 = scmp.lt.s32.totalorder %s1488_s17, %s1488_s17 }
 0x53f   : > { %p10527_p7 = scmp.ne.s32.totalorder %s1488_s17, %s10526_s6  ;;  %p10532_p4 = scmp.lt.s32.totalorder %s10526_s6, %s10526_s6 }
 0x541   : > { %p10533_p2 = por %p10532_p4, %p10531_p9 }
 0x543   : > { %p10534_p12 = pnand %p10533_p2, %p10527_p7 }
 0x545   : > { %10537 = shalt.err (!%p10534_p12)  }
 0x546   : > { %1490 = dma.hbm_to_vmem [thread:$0]  %s12266_s12, 4096, %s1488_s17, [#allocation8 + $0x3]  ;;  %v2002_v55 = vsub.s32 4, %v11511_v19  ;;  %v2010_v56 = vsub.s32 6, %v11511_v19  ;;  %v2006_v57 = vsub.s32 5, %v11511_v19  ;;  %v2014_v58 = vsub.s32 7, %v11511_v19 }
 0x548   : > { %v2003_v59 = vrot.slane %v1980_v27, %v2002_v55  ;;  %v2011_v60 = vrot.slane %v1980_v27, %v2010_v56  ;;  %v2007_v61 = vrot.slane %v1980_v27, %v2006_v57  ;;  %v2015_v63 = vrot.slane %v1980_v27, %v2014_v58  ;;  %v1981_v27 = vld [vmem:[#allocation21 + $0x8] sm:$0xf] }
 0x549   : > { %v2019_v26 = vrot.slane %v1981_v27, %v11514_v20  ;;  %v2027_v30 = vrot.slane %v1981_v27, %v1994_v25  ;;  %v2023_v28 = vrot.slane %v1981_v27, %v11517_v22  ;;  %v2031_v31 = vrot.slane %v1981_v27, %v1998_v29 }
 0x570   : > { %v3135_v0 = vpop.f32.mrb[8].mxu0  ;;  %v3176_v2 = vpop.f32.mrb[12].mxu1 }
 0x571   : > { %v3136_v3 = vadd.f32 %v3135_v0, %v2003_v59  ;;  %v3177_v4 = vadd.f32 %v3176_v2, %v2011_v60  ;;  %v3137_v5 = vpop.f32.mrb[9].mxu0  ;;  %v3178_v6 = vpop.f32.mrb[13].mxu1 }
 0x572   : > { %v3138_v7 = vadd.f32 %v3137_v5, %v2007_v61  ;;  %v3179_v8 = vadd.f32 %v3178_v6, %v2015_v63  ;;  %v3139_v9 = vpop.f32.mrb[10].mxu0  ;;  %v3180_v10 = vpop.f32.mrb[14].mxu1 }
 0x573   : > { %v8572_v11 = vclamps-f32 %v3136_v3, 10000.0  ;;  %v8574_v12 = vclamps-f32 %v3177_v4, 10000.0  ;;  %v3140_v13 = vpop.f32.mrb[11].mxu0  ;;  %v3181_v14 = vpop.f32.mrb[15].mxu1 }
 0x574   : > { %v8573_v15 = vclamps-f32 %v3138_v7, 10000.0  ;;  %v8575_v16 = vclamps-f32 %v3179_v8, 10000.0 }
 0x576   : > { %v3318_v17 = vcombine.low %v8572_v11, %v8573_v15  ;;  %v3319_v18 = vcombine.low %v8574_v12, %v8575_v16 }
 0x578   : > { %v3326_v21 = vrot.slane %v3318_v17, %v11546_v48  ;;  %v3333_v23 = vrot.slane %v3319_v18, %v11546_v48 }
 0x57a   : > { %v3334_v24 = vcombine.low %v3326_v21, %v3333_v23 }
 0x57c   : > { %3356 = vst [vmem:[#allocation3 + $0x8] sm:$0xff] %v3334_v24 }
 0x5b0   : > { %v3217_v32 = vpop.f32.mrb[12].mxu0 }
 0x5b1   : > { %v3218_v33 = vadd.f32 %v3217_v32, %v2019_v26  ;;  %v3258_v34 = vpop.f32.mrb[16].mxu1  ;;  %v3219_v35 = vpop.f32.mrb[13].mxu0 }
 0x5b2   : > { %v3259_v1 = vadd.f32 %v3258_v34, %v2027_v30  ;;  %v3220_v36 = vadd.f32 %v3219_v35, %v2023_v28  ;;  %v3260_v37 = vpop.f32.mrb[17].mxu1  ;;  %v3221_v62 = vpop.f32.mrb[14].mxu0 }
 0x5b3   : > { %v8576_v39 = vclamps-f32 %v3218_v33, 10000.0  ;;  %v3261_v41 = vadd.f32 %v3260_v37, %v2031_v31  ;;  %v3262_v42 = vpop.f32.mrb[18].mxu1  ;;  %v3222_v20 = vpop.f32.mrb[15].mxu0 }
 0x5b4   : > { %v8578_v44 = vclamps-f32 %v3259_v1, 10000.0  ;;  %v8577_v45 = vclamps-f32 %v3220_v36, 10000.0  ;;  %v3263_v25 = vpop.f32.mrb[19].mxu1 }
 0x5b5   : > { %v8579_v38 = vclamps-f32 %v3261_v41, 10000.0 }
 0x5b6   : > { %v3335_v22 = vcombine.low %v8576_v39, %v8577_v45 }
 0x5b7   : > { %v3336_v43 = vcombine.low %v8578_v44, %v8579_v38 }
 0x5b8   : > { %v3343_v19 = vrot.slane %v3335_v22, %v11546_v48 }
 0x5b9   : > { %v3350_v29 = vrot.slane %v3336_v43, %v11546_v48 }
 0x5bb   : > { %v3351_v47 = vcombine.low %v3343_v19, %v3350_v29 }
 0x5bd   : > { %3357 = vst [vmem:[#allocation3 + $0x10] sm:$0xff] %v3351_v47 }
 0x5be PF: > { %v9580_v40 = vld [vmem:[%s11429_s0 + $0x4] ss:$12 sps:$4 sm:$0xff]   ;;  %v9582_v46 = vld [vmem:[%s11429_s0] ss:$12 sps:$4 sm:$0xff]   ;;  %v10737_v49 = vmov 0   ;;  %v11593_v7 = vld [vmem:[#allocation2 + $0x18] sm:$0xff]  ;;  %v3398_v26 = vlaneseq }
 0x5bf   : > { %3573 = vmatprep.mubr.bf16.mxu0 %v10737_v49  ;;  %3541 = vmatprep.subr.bf16.mxu0 %v9580_v40  ;;  %v9583_v50 = vld [vmem:[%s11429_s0 + $0x1c] ss:$12 sps:$4 sm:$0xff]   ;;  %v9585_v48 = vld [vmem:[%s11429_s0 + $0x18] ss:$12 sps:$4 sm:$0xff]   ;;  %v9586_v51 = vld [vmem:[%s11429_s0 + $0x34] ss:$12 sps:$4 sm:$0xff]  }
 0x5c0   : > { %3542 = vmatpush1.bf16.msra.mxu0 %v9582_v46  ;;  %v9588_v52 = vld [vmem:[%s11429_s0 + $0x30] ss:$12 sps:$4 sm:$0xff]   ;;  %v9589_v53 = vld [vmem:[%s11429_s0 + $0x4c] ss:$12 sps:$4 sm:$0xff]   ;;  %v11576_v54 = vld [vmem:[#allocation2] sm:$0xff]  ;;  %v11606_v30 = vshrl.u32 %v3398_v26, 7 }
 0x5c1   : > { %3543 = vmatprep.subr.bf16.mxu0 %v9583_v50  ;;  %v9591_v55 = vld [vmem:[%s11429_s0 + $0x48] ss:$12 sps:$4 sm:$0xff]   ;;  %v9592_v57 = vld [vmem:[%s11429_s0 + $0x64] ss:$12 sps:$4 sm:$0xff]   ;;  %v9594_v59 = vld [vmem:[%s11429_s0 + $0x60] ss:$12 sps:$4 sm:$0xff]  }
 0x5c2   : > { %v11579_v56 = vld [vmem:[#allocation2 + $0x8] sm:$0xff]  ;;  %v9597_v61 = vld [vmem:[%s11429_s0 + $0x78] ss:$12 sps:$4 sm:$0xff]   ;;  %v9598_v63 = vld [vmem:[%s11429_s0 + $0x94] ss:$12 sps:$4 sm:$0xff]   ;;  %v11609_v28 = vsub.s32 0, %v11606_v30 }
 0x5c3   : > { %v3362_v58 = vpack.c.bf16 %v11579_v56, %v11576_v54  ;;  %v9595_v60 = vld [vmem:[%s11429_s0 + $0x7c] ss:$12 sps:$4 sm:$0xff]   ;;  %v9601_v2 = vld [vmem:[%s11429_s0 + $0xac] ss:$12 sps:$4 sm:$0xff]   ;;  %v11591_v6 = vld [vmem:[#allocation2 + $0x10] sm:$0xff]  ;;  %v11615_v32 = vsub.s32 1, %v11606_v30 }
 0x5c4   : > { %3544 = vmatpush1.bf16.msra.mxu0 %v9585_v48  ;;  %v9600_v0 = vld [vmem:[%s11429_s0 + $0x90] ss:$12 sps:$4 sm:$0xff]   ;;  %v9603_v3 = vld [vmem:[%s11429_s0 + $0xa8] ss:$12 sps:$4 sm:$0xff]   ;;  %v3363_v9 = vpack.c.bf16 %v11593_v7, %v11591_v6  ;;  %v9610_v13 = vld [vmem:[%s11429_s0 + $0x20] ss:$12 sps:$4 sm:$0xff]  }
 0x5c5   : > { %3545 = vmatprep.subr.bf16.mxu0 %v9586_v51  ;;  %8871 = vmatprep.mubr.bf16.mxu1 %v3362_v58  ;;  %v9604_v4 = vld [vmem:[#allocation15] sm:$0xff]   ;;  %v9605_v5 = vld [vmem:[#allocation15 + $0x8] sm:$0xff]   ;;  %v9606_v8 = vld [vmem:[#allocation15 + $0x10] sm:$0xff]   ;;  %v11633_v26 = vsub.s32 2, %v11606_v30  ;;  %s12273_s10 = sld [smem:[#allocation97_spill]] }
 0x5c6   : > { %v9607_v10 = vld [vmem:[#allocation15 + $0x18] sm:$0xff]   ;;  %v9608_v11 = vld [vmem:[%s11429_s0 + $0x8] ss:$12 sps:$4 sm:$0xff]  }
 0x5c7   : > { %v9609_v12 = vld [vmem:[#allocation15 + $0x20] sm:$0xff]   ;;  %8855 = vmatprep.subr.bf16.mxu1 %v9608_v11  ;;  %v9611_v14 = vld [vmem:[#allocation15 + $0x28] sm:$0xff]   ;;  %v9613_v16 = vld [vmem:[#allocation15 + $0x30] sm:$0xff]  }
 0x5c8   : > { %3546 = vmatpush1.bf16.msra.mxu0 %v9588_v52  ;;  %8856 = vmatpush3.bf16.msra.mxu1 %v9608_v11  ;;  %v9612_v15 = vld [vmem:[%s11429_s0 + $0x38] ss:$12 sps:$4 sm:$0xff]   ;;  %v9614_v17 = vld [vmem:[%s11429_s0 + $0x50] ss:$12 sps:$4 sm:$0xff]   ;;  %v9616_v21 = vld [vmem:[%s11429_s0 + $0x68] ss:$12 sps:$4 sm:$0xff]  }
 0x5c9   : > { %3547 = vmatprep.subr.bf16.mxu0 %v9589_v53  ;;  %8857 = vmatprep.subr.bf16.mxu1 %v9610_v13  ;;  %v9615_v18 = vld [vmem:[#allocation15 + $0x38] sm:$0xff]  }
 0x5ca   : > { %v9617_v23 = vld [vmem:[%s11429_s0 + $0x80] ss:$12 sps:$4 sm:$0xff]   ;;  %v9618_v24 = vld [vmem:[%s11429_s0 + $0x98] ss:$12 sps:$4 sm:$0xff]   ;;  %v9619_v27 = vld [vmem:[%s11429_s0 + $0xb0] ss:$12 sps:$4 sm:$0xff]  }
 0x5cb   : > { %v11612_v31 = vld [vmem:[%s11439_s28] sm:$0x7]  ;;  %s12267_s0 = scalar_lea.vmem [#allocation26], %s11426_s15  ;;  %s12269_s28 = scalar_lea.vmem [#allocation28], %s11426_s15 }
 0x5cc   : > { %3548 = vmatpush1.bf16.msra.mxu0 %v9591_v55  ;;  %8858 = vmatpush3.bf16.msra.mxu1 %v9610_v13  ;;  %v3401_v33 = vrot.slane %v11612_v31, %v11609_v28  ;;  %v3405_v34 = vrot.slane %v11612_v31, %v11615_v32  ;;  %p8690_p3 = scmp.ne.s32.totalorder %s12273_s10, 5 }
 0x5cd   : > { %3549 = vmatprep.subr.bf16.mxu0 %v9592_v57  ;;  %8859 = vmatprep.subr.bf16.mxu1 %v9612_v15 }
 0x5d0   : > { %3550 = vmatpush1.bf16.msra.mxu0 %v9594_v59  ;;  %8860 = vmatpush3.bf16.msra.mxu1 %v9612_v15  ;;  %v9620_v59 = vld [vmem:[%s11441_s22] sm:$0xff]  }
 0x5d1   : > { %3551 = vmatprep.subr.bf16.mxu0 %v9595_v60  ;;  %8861 = vmatprep.subr.bf16.mxu1 %v9614_v17 }
 0x5d4   : > { %3552 = vmatpush1.bf16.msra.mxu0 %v9597_v61  ;;  %8862 = vmatpush3.bf16.msra.mxu1 %v9614_v17 }
 0x5d5   : > { %3553 = vmatprep.subr.bf16.mxu0 %v9598_v63  ;;  %8863 = vmatprep.subr.bf16.mxu1 %v9616_v21  ;;  %v9621_v63 = vld [vmem:[%s11441_s22 + $0x8] sm:$0xff]  }
 0x5d8   : > { %3554 = vmatpush1.bf16.msra.mxu0 %v9600_v0  ;;  %8864 = vmatpush3.bf16.msra.mxu1 %v9616_v21 }
 0x5d9   : > { %3555 = vmatprep.subr.bf16.mxu0 %v9601_v2  ;;  %8865 = vmatprep.subr.bf16.mxu1 %v9617_v23 }
 0x5dc   : > { %3556 = vmatpush1.bf16.msra.mxu0 %v9603_v3  ;;  %8866 = vmatpush3.bf16.msra.mxu1 %v9617_v23  ;;  %v9622_v3 = vld [vmem:[%s11441_s22 + $0x10] sm:$0xff]  }
 0x5dd   : > { %8875 = vmatprep.subr.bf16.mxu0 %v9604_v4  ;;  %8867 = vmatprep.subr.bf16.mxu1 %v9618_v24 }
 0x5df   : > { %3574 = vmatmul.mubr.bf16.vlgmr.msra.gmra.mrb[0].mxu0 %v3362_v58 }
 0x5e0   : > { %3583 = vmatprep.mubr.bf16.mxu0 %v10737_v49  ;;  %8876 = vmatpush3.bf16.msra.mxu0 %v9604_v4  ;;  %v9623_v4 = vld [vmem:[%s11441_s22 + $0x18] sm:$0xff]  }
 0x5e1   : > { %8877 = vmatprep.subr.bf16.mxu0 %v9605_v5  ;;  %8868 = vmatpush3.bf16.msra.mxu1 %v9618_v24 }
 0x5e2   : > { %8869 = vmatprep.subr.bf16.mxu1 %v9619_v27 }
 0x5e4   : > { %8878 = vmatpush3.bf16.msra.mxu0 %v9605_v5  ;;  %v9624_v5 = vld [vmem:[%s11441_s22 + $0x20] sm:$0xff]  }
 0x5e5   : > { %8879 = vmatprep.subr.bf16.mxu0 %v9606_v8  ;;  %8870 = vmatpush3.bf16.msra.mxu1 %v9619_v27 }
 0x5e6   : > { %8899 = vmatprep.subr.bf16.mxu1 %v9620_v59 }
 0x5e7   : > { %3584 = vmatmul.mubr.bf16.gmra.mrb[4].mxu0 %v3363_v9 }
 0x5e8   : > { %8880 = vmatpush3.bf16.msra.mxu0 %v9606_v8  ;;  %8872 = vmatmul.mubr.bf16.vlgmr.msra.gmra.mrb[0].mxu1 %v3363_v9  ;;  %v9625_v8 = vld [vmem:[%s11441_s22 + $0x28] sm:$0xff]   ;;  %v9626_v9 = vld [vmem:[%s11441_s22 + $0x30] sm:$0xff]  }
 0x5e9   : > { %8881 = vmatprep.subr.bf16.mxu0 %v9607_v10  ;;  %8900 = vmatpush3.bf16.msra.mxu1 %v9620_v59 }
 0x5ea   : > { %8901 = vmatprep.subr.bf16.mxu1 %v9621_v63 }
 0x5ec   : > { %8882 = vmatpush3.bf16.msra.mxu0 %v9607_v10  ;;  %v9627_v10 = vld [vmem:[%s11441_s22 + $0x38] sm:$0xff]   ;;  %s12272_s22 = scalar_lea.vmem [#allocation34], %s11426_s15 }
 0x5ed   : > { %8883 = vmatprep.subr.bf16.mxu0 %v9609_v12  ;;  %8902 = vmatpush3.bf16.msra.mxu1 %v9621_v63 }
 0x5ee   : > { %8903 = vmatprep.subr.bf16.mxu1 %v9622_v3 }
 0x5f0   : > { %8884 = vmatpush3.bf16.msra.mxu0 %v9609_v12 }
 0x5f1   : > { %8885 = vmatprep.subr.bf16.mxu0 %v9611_v14  ;;  %8904 = vmatpush3.bf16.msra.mxu1 %v9622_v3 }
 0x5f2   : > { %8905 = vmatprep.subr.bf16.mxu1 %v9623_v4 }
 0x5f4   : > { %8886 = vmatpush3.bf16.msra.mxu0 %v9611_v14 }
 0x5f5   : > { %8887 = vmatprep.subr.bf16.mxu0 %v9613_v16  ;;  %8906 = vmatpush3.bf16.msra.mxu1 %v9623_v4 }
 0x5f6   : > { %8907 = vmatprep.subr.bf16.mxu1 %v9624_v5 }
 0x5f8   : > { %8888 = vmatpush3.bf16.msra.mxu0 %v9613_v16 }
 0x5f9   : > { %8889 = vmatprep.subr.bf16.mxu0 %v9615_v18  ;;  %8908 = vmatpush3.bf16.msra.mxu1 %v9624_v5 }
 0x5fa   : > { %8909 = vmatprep.subr.bf16.mxu1 %v9625_v8 }
 0x5fc   : > { %8890 = vmatpush3.bf16.msra.mxu0 %v9615_v18 }
 0x5fd   : > { %8910 = vmatpush3.bf16.msra.mxu1 %v9625_v8 }
 0x5fe   : > { %8911 = vmatprep.subr.bf16.mxu1 %v9626_v9 }
 0x601   : > { %8912 = vmatpush3.bf16.msra.mxu1 %v9626_v9 }
 0x602   : > { %8913 = vmatprep.subr.bf16.mxu1 %v9627_v10 }
 0x605   : > { %8914 = vmatpush3.bf16.msra.mxu1 %v9627_v10 }
 0x6b2   : > { %v3575_v35 = vpop.f32.mrb[0].mxu0 }
 0x6b3   : > { %v3576_v1 = vadd.f32 %v3575_v35, %v3401_v33  ;;  %v3577_v36 = vpop.f32.mrb[1].mxu0 }
 0x6b4   : > { %v3578_v37 = vadd.f32 %v3577_v36, %v3405_v34  ;;  %v3579_v62 = vpop.f32.mrb[2].mxu0 }
 0x6b5   : > { %v3580_v39 = vadd.f32 %v3579_v62, %v3401_v33  ;;  %v3581_v41 = vpop.f32.mrb[3].mxu0 }
 0x6b6   : > { %v3643_v42 = vmul.f32 %v3578_v37, %v3576_v1  ;;  %v3582_v20 = vadd.f32 %v3581_v41, %v3405_v34 }
 0x6b8   : > { %v3644_v44 = vmul.f32 %v3582_v20, %v3580_v39 }
 0x6ba   : > { %v3585_v45 = vpop.f32.mrb[4].mxu0  ;;  %v3651_v25 = vpack.c.bf16 %v3644_v44, %v3643_v42 }
 0x6bb   : > { %v3586_v38 = vadd.f32 %v3585_v45, %v3401_v33  ;;  %v3587_v22 = vpop.f32.mrb[5].mxu0  ;;  %v8873_v60 = vpop.f32.mrb[0].mxu1 }
 0x6bc   : > { %v3588_v43 = vadd.f32 %v3587_v22, %v3405_v34  ;;  %v3589_v19 = vpop.f32.mrb[6].mxu0  ;;  %8891 = vmatprep.mubr.bf16.mxu0 %v3651_v25  ;;  %v3628_v61 = vpop.f32.mrb[1].mxu1 }
 0x6bd   : > { %v3647_v29 = vmul.f32 %v3586_v38, %v3578_v37  ;;  %v3590_v47 = vadd.f32 %v3589_v19, %v3401_v33  ;;  %v3591_v40 = vpop.f32.mrb[7].mxu0  ;;  %v11624_v0 = vpop.f32.mrb[2].mxu1 }
 0x6be   : > { %v3645_v46 = vmul.f32 %v3588_v43, %v3576_v1  ;;  %v3649_v50 = vmul.f32 %v3588_v43, %v3586_v38  ;;  %v3592_v48 = vadd.f32 %v3591_v40, %v3405_v34  ;;  %v3631_v2 = vpop.f32.mrb[3].mxu1 }
 0x6bf   : > { %v3648_v51 = vmul.f32 %v3590_v47, %v3582_v20 }
 0x6c0   : > { %v3646_v52 = vmul.f32 %v3592_v48, %v3580_v39  ;;  %v3650_v53 = vmul.f32 %v3592_v48, %v3590_v47  ;;  %v3409_v39 = vrot.slane %v11612_v31, %v11633_v26 }
 0x6c1   : > { %v3653_v55 = vpack.c.bf16 %v3648_v51, %v3647_v29 }
 0x6c2   : > { %v3652_v57 = vpack.c.bf16 %v3646_v52, %v3645_v46  ;;  %v3654_v58 = vpack.c.bf16 %v3650_v53, %v3649_v50  ;;  %v3629_v22 = vadd.f32 %v3628_v61, %v3409_v39  ;;  %v3637_v29 = vadd.f32 %v8873_v60, %v3409_v39 }
 0x6c3   : > { %v3632_v47 = vadd.f32 %v3631_v2, %v3409_v39  ;;  %v3640_v46 = vadd.f32 %v11624_v0, %v3409_v39 }
 0x6c4   : > { %8892 = vmatmul.mubr.bf16.vlgmr.msra.gmra.mrb[8].mxu0 %v3652_v57 }
 0x6c5   : > { %8895 = vmatprep.mubr.bf16.mxu0 %v3653_v55 }
 0x6cc   : > { %8896 = vmatmul.mubr.bf16.gmra.mrb[12].mxu0 %v3654_v58 }
 0x6cd   : > { %4277 = vmatprep.mubr.bf16.mxu0 %v10737_v49 }
 0x797   : > { %v8893_v11 = vpop.f32.mrb[8].mxu0 }
 0x798   : > { %v3753_v12 = vpop.f32.mrb[9].mxu0 }
 0x799   : > { %v3784_v13 = vmax.f32 %v3753_v12, %v8893_v11  ;;  %v8894_v14 = vpop.f32.mrb[10].mxu0 }
 0x79a   : > { %v3756_v15 = vpop.f32.mrb[11].mxu0 }
 0x79b   : > { %v3788_v16 = vsub.f32 %v3753_v12, %v3784_v13  ;;  %v3790_v17 = vsub.f32 %v8893_v11, %v3784_v13  ;;  %v3785_v18 = vmax.f32 %v3756_v15, %v8894_v14 }
 0x79d   : > { %v3796_v21 = vmul.f32 1.442695, %v3788_v16  ;;  %v3800_v23 = vmul.f32 1.442695, %v3790_v17  ;;  %v3789_v24 = vsub.f32 %v3756_v15, %v3785_v18  ;;  %v3791_v27 = vsub.f32 %v8894_v14, %v3785_v18 }
 0x79f   : > { %9708 = vpow2.f32 %v3796_v21  ;;  %v3798_v33 = vmul.f32 1.442695, %v3789_v24  ;;  %v3802_v34 = vmul.f32 1.442695, %v3791_v27  ;;  %v8897_v35 = vpop.f32.mrb[12].mxu0 }
 0x7a0   : > { %9710 = vpow2.f32 %v3800_v23  ;;  %v3769_v1 = vpop.f32.mrb[13].mxu0 }
 0x7a1   : > { %9712 = vpow2.f32 %v3798_v33  ;;  %v3786_v36 = vmax.f32 %v3769_v1, %v8897_v35  ;;  %v8898_v37 = vpop.f32.mrb[14].mxu0  ;;  %v8612_v33 = vld [vmem:[%s12267_s0] ss:$0 sm:$0xff] }
 0x7a2   : > { %9714 = vpow2.f32 %v3802_v34  ;;  %v3772_v62 = vpop.f32.mrb[15].mxu0 }
 0x7a3   : > { %v3792_v41 = vsub.f32 %v3769_v1, %v3786_v36  ;;  %v3794_v42 = vsub.f32 %v8897_v35, %v3786_v36  ;;  %v3787_v20 = vmax.f32 %v3772_v62, %v8898_v37 }
 0x7a5   : > { %v3804_v44 = vmul.f32 1.442695, %v3792_v41  ;;  %v3808_v45 = vmul.f32 1.442695, %v3794_v42  ;;  %v3793_v25 = vsub.f32 %v3772_v62, %v3787_v20  ;;  %v3795_v38 = vsub.f32 %v8898_v37, %v3787_v20 }
 0x7a7   : > { %9716 = vpow2.f32 %v3804_v44  ;;  %v3806_v43 = vmul.f32 1.442695, %v3793_v25  ;;  %v3810_v19 = vmul.f32 1.442695, %v3795_v38  ;;  %v9628_v25 = vld [vmem:[%s11446_s3] ss:$16 sps:$4 sm:$0xff]  }
 0x7a8   : > { %9718 = vpow2.f32 %v3808_v45  ;;  %v9630_v38 = vld [vmem:[%s11446_s3 + $0x4] ss:$16 sps:$4 sm:$0xff]  }
 0x7a9   : > { %v9709_v40 = vpop.eup %9708  ;;  %9720 = vpow2.f32 %v3806_v43  ;;  %v9633_v43 = vld [vmem:[%s11446_s3 + $0xc] ss:$16 sps:$4 sm:$0xff]   ;;  %4245 = vmatprep.subr.bf16.mxu0 %v9630_v38 }
 0x7aa   : > { %v9711_v50 = vpop.eup %9710  ;;  %9722 = vpow2.f32 %v3810_v19  ;;  %v3816_v31 = vmul.f32 %v9709_v40, %v3629_v22  ;;  %v9636_v19 = vld [vmem:[%s11446_s3 + $0x24] ss:$16 sps:$4 sm:$0xff]   ;;  %4298 = vmatprep.subr.bf16.mxu1 %v9633_v43  ;;  %4246 = vmatpush1.bf16.msra.mxu0 %v9628_v25 }
 0x7ab   : > { %v9713_v48 = vpop.eup %9712  ;;  %v3812_v51 = vadd.f32 %v9711_v50, %v9709_v40  ;;  %v3818_v52 = vmul.f32 %v9711_v50, %v3637_v29  ;;  %4247 = vmatprep.subr.bf16.mxu0 %v9636_v19 }
 0x7ac   : > { %v9715_v53 = vpop.eup %9714  ;;  %v3817_v55 = vmul.f32 %v9713_v48, %v3632_v47 }
 0x7ad   : > { %9724 = vrcp.f32 %v3812_v51  ;;  %v3813_v57 = vadd.f32 %v9715_v53, %v9713_v48  ;;  %v3824_v58 = vadd.f32 %v3818_v52, %v3816_v31  ;;  %v3819_v59 = vmul.f32 %v9715_v53, %v3640_v46 }
 0x7af   : > { %9726 = vrcp.f32 %v3813_v57  ;;  %v3825_v60 = vadd.f32 %v3819_v59, %v3817_v55 }
 0x7b1   : > { %v9717_v61 = vpop.eup %9716 }
 0x7b2   : > { %v9719_v63 = vpop.eup %9718  ;;  %v3820_v2 = vmul.f32 %v9717_v61, %v3629_v22  ;;  %v9631_v22 = vld [vmem:[%s11446_s3 + $0x8] ss:$16 sps:$4 sm:$0xff]  }
 0x7b3   : > { %v9721_v3 = vpop.eup %9720  ;;  %v3814_v4 = vadd.f32 %v9719_v63, %v9717_v61  ;;  %v3822_v0 = vmul.f32 %v9719_v63, %v3637_v29  ;;  %v9637_v29 = vld [vmem:[%s11446_s3 + $0x28] ss:$16 sps:$4 sm:$0xff]   ;;  %v9642_v61 = vld [vmem:[%s11446_s3 + $0x44] ss:$16 sps:$4 sm:$0xff]   ;;  %v9645_v63 = vld [vmem:[%s11446_s3 + $0x4c] ss:$16 sps:$4 sm:$0xff]  }
 0x7b4   : > { %v9723_v5 = vpop.eup %9722  ;;  %v3821_v8 = vmul.f32 %v9721_v3, %v3632_v47 }
 0x7b5   : > { %9728 = vrcp.f32 %v3814_v4  ;;  %v3815_v9 = vadd.f32 %v9723_v5, %v9721_v3  ;;  %v3826_v10 = vadd.f32 %v3822_v0, %v3820_v2  ;;  %v3823_v11 = vmul.f32 %v9723_v5, %v3640_v46  ;;  %v9640_v2 = vld [vmem:[%s11446_s3 + $0x40] ss:$16 sps:$4 sm:$0xff]   ;;  %v9643_v3 = vld [vmem:[%s11446_s3 + $0x48] ss:$16 sps:$4 sm:$0xff]   ;;  %v9648_v4 = vld [vmem:[%s11446_s3 + $0x64] ss:$16 sps:$4 sm:$0xff]  }
 0x7b6   : > { %v9651_v0 = vld [vmem:[%s11446_s3 + $0x6c] ss:$16 sps:$4 sm:$0xff]   ;;  %v9646_v5 = vld [vmem:[%s11446_s3 + $0x60] ss:$16 sps:$4 sm:$0xff]  }
 0x7b7   : > { %v9725_v12 = vpop.eup %9724  ;;  %9730 = vrcp.f32 %v3815_v9  ;;  %v3827_v13 = vadd.f32 %v3823_v11, %v3821_v8  ;;  %v9649_v8 = vld [vmem:[%s11446_s3 + $0x68] ss:$16 sps:$4 sm:$0xff]   ;;  %v9654_v9 = vld [vmem:[%s11446_s3 + $0x84] ss:$16 sps:$4 sm:$0xff]   ;;  %v9652_v11 = vld [vmem:[%s11446_s3 + $0x80] ss:$16 sps:$4 sm:$0xff]  }
 0x7b8   : > { %v3829_v14 = vmul.f32 %v9725_v12, %v3824_v58  ;;  %v9655_v12 = vld [vmem:[%s11446_s3 + $0x88] ss:$16 sps:$4 sm:$0xff]  }
 0x7b9   : > { %v9727_v15 = vpop.eup %9726 }
 0x7ba   : > { %v3831_v16 = vmul.f32 %v9727_v15, %v3825_v60  ;;  %v9658_v15 = vld [vmem:[%s11446_s3 + $0xa0] ss:$16 sps:$4 sm:$0xff]  }
 0x7bc   : > { %v3836_v17 = vpack.c.bf16 %v3831_v16, %v3829_v14  ;;  %v9663_v14 = vld [vmem:[%s11446_s3 + $0xac] ss:$16 sps:$4 sm:$0xff]   ;;  %v9661_v16 = vld [vmem:[%s11446_s3 + $0xa8] ss:$16 sps:$4 sm:$0xff]  }
 0x7be   : > { %8915 = vmatprep.mubr.bf16.mxu1 %v3836_v17  ;;  %v9666_v17 = vld [vmem:[%s11446_s3 + $0xc4] ss:$16 sps:$4 sm:$0xff]  }
 0x7bf   : > { %v9729_v18 = vpop.eup %9728 }
 0x7c0   : > { %v3833_v21 = vmul.f32 %v9729_v18, %v3826_v10  ;;  %v9657_v10 = vld [vmem:[%s11446_s3 + $0x8c] ss:$16 sps:$4 sm:$0xff]  }
 0x7c1   : > { %v9731_v23 = vpop.eup %9730  ;;  %v9669_v18 = vld [vmem:[%s11446_s3 + $0xcc] ss:$16 sps:$4 sm:$0xff]  }
 0x7c2   : > { %v3835_v24 = vmul.f32 %v9731_v23, %v3827_v13  ;;  %v9660_v13 = vld [vmem:[%s11446_s3 + $0xa4] ss:$16 sps:$4 sm:$0xff]   ;;  %v9667_v23 = vld [vmem:[%s11446_s3 + $0xc8] ss:$16 sps:$4 sm:$0xff]  }
 0x7c4   : > { %v3837_v27 = vpack.c.bf16 %v3835_v24, %v3833_v21  ;;  %v9664_v21 = vld [vmem:[%s11446_s3 + $0xc0] ss:$16 sps:$4 sm:$0xff]  }
 0x7c5   : > { %v9670_v24 = vld [vmem:[%s11446_s3 + $0xe0] ss:$16 sps:$4 sm:$0xff]  }
 0x7c6   : > { %8916 = vmatmul.mubr.bf16.vlgmr.msra.gmra.mrb[4].mxu1 %v3837_v27  ;;  %v9672_v27 = vld [vmem:[%s11446_s3 + $0xe4] ss:$16 sps:$4 sm:$0xff]  }
 0x7c7   : > { %4330 = vmatprep.mubr.bf16.mxu1 %v10737_v49  ;;  %4299 = vmatpush1.bf16.msra.mxu1 %v9631_v22 }
 0x899   : > { %v8917_v34 = vpop.f32.mrb[4].mxu1 }
 0x89a   : > { %v3952_v35 = vadd.f32 %v8917_v34, %v8612_v33  ;;  %v3943_v1 = vpop.f32.mrb[5].mxu1  ;;  %v9675_v34 = vld [vmem:[%s11446_s3 + $0xec] ss:$16 sps:$4 sm:$0xff]  }
 0x89b   : > { %v3944_v36 = vadd.f32 %v8612_v33, %v3943_v1  ;;  %v8918_v37 = vpop.f32.mrb[6].mxu1  ;;  %v9677_v1 = vld [vmem:[%s11450_s5 + $0xc0] sm:$0xff]  }
 0x89c   : > { %v3955_v62 = vadd.f32 %v8918_v37, %v8612_v33  ;;  %v3946_v39 = vpop.f32.mrb[7].mxu1  ;;  %v3960_v41 = vadd.f32 %v3952_v35, %v11591_v6  ;;  %v9639_v6 = vld [vmem:[%s11446_s3 + $0x2c] ss:$16 sps:$4 sm:$0xff]  }
 0x89d   : > { %v3947_v42 = vadd.f32 %v8612_v33, %v3946_v39  ;;  %v3958_v20 = vadd.f32 %v3944_v36, %v11576_v54  ;;  %v9634_v54 = vld [vmem:[%s11446_s3 + $0x20] ss:$16 sps:$4 sm:$0xff]   ;;  %4300 = vmatprep.subr.bf16.mxu1 %v9639_v6  ;;  %v9673_v33 = vld [vmem:[%s11446_s3 + $0xe8] ss:$16 sps:$4 sm:$0xff]   ;;  %s12268_s3 = scalar_lea.vmem [#allocation27], %s11426_s15 }
 0x89e   : > { %3968 = vadd.xlane.f32.xlu1 %v3960_v41  ;;  %v3961_v44 = vadd.f32 %v3955_v62, %v11593_v7  ;;  %4248 = vmatpush1.bf16.msra.mxu0 %v9634_v54  ;;  %v9676_v35 = vld [vmem:[%s11450_s5 + $0x40] sm:$0xff]   ;;  %v8621_v6 = vld [vmem:[%s12268_s3] ss:$0 sm:$0xff] }
 0x89f   : > { %3964 = vadd.xlane.f32.xlu0 %v3958_v20  ;;  %v3959_v45 = vadd.f32 %v3947_v42, %v11579_v56  ;;  %4301 = vmatpush1.bf16.msra.mxu1 %v9637_v29 }
 0x8a0   : > { %4249 = vmatprep.subr.bf16.mxu0 %v9642_v61  ;;  %4302 = vmatprep.subr.bf16.mxu1 %v9645_v63  ;;  %v9681_v61 = vld [vmem:[%s11450_s5 + $0xc8] sm:$0xff]  }
 0x8a2   : > { %3970 = vadd.xlane.f32.xlu1 %v3961_v44  ;;  %4250 = vmatpush1.bf16.msra.mxu0 %v9640_v2  ;;  %v9683_v2 = vld [vmem:[%s11450_s5 + $0x88] sm:$0xff]  }
 0x8a3   : > { %3966 = vadd.xlane.f32.xlu0 %v3959_v45  ;;  %4303 = vmatpush1.bf16.msra.mxu1 %v9643_v3 }
 0x8a4   : > { %4251 = vmatprep.subr.bf16.mxu0 %v9648_v4  ;;  %4304 = vmatprep.subr.bf16.mxu1 %v9651_v0  ;;  %v9685_v0 = vld [vmem:[%s11450_s5 + $0xd0] sm:$0xff]  }
 0x8a6   : > { %4252 = vmatpush1.bf16.msra.mxu0 %v9646_v5  ;;  %v9686_v5 = vld [vmem:[%s11450_s5 + $0x10] sm:$0xff]  }
 0x8a7   : > { %4305 = vmatpush1.bf16.msra.mxu1 %v9649_v8  ;;  %4253 = vmatprep.subr.bf16.mxu0 %v9654_v9  ;;  %v9687_v8 = vld [vmem:[%s11450_s5 + $0x90] sm:$0xff]   ;;  %v9688_v9 = vld [vmem:[%s11450_s5 + $0x58] sm:$0xff]  }
 0x8a8   : > { %4306 = vmatprep.subr.bf16.mxu1 %v9657_v10  ;;  %v9689_v10 = vld [vmem:[%s11450_s5 + $0xd8] sm:$0xff]  }
 0x8aa   : > { %4254 = vmatpush1.bf16.msra.mxu0 %v9652_v11  ;;  %v9690_v11 = vld [vmem:[%s11450_s5 + $0x18] sm:$0xff]  }
 0x8ab   : > { %4307 = vmatpush1.bf16.msra.mxu1 %v9655_v12  ;;  %4255 = vmatprep.subr.bf16.mxu0 %v9660_v13  ;;  %v9691_v12 = vld [vmem:[%s11450_s5 + $0x98] sm:$0xff]   ;;  %v9692_v13 = vld [vmem:[%s11450_s5 + $0x60] sm:$0xff]  }
 0x8ac   : > { %4308 = vmatprep.subr.bf16.mxu1 %v9663_v14  ;;  %v9693_v14 = vld [vmem:[%s11450_s5 + $0xe0] sm:$0xff]  }
 0x8ae   : > { %4256 = vmatpush1.bf16.msra.mxu0 %v9658_v15  ;;  %v9694_v15 = vld [vmem:[%s11450_s5 + $0x20] sm:$0xff]  }
 0x8af   : > { %4309 = vmatpush1.bf16.msra.mxu1 %v9661_v16  ;;  %4257 = vmatprep.subr.bf16.mxu0 %v9666_v17  ;;  %v9695_v16 = vld [vmem:[%s11450_s5 + $0xa0] sm:$0xff]   ;;  %v9696_v17 = vld [vmem:[%s11450_s5 + $0x68] sm:$0xff]  }
 0x8b0   : > { %4310 = vmatprep.subr.bf16.mxu1 %v9669_v18  ;;  %v9697_v18 = vld [vmem:[%s11450_s5 + $0xe8] sm:$0xff]  }
 0x8b2   : > { %4258 = vmatpush1.bf16.msra.mxu0 %v9664_v21  ;;  %v9698_v21 = vld [vmem:[%s11450_s5 + $0x28] sm:$0xff]  }
 0x8b3   : > { %4311 = vmatpush1.bf16.msra.mxu1 %v9667_v23  ;;  %4259 = vmatprep.subr.bf16.mxu0 %v9672_v27  ;;  %v9699_v23 = vld [vmem:[%s11450_s5 + $0xa8] sm:$0xff]   ;;  %v9701_v27 = vld [vmem:[%s11450_s5 + $0xf0] sm:$0xff]  }
 0x8b4   : > { %4312 = vmatprep.subr.bf16.mxu1 %v9675_v34  ;;  %v9703_v34 = vld [vmem:[%s11450_s5 + $0xb0] sm:$0xff]  }
 0x8b6   : > { %4260 = vmatpush1.bf16.msra.mxu0 %v9670_v24  ;;  %v9700_v24 = vld [vmem:[%s11450_s5 + $0x70] sm:$0xff]  }
 0x8b7   : > { %4313 = vmatpush1.bf16.msra.mxu1 %v9673_v33  ;;  %8745 = vmatprep.subr.bf16.mxu0 %v9676_v35  ;;  %v9702_v33 = vld [vmem:[%s11450_s5 + $0x30] sm:$0xff]   ;;  %v9704_v35 = vld [vmem:[%s11450_s5 + $0x78] sm:$0xff]  }
 0x8b8   : > { %8773 = vmatprep.subr.bf16.mxu1 %v9677_v1  ;;  %v9705_v1 = vld [vmem:[%s11450_s5 + $0xf8] sm:$0xff]  }
 0x92b   : > { %v3969_v7 = vpop.xlane.xlu1 %3968 }
 0x92c   : > { %v3965_v56 = vpop.xlane.xlu0 %3964  ;;  %v3975_v47 = vmul.f32 0.0078125, %v3969_v7 }
 0x92d   : > { %v3973_v40 = vmul.f32 0.0078125, %v3965_v56 }
 0x92e   : > { %v11655_v48 = vsub.f32 %v3960_v41, %v3975_v47  ;;  %v8622_v47 = vld [vmem:[%s12269_s28] ss:$0 sm:$0xff] }
 0x92f   : > { %v11653_v46 = vsub.f32 %v3958_v20, %v3973_v40  ;;  %v3971_v50 = vpop.xlane.xlu1 %3970 }
 0x930   : > { %v3967_v31 = vpop.xlane.xlu0 %3966  ;;  %v3976_v51 = vmul.f32 0.0078125, %v3971_v50  ;;  %v3983_v58 = vmul.f32 %v11655_v48, %v11655_v48 }
 0x931   : > { %v3974_v52 = vmul.f32 0.0078125, %v3967_v31  ;;  %v3981_v53 = vmul.f32 %v11653_v46, %v11653_v46 }
 0x932   : > { %v11661_v57 = vsub.f32 %v3961_v44, %v3976_v51 }
 0x933   : > { %v11659_v55 = vsub.f32 %v3959_v45, %v3974_v52  ;;  %3985 = vadd.xlane.f32.xlu0 %v3981_v53 }
 0x934   : > { %v3984_v60 = vmul.f32 %v11661_v57, %v11661_v57 }
 0x935   : > { %v3982_v59 = vmul.f32 %v11659_v55, %v11659_v55 }
 0x937   : > { %3989 = vadd.xlane.f32.xlu0 %v3983_v58  ;;  %3987 = vadd.xlane.f32.xlu1 %v3982_v59  ;;  %v9679_v59 = vld [vmem:[%s11450_s5 + $0x80] sm:$0xff]  }
 0x93b   : > { %3991 = vadd.xlane.f32.xlu1 %v3984_v60  ;;  %v9680_v60 = vld [vmem:[%s11450_s5 + $0x48] sm:$0xff]  }
 0x9c0   : > { %v3986_v36 = vpop.xlane.xlu0 %3985 }
 0x9c1   : > { %v3993_v37 = vmul.f32 0.0078125, %v3986_v36  ;;  %v9706_v36 = vld [vmem:[%s11450_s5 + $0x38] sm:$0xff]  }
 0x9c3   : > { %v3997_v62 = vadd.f32 1e-05, %v3993_v37  ;;  %v9707_v37 = vld [vmem:[%s11450_s5 + $0xb8] sm:$0xff]  }
 0x9c4   : > { %v3988_v39 = vpop.xlane.xlu1 %3987  ;;  %v3990_v41 = vpop.xlane.xlu0 %3989 }
 0x9c5   : > { %9732 = vrsqrt.f32 %v3997_v62  ;;  %v3994_v42 = vmul.f32 0.0078125, %v3988_v39  ;;  %v3995_v20 = vmul.f32 0.0078125, %v3990_v41  ;;  %v4063_v62 = vld [vmem:[%s11448_s4] sm:$0xf]  ;;  %v11749_v39 = vsub.s32 3, %v11606_v30  ;;  %s12271_s4 = scalar_lea.vmem [#allocation33], %s11426_s15 }
 0x9c6   : > { %v4068_v41 = vrot.slane %v4063_v62, %v11609_v28 }
 0x9c7   : > { %v3998_v44 = vadd.f32 1e-05, %v3994_v42  ;;  %v3999_v45 = vadd.f32 1e-05, %v3995_v20  ;;  %v4076_v42 = vrot.slane %v4063_v62, %v11633_v26  ;;  %v4072_v20 = vrot.slane %v4063_v62, %v11615_v32 }
 0x9c8   : > { %v3992_v25 = vpop.xlane.xlu1 %3991 }
 0x9c9   : > { %9734 = vrsqrt.f32 %v3998_v44  ;;  %v3996_v38 = vmul.f32 0.0078125, %v3992_v25  ;;  %v4080_v44 = vrot.slane %v4063_v62, %v11749_v39 }
 0x9ca   : > { %9736 = vrsqrt.f32 %v3999_v45 }
 0x9cb   : > { %v4000_v22 = vadd.f32 1e-05, %v3996_v38 }
 0x9cd   : > { %9738 = vrsqrt.f32 %v4000_v22 }
 0x9cf   : > { %v9733_v43 = vpop.eup %9732 }
 0x9d0   : > { %v4005_v19 = vmul.f32 %v9733_v43, %v11653_v46 }
 0x9d2   : > { %v4015_v29 = vmul.f32 %v8621_v6, %v4005_v19 }
 0x9d3   : > { %v9735_v54 = vpop.eup %9734 }
 0x9d4   : > { %v4006_v7 = vmul.f32 %v9735_v54, %v11659_v55  ;;  %v9737_v56 = vpop.eup %9736  ;;  %v11701_v31 = vadd.f32 %v8622_v47, %v4015_v29  ;;  %v9678_v55 = vld [vmem:[%s11450_s5] sm:$0xff]  }
 0x9d5   : > { %v4007_v46 = vmul.f32 %v9737_v56, %v11655_v48 }
 0x9d6   : > { %v4016_v40 = vmul.f32 %v8621_v6, %v4006_v7 }
 0x9d7   : > { %v9739_v50 = vpop.eup %9738  ;;  %v4017_v63 = vmul.f32 %v8621_v6, %v4007_v46 }
 0x9d8   : > { %v11703_v51 = vadd.f32 %v8622_v47, %v4016_v40  ;;  %v4008_v52 = vmul.f32 %v9739_v50, %v11661_v57  ;;  %v9682_v57 = vld [vmem:[%s11450_s5 + $0x8] sm:$0xff]  }
 0x9d9   : > { %v11719_v3 = vadd.f32 %v8622_v47, %v4017_v63 }
 0x9da   : > { %v4029_v53 = vpack.c.bf16 %v11703_v51, %v11701_v31  ;;  %v4018_v58 = vmul.f32 %v8621_v6, %v4008_v52 }
 0x9dc   : > { %4278 = vmatmul.mubr.bf16.vlgmr.msra.gmra.mrb[16].mxu0 %v4029_v53  ;;  %4331 = vmatmul.mubr.bf16.vlgmr.msra.gmra.mrb[8].mxu1 %v4029_v53  ;;  %v11715_v48 = vadd.f32 %v8622_v47, %v4018_v58 }
 0x9dd   : > { %4287 = vmatprep.mubr.bf16.mxu0 %v10737_v49  ;;  %4340 = vmatprep.mubr.bf16.mxu1 %v10737_v49  ;;  %v9684_v49 = vld [vmem:[%s11450_s5 + $0x50] sm:$0xff]   ;;  %s12270_s5 = scalar_lea.vmem [#allocation32], %s11426_s15 }
 0x9de   : > { %8746 = vmatpush3.bf16.msra.mxu0 %v9678_v55  ;;  %8774 = vmatpush3.bf16.msra.mxu1 %v9679_v59  ;;  %v4030_v4 = vpack.c.bf16 %v11715_v48, %v11719_v3 }
 0x9df   : > { %8747 = vmatprep.subr.bf16.mxu0 %v9680_v60  ;;  %8775 = vmatprep.subr.bf16.mxu1 %v9681_v61 }
 0x9e2   : > { %8748 = vmatpush3.bf16.msra.mxu0 %v9682_v57  ;;  %8776 = vmatpush3.bf16.msra.mxu1 %v9683_v2 }
 0x9e3   : > { %8749 = vmatprep.subr.bf16.mxu0 %v9684_v49  ;;  %8777 = vmatprep.subr.bf16.mxu1 %v9685_v0 }
 0x9e4   : > { %4288 = vmatmul.mubr.bf16.gmra.mrb[20].mxu0 %v4030_v4  ;;  %4341 = vmatmul.mubr.bf16.gmra.mrb[12].mxu1 %v4030_v4 }
 0x9e6   : > { %8750 = vmatpush3.bf16.msra.mxu0 %v9686_v5  ;;  %8778 = vmatpush3.bf16.msra.mxu1 %v9687_v8 }
 0x9e7   : > { %8751 = vmatprep.subr.bf16.mxu0 %v9688_v9  ;;  %8779 = vmatprep.subr.bf16.mxu1 %v9689_v10 }
 0x9ea   : > { %8752 = vmatpush3.bf16.msra.mxu0 %v9690_v11  ;;  %8780 = vmatpush3.bf16.msra.mxu1 %v9691_v12 }
 0x9eb   : > { %8753 = vmatprep.subr.bf16.mxu0 %v9692_v13  ;;  %8781 = vmatprep.subr.bf16.mxu1 %v9693_v14 }
 0x9ee   : > { %8754 = vmatpush3.bf16.msra.mxu0 %v9694_v15  ;;  %8782 = vmatpush3.bf16.msra.mxu1 %v9695_v16 }
 0x9ef   : > { %8755 = vmatprep.subr.bf16.mxu0 %v9696_v17  ;;  %8783 = vmatprep.subr.bf16.mxu1 %v9697_v18 }
 0x9f2   : > { %8756 = vmatpush3.bf16.msra.mxu0 %v9698_v21  ;;  %8784 = vmatpush3.bf16.msra.mxu1 %v9699_v23 }
 0x9f3   : > { %8757 = vmatprep.subr.bf16.mxu0 %v9700_v24  ;;  %8785 = vmatprep.subr.bf16.mxu1 %v9701_v27 }
 0x9f6   : > { %8758 = vmatpush3.bf16.msra.mxu0 %v9702_v33  ;;  %8786 = vmatpush3.bf16.msra.mxu1 %v9703_v34 }
 0x9f7   : > { %8759 = vmatprep.subr.bf16.mxu0 %v9704_v35  ;;  %8787 = vmatprep.subr.bf16.mxu1 %v9705_v1 }
 0x9fa   : > { %8760 = vmatpush3.bf16.msra.mxu0 %v9706_v36  ;;  %8788 = vmatpush3.bf16.msra.mxu1 %v9707_v37 }
 0xaaf   : > { %v4279_v45 = vpop.f32.mrb[16].mxu0  ;;  %v4332_v25 = vpop.f32.mrb[8].mxu1 }
 0xab0   : > { %v4280_v38 = vadd.f32 %v4279_v45, %v4068_v41  ;;  %v4333_v22 = vadd.f32 %v4332_v25, %v4076_v42  ;;  %v4281_v43 = vpop.f32.mrb[17].mxu0  ;;  %v4334_v19 = vpop.f32.mrb[9].mxu1 }
 0xab1   : > { %v4282_v6 = vadd.f32 %v4281_v43, %v4072_v20  ;;  %v4335_v54 = vadd.f32 %v4334_v19, %v4080_v44  ;;  %v4283_v29 = vpop.f32.mrb[18].mxu0  ;;  %v4336_v7 = vpop.f32.mrb[10].mxu1 }
 0xab2   : > { %v4367_v56 = vmul.f32 0.70710677, %v4280_v38  ;;  %v4369_v47 = vmul.f32 0.70710677, %v4333_v22  ;;  %v4284_v46 = vadd.f32 %v4283_v29, %v4068_v41  ;;  %v11755_v52 = vadd.f32 %v4336_v7, %v4076_v42  ;;  %v4285_v53 = vpop.f32.mrb[19].mxu0  ;;  %v4338_v58 = vpop.f32.mrb[11].mxu1 }
 0xab3   : > { %v4368_v40 = vmul.f32 0.70710677, %v4282_v6  ;;  %v4370_v50 = vmul.f32 0.70710677, %v4335_v54  ;;  %v4286_v55 = vadd.f32 %v4285_v53, %v4072_v20  ;;  %v11757_v59 = vadd.f32 %v4338_v58, %v4080_v44 }
 0xab4   : > { %9740 = verf.f32 %v4367_v56  ;;  %v4371_v60 = vmul.f32 0.70710677, %v4284_v46  ;;  %v4373_v61 = vmul.f32 0.70710677, %v11755_v52  ;;  %v4351_v36 = vmul.f32 0.5, %v4280_v38 }
 0xab5   : > { %9742 = verf.f32 %v4369_v47  ;;  %v4372_v63 = vmul.f32 0.70710677, %v4286_v55  ;;  %v4374_v2 = vmul.f32 0.70710677, %v11757_v59  ;;  %v4353_v37 = vmul.f32 0.5, %v4333_v22 }
 0xab6   : > { %9744 = verf.f32 %v4368_v40  ;;  %v4354_v19 = vmul.f32 0.5, %v4335_v54  ;;  %v4355_v29 = vmul.f32 0.5, %v4284_v46  ;;  %v4357_v40 = vmul.f32 0.5, %v11755_v52 }
 0xab7   : > { %9746 = verf.f32 %v4370_v50  ;;  %v4289_v57 = vpop.f32.mrb[20].mxu0  ;;  %v4342_v49 = vpop.f32.mrb[12].mxu1 }
 0xab8   : > { %9748 = verf.f32 %v4371_v60  ;;  %v11761_v4 = vadd.f32 %v4289_v57, %v4068_v41  ;;  %v4291_v0 = vpop.f32.mrb[21].mxu0  ;;  %v11763_v5 = vadd.f32 %v4342_v49, %v4076_v42  ;;  %v4344_v9 = vpop.f32.mrb[13].mxu1 }
 0xab9   : > { %9750 = verf.f32 %v4373_v61  ;;  %v11765_v8 = vadd.f32 %v4291_v0, %v4072_v20  ;;  %v4293_v10 = vpop.f32.mrb[22].mxu0  ;;  %v11768_v12 = vadd.f32 %v4344_v9, %v4080_v44  ;;  %v4346_v13 = vpop.f32.mrb[14].mxu1 }
 0xaba   : > { %9752 = verf.f32 %v4372_v63  ;;  %v4375_v11 = vmul.f32 0.70710677, %v11761_v4  ;;  %v4295_v14 = vpop.f32.mrb[23].mxu0  ;;  %v4377_v15 = vmul.f32 0.70710677, %v11763_v5  ;;  %v4348_v16 = vpop.f32.mrb[15].mxu1  ;;  %v4294_v21 = vadd.f32 %v4293_v10, %v4068_v41 }
 0xabb   : > { %9754 = verf.f32 %v4374_v2  ;;  %v4376_v17 = vmul.f32 0.70710677, %v11765_v8  ;;  %v4378_v18 = vmul.f32 0.70710677, %v11768_v12  ;;  %v11773_v23 = vadd.f32 %v4346_v13, %v4076_v42 }
 0xabc   : > { %9756 = verf.f32 %v4375_v11  ;;  %v11775_v24 = vadd.f32 %v4295_v14, %v4072_v20  ;;  %v4379_v34 = vmul.f32 0.70710677, %v4294_v21  ;;  %v11777_v35 = vadd.f32 %v4348_v16, %v4080_v44 }
 0xabd   : > { %9758 = verf.f32 %v4377_v15  ;;  %v4381_v62 = vmul.f32 0.70710677, %v11773_v23  ;;  %v4352_v41 = vmul.f32 0.5, %v4282_v6  ;;  %v4356_v6 = vmul.f32 0.5, %v4286_v55 }
 0xabe   : > { %v9741_v27 = vpop.eup %9740  ;;  %9760 = verf.f32 %v4376_v17  ;;  %v4380_v42 = vmul.f32 0.70710677, %v11775_v24  ;;  %v4382_v38 = vmul.f32 0.70710677, %v11777_v35  ;;  %v4358_v63 = vmul.f32 0.5, %v11757_v59 }
 0xabf   : > { %v9743_v33 = vpop.eup %9742  ;;  %9762 = verf.f32 %v4378_v18  ;;  %v4399_v25 = vadd.f32 1.0, %v9741_v27  ;;  %v4359_v27 = vmul.f32 0.5, %v11761_v4 }
 0xac0   : > { %v9745_v1 = vpop.eup %9744  ;;  %9764 = verf.f32 %v4379_v34  ;;  %v4401_v43 = vadd.f32 1.0, %v9743_v33  ;;  %v4361_v34 = vmul.f32 0.5, %v11763_v5 }
 0xac1   : > { %v9747_v45 = vpop.eup %9746  ;;  %9766 = verf.f32 %v4381_v62  ;;  %v4400_v44 = vadd.f32 1.0, %v9745_v1  ;;  %v4415_v58 = vmul.f32 %v4399_v25, %v4351_v36  ;;  %v4363_v36 = vmul.f32 0.5, %v4294_v21 }
 0xac2   : > { %v9749_v20 = vpop.eup %9748  ;;  %9768 = verf.f32 %v4380_v42  ;;  %v4402_v47 = vadd.f32 1.0, %v9747_v45  ;;  %v4417_v54 = vmul.f32 %v4401_v43, %v4353_v37  ;;  %v4360_v45 = vmul.f32 0.5, %v11765_v8 }
 0xac3   : > { %v9751_v7 = vpop.eup %9750  ;;  %v4403_v56 = vadd.f32 1.0, %v9749_v20  ;;  %9770 = verf.f32 %v4382_v38  ;;  %v4416_v49 = vmul.f32 %v4400_v44, %v4352_v41  ;;  %v4365_v25 = vmul.f32 0.5, %v11773_v23 }
 0xac4   : > { %v9753_v22 = vpop.eup %9752  ;;  %v4405_v50 = vadd.f32 1.0, %v9751_v7  ;;  %v4418_v11 = vmul.f32 %v4402_v47, %v4354_v19  ;;  %v4364_v42 = vmul.f32 0.5, %v11775_v24  ;;  %v4362_v21 = vmul.f32 0.5, %v11768_v12  ;;  %v8655_v12 = vld [vmem:[%s12270_s5] ss:$0 sm:$0xff] }
 0xac5   : > { %v9755_v53 = vpop.eup %9754  ;;  %v4419_v60 = vmul.f32 %v4403_v56, %v4355_v29  ;;  %v4404_v61 = vadd.f32 1.0, %v9753_v22  ;;  %v4366_v44 = vmul.f32 0.5, %v11777_v35 }
 0xac6   : > { %v4421_v46 = vmul.f32 %v4405_v50, %v4357_v40  ;;  %v4406_v57 = vadd.f32 1.0, %v9755_v53  ;;  %v9757_v2 = vpop.eup %9756 }
 0xac7   : > { %v4431_v0 = vpack.c.bf16 %v4419_v60, %v4415_v58  ;;  %v4420_v9 = vmul.f32 %v4404_v61, %v4356_v6  ;;  %v9759_v10 = vpop.eup %9758  ;;  %v4407_v16 = vadd.f32 1.0, %v9757_v2 }
 0xac8   : > { %v4433_v13 = vpack.c.bf16 %v4421_v46, %v4417_v54  ;;  %v4422_v52 = vmul.f32 %v4406_v57, %v4358_v63  ;;  %v9761_v14 = vpop.eup %9760  ;;  %v4409_v33 = vadd.f32 1.0, %v9759_v10 }
 0xac9   : > { %v4432_v55 = vpack.c.bf16 %v4420_v9, %v4416_v49  ;;  %v9763_v15 = vpop.eup %9762  ;;  %v4408_v1 = vadd.f32 1.0, %v9761_v14  ;;  %v4423_v4 = vmul.f32 %v4407_v16, %v4359_v27 }
 0xaca   : > { %v4434_v17 = vpack.c.bf16 %v4422_v52, %v4418_v11  ;;  %v9765_v18 = vpop.eup %9764  ;;  %v4410_v20 = vadd.f32 1.0, %v9763_v15  ;;  %v4425_v5 = vmul.f32 %v4409_v33, %v4361_v34 }
 0xacb   : > { %4734 = vmatprep.mubr.bf16.mxu0 %v4432_v55  ;;  %v9767_v59 = vpop.eup %9766  ;;  %v4411_v37 = vadd.f32 1.0, %v9765_v18  ;;  %v4424_v56 = vmul.f32 %v4408_v1, %v4360_v45 }
 0xacc   : > { %4783 = vmatprep.mubr.bf16.mxu1 %v4434_v17  ;;  %4735 = vmatmul.mubr.bf16.vlgmr.msra.gmra.mrb[24].mxu0 %v4431_v0  ;;  %v9769_v62 = vpop.eup %9768  ;;  %v4413_v41 = vadd.f32 1.0, %v9767_v59  ;;  %v4426_v47 = vmul.f32 %v4410_v20, %v4362_v21 }
 0xacd   : > { %4784 = vmatmul.mubr.bf16.vlgmr.msra.gmra.mrb[16].mxu1 %v4433_v13  ;;  %v4427_v43 = vmul.f32 %v4411_v37, %v4363_v36  ;;  %v4412_v19 = vadd.f32 1.0, %v9769_v62  ;;  %v9771_v29 = vpop.eup %9770 }
 0xace   : > { %v4429_v7 = vmul.f32 %v4413_v41, %v4365_v25  ;;  %v4414_v38 = vadd.f32 1.0, %v9771_v29 }
 0xacf   : > { %v4428_v8 = vmul.f32 %v4412_v19, %v4364_v42  ;;  %v4435_v23 = vpack.c.bf16 %v4427_v43, %v4423_v4 }
 0xad0   : > { %v4437_v22 = vpack.c.bf16 %v4429_v7, %v4425_v5  ;;  %v4430_v24 = vmul.f32 %v4414_v38, %v4366_v44 }
 0xad1   : > { %v4436_v40 = vpack.c.bf16 %v4428_v8, %v4424_v56 }
 0xad2   : > { %v4438_v50 = vpack.c.bf16 %v4430_v24, %v4426_v47 }
 0xad3   : > { %4742 = vmatprep.mubr.bf16.mxu0 %v4436_v40 }
 0xad4   : > { %4743 = vmatmul.mubr.bf16.gmra.mrb[28].mxu0 %v4435_v23  ;;  %4791 = vmatprep.mubr.bf16.mxu1 %v4438_v50 }
 0xad5   : > { %4792 = vmatmul.mubr.bf16.gmra.mrb[20].mxu1 %v4437_v22 }
 0xb9f   : > { %v8761_v6 = vpop.f32.mrb[24].mxu0 }
 0xba0   : > { %v8789_v53 = vpop.f32.mrb[16].mxu1  ;;  %v8762_v58 = vpop.f32.mrb[25].mxu0 }
 0xba1   : > { %v8763_v35 = vadd.f32 %v8762_v58, %v8761_v6  ;;  %v8790_v60 = vpop.f32.mrb[17].mxu1  ;;  %v8764_v61 = vpop.f32.mrb[26].mxu0 }
 0xba2   : > { %v8791_v54 = vadd.f32 %v8790_v60, %v8789_v53  ;;  %v8792_v46 = vpop.f32.mrb[18].mxu1  ;;  %v8765_v63 = vpop.f32.mrb[27].mxu0 }
 0xba3   : > { %v4737_v57 = vadd.f32 %v8763_v35, %v8655_v12  ;;  %v8766_v2 = vadd.f32 %v8765_v63, %v8764_v61  ;;  %v8793_v49 = vpop.f32.mrb[19].mxu1 }
 0xba4   : > { %v8794_v0 = vadd.f32 %v8793_v49, %v8792_v46 }
 0xba5   : > { %v4786_v9 = vadd.f32 %v8791_v54, %v4737_v57  ;;  %v4740_v10 = vadd.f32 %v8766_v2, %v8655_v12  ;;  %v8688_v54 = vld [vmem:[%s12271_s4] ss:$0 sm:$0xff] }
 0xba6   : > { %v8689_v57 = vld [vmem:[%s12272_s22] ss:$0 sm:$0xff] }
 0xba7   : > { %v4789_v11 = vadd.f32 %v8794_v0, %v4740_v10  ;;  %v4800_v13 = vadd.f32 %v4786_v9, %v11701_v31  ;;  %v8767_v52 = vpop.f32.mrb[28].mxu0 }
 0xba8   : > { %v8768_v14 = vpop.f32.mrb[29].mxu0  ;;  %v8795_v15 = vpop.f32.mrb[20].mxu1 }
 0xba9   : > { %4806 = vadd.xlane.f32.xlu0 %v4800_v13  ;;  %v4801_v55 = vadd.f32 %v4789_v11, %v11703_v51  ;;  %v8769_v16 = vadd.f32 %v8768_v14, %v8767_v52  ;;  %v8770_v17 = vpop.f32.mrb[30].mxu0  ;;  %v8796_v18 = vpop.f32.mrb[21].mxu1 }
 0xbaa   : > { %v8771_v27 = vpop.f32.mrb[31].mxu0  ;;  %v8797_v59 = vadd.f32 %v8796_v18, %v8795_v15  ;;  %v8798_v34 = vpop.f32.mrb[22].mxu1 }
 0xbab   : > { %4808 = vadd.xlane.f32.xlu1 %v4801_v55  ;;  %v4745_v33 = vadd.f32 %v8769_v16, %v8655_v12  ;;  %v8772_v1 = vadd.f32 %v8771_v27, %v8770_v17  ;;  %v8799_v36 = vpop.f32.mrb[23].mxu1 }
 0xbac   : > { %v8800_v45 = vadd.f32 %v8799_v36, %v8798_v34 }
 0xbad   : > { %v4794_v37 = vadd.f32 %v8797_v59, %v4745_v33  ;;  %v4748_v62 = vadd.f32 %v8772_v1, %v8655_v12 }
 0xbaf   : > { %v4797_v31 = vadd.f32 %v8800_v45, %v4748_v62  ;;  %v4802_v25 = vadd.f32 %v4794_v37, %v11719_v3 }
 0xbb1   : > { %4810 = vadd.xlane.f32.xlu0 %v4802_v25  ;;  %v4803_v51 = vadd.f32 %v4797_v31, %v11715_v48 }
 0xbb3   : > { %4812 = vadd.xlane.f32.xlu1 %v4803_v51 }
 0xc36   : > { %v4807_v41 = vpop.xlane.xlu0 %4806 }
 0xc37   : > { %v4814_v42 = vmul.f32 0.0078125, %v4807_v41 }
 0xc38   : > { %v4809_v4 = vpop.xlane.xlu1 %4808 }
 0xc39   : > { %v4818_v20 = vsub.f32 %v4800_v13, %v4814_v42  ;;  %v4815_v43 = vmul.f32 0.0078125, %v4809_v4 }
 0xc3b   : > { %v4819_v19 = vsub.f32 %v4801_v55, %v4815_v43  ;;  %v4822_v29 = vmul.f32 %v4818_v20, %v4818_v20 }
 0xc3d   : > { %4826 = vadd.xlane.f32.xlu0 %v4822_v29  ;;  %v4823_v5 = vmul.f32 %v4819_v19, %v4819_v19 }
 0xc3e   : > { %v4811_v21 = vpop.xlane.xlu0 %4810 }
 0xc3f   : > { %4828 = vadd.xlane.f32.xlu1 %v4823_v5  ;;  %v4816_v7 = vmul.f32 0.0078125, %v4811_v21 }
 0xc40   : > { %v4813_v44 = vpop.xlane.xlu1 %4812 }
 0xc41   : > { %v4820_v56 = vsub.f32 %v4802_v25, %v4816_v7  ;;  %v4817_v8 = vmul.f32 0.0078125, %v4813_v44 }
 0xc43   : > { %v4821_v3 = vsub.f32 %v4803_v51, %v4817_v8  ;;  %v4824_v38 = vmul.f32 %v4820_v56, %v4820_v56 }
 0xc45   : > { %4830 = vadd.xlane.f32.xlu0 %v4824_v38  ;;  %v4825_v48 = vmul.f32 %v4821_v3, %v4821_v3 }
 0xc47   : > { %4832 = vadd.xlane.f32.xlu1 %v4825_v48 }
 0xcca   : > { %v4827_v23 = vpop.xlane.xlu0 %4826 }
 0xccb   : > { %v4834_v22 = vmul.f32 0.0078125, %v4827_v23 }
 0xccc   : > { %v4829_v47 = vpop.xlane.xlu1 %4828 }
 0xccd   : > { %v4838_v24 = vadd.f32 1e-05, %v4834_v22  ;;  %v4835_v40 = vmul.f32 0.0078125, %v4829_v47  ;;  %v8691_v22 = vld [vmem:[#allocation35] ss:$0 sm:$0xff] (!%p8690_p3) }
 0xccf   : > { %9772 = vrsqrt.f32 %v4838_v24  ;;  %v4839_v50 = vadd.f32 1e-05, %v4835_v40 }
 0xcd1   : > { %9774 = vrsqrt.f32 %v4839_v50 }
 0xcd2   : > { %v4831_v6 = vpop.xlane.xlu0 %4830 }
 0xcd3   : > { %v4836_v53 = vmul.f32 0.0078125, %v4831_v6  ;;  %v8692_v6 = vld [vmem:[#allocation36] ss:$0 sm:$0xff] (!%p8690_p3) }
 0xcd4   : > { %v4833_v12 = vpop.xlane.xlu1 %4832 }
 0xcd5   : > { %v4840_v58 = vadd.f32 1e-05, %v4836_v53  ;;  %v4837_v35 = vmul.f32 0.0078125, %v4833_v12 }
 0xcd7   : > { %9776 = vrsqrt.f32 %v4840_v58  ;;  %v4841_v60 = vadd.f32 1e-05, %v4837_v35 }
 0xcd9   : > { %v9773_v61 = vpop.eup %9772  ;;  %9778 = vrsqrt.f32 %v4841_v60 }
 0xcda   : > { %v4846_v46 = vmul.f32 %v9773_v61, %v4818_v20 }
 0xcdb   : > { %v9775_v63 = vpop.eup %9774 }
 0xcdc   : > { %v4856_v2 = vmul.f32 %v8688_v54, %v4846_v46  ;;  %v4847_v49 = vmul.f32 %v9775_v63, %v4819_v19 }
 0xcde   : > { %v4866_v0 = vadd.f32 %v8689_v57, %v4856_v2  ;;  %v4857_v9 = vmul.f32 %v8688_v54, %v4847_v49 }
 0xce0   : > { %4870 = vst [vmem:[#allocation2] sm:$0xff] %v4866_v0  ;;  %v4867_v10 = vadd.f32 %v8689_v57, %v4857_v9  ;;  %4880 = vadd.xlane.f32.xlu0 (!%p8690_p3), %v4866_v0 }
 0xce1   : > { %v9777_v11 = vpop.eup %9776 }
 0xce2   : > { %4871 = vst [vmem:[#allocation2 + $0x8] sm:$0xff] %v4867_v10  ;;  %v4848_v13 = vmul.f32 %v9777_v11, %v4820_v56 }
 0xce3   : > { %v9779_v52 = vpop.eup %9778 }
 0xce4   : > { %v4858_v14 = vmul.f32 %v8688_v54, %v4848_v13  ;;  %v4849_v55 = vmul.f32 %v9779_v52, %v4821_v3  ;;  %4877 = sbr.rel (%p8690_p3) target bundleno = 5173 (0x1435), region = 236  ;;  %4882 = vadd.xlane.f32.xlu0 (!%p8690_p3), %v4867_v10 }
 0xce6   : > { %v4868_v15 = vadd.f32 %v8689_v57, %v4858_v14  ;;  %v4859_v16 = vmul.f32 %v8688_v54, %v4849_v55 }
 0xce8   : > { %4872 = vst [vmem:[#allocation2 + $0x10] sm:$0xff] %v4868_v15  ;;  %v4869_v17 = vadd.f32 %v8689_v57, %v4859_v16  ;;  %4884 = vadd.xlane.f32.xlu1 (!%p8690_p3), %v4868_v15 }
 0xcea   : > { %4873 = vst [vmem:[#allocation2 + $0x18] sm:$0xff] %v4869_v17 }
 0xcec   : > { %4886 = vadd.xlane.f32.xlu1 %v4869_v17 }
 0xd6d   : > { %v4881_v18 = vpop.xlane.xlu0 %4880 }
 0xd6e   : > { %v4888_v33 = vmul.f32 0.0078125, %v4881_v18 }
 0xd70   : > { %v4892_v34 = vsub.f32 %v4866_v0, %v4888_v33 }
 0xd71   : > { %v4883_v36 = vpop.xlane.xlu0 %4882 }
 0xd72   : > { %v4889_v62 = vmul.f32 0.0078125, %v4883_v36  ;;  %v4896_v45 = vmul.f32 %v4892_v34, %v4892_v34 }
 0xd74   : > { %v4893_v25 = vsub.f32 %v4867_v10, %v4889_v62  ;;  %4900 = vadd.xlane.f32.xlu0 %v4896_v45 }
 0xd75   : > { %v4885_v27 = vpop.xlane.xlu1 %4884 }
 0xd76   : > { %v4890_v59 = vmul.f32 0.0078125, %v4885_v27  ;;  %v4897_v42 = vmul.f32 %v4893_v25, %v4893_v25 }
 0xd78   : > { %v4894_v1 = vsub.f32 %v4868_v15, %v4890_v59  ;;  %4902 = vadd.xlane.f32.xlu1 %v4897_v42 }
 0xd79   : > { %v4887_v37 = vpop.xlane.xlu1 %4886 }
 0xd7a   : > { %v4891_v31 = vmul.f32 0.0078125, %v4887_v37  ;;  %v4898_v41 = vmul.f32 %v4894_v1, %v4894_v1 }
 0xd7c   : > { %v4895_v51 = vsub.f32 %v4869_v17, %v4891_v31  ;;  %4904 = vadd.xlane.f32.xlu0 %v4898_v41 }
 0xd7e   : > { %v4899_v4 = vmul.f32 %v4895_v51, %v4895_v51 }
 0xd80   : > { %4906 = vadd.xlane.f32.xlu1 %v4899_v4 }
 0xe01   : > { %v4901_v20 = vpop.xlane.xlu0 %4900 }
 0xe02   : > { %v4908_v43 = vmul.f32 0.0078125, %v4901_v20 }
 0xe04   : > { %v4912_v19 = vadd.f32 1e-05, %v4908_v43 }
 0xe05   : > { %v4903_v29 = vpop.xlane.xlu1 %4902 }
 0xe06   : > { %9780 = vrsqrt.f32 %v4912_v19  ;;  %v4909_v21 = vmul.f32 0.0078125, %v4903_v29 }
 0xe08   : > { %v4913_v44 = vadd.f32 1e-05, %v4909_v21 }
 0xe09   : > { %v4905_v5 = vpop.xlane.xlu0 %4904 }
 0xe0a   : > { %v4910_v7 = vmul.f32 0.0078125, %v4905_v5  ;;  %9782 = vrsqrt.f32 %v4913_v44 }
 0xe0c   : > { %v4914_v56 = vadd.f32 1e-05, %v4910_v7 }
 0xe0d   : > { %v4907_v8 = vpop.xlane.xlu1 %4906 }
 0xe0e   : > { %v4911_v3 = vmul.f32 0.0078125, %v4907_v8  ;;  %9784 = vrsqrt.f32 %v4914_v56 }
 0xe10   : > { %v4915_v38 = vadd.f32 1e-05, %v4911_v3  ;;  %v9781_v48 = vpop.eup %9780 }
 0xe11   : > { %v4920_v23 = vmul.f32 %v9781_v48, %v4892_v34 }
 0xe12   : > { %9786 = vrsqrt.f32 %v4915_v38 }
 0xe13   : > { %v4930_v40 = vmul.f32 %v8691_v22, %v4920_v23 }
 0xe14   : > { %v9783_v47 = vpop.eup %9782 }
 0xe15   : > { %v4921_v50 = vmul.f32 %v9783_v47, %v4893_v25  ;;  %v4940_v35 = vadd.f32 %v8692_v6, %v4930_v40 }
 0xe17   : > { %v4931_v12 = vmul.f32 %v8691_v22, %v4921_v50 }
 0xe18   : > { %v9785_v24 = vpop.eup %9784 }
 0xe19   : > { %v4922_v53 = vmul.f32 %v9785_v24, %v4894_v1  ;;  %v4941_v60 = vadd.f32 %v8692_v6, %v4931_v12 }
 0xe1b   : > { %v4932_v61 = vmul.f32 %v8691_v22, %v4922_v53  ;;  %v4944_v46 = vadd.f32 %v4941_v60, %v4940_v35 }
 0xe1c   : > { %v9787_v58 = vpop.eup %9786 }
 0xe1d   : > { %v4923_v54 = vmul.f32 %v9787_v58, %v4895_v51  ;;  %v4945_v57 = vrot.slane %v4944_v46, 4  ;;  %v4942_v2 = vadd.f32 %v8692_v6, %v4932_v61 }
 0xe1f   : > { %v4933_v63 = vmul.f32 %v8691_v22, %v4923_v54  ;;  %v4946_v0 = vadd.f32 %v4945_v57, %v4944_v46 }
 0xe21   : > { %v4943_v49 = vadd.f32 %v8692_v6, %v4933_v63  ;;  %v4947_v10 = vrot.slane %v4946_v0, 2 }
 0xe23   : > { %v4951_v9 = vadd.f32 %v4943_v49, %v4942_v2  ;;  %v4948_v13 = vadd.f32 %v4947_v10, %v4946_v0 }
 0xe25   : > { %v4952_v11 = vrot.slane %v4951_v9, 4  ;;  %v4949_v14 = vrot.slane %v4948_v13, 1 }
 0xe27   : > { %v4953_v52 = vadd.f32 %v4952_v11, %v4951_v9  ;;  %v4950_v15 = vadd.f32 %v4949_v14, %v4948_v13 }
 0xe29   : > { %v4954_v55 = vrot.slane %v4953_v52, 2  ;;  %v4959_v17 = vmul.f32 0.0625, %v4950_v15 }
 0xe2b   : > { %v4955_v16 = vadd.f32 %v4954_v55, %v4953_v52  ;;  %v8693_v27 = vclamps-f32 %v4959_v17, 10000.0 }
 0xe2d   : > { %v4956_v18 = vrot.slane %v4955_v16, 1 }
 0xe2f   : > { %v4957_v33 = vadd.f32 %v4956_v18, %v4955_v16 }
 0xe31   : > { %v4960_v59 = vmul.f32 0.0625, %v4957_v33 }
 0xe33   : > { %v8694_v34 = vclamps-f32 %v4960_v59, 10000.0 }
 0xe34   : > { %10624 = dma.done.wait [#allocation8], 98304 }
 0xe35   : > { %10625 = vsyncadd [#allocation8], 4294868992 }
 0xe36   : > { %10626 = dma.done.wait [#allocation8 + $0x1], 8192 }
 0xe37   : > { %10627 = vsyncadd [#allocation8 + $0x1], 4294959104 }
 0xe38   : > { %10628 = dma.done.wait [#allocation8 + $0x2], 32768 }
 0xe39   : > { %10629 = vsyncadd [#allocation8 + $0x2], 4294934528 }
 0xe3a   : > { %10630 = dma.done.wait [#allocation8 + $0x3], 4096 }
 0xe3b   : > { %10631 = vsyncadd [#allocation8 + $0x3], 4294963200  ;;  %v10738_v1 = vmov 0   ;;  %v5836_v36 = vld [vmem:[#allocation5 + $0x8] sm:$0xff]  ;;  %v5838_v37 = vld [vmem:[#allocation5 + $0x18] sm:$0xff]  ;;  %v5833_v48 = vpack.c.bf16 %v8693_v27, %v8693_v27  ;;  %v5834_v23 = vpack.c.bf16 %v8694_v34, %v8694_v34  ;;  %vm5903_vm2 = vcmask 1041409  }
 0xe3c   : > { %5939 = vmatprep.mubr.bf16.mxu0 %v10738_v1  ;;  %5980 = vmatprep.mubr.bf16.mxu1 %v10738_v1  ;;  %v5835_v62 = vld [vmem:[#allocation5] sm:$0xff]  ;;  %v5837_v45 = vld [vmem:[#allocation5 + $0x10] sm:$0xff]  ;;  %v5844_v31 = vld [vmem:[#allocation5 + $0x48] sm:$0xff]  ;;  %v10739_v59 = vmov 1983009808  }
 0xe3d   : > { %5907 = vmatprep.subr.bf16.mxu0 %v5836_v36  ;;  %5948 = vmatprep.subr.bf16.mxu1 %v5838_v37  ;;  %v5846_v25 = vld [vmem:[#allocation5 + $0x58] sm:$0xff]  ;;  %v5843_v51 = vld [vmem:[#allocation5 + $0x40] sm:$0xff]  ;;  %v5845_v41 = vld [vmem:[#allocation5 + $0x50] sm:$0xff]  ;;  %v5901_v50 = vunpack.c.l.b16 %v5833_v48  ;;  %v5902_v6 = vunpack.c.l.b16 %v5834_v23  ;;  %v4992_v34 = vunpack.c.l.s4 %v10739_v59 }
 0xe3e   : > { %5908 = vmatpush1.bf16.msra.mxu0 %v5835_v62  ;;  %5949 = vmatpush1.bf16.msra.mxu1 %v5837_v45  ;;  %v5852_v42 = vld [vmem:[#allocation5 + $0x88] sm:$0xff]  ;;  %v5854_v4 = vld [vmem:[#allocation5 + $0x98] sm:$0xff]  ;;  %v5851_v20 = vld [vmem:[#allocation5 + $0x80] sm:$0xff] }
 0xe3f   : > { %5909 = vmatprep.subr.bf16.mxu0 %v5844_v31  ;;  %5950 = vmatprep.subr.bf16.mxu1 %v5846_v25  ;;  %v5853_v43 = vld [vmem:[#allocation5 + $0x90] sm:$0xff]  ;;  %v5860_v19 = vld [vmem:[#allocation5 + $0xc8] sm:$0xff]  ;;  %v5862_v29 = vld [vmem:[#allocation5 + $0xd8] sm:$0xff]  ;;  %v5904_v60 = vsel %vm5903_vm2, %v5902_v6, %v5901_v50  ;;  %v4993_v45 = vunpack.c.0.s8 %v4992_v34 }
 0xe40   : > { %v5859_v5 = vld [vmem:[#allocation5 + $0xc0] sm:$0xff]  ;;  %v5861_v21 = vld [vmem:[#allocation5 + $0xd0] sm:$0xff]  ;;  %v5868_v7 = vld [vmem:[#allocation5 + $0x108] sm:$0xff]  ;;  %v11804_v57 = vpack.c.b16 %v5904_v60, %v5904_v60 }
 0xe41   : > { %v5870_v44 = vld [vmem:[#allocation5 + $0x118] sm:$0xff]  ;;  %v5867_v56 = vld [vmem:[#allocation5 + $0x100] sm:$0xff]  ;;  %v5869_v8 = vld [vmem:[#allocation5 + $0x110] sm:$0xff] }
 0xe42   : > { %5910 = vmatpush1.bf16.msra.mxu0 %v5843_v51  ;;  %5951 = vmatpush1.bf16.msra.mxu1 %v5845_v41  ;;  %v5876_v3 = vld [vmem:[#allocation5 + $0x148] sm:$0xff]  ;;  %v5878_v38 = vld [vmem:[#allocation5 + $0x158] sm:$0xff]  ;;  %v5875_v22 = vld [vmem:[#allocation5 + $0x140] sm:$0xff] }
 0xe43   : > { %5911 = vmatprep.subr.bf16.mxu0 %v5852_v42  ;;  %5952 = vmatprep.subr.bf16.mxu1 %v5854_v4  ;;  %v5877_v47 = vld [vmem:[#allocation5 + $0x150] sm:$0xff]  ;;  %v5884_v24 = vld [vmem:[#allocation5 + $0x188] sm:$0xff]  ;;  %v5886_v40 = vld [vmem:[#allocation5 + $0x198] sm:$0xff]  ;;  %v11811_v4 = vsub.s32 %v4993_v45, %v11606_v30 }
 0xe44   : > { %v5883_v53 = vld [vmem:[#allocation5 + $0x180] sm:$0xff]  ;;  %v5885_v12 = vld [vmem:[#allocation5 + $0x190] sm:$0xff]  ;;  %v5892_v58 = vld [vmem:[#allocation5 + $0x1c8] sm:$0xff] }
 0xe45   : > { %v5894_v35 = vld [vmem:[#allocation5 + $0x1d8] sm:$0xff]  ;;  %v5891_v61 = vld [vmem:[#allocation5 + $0x1c0] sm:$0xff]  ;;  %v5893_v54 = vld [vmem:[#allocation5 + $0x1d0] sm:$0xff] }
 0xe46   : > { %5912 = vmatpush1.bf16.msra.mxu0 %v5851_v20  ;;  %5953 = vmatpush1.bf16.msra.mxu1 %v5853_v43  ;;  %v5840_v46 = vld [vmem:[#allocation5 + $0x28] sm:$0xff]  ;;  %v5842_v63 = vld [vmem:[#allocation5 + $0x38] sm:$0xff]  ;;  %v5839_v2 = vld [vmem:[#allocation5 + $0x20] sm:$0xff] }
 0xe47   : > { %5913 = vmatprep.subr.bf16.mxu0 %v5860_v19  ;;  %5954 = vmatprep.subr.bf16.mxu1 %v5862_v29  ;;  %v5841_v49 = vld [vmem:[#allocation5 + $0x30] sm:$0xff]  ;;  %v5848_v0 = vld [vmem:[#allocation5 + $0x68] sm:$0xff]  ;;  %v5850_v9 = vld [vmem:[#allocation5 + $0x78] sm:$0xff] }
 0xe48   : > { %v5847_v10 = vld [vmem:[#allocation5 + $0x60] sm:$0xff]  ;;  %v5849_v11 = vld [vmem:[#allocation5 + $0x70] sm:$0xff]  ;;  %v5856_v13 = vld [vmem:[#allocation5 + $0xa8] sm:$0xff] }
 0xe49   : > { %v5858_v52 = vld [vmem:[#allocation5 + $0xb8] sm:$0xff]  ;;  %v5855_v14 = vld [vmem:[#allocation5 + $0xa0] sm:$0xff]  ;;  %v5857_v55 = vld [vmem:[#allocation5 + $0xb0] sm:$0xff] }
 0xe4a   : > { %5914 = vmatpush1.bf16.msra.mxu0 %v5859_v5  ;;  %5955 = vmatpush1.bf16.msra.mxu1 %v5861_v21  ;;  %v5864_v15 = vld [vmem:[#allocation5 + $0xe8] sm:$0xff]  ;;  %v5866_v16 = vld [vmem:[#allocation5 + $0xf8] sm:$0xff]  ;;  %v5863_v17 = vld [vmem:[#allocation5 + $0xe0] sm:$0xff] }
 0xe4b   : > { %5915 = vmatprep.subr.bf16.mxu0 %v5868_v7  ;;  %5956 = vmatprep.subr.bf16.mxu1 %v5870_v44  ;;  %v5865_v18 = vld [vmem:[#allocation5 + $0xf0] sm:$0xff]  ;;  %v5872_v27 = vld [vmem:[#allocation5 + $0x128] sm:$0xff]  ;;  %v5874_v33 = vld [vmem:[#allocation5 + $0x138] sm:$0xff] }
 0xe4c   : > { %v5873_v36 = vld [vmem:[#allocation5 + $0x130] sm:$0xff]  ;;  %v5880_v37 = vld [vmem:[#allocation5 + $0x168] sm:$0xff]  ;;  %v5882_v62 = vld [vmem:[#allocation5 + $0x178] sm:$0xff] }
 0xe4d   : > { %v4984_v31 = vld [vmem:[#allocation3] sm:$0xff]  ;;  %v5879_v25 = vld [vmem:[#allocation5 + $0x160] sm:$0xff]  ;;  %v5881_v51 = vld [vmem:[#allocation5 + $0x170] sm:$0xff] }
 0xe4e   : > { %5916 = vmatpush1.bf16.msra.mxu0 %v5867_v56  ;;  %5957 = vmatpush1.bf16.msra.mxu1 %v5869_v8  ;;  %v5888_v41 = vld [vmem:[#allocation5 + $0x1a8] sm:$0xff]  ;;  %v5890_v42 = vld [vmem:[#allocation5 + $0x1b8] sm:$0xff]  ;;  %v4990_v20 = vcombine.high %v4984_v31, %v4984_v31  ;;  %v5887_v43 = vld [vmem:[#allocation5 + $0x1a0] sm:$0xff]  ;;  %v11814_v21 = vrot.slane %v4984_v31, %v11811_v4 }
 0xe4f   : > { %5917 = vmatprep.subr.bf16.mxu0 %v5876_v3  ;;  %5958 = vmatprep.subr.bf16.mxu1 %v5878_v38  ;;  %v5889_v19 = vld [vmem:[#allocation5 + $0x1b0] sm:$0xff]  ;;  %v5896_v29 = vld [vmem:[#allocation5 + $0x1e8] sm:$0xff]  ;;  %v5898_v5 = vld [vmem:[#allocation5 + $0x1f8] sm:$0xff] }
 0xe50   : > { %v11817_v7 = vrot.slane %v4990_v20, %v11811_v4  ;;  %v5895_v44 = vld [vmem:[#allocation5 + $0x1e0] sm:$0xff]  ;;  %v5897_v56 = vld [vmem:[#allocation5 + $0x1f0] sm:$0xff]  ;;  %v5066_v8 = vld [vmem:[#allocation4 + $0x8] sm:$0xff]  ;;  %v5005_v38 = vcombine.high %v11814_v21, %v11814_v21 }
 0xe51   : > { %v5194_v3 = vld [vmem:[#allocation4 + $0x408] sm:$0xff]  ;;  %v5065_v23 = vld [vmem:[#allocation4] sm:$0xff] }
 0xe52   : > { %5918 = vmatpush1.bf16.msra.mxu0 %v5875_v22  ;;  %5959 = vmatpush1.bf16.msra.mxu1 %v5877_v47  ;;  %v5006_v48 = vcombine.high %v11817_v7, %v11817_v7  ;;  %v5193_v22 = vld [vmem:[#allocation4 + $0x400] sm:$0xff]  ;;  %v5074_v47 = vld [vmem:[#allocation4 + $0x48] sm:$0xff] }
 0xe53   : > { %5919 = vmatprep.subr.bf16.mxu0 %v5884_v24  ;;  %5960 = vmatprep.subr.bf16.mxu1 %v5886_v40  ;;  %v5202_v24 = vld [vmem:[#allocation4 + $0x448] sm:$0xff]  ;;  %v11823_v40 = vpack.c.bf16 %v5005_v38, %v5005_v38  ;;  %v5073_v6 = vld [vmem:[#allocation4 + $0x40] sm:$0xff]  ;;  %v4985_v38 = vld [vmem:[#allocation3 + $0x8] sm:$0xff] }
 0xe54   : > { %v11825_v50 = vpack.c.bf16 %v5006_v48, %v5006_v48  ;;  %v5209_v60 = vld [vmem:[#allocation4 + $0x480] sm:$0xff]  ;;  %v5258_v59 = vld [vmem:[#allocation4 + $0x608] sm:$0xff] }
 0xe55   : > { %v5129_v34 = vld [vmem:[#allocation4 + $0x200] sm:$0xff]  ;;  %v5146_v31 = vld [vmem:[#allocation4 + $0x288] sm:$0xff] }
 0xe56   : > { %5920 = vmatpush1.bf16.msra.mxu0 %v5883_v53  ;;  %5961 = vmatpush1.bf16.msra.mxu1 %v5885_v12  ;;  %v5201_v53 = vld [vmem:[#allocation4 + $0x440] sm:$0xff]  ;;  %v5082_v12 = vld [vmem:[#allocation4 + $0x88] sm:$0xff] }
 0xe57   : > { %5921 = vmatprep.subr.bf16.mxu0 %v5892_v58  ;;  %5962 = vmatprep.subr.bf16.mxu1 %v5894_v35  ;;  %v5210_v58 = vld [vmem:[#allocation4 + $0x488] sm:$0xff]  ;;  %v5081_v35 = vld [vmem:[#allocation4 + $0x80] sm:$0xff] }
 0xe58   : > { %v5265_v45 = vld [vmem:[#allocation4 + $0x640] sm:$0xff]  ;;  %v5282_v20 = vld [vmem:[#allocation4 + $0x6c8] sm:$0xff] }
 0xe59   : > { %v5169_v48 = vld [vmem:[#allocation4 + $0x340] sm:$0xff] }
 0xe5a   : > { %5922 = vmatpush1.bf16.msra.mxu0 %v5891_v61  ;;  %5963 = vmatpush1.bf16.msra.mxu1 %v5893_v54  ;;  %v5090_v61 = vld [vmem:[#allocation4 + $0xc8] sm:$0xff] }
 0xe5b   : > { %5989 = vmatprep.subr.bf16.mxu0 %v5840_v46  ;;  %6030 = vmatprep.subr.bf16.mxu1 %v5842_v63  ;;  %v5218_v54 = vld [vmem:[#allocation4 + $0x4c8] sm:$0xff]  ;;  %v5089_v46 = vld [vmem:[#allocation4 + $0xc0] sm:$0xff] }
 0xe5c   : > { %v5217_v63 = vld [vmem:[#allocation4 + $0x4c0] sm:$0xff] }
 0xe5d   : > { %5940 = vmatmul.mubr.bf16.vlgmr.msra.gmra.mrb[0].mxu0 %v11804_v57  ;;  %5981 = vmatmul.mubr.bf16.vlgmr.msra.gmra.mrb[0].mxu1 %v11804_v57 }
 0xe5e   : > { %5990 = vmatpush1.bf16.msra.mxu0 %v5839_v2  ;;  %6031 = vmatpush1.bf16.msra.mxu1 %v5841_v49  ;;  %v5226_v2 = vld [vmem:[#allocation4 + $0x508] sm:$0xff]  ;;  %v5097_v49 = vld [vmem:[#allocation4 + $0x100] sm:$0xff] }
 0xe5f   : > { %5991 = vmatprep.subr.bf16.mxu0 %v5848_v0  ;;  %6032 = vmatprep.subr.bf16.mxu1 %v5850_v9  ;;  %v5225_v0 = vld [vmem:[#allocation4 + $0x500] sm:$0xff]  ;;  %v5106_v9 = vld [vmem:[#allocation4 + $0x148] sm:$0xff] }
 0xe60   : > { %6021 = vmatprep.mubr.bf16.mxu0 %v10738_v1  ;;  %6062 = vmatprep.mubr.bf16.mxu1 %v10738_v1  ;;  %v5871_v1 = vld [vmem:[#allocation5 + $0x120] sm:$0xff] }
 0xe62   : > { %5992 = vmatpush1.bf16.msra.mxu0 %v5847_v10  ;;  %6033 = vmatpush1.bf16.msra.mxu1 %v5849_v11  ;;  %v5234_v10 = vld [vmem:[#allocation4 + $0x548] sm:$0xff]  ;;  %v5105_v11 = vld [vmem:[#allocation4 + $0x140] sm:$0xff] }
 0xe63   : > { %5993 = vmatprep.subr.bf16.mxu0 %v5856_v13  ;;  %6034 = vmatprep.subr.bf16.mxu1 %v5858_v52  ;;  %v5233_v13 = vld [vmem:[#allocation4 + $0x540] sm:$0xff]  ;;  %v5114_v52 = vld [vmem:[#allocation4 + $0x188] sm:$0xff] }
 0xe66   : > { %5994 = vmatpush1.bf16.msra.mxu0 %v5855_v14  ;;  %6035 = vmatpush1.bf16.msra.mxu1 %v5857_v55  ;;  %v5242_v14 = vld [vmem:[#allocation4 + $0x588] sm:$0xff]  ;;  %v5113_v55 = vld [vmem:[#allocation4 + $0x180] sm:$0xff] }
 0xe67   : > { %5995 = vmatprep.subr.bf16.mxu0 %v5864_v15  ;;  %6036 = vmatprep.subr.bf16.mxu1 %v5866_v16  ;;  %v5241_v15 = vld [vmem:[#allocation4 + $0x580] sm:$0xff]  ;;  %v5122_v16 = vld [vmem:[#allocation4 + $0x1c8] sm:$0xff] }
 0xe6a   : > { %5996 = vmatpush1.bf16.msra.mxu0 %v5863_v17  ;;  %6037 = vmatpush1.bf16.msra.mxu1 %v5865_v18  ;;  %v5250_v17 = vld [vmem:[#allocation4 + $0x5c8] sm:$0xff]  ;;  %v5121_v18 = vld [vmem:[#allocation4 + $0x1c0] sm:$0xff] }
 0xe6b   : > { %5997 = vmatprep.subr.bf16.mxu0 %v5872_v27  ;;  %6038 = vmatprep.subr.bf16.mxu1 %v5874_v33  ;;  %v5249_v27 = vld [vmem:[#allocation4 + $0x5c0] sm:$0xff]  ;;  %v5130_v33 = vld [vmem:[#allocation4 + $0x208] sm:$0xff] }
 0xe6e   : > { %5998 = vmatpush1.bf16.msra.mxu0 %v5871_v1  ;;  %6039 = vmatpush1.bf16.msra.mxu1 %v5873_v36  ;;  %v5257_v1 = vld [vmem:[#allocation4 + $0x600] sm:$0xff]  ;;  %v5138_v36 = vld [vmem:[#allocation4 + $0x248] sm:$0xff] }
 0xe6f   : > { %5999 = vmatprep.subr.bf16.mxu0 %v5880_v37  ;;  %6040 = vmatprep.subr.bf16.mxu1 %v5882_v62  ;;  %v5266_v37 = vld [vmem:[#allocation4 + $0x648] sm:$0xff]  ;;  %v5137_v62 = vld [vmem:[#allocation4 + $0x240] sm:$0xff] }
 0xe72   : > { %6000 = vmatpush1.bf16.msra.mxu0 %v5879_v25  ;;  %6041 = vmatpush1.bf16.msra.mxu1 %v5881_v51  ;;  %v5274_v25 = vld [vmem:[#allocation4 + $0x688] sm:$0xff]  ;;  %v5145_v51 = vld [vmem:[#allocation4 + $0x280] sm:$0xff] }
 0xe73   : > { %6001 = vmatprep.subr.bf16.mxu0 %v5888_v41  ;;  %6042 = vmatprep.subr.bf16.mxu1 %v5890_v42  ;;  %v5273_v41 = vld [vmem:[#allocation4 + $0x680] sm:$0xff]  ;;  %v5154_v42 = vld [vmem:[#allocation4 + $0x2c8] sm:$0xff] }
 0xe76   : > { %6002 = vmatpush1.bf16.msra.mxu0 %v5887_v43  ;;  %6043 = vmatpush1.bf16.msra.mxu1 %v5889_v19  ;;  %v5153_v43 = vld [vmem:[#allocation4 + $0x2c0] sm:$0xff] }
 0xe77   : > { %6003 = vmatprep.subr.bf16.mxu0 %v5896_v29  ;;  %6044 = vmatprep.subr.bf16.mxu1 %v5898_v5  ;;  %v5281_v19 = vld [vmem:[#allocation4 + $0x6c0] sm:$0xff]  ;;  %v5162_v29 = vld [vmem:[#allocation4 + $0x308] sm:$0xff] }
 0xe78   : > { %v5290_v5 = vld [vmem:[#allocation4 + $0x708] sm:$0xff] }
 0xe7a   : > { %6004 = vmatpush1.bf16.msra.mxu0 %v5895_v44  ;;  %6045 = vmatpush1.bf16.msra.mxu1 %v5897_v56  ;;  %v5161_v44 = vld [vmem:[#allocation4 + $0x300] sm:$0xff] }
 0xe7b   : > { %6071 = vmatprep.subr.bf16.mxu0 %v5066_v8  ;;  %6112 = vmatprep.subr.bf16.mxu1 %v5194_v3  ;;  %v5289_v56 = vld [vmem:[#allocation4 + $0x700] sm:$0xff]  ;;  %v5170_v8 = vld [vmem:[#allocation4 + $0x348] sm:$0xff] }
 0xe7c   : > { %v5298_v3 = vld [vmem:[#allocation4 + $0x748] sm:$0xff] }
 0xe7d   : > { %6022 = vmatmul.mubr.bf16.vlgmr.msra.gmra.mrb[4].mxu0 %v11804_v57  ;;  %6063 = vmatmul.mubr.bf16.vlgmr.msra.gmra.mrb[4].mxu1 %v11804_v57  ;;  %v5098_v57 = vld [vmem:[#allocation4 + $0x108] sm:$0xff] }
 0xe7e   : > { %6072 = vmatpush1.bf16.msra.mxu0 %v5065_v23  ;;  %6113 = vmatpush1.bf16.msra.mxu1 %v5193_v22  ;;  %v5297_v23 = vld [vmem:[#allocation4 + $0x740] sm:$0xff]  ;;  %v5178_v22 = vld [vmem:[#allocation4 + $0x388] sm:$0xff] }
 0xe7f   : > { %6073 = vmatprep.subr.bf16.mxu0 %v5074_v47  ;;  %6114 = vmatprep.subr.bf16.mxu1 %v5202_v24  ;;  %v5306_v47 = vld [vmem:[#allocation4 + $0x788] sm:$0xff]  ;;  %v5007_v24 = vcombine.high %v4985_v38, %v4985_v38 }
 0xe80   : > { %6103 = vmatprep.mubr.bf16.mxu0 %v11823_v40  ;;  %6144 = vmatprep.mubr.bf16.mxu1 %v11825_v50 }
 0xe82   : > { %6074 = vmatpush1.bf16.msra.mxu0 %v5073_v6  ;;  %6115 = vmatpush1.bf16.msra.mxu1 %v5201_v53  ;;  %v5177_v6 = vld [vmem:[#allocation4 + $0x380] sm:$0xff] }
 0xe83   : > { %6075 = vmatprep.subr.bf16.mxu0 %v5082_v12  ;;  %6116 = vmatprep.subr.bf16.mxu1 %v5210_v58  ;;  %v5305_v53 = vld [vmem:[#allocation4 + $0x780] sm:$0xff]  ;;  %v5186_v12 = vld [vmem:[#allocation4 + $0x3c8] sm:$0xff] }
 0xe84   : > { %v5314_v58 = vld [vmem:[#allocation4 + $0x7c8] sm:$0xff] }
 0xe86   : > { %6076 = vmatpush1.bf16.msra.mxu0 %v5081_v35  ;;  %6117 = vmatpush1.bf16.msra.mxu1 %v5209_v60  ;;  %v11832_v35 = vrot.slane %v4985_v38, %v11811_v4  ;;  %v11835_v60 = vrot.slane %v5007_v24, %v11811_v4  ;;  %v5394_v38 = vld [vmem:[#allocation4 + $0xa48] sm:$0xff] }
 0xe87   : > { %6077 = vmatprep.subr.bf16.mxu0 %v5090_v61  ;;  %6118 = vmatprep.subr.bf16.mxu1 %v5218_v54  ;;  %v5185_v61 = vld [vmem:[#allocation4 + $0x3c0] sm:$0xff]  ;;  %v5530_v24 = vld [vmem:[#allocation4 + $0xe88] sm:$0xff] }
 0xe88   : > { %v5313_v54 = vld [vmem:[#allocation4 + $0x7c0] sm:$0xff] }
 0xe8a   : > { %6078 = vmatpush1.bf16.msra.mxu0 %v5089_v46  ;;  %6119 = vmatpush1.bf16.msra.mxu1 %v5217_v63  ;;  %v5322_v46 = vld [vmem:[#allocation4 + $0x808] sm:$0xff] }
 0xe8b   : > { %6079 = vmatprep.subr.bf16.mxu0 %v5098_v57  ;;  %6120 = vmatprep.subr.bf16.mxu1 %v5226_v2  ;;  %v5450_v63 = vld [vmem:[#allocation4 + $0xc08] sm:$0xff]  ;;  %v5022_v57 = vcombine.high %v11832_v35, %v11832_v35  ;;  %v5023_v2 = vcombine.high %v11835_v60, %v11835_v60 }
 0xe8e   : > { %6080 = vmatpush1.bf16.msra.mxu0 %v5097_v49  ;;  %6121 = vmatpush1.bf16.msra.mxu1 %v5225_v0  ;;  %v11843_v49 = vpack.c.bf16 %v11814_v21, %v11814_v21  ;;  %v11847_v0 = vpack.c.bf16 %v11817_v7, %v11817_v7  ;;  %v5329_v21 = vld [vmem:[#allocation4 + $0x840] sm:$0xff] }
 0xe8f   : > { %6081 = vmatprep.subr.bf16.mxu0 %v5106_v9  ;;  %6122 = vmatprep.subr.bf16.mxu1 %v5234_v10  ;;  %v5321_v9 = vld [vmem:[#allocation4 + $0x800] sm:$0xff] }
 0xe90   : > { %v5449_v10 = vld [vmem:[#allocation4 + $0xc00] sm:$0xff] }
 0xe91   : > { %v5457_v7 = vld [vmem:[#allocation4 + $0xc40] sm:$0xff] }
 0xe92   : > { %6082 = vmatpush1.bf16.msra.mxu0 %v5105_v11  ;;  %6123 = vmatpush1.bf16.msra.mxu1 %v5233_v13  ;;  %v5330_v11 = vld [vmem:[#allocation4 + $0x848] sm:$0xff] }
 0xe93   : > { %6083 = vmatprep.subr.bf16.mxu0 %v5114_v52  ;;  %6124 = vmatprep.subr.bf16.mxu1 %v5242_v14  ;;  %v5458_v13 = vld [vmem:[#allocation4 + $0xc48] sm:$0xff]  ;;  %v11849_v52 = vpack.c.bf16 %v5022_v57, %v5022_v57  ;;  %v11851_v14 = vpack.c.bf16 %v5023_v2, %v5023_v2  ;;  %v5417_v57 = vld [vmem:[#allocation4 + $0xb00] sm:$0xff] }
 0xe94   : > { %v5545_v2 = vld [vmem:[#allocation4 + $0xf00] sm:$0xff] }
 0xe96   : > { %6084 = vmatpush1.bf16.msra.mxu0 %v5113_v55  ;;  %6125 = vmatpush1.bf16.msra.mxu1 %v5241_v15  ;;  %v5338_v55 = vld [vmem:[#allocation4 + $0x888] sm:$0xff] }
 0xe97   : > { %6085 = vmatprep.subr.bf16.mxu0 %v5122_v16  ;;  %6126 = vmatprep.subr.bf16.mxu1 %v5250_v17  ;;  %v5466_v15 = vld [vmem:[#allocation4 + $0xc88] sm:$0xff]  ;;  %v5337_v16 = vld [vmem:[#allocation4 + $0x880] sm:$0xff] }
 0xe98   : > { %v5465_v17 = vld [vmem:[#allocation4 + $0xc80] sm:$0xff] }
 0xe9a   : > { %6086 = vmatpush1.bf16.msra.mxu0 %v5121_v18  ;;  %6127 = vmatpush1.bf16.msra.mxu1 %v5249_v27  ;;  %v5346_v18 = vld [vmem:[#allocation4 + $0x8c8] sm:$0xff] }
 0xe9b   : > { %6087 = vmatprep.subr.bf16.mxu0 %v5130_v33  ;;  %6128 = vmatprep.subr.bf16.mxu1 %v5258_v59  ;;  %v5474_v27 = vld [vmem:[#allocation4 + $0xcc8] sm:$0xff]  ;;  %v5345_v33 = vld [vmem:[#allocation4 + $0x8c0] sm:$0xff] }
 0xe9c   : > { %v5473_v59 = vld [vmem:[#allocation4 + $0xcc0] sm:$0xff] }
 0xe9e   : > { %6088 = vmatpush1.bf16.msra.mxu0 %v5129_v34  ;;  %6129 = vmatpush1.bf16.msra.mxu1 %v5257_v1  ;;  %v5354_v34 = vld [vmem:[#allocation4 + $0x908] sm:$0xff] }
 0xe9f   : > { %6089 = vmatprep.subr.bf16.mxu0 %v5138_v36  ;;  %6130 = vmatprep.subr.bf16.mxu1 %v5266_v37  ;;  %v5482_v1 = vld [vmem:[#allocation4 + $0xd08] sm:$0xff]  ;;  %v5353_v36 = vld [vmem:[#allocation4 + $0x900] sm:$0xff] }
 0xea0   : > { %v5481_v37 = vld [vmem:[#allocation4 + $0xd00] sm:$0xff] }
 0xea2   : > { %6090 = vmatpush1.bf16.msra.mxu0 %v5137_v62  ;;  %6131 = vmatpush1.bf16.msra.mxu1 %v5265_v45  ;;  %v5362_v62 = vld [vmem:[#allocation4 + $0x948] sm:$0xff] }
 0xea3   : > { %6091 = vmatprep.subr.bf16.mxu0 %v5146_v31  ;;  %6132 = vmatprep.subr.bf16.mxu1 %v5274_v25  ;;  %v5490_v45 = vld [vmem:[#allocation4 + $0xd48] sm:$0xff]  ;;  %v5361_v31 = vld [vmem:[#allocation4 + $0x940] sm:$0xff] }
 0xea4   : > { %v5489_v25 = vld [vmem:[#allocation4 + $0xd40] sm:$0xff] }
 0xea6   : > { %6092 = vmatpush1.bf16.msra.mxu0 %v5145_v51  ;;  %6133 = vmatpush1.bf16.msra.mxu1 %v5273_v41  ;;  %v5370_v51 = vld [vmem:[#allocation4 + $0x988] sm:$0xff] }
 0xea7   : > { %6093 = vmatprep.subr.bf16.mxu0 %v5154_v42  ;;  %6134 = vmatprep.subr.bf16.mxu1 %v5282_v20  ;;  %v5498_v41 = vld [vmem:[#allocation4 + $0xd88] sm:$0xff]  ;;  %v5369_v42 = vld [vmem:[#allocation4 + $0x980] sm:$0xff] }
 0xea8   : > { %v5497_v20 = vld [vmem:[#allocation4 + $0xd80] sm:$0xff] }
 0xeaa   : > { %6094 = vmatpush1.bf16.msra.mxu0 %v5153_v43  ;;  %6135 = vmatpush1.bf16.msra.mxu1 %v5281_v19  ;;  %v5378_v43 = vld [vmem:[#allocation4 + $0x9c8] sm:$0xff] }
 0xeab   : > { %6095 = vmatprep.subr.bf16.mxu0 %v5162_v29  ;;  %6136 = vmatprep.subr.bf16.mxu1 %v5290_v5  ;;  %v5506_v19 = vld [vmem:[#allocation4 + $0xdc8] sm:$0xff]  ;;  %v5377_v29 = vld [vmem:[#allocation4 + $0x9c0] sm:$0xff] }
 0xeac   : > { %v5505_v5 = vld [vmem:[#allocation4 + $0xdc0] sm:$0xff] }
 0xeae   : > { %6096 = vmatpush1.bf16.msra.mxu0 %v5161_v44  ;;  %6137 = vmatpush1.bf16.msra.mxu1 %v5289_v56  ;;  %v5386_v44 = vld [vmem:[#allocation4 + $0xa08] sm:$0xff] }
 0xeaf   : > { %6097 = vmatprep.subr.bf16.mxu0 %v5170_v8  ;;  %6138 = vmatprep.subr.bf16.mxu1 %v5298_v3  ;;  %v5514_v56 = vld [vmem:[#allocation4 + $0xe08] sm:$0xff]  ;;  %v5385_v8 = vld [vmem:[#allocation4 + $0xa00] sm:$0xff] }
 0xeb0   : > { %v5513_v3 = vld [vmem:[#allocation4 + $0xe00] sm:$0xff] }
 0xeb2   : > { %6098 = vmatpush1.bf16.msra.mxu0 %v5169_v48  ;;  %6139 = vmatpush1.bf16.msra.mxu1 %v5297_v23  ;;  %v5522_v48 = vld [vmem:[#allocation4 + $0xe48] sm:$0xff]  ;;  %v5393_v23 = vld [vmem:[#allocation4 + $0xa40] sm:$0xff] }
 0xeb3   : > { %6099 = vmatprep.subr.bf16.mxu0 %v5178_v22  ;;  %6140 = vmatprep.subr.bf16.mxu1 %v5306_v47  ;;  %v5521_v22 = vld [vmem:[#allocation4 + $0xe40] sm:$0xff]  ;;  %v5402_v47 = vld [vmem:[#allocation4 + $0xa88] sm:$0xff] }
 0xeb6   : > { %6100 = vmatpush1.bf16.msra.mxu0 %v5177_v6  ;;  %6141 = vmatpush1.bf16.msra.mxu1 %v5305_v53  ;;  %v5401_v6 = vld [vmem:[#allocation4 + $0xa80] sm:$0xff] }
 0xeb7   : > { %6101 = vmatprep.subr.bf16.mxu0 %v5186_v12  ;;  %6142 = vmatprep.subr.bf16.mxu1 %v5314_v58  ;;  %v5529_v53 = vld [vmem:[#allocation4 + $0xe80] sm:$0xff]  ;;  %v5410_v12 = vld [vmem:[#allocation4 + $0xac8] sm:$0xff] }
 0xeb8   : > { %v5538_v58 = vld [vmem:[#allocation4 + $0xec8] sm:$0xff] }
 0xeba   : > { %6102 = vmatpush1.bf16.msra.mxu0 %v5185_v61  ;;  %6143 = vmatpush1.bf16.msra.mxu1 %v5313_v54  ;;  %v5409_v61 = vld [vmem:[#allocation4 + $0xac0] sm:$0xff] }
 0xebb   : > { %6153 = vmatprep.subr.bf16.mxu0 %v5322_v46  ;;  %6194 = vmatprep.subr.bf16.mxu1 %v5450_v63  ;;  %v5537_v54 = vld [vmem:[#allocation4 + $0xec0] sm:$0xff]  ;;  %v5418_v46 = vld [vmem:[#allocation4 + $0xb08] sm:$0xff] }
 0xebc   : > { %v5546_v63 = vld [vmem:[#allocation4 + $0xf08] sm:$0xff] }
 0xebd   : > { %6104 = vmatmul.mubr.bf16.vlgmr.msra.gmra.mrb[8].mxu0 %v11843_v49  ;;  %6145 = vmatmul.mubr.bf16.vlgmr.msra.gmra.mrb[8].mxu1 %v11847_v0 }
 0xebe   : > { %6154 = vmatpush1.bf16.msra.mxu0 %v5321_v9  ;;  %6195 = vmatpush1.bf16.msra.mxu1 %v5449_v10  ;;  %v5426_v9 = vld [vmem:[#allocation4 + $0xb48] sm:$0xff] }
 0xebf   : > { %6155 = vmatprep.subr.bf16.mxu0 %v5330_v11  ;;  %6196 = vmatprep.subr.bf16.mxu1 %v5458_v13  ;;  %v5554_v10 = vld [vmem:[#allocation4 + $0xf48] sm:$0xff]  ;;  %v4986_v11 = vld [vmem:[#allocation3 + $0x10] sm:$0xff]  ;;  %v5425_v13 = vld [vmem:[#allocation4 + $0xb40] sm:$0xff] }
 0xec0   : > { %6185 = vmatprep.mubr.bf16.mxu0 %v11849_v52  ;;  %6226 = vmatprep.mubr.bf16.mxu1 %v11851_v14 }
 0xec2   : > { %6156 = vmatpush1.bf16.msra.mxu0 %v5329_v21  ;;  %6197 = vmatpush1.bf16.msra.mxu1 %v5457_v7  ;;  %v5553_v21 = vld [vmem:[#allocation4 + $0xf40] sm:$0xff]  ;;  %v5434_v7 = vld [vmem:[#allocation4 + $0xb88] sm:$0xff] }
 0xec3   : > { %6157 = vmatprep.subr.bf16.mxu0 %v5338_v55  ;;  %6198 = vmatprep.subr.bf16.mxu1 %v5466_v15  ;;  %v5562_v55 = vld [vmem:[#allocation4 + $0xf88] sm:$0xff]  ;;  %v5024_v15 = vcombine.high %v4986_v11, %v4986_v11 }
 0xec6   : > { %6158 = vmatpush1.bf16.msra.mxu0 %v5337_v16  ;;  %6199 = vmatpush1.bf16.msra.mxu1 %v5465_v17  ;;  %v5433_v16 = vld [vmem:[#allocation4 + $0xb80] sm:$0xff] }
 0xec7   : > { %6159 = vmatprep.subr.bf16.mxu0 %v5346_v18  ;;  %6200 = vmatprep.subr.bf16.mxu1 %v5474_v27  ;;  %v5561_v17 = vld [vmem:[#allocation4 + $0xf80] sm:$0xff]  ;;  %v5442_v18 = vld [vmem:[#allocation4 + $0xbc8] sm:$0xff] }
 0xec8   : > { %v5570_v27 = vld [vmem:[#allocation4 + $0xfc8] sm:$0xff] }
 0xeca   : > { %6160 = vmatpush1.bf16.msra.mxu0 %v5345_v33  ;;  %6201 = vmatpush1.bf16.msra.mxu1 %v5473_v59  ;;  %v11858_v33 = vrot.slane %v4986_v11, %v11811_v4  ;;  %v11861_v59 = vrot.slane %v5024_v15, %v11811_v4  ;;  %v11873_v4 = vpack.c.bf16 %v11835_v60, %v11835_v60  ;;  %v5713_v60 = vld [vmem:[#allocation4 + $0x1440] sm:$0xff]  ;;  %v5770_v11 = vld [vmem:[#allocation4 + $0x1608] sm:$0xff] }
 0xecb   : > { %6161 = vmatprep.subr.bf16.mxu0 %v5354_v34  ;;  %6202 = vmatprep.subr.bf16.mxu1 %v5482_v1  ;;  %v5441_v34 = vld [vmem:[#allocation4 + $0xbc0] sm:$0xff] }
 0xecc   : > { %v5569_v1 = vld [vmem:[#allocation4 + $0xfc0] sm:$0xff] }
 0xecd   : > { %v5649_v15 = vld [vmem:[#allocation4 + $0x1240] sm:$0xff] }
 0xece   : > { %6162 = vmatpush1.bf16.msra.mxu0 %v5353_v36  ;;  %6203 = vmatpush1.bf16.msra.mxu1 %v5481_v37  ;;  %v5578_v36 = vld [vmem:[#allocation4 + $0x1008] sm:$0xff] }
 0xecf   : > { %6163 = vmatprep.subr.bf16.mxu0 %v5362_v62  ;;  %6204 = vmatprep.subr.bf16.mxu1 %v5490_v45  ;;  %v5706_v37 = vld [vmem:[#allocation4 + $0x1408] sm:$0xff]  ;;  %v5039_v62 = vcombine.high %v11858_v33, %v11858_v33  ;;  %v5040_v45 = vcombine.high %v11861_v59, %v11861_v59 }
 0xed2   : > { %6164 = vmatpush1.bf16.msra.mxu0 %v5361_v31  ;;  %6205 = vmatpush1.bf16.msra.mxu1 %v5489_v25  ;;  %v11869_v31 = vpack.c.bf16 %v11832_v35, %v11832_v35  ;;  %v5577_v25 = vld [vmem:[#allocation4 + $0x1000] sm:$0xff] }
 0xed3   : > { %6165 = vmatprep.subr.bf16.mxu0 %v5370_v51  ;;  %6206 = vmatprep.subr.bf16.mxu1 %v5498_v41  ;;  %v5705_v51 = vld [vmem:[#allocation4 + $0x1400] sm:$0xff]  ;;  %v5586_v41 = vld [vmem:[#allocation4 + $0x1048] sm:$0xff] }
 0xed4   : > { %v5585_v35 = vld [vmem:[#allocation4 + $0x1040] sm:$0xff] }
 0xed6   : > { %6166 = vmatpush1.bf16.msra.mxu0 %v5369_v42  ;;  %6207 = vmatpush1.bf16.msra.mxu1 %v5497_v20  ;;  %v5714_v42 = vld [vmem:[#allocation4 + $0x1448] sm:$0xff]  ;;  %v11875_v20 = vpack.c.bf16 %v5039_v62, %v5039_v62  ;;  %v5793_v62 = vld [vmem:[#allocation4 + $0x16c0] sm:$0xff] }
 0xed7   : > { %6167 = vmatprep.subr.bf16.mxu0 %v5378_v43  ;;  %6208 = vmatprep.subr.bf16.mxu1 %v5506_v19  ;;  %v11877_v43 = vpack.c.bf16 %v5040_v45, %v5040_v45  ;;  %v5594_v19 = vld [vmem:[#allocation4 + $0x1088] sm:$0xff] }
 0xed8   : > { %v5674_v45 = vld [vmem:[#allocation4 + $0x1308] sm:$0xff] }
 0xeda   : > { %6168 = vmatpush1.bf16.msra.mxu0 %v5377_v29  ;;  %6209 = vmatpush1.bf16.msra.mxu1 %v5505_v5  ;;  %v5722_v29 = vld [vmem:[#allocation4 + $0x1488] sm:$0xff]  ;;  %v5593_v5 = vld [vmem:[#allocation4 + $0x1080] sm:$0xff] }
 0xedb   : > { %6169 = vmatprep.subr.bf16.mxu0 %v5386_v44  ;;  %6210 = vmatprep.subr.bf16.mxu1 %v5514_v56  ;;  %v5721_v44 = vld [vmem:[#allocation4 + $0x1480] sm:$0xff]  ;;  %v5602_v56 = vld [vmem:[#allocation4 + $0x10c8] sm:$0xff] }
 0xede   : > { %6170 = vmatpush1.bf16.msra.mxu0 %v5385_v8  ;;  %6211 = vmatpush1.bf16.msra.mxu1 %v5513_v3  ;;  %v5730_v8 = vld [vmem:[#allocation4 + $0x14c8] sm:$0xff]  ;;  %v5601_v3 = vld [vmem:[#allocation4 + $0x10c0] sm:$0xff] }
 0xedf   : > { %6171 = vmatprep.subr.bf16.mxu0 %v5394_v38  ;;  %6212 = vmatprep.subr.bf16.mxu1 %v5522_v48  ;;  %v5729_v38 = vld [vmem:[#allocation4 + $0x14c0] sm:$0xff]  ;;  %v5610_v48 = vld [vmem:[#allocation4 + $0x1108] sm:$0xff] }
 0xee2   : > { %6172 = vmatpush1.bf16.msra.mxu0 %v5393_v23  ;;  %6213 = vmatpush1.bf16.msra.mxu1 %v5521_v22  ;;  %v5738_v23 = vld [vmem:[#allocation4 + $0x1508] sm:$0xff]  ;;  %v5609_v22 = vld [vmem:[#allocation4 + $0x1100] sm:$0xff] }
 0xee3   : > { %6173 = vmatprep.subr.bf16.mxu0 %v5402_v47  ;;  %6214 = vmatprep.subr.bf16.mxu1 %v5530_v24  ;;  %v5737_v47 = vld [vmem:[#allocation4 + $0x1500] sm:$0xff]  ;;  %v5618_v24 = vld [vmem:[#allocation4 + $0x1148] sm:$0xff] }
 0xee6   : > { %6174 = vmatpush1.bf16.msra.mxu0 %v5401_v6  ;;  %6215 = vmatpush1.bf16.msra.mxu1 %v5529_v53  ;;  %v5746_v6 = vld [vmem:[#allocation4 + $0x1548] sm:$0xff]  ;;  %v5617_v53 = vld [vmem:[#allocation4 + $0x1140] sm:$0xff] }
 0xee7   : > { %6175 = vmatprep.subr.bf16.mxu0 %v5410_v12  ;;  %6216 = vmatprep.subr.bf16.mxu1 %v5538_v58  ;;  %v5745_v12 = vld [vmem:[#allocation4 + $0x1540] sm:$0xff]  ;;  %v5626_v58 = vld [vmem:[#allocation4 + $0x1188] sm:$0xff] }
 0xeea   : > { %6176 = vmatpush1.bf16.msra.mxu0 %v5409_v61  ;;  %6217 = vmatpush1.bf16.msra.mxu1 %v5537_v54  ;;  %v5754_v61 = vld [vmem:[#allocation4 + $0x1588] sm:$0xff]  ;;  %v5625_v54 = vld [vmem:[#allocation4 + $0x1180] sm:$0xff] }
 0xeeb   : > { %6177 = vmatprep.subr.bf16.mxu0 %v5418_v46  ;;  %6218 = vmatprep.subr.bf16.mxu1 %v5546_v63  ;;  %v5753_v46 = vld [vmem:[#allocation4 + $0x1580] sm:$0xff]  ;;  %v5634_v63 = vld [vmem:[#allocation4 + $0x11c8] sm:$0xff] }
 0xeee   : > { %6178 = vmatpush1.bf16.msra.mxu0 %v5417_v57  ;;  %6219 = vmatpush1.bf16.msra.mxu1 %v5545_v2  ;;  %v5762_v57 = vld [vmem:[#allocation4 + $0x15c8] sm:$0xff]  ;;  %v5633_v2 = vld [vmem:[#allocation4 + $0x11c0] sm:$0xff] }
 0xeef   : > { %6179 = vmatprep.subr.bf16.mxu0 %v5426_v9  ;;  %6220 = vmatprep.subr.bf16.mxu1 %v5554_v10  ;;  %v5761_v9 = vld [vmem:[#allocation4 + $0x15c0] sm:$0xff]  ;;  %v5642_v10 = vld [vmem:[#allocation4 + $0x1208] sm:$0xff] }
 0xef2   : > { %6180 = vmatpush1.bf16.msra.mxu0 %v5425_v13  ;;  %6221 = vmatpush1.bf16.msra.mxu1 %v5553_v21  ;;  %v5641_v13 = vld [vmem:[#allocation4 + $0x1200] sm:$0xff] }
 0xef3   : > { %6181 = vmatprep.subr.bf16.mxu0 %v5434_v7  ;;  %6222 = vmatprep.subr.bf16.mxu1 %v5562_v55  ;;  %v5769_v21 = vld [vmem:[#allocation4 + $0x1600] sm:$0xff]  ;;  %v5650_v7 = vld [vmem:[#allocation4 + $0x1248] sm:$0xff] }
 0xef4   : > { %v5778_v55 = vld [vmem:[#allocation4 + $0x1648] sm:$0xff] }
 0xef6   : > { %6182 = vmatpush1.bf16.msra.mxu0 %v5433_v16  ;;  %6223 = vmatpush1.bf16.msra.mxu1 %v5561_v17  ;;  %v5777_v16 = vld [vmem:[#allocation4 + $0x1640] sm:$0xff]  ;;  %v5658_v17 = vld [vmem:[#allocation4 + $0x1288] sm:$0xff] }
 0xef7   : > { %6183 = vmatprep.subr.bf16.mxu0 %v5442_v18  ;;  %6224 = vmatprep.subr.bf16.mxu1 %v5570_v27  ;;  %v5786_v18 = vld [vmem:[#allocation4 + $0x1688] sm:$0xff]  ;;  %v5657_v27 = vld [vmem:[#allocation4 + $0x1280] sm:$0xff] }
 0xefa   : > { %6184 = vmatpush1.bf16.msra.mxu0 %v5441_v34  ;;  %6225 = vmatpush1.bf16.msra.mxu1 %v5569_v1  ;;  %v5785_v34 = vld [vmem:[#allocation4 + $0x1680] sm:$0xff]  ;;  %v5666_v1 = vld [vmem:[#allocation4 + $0x12c8] sm:$0xff] }
 0xefb   : > { %6235 = vmatprep.subr.bf16.mxu0 %v5578_v36  ;;  %6276 = vmatprep.subr.bf16.mxu1 %v5706_v37  ;;  %v5794_v36 = vld [vmem:[#allocation4 + $0x16c8] sm:$0xff]  ;;  %v5665_v37 = vld [vmem:[#allocation4 + $0x12c0] sm:$0xff] }
 0xefd   : > { %6186 = vmatmul.mubr.bf16.vlgmr.msra.gmra.mrb[12].mxu0 %v11869_v31  ;;  %6227 = vmatmul.mubr.bf16.vlgmr.msra.gmra.mrb[12].mxu1 %v11873_v4 }
 0xefe   : > { %6236 = vmatpush1.bf16.msra.mxu0 %v5577_v25  ;;  %6277 = vmatpush1.bf16.msra.mxu1 %v5705_v51  ;;  %v5802_v25 = vld [vmem:[#allocation4 + $0x1708] sm:$0xff]  ;;  %v5673_v51 = vld [vmem:[#allocation4 + $0x1300] sm:$0xff] }
 0xeff   : > { %6237 = vmatprep.subr.bf16.mxu0 %v5586_v41  ;;  %6278 = vmatprep.subr.bf16.mxu1 %v5714_v42  ;;  %v5801_v41 = vld [vmem:[#allocation4 + $0x1700] sm:$0xff]  ;;  %v5682_v42 = vld [vmem:[#allocation4 + $0x1348] sm:$0xff] }
 0xf00   : > { %6267 = vmatprep.mubr.bf16.mxu0 %v11875_v20  ;;  %6308 = vmatprep.mubr.bf16.mxu1 %v11877_v43 }
 0xf02   : > { %6238 = vmatpush1.bf16.msra.mxu0 %v5585_v35  ;;  %6279 = vmatpush1.bf16.msra.mxu1 %v5713_v60  ;;  %v5810_v35 = vld [vmem:[#allocation4 + $0x1748] sm:$0xff]  ;;  %v5681_v60 = vld [vmem:[#allocation4 + $0x1340] sm:$0xff] }
 0xf03   : > { %6239 = vmatprep.subr.bf16.mxu0 %v5594_v19  ;;  %6280 = vmatprep.subr.bf16.mxu1 %v5722_v29  ;;  %v5809_v19 = vld [vmem:[#allocation4 + $0x1740] sm:$0xff] }
 0xf06   : > { %6240 = vmatpush1.bf16.msra.mxu0 %v5593_v5  ;;  %6281 = vmatpush1.bf16.msra.mxu1 %v5721_v44  ;;  %v5690_v44 = vld [vmem:[#allocation4 + $0x1388] sm:$0xff] }
 0xf07   : > { %6241 = vmatprep.subr.bf16.mxu0 %v5602_v56  ;;  %6282 = vmatprep.subr.bf16.mxu1 %v5730_v8  ;;  %v5818_v56 = vld [vmem:[#allocation4 + $0x1788] sm:$0xff] }
 0xf0a   : > { %6242 = vmatpush1.bf16.msra.mxu0 %v5601_v3  ;;  %6283 = vmatpush1.bf16.msra.mxu1 %v5729_v38 }
 0xf0b   : > { %6243 = vmatprep.subr.bf16.mxu0 %v5610_v48  ;;  %6284 = vmatprep.subr.bf16.mxu1 %v5738_v23 }
 0xf0e   : > { %6244 = vmatpush1.bf16.msra.mxu0 %v5609_v22  ;;  %6285 = vmatpush1.bf16.msra.mxu1 %v5737_v47  ;;  %v5689_v47 = vld [vmem:[#allocation4 + $0x1380] sm:$0xff] }
 0xf0f   : > { %6245 = vmatprep.subr.bf16.mxu0 %v5618_v24  ;;  %6286 = vmatprep.subr.bf16.mxu1 %v5746_v6  ;;  %v5817_v24 = vld [vmem:[#allocation4 + $0x1780] sm:$0xff]  ;;  %v5698_v6 = vld [vmem:[#allocation4 + $0x13c8] sm:$0xff] }
 0xf12   : > { %6246 = vmatpush1.bf16.msra.mxu0 %v5617_v53  ;;  %6287 = vmatpush1.bf16.msra.mxu1 %v5745_v12  ;;  %v5826_v53 = vld [vmem:[#allocation4 + $0x17c8] sm:$0xff]  ;;  %v5697_v12 = vld [vmem:[#allocation4 + $0x13c0] sm:$0xff] }
 0xf13   : > { %6247 = vmatprep.subr.bf16.mxu0 %v5626_v58  ;;  %6288 = vmatprep.subr.bf16.mxu1 %v5754_v61  ;;  %v5825_v58 = vld [vmem:[#allocation4 + $0x17c0] sm:$0xff]  ;;  %v5068_v61 = vld [vmem:[#allocation4 + $0x18] sm:$0xff] }
 0xf16   : > { %6248 = vmatpush1.bf16.msra.mxu0 %v5625_v54  ;;  %6289 = vmatpush1.bf16.msra.mxu1 %v5753_v46  ;;  %v5196_v54 = vld [vmem:[#allocation4 + $0x418] sm:$0xff]  ;;  %v11893_v46 = vpack.c.bf16 %v11858_v33, %v11858_v33  ;;  %v5075_v33 = vld [vmem:[#allocation4 + $0x50] sm:$0xff] }
 0xf17   : > { %6249 = vmatprep.subr.bf16.mxu0 %v5634_v63  ;;  %6290 = vmatprep.subr.bf16.mxu1 %v5762_v57  ;;  %v11897_v63 = vpack.c.bf16 %v11861_v59, %v11861_v59  ;;  %v5067_v57 = vld [vmem:[#allocation4 + $0x10] sm:$0xff]  ;;  %v5084_v59 = vld [vmem:[#allocation4 + $0x98] sm:$0xff] }
 0xf1a   : > { %6250 = vmatpush1.bf16.msra.mxu0 %v5633_v2  ;;  %6291 = vmatpush1.bf16.msra.mxu1 %v5761_v9  ;;  %v5195_v2 = vld [vmem:[#allocation4 + $0x410] sm:$0xff]  ;;  %v5076_v9 = vld [vmem:[#allocation4 + $0x58] sm:$0xff] }
 0xf1b   : > { %6251 = vmatprep.subr.bf16.mxu0 %v5642_v10  ;;  %6292 = vmatprep.subr.bf16.mxu1 %v5770_v11  ;;  %v5204_v10 = vld [vmem:[#allocation4 + $0x458] sm:$0xff]  ;;  %v5203_v11 = vld [vmem:[#allocation4 + $0x450] sm:$0xff] }
 0xf1e   : > { %6252 = vmatpush1.bf16.msra.mxu0 %v5641_v13  ;;  %6293 = vmatpush1.bf16.msra.mxu1 %v5769_v21  ;;  %v5212_v13 = vld [vmem:[#allocation4 + $0x498] sm:$0xff]  ;;  %v5083_v21 = vld [vmem:[#allocation4 + $0x90] sm:$0xff] }
 0xf1f   : > { %6253 = vmatprep.subr.bf16.mxu0 %v5650_v7  ;;  %6294 = vmatprep.subr.bf16.mxu1 %v5778_v55  ;;  %v5211_v7 = vld [vmem:[#allocation4 + $0x490] sm:$0xff]  ;;  %v5092_v55 = vld [vmem:[#allocation4 + $0xd8] sm:$0xff] }
 0xf22   : > { %6254 = vmatpush1.bf16.msra.mxu0 %v5649_v15  ;;  %6295 = vmatpush1.bf16.msra.mxu1 %v5777_v16  ;;  %v5220_v15 = vld [vmem:[#allocation4 + $0x4d8] sm:$0xff]  ;;  %v5091_v16 = vld [vmem:[#allocation4 + $0xd0] sm:$0xff] }
 0xf23   : > { %6255 = vmatprep.subr.bf16.mxu0 %v5658_v17  ;;  %6296 = vmatprep.subr.bf16.mxu1 %v5786_v18  ;;  %v5219_v17 = vld [vmem:[#allocation4 + $0x4d0] sm:$0xff]  ;;  %v5100_v18 = vld [vmem:[#allocation4 + $0x118] sm:$0xff] }
 0xf26   : > { %6256 = vmatpush1.bf16.msra.mxu0 %v5657_v27  ;;  %6297 = vmatpush1.bf16.msra.mxu1 %v5785_v34  ;;  %v5228_v27 = vld [vmem:[#allocation4 + $0x518] sm:$0xff]  ;;  %v5099_v34 = vld [vmem:[#allocation4 + $0x110] sm:$0xff] }
 0xf27   : > { %6257 = vmatprep.subr.bf16.mxu0 %v5666_v1  ;;  %6298 = vmatprep.subr.bf16.mxu1 %v5794_v36  ;;  %v5227_v1 = vld [vmem:[#allocation4 + $0x510] sm:$0xff]  ;;  %v5108_v36 = vld [vmem:[#allocation4 + $0x158] sm:$0xff] }
 0xf2a   : > { %6258 = vmatpush1.bf16.msra.mxu0 %v5665_v37  ;;  %6299 = vmatpush1.bf16.msra.mxu1 %v5793_v62  ;;  %v5236_v37 = vld [vmem:[#allocation4 + $0x558] sm:$0xff]  ;;  %v5107_v62 = vld [vmem:[#allocation4 + $0x150] sm:$0xff] }
 0xf2b   : > { %6259 = vmatprep.subr.bf16.mxu0 %v5674_v45  ;;  %6300 = vmatprep.subr.bf16.mxu1 %v5802_v25  ;;  %v5235_v45 = vld [vmem:[#allocation4 + $0x550] sm:$0xff] }
 0xf2e   : > { %6260 = vmatpush1.bf16.msra.mxu0 %v5673_v51  ;;  %6301 = vmatpush1.bf16.msra.mxu1 %v5801_v41  ;;  %v5116_v41 = vld [vmem:[#allocation4 + $0x198] sm:$0xff] }
 0xf2f   : > { %6261 = vmatprep.subr.bf16.mxu0 %v5682_v42  ;;  %6302 = vmatprep.subr.bf16.mxu1 %v5810_v35  ;;  %v5244_v42 = vld [vmem:[#allocation4 + $0x598] sm:$0xff] }
 0xf30   : > { %v11883_v29 = vpop.f32.mrb[0].mxu0  ;;  %v11885_v5 = vpop.f32.mrb[0].mxu1 }
 0xf31   : > { %v11887_v8 = vpop.f32.mrb[1].mxu0  ;;  %v11889_v3 = vpop.f32.mrb[1].mxu1 }
 0xf32   : > { %v5945_v38 = vpop.f32.mrb[2].mxu0  ;;  %v5986_v48 = vpop.f32.mrb[2].mxu1  ;;  %6262 = vmatpush1.bf16.msra.mxu0 %v5681_v60  ;;  %6303 = vmatpush1.bf16.msra.mxu1 %v5809_v19 }
 0xf33   : > { %v5946_v23 = vpop.f32.mrb[3].mxu0  ;;  %v5987_v22 = vpop.f32.mrb[3].mxu1  ;;  %6263 = vmatprep.subr.bf16.mxu0 %v5690_v44  ;;  %6304 = vmatprep.subr.bf16.mxu1 %v5818_v56  ;;  %v5115_v48 = vld [vmem:[#allocation4 + $0x190] sm:$0xff] }
 0xf34   : > { %v5243_v23 = vld [vmem:[#allocation4 + $0x590] sm:$0xff]  ;;  %v5124_v22 = vld [vmem:[#allocation4 + $0x1d8] sm:$0xff] }
 0xf36   : > { %6264 = vmatpush1.bf16.msra.mxu0 %v5689_v47  ;;  %6305 = vmatpush1.bf16.msra.mxu1 %v5817_v24  ;;  %v5252_v47 = vld [vmem:[#allocation4 + $0x5d8] sm:$0xff]  ;;  %v5123_v24 = vld [vmem:[#allocation4 + $0x1d0] sm:$0xff] }
 0xf37   : > { %6265 = vmatprep.subr.bf16.mxu0 %v5698_v6  ;;  %6306 = vmatprep.subr.bf16.mxu1 %v5826_v53  ;;  %v5251_v6 = vld [vmem:[#allocation4 + $0x5d0] sm:$0xff]  ;;  %v5132_v53 = vld [vmem:[#allocation4 + $0x218] sm:$0xff] }
 0xf3a   : > { %6266 = vmatpush1.bf16.msra.mxu0 %v5697_v12  ;;  %6307 = vmatpush1.bf16.msra.mxu1 %v5825_v58  ;;  %v5260_v12 = vld [vmem:[#allocation4 + $0x618] sm:$0xff]  ;;  %v5131_v58 = vld [vmem:[#allocation4 + $0x210] sm:$0xff] }
 0xf3b   : > { %6317 = vmatprep.subr.bf16.mxu0 %v5068_v61  ;;  %6358 = vmatprep.subr.bf16.mxu1 %v5196_v54  ;;  %v5259_v61 = vld [vmem:[#allocation4 + $0x610] sm:$0xff]  ;;  %v5140_v54 = vld [vmem:[#allocation4 + $0x258] sm:$0xff] }
 0xf3d   : > { %6268 = vmatmul.mubr.bf16.vlgmr.msra.gmra.mrb[16].mxu0 %v11893_v46  ;;  %6309 = vmatmul.mubr.bf16.vlgmr.msra.gmra.mrb[16].mxu1 %v11897_v63 }
 0xf3e   : > { %6318 = vmatpush1.bf16.msra.mxu0 %v5067_v57  ;;  %6359 = vmatpush1.bf16.msra.mxu1 %v5195_v2  ;;  %v5268_v57 = vld [vmem:[#allocation4 + $0x658] sm:$0xff]  ;;  %v5139_v2 = vld [vmem:[#allocation4 + $0x250] sm:$0xff] }
 0xf3f   : > { %6319 = vmatprep.subr.bf16.mxu0 %v5076_v9  ;;  %6360 = vmatprep.subr.bf16.mxu1 %v5204_v10  ;;  %v5267_v9 = vld [vmem:[#allocation4 + $0x650] sm:$0xff]  ;;  %v5148_v10 = vld [vmem:[#allocation4 + $0x298] sm:$0xff] }
 0xf40   : > { %6349 = vmatprep.mubr.bf16.mxu0 %v11823_v40  ;;  %6390 = vmatprep.mubr.bf16.mxu1 %v11825_v50 }
 0xf42   : > { %6320 = vmatpush1.bf16.msra.mxu0 %v5075_v33  ;;  %6361 = vmatpush1.bf16.msra.mxu1 %v5203_v11  ;;  %v5276_v33 = vld [vmem:[#allocation4 + $0x698] sm:$0xff]  ;;  %v5147_v11 = vld [vmem:[#allocation4 + $0x290] sm:$0xff] }
 0xf43   : > { %6321 = vmatprep.subr.bf16.mxu0 %v5084_v59  ;;  %6362 = vmatprep.subr.bf16.mxu1 %v5212_v13  ;;  %v5275_v59 = vld [vmem:[#allocation4 + $0x690] sm:$0xff]  ;;  %v5156_v13 = vld [vmem:[#allocation4 + $0x2d8] sm:$0xff] }
 0xf46   : > { %6322 = vmatpush1.bf16.msra.mxu0 %v5083_v21  ;;  %6363 = vmatpush1.bf16.msra.mxu1 %v5211_v7  ;;  %v5284_v21 = vld [vmem:[#allocation4 + $0x6d8] sm:$0xff]  ;;  %v5155_v7 = vld [vmem:[#allocation4 + $0x2d0] sm:$0xff] }
 0xf47   : > { %6323 = vmatprep.subr.bf16.mxu0 %v5092_v55  ;;  %6364 = vmatprep.subr.bf16.mxu1 %v5220_v15  ;;  %v5283_v55 = vld [vmem:[#allocation4 + $0x6d0] sm:$0xff]  ;;  %v5164_v15 = vld [vmem:[#allocation4 + $0x318] sm:$0xff] }
 0xf4a   : > { %6324 = vmatpush1.bf16.msra.mxu0 %v5091_v16  ;;  %6365 = vmatpush1.bf16.msra.mxu1 %v5219_v17  ;;  %v5292_v16 = vld [vmem:[#allocation4 + $0x718] sm:$0xff]  ;;  %v5163_v17 = vld [vmem:[#allocation4 + $0x310] sm:$0xff] }
 0xf4b   : > { %6325 = vmatprep.subr.bf16.mxu0 %v5100_v18  ;;  %6366 = vmatprep.subr.bf16.mxu1 %v5228_v27  ;;  %v5291_v18 = vld [vmem:[#allocation4 + $0x710] sm:$0xff]  ;;  %v5172_v27 = vld [vmem:[#allocation4 + $0x358] sm:$0xff] }
 0xf4e   : > { %6326 = vmatpush1.bf16.msra.mxu0 %v5099_v34  ;;  %6367 = vmatpush1.bf16.msra.mxu1 %v5227_v1  ;;  %v5300_v34 = vld [vmem:[#allocation4 + $0x758] sm:$0xff]  ;;  %v5171_v1 = vld [vmem:[#allocation4 + $0x350] sm:$0xff] }
 0xf4f   : > { %6327 = vmatprep.subr.bf16.mxu0 %v5108_v36  ;;  %6368 = vmatprep.subr.bf16.mxu1 %v5236_v37  ;;  %v5299_v36 = vld [vmem:[#allocation4 + $0x750] sm:$0xff]  ;;  %v5180_v37 = vld [vmem:[#allocation4 + $0x398] sm:$0xff] }
 0xf50   : > { %v11903_v25 = vpop.f32.mrb[4].mxu0  ;;  %v11905_v51 = vpop.f32.mrb[4].mxu1 }
 0xf51   : > { %v11907_v35 = vpop.f32.mrb[5].mxu0  ;;  %v11909_v60 = vpop.f32.mrb[5].mxu1 }
 0xf52   : > { %v6027_v19 = vpop.f32.mrb[6].mxu0  ;;  %v6068_v44 = vpop.f32.mrb[6].mxu1  ;;  %6328 = vmatpush1.bf16.msra.mxu0 %v5107_v62  ;;  %6369 = vmatpush1.bf16.msra.mxu1 %v5235_v45  ;;  %v5308_v62 = vld [vmem:[#allocation4 + $0x798] sm:$0xff]  ;;  %v5179_v45 = vld [vmem:[#allocation4 + $0x390] sm:$0xff] }
 0xf53   : > { %v6028_v56 = vpop.f32.mrb[7].mxu0  ;;  %v6069_v38 = vpop.f32.mrb[7].mxu1  ;;  %6329 = vmatprep.subr.bf16.mxu0 %v5116_v41  ;;  %6370 = vmatprep.subr.bf16.mxu1 %v5244_v42  ;;  %v5307_v41 = vld [vmem:[#allocation4 + $0x790] sm:$0xff]  ;;  %v5188_v42 = vld [vmem:[#allocation4 + $0x3d8] sm:$0xff] }
 0xf54   : > { %v5316_v19 = vld [vmem:[#allocation4 + $0x7d8] sm:$0xff]  ;;  %v5187_v44 = vld [vmem:[#allocation4 + $0x3d0] sm:$0xff] }
 0xf55   : > { %v5315_v56 = vld [vmem:[#allocation4 + $0x7d0] sm:$0xff]  ;;  %v5324_v38 = vld [vmem:[#allocation4 + $0x818] sm:$0xff] }
 0xf56   : > { %6330 = vmatpush1.bf16.msra.mxu0 %v5115_v48  ;;  %6371 = vmatpush1.bf16.msra.mxu1 %v5243_v23  ;;  %v5452_v48 = vld [vmem:[#allocation4 + $0xc18] sm:$0xff]  ;;  %v5323_v23 = vld [vmem:[#allocation4 + $0x810] sm:$0xff] }
 0xf57   : > { %6331 = vmatprep.subr.bf16.mxu0 %v5124_v22  ;;  %6372 = vmatprep.subr.bf16.mxu1 %v5252_v47  ;;  %v5451_v22 = vld [vmem:[#allocation4 + $0xc10] sm:$0xff]  ;;  %v5332_v47 = vld [vmem:[#allocation4 + $0x858] sm:$0xff] }
 0xf5a   : > { %6332 = vmatpush1.bf16.msra.mxu0 %v5123_v24  ;;  %6373 = vmatpush1.bf16.msra.mxu1 %v5251_v6  ;;  %v5460_v24 = vld [vmem:[#allocation4 + $0xc58] sm:$0xff]  ;;  %v5331_v6 = vld [vmem:[#allocation4 + $0x850] sm:$0xff] }
 0xf5b   : > { %6333 = vmatprep.subr.bf16.mxu0 %v5132_v53  ;;  %6374 = vmatprep.subr.bf16.mxu1 %v5260_v12  ;;  %v5459_v53 = vld [vmem:[#allocation4 + $0xc50] sm:$0xff]  ;;  %v5340_v12 = vld [vmem:[#allocation4 + $0x898] sm:$0xff] }
 0xf5e   : > { %6334 = vmatpush1.bf16.msra.mxu0 %v5131_v58  ;;  %6375 = vmatpush1.bf16.msra.mxu1 %v5259_v61  ;;  %v5468_v58 = vld [vmem:[#allocation4 + $0xc98] sm:$0xff]  ;;  %v5339_v61 = vld [vmem:[#allocation4 + $0x890] sm:$0xff] }
 0xf5f   : > { %6335 = vmatprep.subr.bf16.mxu0 %v5140_v54  ;;  %6376 = vmatprep.subr.bf16.mxu1 %v5268_v57  ;;  %v5467_v54 = vld [vmem:[#allocation4 + $0xc90] sm:$0xff]  ;;  %v5348_v57 = vld [vmem:[#allocation4 + $0x8d8] sm:$0xff] }
 0xf62   : > { %6336 = vmatpush1.bf16.msra.mxu0 %v5139_v2  ;;  %6377 = vmatpush1.bf16.msra.mxu1 %v5267_v9  ;;  %v5476_v2 = vld [vmem:[#allocation4 + $0xcd8] sm:$0xff]  ;;  %v5347_v9 = vld [vmem:[#allocation4 + $0x8d0] sm:$0xff] }
 0xf63   : > { %6337 = vmatprep.subr.bf16.mxu0 %v5148_v10  ;;  %6378 = vmatprep.subr.bf16.mxu1 %v5276_v33  ;;  %v5475_v10 = vld [vmem:[#allocation4 + $0xcd0] sm:$0xff]  ;;  %v5356_v33 = vld [vmem:[#allocation4 + $0x918] sm:$0xff] }
 0xf66   : > { %6338 = vmatpush1.bf16.msra.mxu0 %v5147_v11  ;;  %6379 = vmatpush1.bf16.msra.mxu1 %v5275_v59  ;;  %v5484_v11 = vld [vmem:[#allocation4 + $0xd18] sm:$0xff]  ;;  %v5355_v59 = vld [vmem:[#allocation4 + $0x910] sm:$0xff] }
 0xf67   : > { %6339 = vmatprep.subr.bf16.mxu0 %v5156_v13  ;;  %6380 = vmatprep.subr.bf16.mxu1 %v5284_v21  ;;  %v5483_v13 = vld [vmem:[#allocation4 + $0xd10] sm:$0xff]  ;;  %v5364_v21 = vld [vmem:[#allocation4 + $0x958] sm:$0xff] }
 0xf6a   : > { %6340 = vmatpush1.bf16.msra.mxu0 %v5155_v7  ;;  %6381 = vmatpush1.bf16.msra.mxu1 %v5283_v55  ;;  %v5492_v7 = vld [vmem:[#allocation4 + $0xd58] sm:$0xff]  ;;  %v5363_v55 = vld [vmem:[#allocation4 + $0x950] sm:$0xff] }
 0xf6b   : > { %6341 = vmatprep.subr.bf16.mxu0 %v5164_v15  ;;  %6382 = vmatprep.subr.bf16.mxu1 %v5292_v16  ;;  %v5491_v15 = vld [vmem:[#allocation4 + $0xd50] sm:$0xff] }
 0xf6e   : > { %6342 = vmatpush1.bf16.msra.mxu0 %v5163_v17  ;;  %6383 = vmatpush1.bf16.msra.mxu1 %v5291_v18  ;;  %v5372_v18 = vld [vmem:[#allocation4 + $0x998] sm:$0xff] }
 0xf6f   : > { %6343 = vmatprep.subr.bf16.mxu0 %v5172_v27  ;;  %6384 = vmatprep.subr.bf16.mxu1 %v5300_v34  ;;  %v5500_v27 = vld [vmem:[#allocation4 + $0xd98] sm:$0xff] }
 0xf72   : > { %6344 = vmatpush1.bf16.msra.mxu0 %v5171_v1  ;;  %6385 = vmatpush1.bf16.msra.mxu1 %v5299_v36 }
 0xf73   : > { %6345 = vmatprep.subr.bf16.mxu0 %v5180_v37  ;;  %6386 = vmatprep.subr.bf16.mxu1 %v5308_v62 }
 0xf76   : > { %6346 = vmatpush1.bf16.msra.mxu0 %v5179_v45  ;;  %6387 = vmatpush1.bf16.msra.mxu1 %v5307_v41 }
 0xf77   : > { %6347 = vmatprep.subr.bf16.mxu0 %v5188_v42  ;;  %6388 = vmatprep.subr.bf16.mxu1 %v5316_v19 }
 0xf7a   : > { %6348 = vmatpush1.bf16.msra.mxu0 %v5187_v44  ;;  %6389 = vmatpush1.bf16.msra.mxu1 %v5315_v56  ;;  %v5371_v44 = vld [vmem:[#allocation4 + $0x990] sm:$0xff] }
 0xf7b   : > { %6399 = vmatprep.subr.bf16.mxu0 %v5324_v38  ;;  %6440 = vmatprep.subr.bf16.mxu1 %v5452_v48  ;;  %v5499_v56 = vld [vmem:[#allocation4 + $0xd90] sm:$0xff]  ;;  %v5380_v48 = vld [vmem:[#allocation4 + $0x9d8] sm:$0xff] }
 0xf7d   : > { %6350 = vmatmul.mubr.bf16.vlgmr.msra.gmra.mrb[20].mxu0 %v11843_v49  ;;  %6391 = vmatmul.mubr.bf16.vlgmr.msra.gmra.mrb[20].mxu1 %v11847_v0 }
 0xf7e   : > { %6400 = vmatpush1.bf16.msra.mxu0 %v5323_v23  ;;  %6441 = vmatpush1.bf16.msra.mxu1 %v5451_v22  ;;  %v5507_v23 = vld [vmem:[#allocation4 + $0xdd0] sm:$0xff]  ;;  %v5388_v22 = vld [vmem:[#allocation4 + $0xa18] sm:$0xff] }
 0xf7f   : > { %6401 = vmatprep.subr.bf16.mxu0 %v5332_v47  ;;  %6442 = vmatprep.subr.bf16.mxu1 %v5460_v24  ;;  %v5516_v47 = vld [vmem:[#allocation4 + $0xe18] sm:$0xff]  ;;  %v5387_v24 = vld [vmem:[#allocation4 + $0xa10] sm:$0xff] }
 0xf80   : > { %6431 = vmatprep.mubr.bf16.mxu0 %v11849_v52  ;;  %6472 = vmatprep.mubr.bf16.mxu1 %v11851_v14 }
 0xf82   : > { %6402 = vmatpush1.bf16.msra.mxu0 %v5331_v6  ;;  %6443 = vmatpush1.bf16.msra.mxu1 %v5459_v53  ;;  %v5515_v6 = vld [vmem:[#allocation4 + $0xe10] sm:$0xff]  ;;  %v5396_v53 = vld [vmem:[#allocation4 + $0xa58] sm:$0xff] }
 0xf83   : > { %6403 = vmatprep.subr.bf16.mxu0 %v5340_v12  ;;  %6444 = vmatprep.subr.bf16.mxu1 %v5468_v58  ;;  %v5524_v12 = vld [vmem:[#allocation4 + $0xe58] sm:$0xff]  ;;  %v5395_v58 = vld [vmem:[#allocation4 + $0xa50] sm:$0xff] }
 0xf86   : > { %6404 = vmatpush1.bf16.msra.mxu0 %v5339_v61  ;;  %6445 = vmatpush1.bf16.msra.mxu1 %v5467_v54  ;;  %v5523_v61 = vld [vmem:[#allocation4 + $0xe50] sm:$0xff]  ;;  %v5404_v54 = vld [vmem:[#allocation4 + $0xa98] sm:$0xff] }
 0xf87   : > { %6405 = vmatprep.subr.bf16.mxu0 %v5348_v57  ;;  %6446 = vmatprep.subr.bf16.mxu1 %v5476_v2  ;;  %v5532_v57 = vld [vmem:[#allocation4 + $0xe98] sm:$0xff]  ;;  %v5403_v2 = vld [vmem:[#allocation4 + $0xa90] sm:$0xff] }
 0xf8a   : > { %6406 = vmatpush1.bf16.msra.mxu0 %v5347_v9  ;;  %6447 = vmatpush1.bf16.msra.mxu1 %v5475_v10  ;;  %v5531_v9 = vld [vmem:[#allocation4 + $0xe90] sm:$0xff]  ;;  %v5412_v10 = vld [vmem:[#allocation4 + $0xad8] sm:$0xff] }
 0xf8b   : > { %6407 = vmatprep.subr.bf16.mxu0 %v5356_v33  ;;  %6448 = vmatprep.subr.bf16.mxu1 %v5484_v11  ;;  %v5540_v33 = vld [vmem:[#allocation4 + $0xed8] sm:$0xff]  ;;  %v5411_v11 = vld [vmem:[#allocation4 + $0xad0] sm:$0xff] }
 0xf8e   : > { %6408 = vmatpush1.bf16.msra.mxu0 %v5355_v59  ;;  %6449 = vmatpush1.bf16.msra.mxu1 %v5483_v13  ;;  %v5539_v59 = vld [vmem:[#allocation4 + $0xed0] sm:$0xff]  ;;  %v5420_v13 = vld [vmem:[#allocation4 + $0xb18] sm:$0xff] }
 0xf8f   : > { %6409 = vmatprep.subr.bf16.mxu0 %v5364_v21  ;;  %6450 = vmatprep.subr.bf16.mxu1 %v5492_v7  ;;  %v5548_v21 = vld [vmem:[#allocation4 + $0xf18] sm:$0xff]  ;;  %v5419_v7 = vld [vmem:[#allocation4 + $0xb10] sm:$0xff] }
 0xf90   : > { %v6105_v16 = vpop.f32.mrb[8].mxu0  ;;  %v6146_v17 = vpop.f32.mrb[8].mxu1 }
 0xf91   : > { %v6106_v34 = vadd.f32 %v6105_v16, %v11883_v29  ;;  %v6107_v1 = vpop.f32.mrb[9].mxu0  ;;  %v6148_v36 = vpop.f32.mrb[9].mxu1  ;;  %v5508_v29 = vld [vmem:[#allocation4 + $0xdd8] sm:$0xff] }
 0xf92   : > { %v6108_v37 = vadd.f32 %v6107_v1, %v11887_v8  ;;  %v6109_v62 = vpop.f32.mrb[10].mxu0  ;;  %v6150_v45 = vpop.f32.mrb[10].mxu1  ;;  %6410 = vmatpush1.bf16.msra.mxu0 %v5363_v55  ;;  %6451 = vmatpush1.bf16.msra.mxu1 %v5491_v15  ;;  %v5379_v8 = vld [vmem:[#allocation4 + $0x9d0] sm:$0xff]  ;;  %v5428_v15 = vld [vmem:[#allocation4 + $0xb58] sm:$0xff] }
 0xf93   : > { %v11917_v41 = vadd.f32 %v6146_v17, %v6106_v34  ;;  %v6110_v42 = vpop.f32.mrb[11].mxu0  ;;  %v6151_v19 = vpop.f32.mrb[11].mxu1  ;;  %6411 = vmatprep.subr.bf16.mxu0 %v5372_v18  ;;  %6452 = vmatprep.subr.bf16.mxu1 %v5500_v27  ;;  %v5547_v55 = vld [vmem:[#allocation4 + $0xf10] sm:$0xff]  ;;  %v5556_v16 = vld [vmem:[#allocation4 + $0xf58] sm:$0xff] }
 0xf94   : > { %v11919_v38 = vadd.f32 %v6148_v36, %v6108_v37  ;;  %v5427_v17 = vld [vmem:[#allocation4 + $0xb50] sm:$0xff]  ;;  %v5436_v27 = vld [vmem:[#allocation4 + $0xb98] sm:$0xff] }
 0xf95   : > { %v5555_v18 = vld [vmem:[#allocation4 + $0xf50] sm:$0xff]  ;;  %v5564_v34 = vld [vmem:[#allocation4 + $0xf98] sm:$0xff] }
 0xf96   : > { %6412 = vmatpush1.bf16.msra.mxu0 %v5371_v44  ;;  %6453 = vmatpush1.bf16.msra.mxu1 %v5499_v56  ;;  %v5435_v1 = vld [vmem:[#allocation4 + $0xb90] sm:$0xff]  ;;  %v5444_v37 = vld [vmem:[#allocation4 + $0xbd8] sm:$0xff] }
 0xf97   : > { %6413 = vmatprep.subr.bf16.mxu0 %v5380_v48  ;;  %6454 = vmatprep.subr.bf16.mxu1 %v5508_v29  ;;  %v5563_v36 = vld [vmem:[#allocation4 + $0xf90] sm:$0xff]  ;;  %v5572_v62 = vld [vmem:[#allocation4 + $0xfd8] sm:$0xff] }
 0xf98   : > { %v5443_v45 = vld [vmem:[#allocation4 + $0xbd0] sm:$0xff]  ;;  %v5580_v19 = vld [vmem:[#allocation4 + $0x1018] sm:$0xff] }
 0xf99   : > { %v5571_v42 = vld [vmem:[#allocation4 + $0xfd0] sm:$0xff]  ;;  %v5708_v44 = vld [vmem:[#allocation4 + $0x1418] sm:$0xff] }
 0xf9a   : > { %6414 = vmatpush1.bf16.msra.mxu0 %v5379_v8  ;;  %6455 = vmatpush1.bf16.msra.mxu1 %v5507_v23  ;;  %v5579_v56 = vld [vmem:[#allocation4 + $0x1010] sm:$0xff]  ;;  %v5588_v29 = vld [vmem:[#allocation4 + $0x1058] sm:$0xff] }
 0xf9b   : > { %6415 = vmatprep.subr.bf16.mxu0 %v5388_v22  ;;  %6456 = vmatprep.subr.bf16.mxu1 %v5516_v47  ;;  %v5707_v48 = vld [vmem:[#allocation4 + $0x1410] sm:$0xff]  ;;  %v5716_v8 = vld [vmem:[#allocation4 + $0x1458] sm:$0xff] }
 0xf9c   : > { %v5587_v23 = vld [vmem:[#allocation4 + $0x1050] sm:$0xff]  ;;  %v5596_v47 = vld [vmem:[#allocation4 + $0x1098] sm:$0xff] }
 0xf9d   : > { %v5715_v22 = vld [vmem:[#allocation4 + $0x1450] sm:$0xff] }
 0xf9e   : > { %6416 = vmatpush1.bf16.msra.mxu0 %v5387_v24  ;;  %6457 = vmatpush1.bf16.msra.mxu1 %v5515_v6  ;;  %v5724_v24 = vld [vmem:[#allocation4 + $0x1498] sm:$0xff]  ;;  %v5595_v6 = vld [vmem:[#allocation4 + $0x1090] sm:$0xff] }
 0xf9f   : > { %6417 = vmatprep.subr.bf16.mxu0 %v5396_v53  ;;  %6458 = vmatprep.subr.bf16.mxu1 %v5524_v12  ;;  %v5723_v53 = vld [vmem:[#allocation4 + $0x1490] sm:$0xff]  ;;  %v5604_v12 = vld [vmem:[#allocation4 + $0x10d8] sm:$0xff] }
 0xfa2   : > { %6418 = vmatpush1.bf16.msra.mxu0 %v5395_v58  ;;  %6459 = vmatpush1.bf16.msra.mxu1 %v5523_v61  ;;  %v5732_v58 = vld [vmem:[#allocation4 + $0x14d8] sm:$0xff]  ;;  %v5603_v61 = vld [vmem:[#allocation4 + $0x10d0] sm:$0xff] }
 0xfa3   : > { %6419 = vmatprep.subr.bf16.mxu0 %v5404_v54  ;;  %6460 = vmatprep.subr.bf16.mxu1 %v5532_v57  ;;  %v5731_v54 = vld [vmem:[#allocation4 + $0x14d0] sm:$0xff]  ;;  %v5612_v57 = vld [vmem:[#allocation4 + $0x1118] sm:$0xff] }
 0xfa6   : > { %6420 = vmatpush1.bf16.msra.mxu0 %v5403_v2  ;;  %6461 = vmatpush1.bf16.msra.mxu1 %v5531_v9  ;;  %v5740_v2 = vld [vmem:[#allocation4 + $0x1518] sm:$0xff]  ;;  %v5611_v9 = vld [vmem:[#allocation4 + $0x1110] sm:$0xff] }
 0xfa7   : > { %6421 = vmatprep.subr.bf16.mxu0 %v5412_v10  ;;  %6462 = vmatprep.subr.bf16.mxu1 %v5540_v33  ;;  %v5739_v10 = vld [vmem:[#allocation4 + $0x1510] sm:$0xff]  ;;  %v5620_v33 = vld [vmem:[#allocation4 + $0x1158] sm:$0xff] }
 0xfaa   : > { %6422 = vmatpush1.bf16.msra.mxu0 %v5411_v11  ;;  %6463 = vmatpush1.bf16.msra.mxu1 %v5539_v59  ;;  %v5748_v11 = vld [vmem:[#allocation4 + $0x1558] sm:$0xff]  ;;  %v5619_v59 = vld [vmem:[#allocation4 + $0x1150] sm:$0xff] }
 0xfab   : > { %6423 = vmatprep.subr.bf16.mxu0 %v5420_v13  ;;  %6464 = vmatprep.subr.bf16.mxu1 %v5548_v21  ;;  %v5747_v13 = vld [vmem:[#allocation4 + $0x1550] sm:$0xff] }
 0xfae   : > { %6424 = vmatpush1.bf16.msra.mxu0 %v5419_v7  ;;  %6465 = vmatpush1.bf16.msra.mxu1 %v5547_v55  ;;  %v5628_v55 = vld [vmem:[#allocation4 + $0x1198] sm:$0xff] }
 0xfaf   : > { %6425 = vmatprep.subr.bf16.mxu0 %v5428_v15  ;;  %6466 = vmatprep.subr.bf16.mxu1 %v5556_v16  ;;  %v5756_v15 = vld [vmem:[#allocation4 + $0x1598] sm:$0xff] }
 0xfb2   : > { %6426 = vmatpush1.bf16.msra.mxu0 %v5427_v17  ;;  %6467 = vmatpush1.bf16.msra.mxu1 %v5555_v18 }
 0xfb3   : > { %6427 = vmatprep.subr.bf16.mxu0 %v5436_v27  ;;  %6468 = vmatprep.subr.bf16.mxu1 %v5564_v34 }
 0xfb6   : > { %6428 = vmatpush1.bf16.msra.mxu0 %v5435_v1  ;;  %6469 = vmatpush1.bf16.msra.mxu1 %v5563_v36 }
 0xfb7   : > { %6429 = vmatprep.subr.bf16.mxu0 %v5444_v37  ;;  %6470 = vmatprep.subr.bf16.mxu1 %v5572_v62 }
 0xfba   : > { %6430 = vmatpush1.bf16.msra.mxu0 %v5443_v45  ;;  %6471 = vmatpush1.bf16.msra.mxu1 %v5571_v42  ;;  %v5627_v45 = vld [vmem:[#allocation4 + $0x1190] sm:$0xff] }
 0xfbb   : > { %6481 = vmatprep.subr.bf16.mxu0 %v5580_v19  ;;  %6522 = vmatprep.subr.bf16.mxu1 %v5708_v44  ;;  %v5755_v42 = vld [vmem:[#allocation4 + $0x1590] sm:$0xff]  ;;  %v5636_v44 = vld [vmem:[#allocation4 + $0x11d8] sm:$0xff] }
 0xfbd   : > { %6432 = vmatmul.mubr.bf16.vlgmr.msra.gmra.mrb[24].mxu0 %v11869_v31  ;;  %6473 = vmatmul.mubr.bf16.vlgmr.msra.gmra.mrb[24].mxu1 %v11873_v4 }
 0xfbe   : > { %6482 = vmatpush1.bf16.msra.mxu0 %v5579_v56  ;;  %6523 = vmatpush1.bf16.msra.mxu1 %v5707_v48  ;;  %v5763_v56 = vld [vmem:[#allocation4 + $0x15d0] sm:$0xff]  ;;  %v5644_v48 = vld [vmem:[#allocation4 + $0x1218] sm:$0xff] }
 0xfbf   : > { %6483 = vmatprep.subr.bf16.mxu0 %v5588_v29  ;;  %6524 = vmatprep.subr.bf16.mxu1 %v5716_v8  ;;  %v5772_v29 = vld [vmem:[#allocation4 + $0x1618] sm:$0xff]  ;;  %v5643_v8 = vld [vmem:[#allocation4 + $0x1210] sm:$0xff] }
 0xfc0   : > { %6513 = vmatprep.mubr.bf16.mxu0 %v11875_v20  ;;  %6554 = vmatprep.mubr.bf16.mxu1 %v11877_v43 }
 0xfc2   : > { %6484 = vmatpush1.bf16.msra.mxu0 %v5587_v23  ;;  %6525 = vmatpush1.bf16.msra.mxu1 %v5715_v22  ;;  %v5771_v23 = vld [vmem:[#allocation4 + $0x1610] sm:$0xff]  ;;  %v5652_v22 = vld [vmem:[#allocation4 + $0x1258] sm:$0xff] }
 0xfc3   : > { %6485 = vmatprep.subr.bf16.mxu0 %v5596_v47  ;;  %6526 = vmatprep.subr.bf16.mxu1 %v5724_v24  ;;  %v5780_v47 = vld [vmem:[#allocation4 + $0x1658] sm:$0xff]  ;;  %v5651_v24 = vld [vmem:[#allocation4 + $0x1250] sm:$0xff] }
 0xfc6   : > { %6486 = vmatpush1.bf16.msra.mxu0 %v5595_v6  ;;  %6527 = vmatpush1.bf16.msra.mxu1 %v5723_v53  ;;  %v5779_v6 = vld [vmem:[#allocation4 + $0x1650] sm:$0xff]  ;;  %v5660_v53 = vld [vmem:[#allocation4 + $0x1298] sm:$0xff] }
 0xfc7   : > { %6487 = vmatprep.subr.bf16.mxu0 %v5604_v12  ;;  %6528 = vmatprep.subr.bf16.mxu1 %v5732_v58  ;;  %v5788_v12 = vld [vmem:[#allocation4 + $0x1698] sm:$0xff]  ;;  %v5659_v58 = vld [vmem:[#allocation4 + $0x1290] sm:$0xff] }
 0xfca   : > { %6488 = vmatpush1.bf16.msra.mxu0 %v5603_v61  ;;  %6529 = vmatpush1.bf16.msra.mxu1 %v5731_v54  ;;  %v5787_v61 = vld [vmem:[#allocation4 + $0x1690] sm:$0xff]  ;;  %v5668_v54 = vld [vmem:[#allocation4 + $0x12d8] sm:$0xff] }
 0xfcb   : > { %6489 = vmatprep.subr.bf16.mxu0 %v5612_v57  ;;  %6530 = vmatprep.subr.bf16.mxu1 %v5740_v2  ;;  %v5796_v57 = vld [vmem:[#allocation4 + $0x16d8] sm:$0xff]  ;;  %v5667_v2 = vld [vmem:[#allocation4 + $0x12d0] sm:$0xff] }
 0xfce   : > { %6490 = vmatpush1.bf16.msra.mxu0 %v5611_v9  ;;  %6531 = vmatpush1.bf16.msra.mxu1 %v5739_v10  ;;  %v5795_v9 = vld [vmem:[#allocation4 + $0x16d0] sm:$0xff]  ;;  %v5676_v10 = vld [vmem:[#allocation4 + $0x1318] sm:$0xff] }
 0xfcf   : > { %6491 = vmatprep.subr.bf16.mxu0 %v5620_v33  ;;  %6532 = vmatprep.subr.bf16.mxu1 %v5748_v11  ;;  %v5804_v33 = vld [vmem:[#allocation4 + $0x1718] sm:$0xff]  ;;  %v5675_v11 = vld [vmem:[#allocation4 + $0x1310] sm:$0xff] }
 0xfd0   : > { %v6187_v21 = vpop.f32.mrb[12].mxu0  ;;  %v6228_v7 = vpop.f32.mrb[12].mxu1 }
 0xfd1   : > { %v6188_v16 = vadd.f32 %v6187_v21, %v11917_v41  ;;  %v6189_v17 = vpop.f32.mrb[13].mxu0  ;;  %v6230_v18 = vpop.f32.mrb[13].mxu1  ;;  %v5764_v41 = vld [vmem:[#allocation4 + $0x15d8] sm:$0xff] }
 0xfd2   : > { %v6190_v27 = vadd.f32 %v6189_v17, %v11919_v38  ;;  %v6191_v34 = vpop.f32.mrb[14].mxu0  ;;  %v6232_v1 = vpop.f32.mrb[14].mxu1  ;;  %6492 = vmatpush1.bf16.msra.mxu0 %v5619_v59  ;;  %6533 = vmatpush1.bf16.msra.mxu1 %v5747_v13  ;;  %v5635_v38 = vld [vmem:[#allocation4 + $0x11d0] sm:$0xff]  ;;  %v5684_v13 = vld [vmem:[#allocation4 + $0x1358] sm:$0xff] }
 0xfd3   : > { %v11927_v36 = vadd.f32 %v6228_v7, %v6188_v16  ;;  %v6192_v37 = vpop.f32.mrb[15].mxu0  ;;  %v6233_v62 = vpop.f32.mrb[15].mxu1  ;;  %6493 = vmatprep.subr.bf16.mxu0 %v5628_v55  ;;  %6534 = vmatprep.subr.bf16.mxu1 %v5756_v15  ;;  %v5803_v59 = vld [vmem:[#allocation4 + $0x1710] sm:$0xff]  ;;  %v5812_v21 = vld [vmem:[#allocation4 + $0x1758] sm:$0xff] }
 0xfd4   : > { %v11929_v19 = vadd.f32 %v6230_v18, %v6190_v27  ;;  %v5683_v7 = vld [vmem:[#allocation4 + $0x1350] sm:$0xff]  ;;  %v5692_v15 = vld [vmem:[#allocation4 + $0x1398] sm:$0xff]  ;;  %v5070_v62 = vld [vmem:[#allocation4 + $0x28] sm:$0xff] }
 0xfd5   : > { %v5811_v55 = vld [vmem:[#allocation4 + $0x1750] sm:$0xff]  ;;  %v5820_v16 = vld [vmem:[#allocation4 + $0x1798] sm:$0xff] }
 0xfd6   : > { %6494 = vmatpush1.bf16.msra.mxu0 %v5627_v45  ;;  %6535 = vmatpush1.bf16.msra.mxu1 %v5755_v42  ;;  %v5691_v17 = vld [vmem:[#allocation4 + $0x1390] sm:$0xff]  ;;  %v5700_v27 = vld [vmem:[#allocation4 + $0x13d8] sm:$0xff]  ;;  %v5198_v45 = vld [vmem:[#allocation4 + $0x428] sm:$0xff] }
 0xfd7   : > { %6495 = vmatprep.subr.bf16.mxu0 %v5636_v44  ;;  %6536 = vmatprep.subr.bf16.mxu1 %v5764_v41  ;;  %v5819_v18 = vld [vmem:[#allocation4 + $0x1790] sm:$0xff]  ;;  %v5828_v34 = vld [vmem:[#allocation4 + $0x17d8] sm:$0xff]  ;;  %v5069_v42 = vld [vmem:[#allocation4 + $0x20] sm:$0xff] }
 0xfd8   : > { %v5699_v1 = vld [vmem:[#allocation4 + $0x13d0] sm:$0xff]  ;;  %v5197_v44 = vld [vmem:[#allocation4 + $0x420] sm:$0xff]  ;;  %v5078_v41 = vld [vmem:[#allocation4 + $0x68] sm:$0xff] }
 0xfd9   : > { %v5827_v37 = vld [vmem:[#allocation4 + $0x17d0] sm:$0xff] }
 0xfda   : > { %6496 = vmatpush1.bf16.msra.mxu0 %v5635_v38  ;;  %6537 = vmatpush1.bf16.msra.mxu1 %v5763_v56  ;;  %v5206_v38 = vld [vmem:[#allocation4 + $0x468] sm:$0xff]  ;;  %v5077_v56 = vld [vmem:[#allocation4 + $0x60] sm:$0xff] }
 0xfdb   : > { %6497 = vmatprep.subr.bf16.mxu0 %v5644_v48  ;;  %6538 = vmatprep.subr.bf16.mxu1 %v5772_v29  ;;  %v5205_v48 = vld [vmem:[#allocation4 + $0x460] sm:$0xff]  ;;  %v5086_v29 = vld [vmem:[#allocation4 + $0xa8] sm:$0xff] }
 0xfde   : > { %6498 = vmatpush1.bf16.msra.mxu0 %v5643_v8  ;;  %6539 = vmatpush1.bf16.msra.mxu1 %v5771_v23  ;;  %v5214_v8 = vld [vmem:[#allocation4 + $0x4a8] sm:$0xff]  ;;  %v5085_v23 = vld [vmem:[#allocation4 + $0xa0] sm:$0xff] }
 0xfdf   : > { %6499 = vmatprep.subr.bf16.mxu0 %v5652_v22  ;;  %6540 = vmatprep.subr.bf16.mxu1 %v5780_v47  ;;  %v5213_v22 = vld [vmem:[#allocation4 + $0x4a0] sm:$0xff]  ;;  %v5094_v47 = vld [vmem:[#allocation4 + $0xe8] sm:$0xff] }
 0xfe2   : > { %6500 = vmatpush1.bf16.msra.mxu0 %v5651_v24  ;;  %6541 = vmatpush1.bf16.msra.mxu1 %v5779_v6  ;;  %v5222_v24 = vld [vmem:[#allocation4 + $0x4e8] sm:$0xff]  ;;  %v5093_v6 = vld [vmem:[#allocation4 + $0xe0] sm:$0xff] }
 0xfe3   : > { %6501 = vmatprep.subr.bf16.mxu0 %v5660_v53  ;;  %6542 = vmatprep.subr.bf16.mxu1 %v5788_v12  ;;  %v5221_v53 = vld [vmem:[#allocation4 + $0x4e0] sm:$0xff]  ;;  %v5102_v12 = vld [vmem:[#allocation4 + $0x128] sm:$0xff] }
 0xfe6   : > { %6502 = vmatpush1.bf16.msra.mxu0 %v5659_v58  ;;  %6543 = vmatpush1.bf16.msra.mxu1 %v5787_v61  ;;  %v5230_v58 = vld [vmem:[#allocation4 + $0x528] sm:$0xff]  ;;  %v5101_v61 = vld [vmem:[#allocation4 + $0x120] sm:$0xff] }
 0xfe7   : > { %6503 = vmatprep.subr.bf16.mxu0 %v5668_v54  ;;  %6544 = vmatprep.subr.bf16.mxu1 %v5796_v57  ;;  %v5229_v54 = vld [vmem:[#allocation4 + $0x520] sm:$0xff]  ;;  %v5110_v57 = vld [vmem:[#allocation4 + $0x168] sm:$0xff] }
 0xfea   : > { %6504 = vmatpush1.bf16.msra.mxu0 %v5667_v2  ;;  %6545 = vmatpush1.bf16.msra.mxu1 %v5795_v9  ;;  %v5238_v2 = vld [vmem:[#allocation4 + $0x568] sm:$0xff]  ;;  %v5109_v9 = vld [vmem:[#allocation4 + $0x160] sm:$0xff] }
 0xfeb   : > { %6505 = vmatprep.subr.bf16.mxu0 %v5676_v10  ;;  %6546 = vmatprep.subr.bf16.mxu1 %v5804_v33  ;;  %v5237_v10 = vld [vmem:[#allocation4 + $0x560] sm:$0xff] }
 0xfee   : > { %6506 = vmatpush1.bf16.msra.mxu0 %v5675_v11  ;;  %6547 = vmatpush1.bf16.msra.mxu1 %v5803_v59  ;;  %v5118_v59 = vld [vmem:[#allocation4 + $0x1a8] sm:$0xff] }
 0xfef   : > { %6507 = vmatprep.subr.bf16.mxu0 %v5684_v13  ;;  %6548 = vmatprep.subr.bf16.mxu1 %v5812_v21  ;;  %v5246_v13 = vld [vmem:[#allocation4 + $0x5a8] sm:$0xff] }
 0xff2   : > { %6508 = vmatpush1.bf16.msra.mxu0 %v5683_v7  ;;  %6549 = vmatpush1.bf16.msra.mxu1 %v5811_v55 }
 0xff3   : > { %6509 = vmatprep.subr.bf16.mxu0 %v5692_v15  ;;  %6550 = vmatprep.subr.bf16.mxu1 %v5820_v16 }
 0xff6   : > { %6510 = vmatpush1.bf16.msra.mxu0 %v5691_v17  ;;  %6551 = vmatpush1.bf16.msra.mxu1 %v5819_v18 }
 0xff7   : > { %6511 = vmatprep.subr.bf16.mxu0 %v5700_v27  ;;  %6552 = vmatprep.subr.bf16.mxu1 %v5828_v34 }
 0xffa   : > { %6512 = vmatpush1.bf16.msra.mxu0 %v5699_v1  ;;  %6553 = vmatpush1.bf16.msra.mxu1 %v5827_v37  ;;  %v5117_v1 = vld [vmem:[#allocation4 + $0x1a0] sm:$0xff] }
 0xffb   : > { %6563 = vmatprep.subr.bf16.mxu0 %v5070_v62  ;;  %6604 = vmatprep.subr.bf16.mxu1 %v5198_v45  ;;  %v5245_v37 = vld [vmem:[#allocation4 + $0x5a0] sm:$0xff]  ;;  %v5126_v45 = vld [vmem:[#allocation4 + $0x1e8] sm:$0xff] }
 0xffd   : > { %6514 = vmatmul.mubr.bf16.vlgmr.msra.gmra.mrb[28].mxu0 %v11893_v46  ;;  %6555 = vmatmul.mubr.bf16.vlgmr.msra.gmra.mrb[28].mxu1 %v11897_v63 }
 0xffe   : > { %6564 = vmatpush1.bf16.msra.mxu0 %v5069_v42  ;;  %6605 = vmatpush1.bf16.msra.mxu1 %v5197_v44  ;;  %v5253_v42 = vld [vmem:[#allocation4 + $0x5e0] sm:$0xff]  ;;  %v5134_v44 = vld [vmem:[#allocation4 + $0x228] sm:$0xff] }
 0xfff   : > { %6565 = vmatprep.subr.bf16.mxu0 %v5078_v41  ;;  %6606 = vmatprep.subr.bf16.mxu1 %v5206_v38  ;;  %v5262_v41 = vld [vmem:[#allocation4 + $0x628] sm:$0xff]  ;;  %v5133_v38 = vld [vmem:[#allocation4 + $0x220] sm:$0xff] }
0x1000   : > { %6595 = vmatprep.mubr.bf16.mxu0 %v11823_v40  ;;  %6636 = vmatprep.mubr.bf16.mxu1 %v11825_v50 }
0x1002   : > { %6566 = vmatpush1.bf16.msra.mxu0 %v5077_v56  ;;  %6607 = vmatpush1.bf16.msra.mxu1 %v5205_v48  ;;  %v5261_v56 = vld [vmem:[#allocation4 + $0x620] sm:$0xff]  ;;  %v5142_v48 = vld [vmem:[#allocation4 + $0x268] sm:$0xff] }
0x1003   : > { %6567 = vmatprep.subr.bf16.mxu0 %v5086_v29  ;;  %6608 = vmatprep.subr.bf16.mxu1 %v5214_v8  ;;  %v5270_v29 = vld [vmem:[#allocation4 + $0x668] sm:$0xff]  ;;  %v5141_v8 = vld [vmem:[#allocation4 + $0x260] sm:$0xff] }
0x1006   : > { %6568 = vmatpush1.bf16.msra.mxu0 %v5085_v23  ;;  %6609 = vmatpush1.bf16.msra.mxu1 %v5213_v22  ;;  %v5269_v23 = vld [vmem:[#allocation4 + $0x660] sm:$0xff]  ;;  %v5150_v22 = vld [vmem:[#allocation4 + $0x2a8] sm:$0xff] }
0x1007   : > { %6569 = vmatprep.subr.bf16.mxu0 %v5094_v47  ;;  %6610 = vmatprep.subr.bf16.mxu1 %v5222_v24  ;;  %v5278_v47 = vld [vmem:[#allocation4 + $0x6a8] sm:$0xff]  ;;  %v5149_v24 = vld [vmem:[#allocation4 + $0x2a0] sm:$0xff] }
0x100a   : > { %6570 = vmatpush1.bf16.msra.mxu0 %v5093_v6  ;;  %6611 = vmatpush1.bf16.msra.mxu1 %v5221_v53  ;;  %v5277_v6 = vld [vmem:[#allocation4 + $0x6a0] sm:$0xff]  ;;  %v5158_v53 = vld [vmem:[#allocation4 + $0x2e8] sm:$0xff] }
0x100b   : > { %6571 = vmatprep.subr.bf16.mxu0 %v5102_v12  ;;  %6612 = vmatprep.subr.bf16.mxu1 %v5230_v58  ;;  %v5286_v12 = vld [vmem:[#allocation4 + $0x6e8] sm:$0xff]  ;;  %v5157_v58 = vld [vmem:[#allocation4 + $0x2e0] sm:$0xff] }
0x100e   : > { %6572 = vmatpush1.bf16.msra.mxu0 %v5101_v61  ;;  %6613 = vmatpush1.bf16.msra.mxu1 %v5229_v54  ;;  %v5285_v61 = vld [vmem:[#allocation4 + $0x6e0] sm:$0xff]  ;;  %v5166_v54 = vld [vmem:[#allocation4 + $0x328] sm:$0xff] }
0x100f   : > { %6573 = vmatprep.subr.bf16.mxu0 %v5110_v57  ;;  %6614 = vmatprep.subr.bf16.mxu1 %v5238_v2  ;;  %v5294_v57 = vld [vmem:[#allocation4 + $0x728] sm:$0xff]  ;;  %v5165_v2 = vld [vmem:[#allocation4 + $0x320] sm:$0xff] }
0x1010   : > { %v6269_v33 = vpop.f32.mrb[16].mxu0  ;;  %v6310_v11 = vpop.f32.mrb[16].mxu1 }
0x1011   : > { %v6270_v21 = vadd.f32 %v6269_v33, %v11927_v36  ;;  %v6271_v7 = vpop.f32.mrb[17].mxu0  ;;  %v6312_v55 = vpop.f32.mrb[17].mxu1  ;;  %v5254_v36 = vld [vmem:[#allocation4 + $0x5e8] sm:$0xff] }
0x1012   : > { %v6272_v15 = vadd.f32 %v6271_v7, %v11929_v19  ;;  %v6273_v16 = vpop.f32.mrb[18].mxu0  ;;  %v6314_v17 = vpop.f32.mrb[18].mxu1  ;;  %6574 = vmatpush1.bf16.msra.mxu0 %v5109_v9  ;;  %6615 = vmatpush1.bf16.msra.mxu1 %v5237_v10  ;;  %v5125_v19 = vld [vmem:[#allocation4 + $0x1e0] sm:$0xff]  ;;  %v5174_v10 = vld [vmem:[#allocation4 + $0x368] sm:$0xff] }
0x1013   : > { %v11937_v18 = vadd.f32 %v6310_v11, %v6270_v21  ;;  %v6274_v27 = vpop.f32.mrb[19].mxu0  ;;  %v6315_v34 = vpop.f32.mrb[19].mxu1  ;;  %6575 = vmatprep.subr.bf16.mxu0 %v5118_v59  ;;  %6616 = vmatprep.subr.bf16.mxu1 %v5246_v13  ;;  %v5293_v9 = vld [vmem:[#allocation4 + $0x720] sm:$0xff]  ;;  %v5302_v33 = vld [vmem:[#allocation4 + $0x768] sm:$0xff] }
0x1014   : > { %v11939_v62 = vadd.f32 %v6312_v55, %v6272_v15  ;;  %v5173_v11 = vld [vmem:[#allocation4 + $0x360] sm:$0xff]  ;;  %v5182_v13 = vld [vmem:[#allocation4 + $0x3a8] sm:$0xff] }
0x1015   : > { %v5301_v59 = vld [vmem:[#allocation4 + $0x760] sm:$0xff]  ;;  %v5310_v21 = vld [vmem:[#allocation4 + $0x7a8] sm:$0xff] }
0x1016   : > { %6576 = vmatpush1.bf16.msra.mxu0 %v5117_v1  ;;  %6617 = vmatpush1.bf16.msra.mxu1 %v5245_v37  ;;  %v5181_v7 = vld [vmem:[#allocation4 + $0x3a0] sm:$0xff]  ;;  %v5190_v15 = vld [vmem:[#allocation4 + $0x3e8] sm:$0xff] }
0x1017   : > { %6577 = vmatprep.subr.bf16.mxu0 %v5126_v45  ;;  %6618 = vmatprep.subr.bf16.mxu1 %v5254_v36  ;;  %v5309_v55 = vld [vmem:[#allocation4 + $0x7a0] sm:$0xff]  ;;  %v5318_v16 = vld [vmem:[#allocation4 + $0x7e8] sm:$0xff] }
0x1018   : > { %v5189_v17 = vld [vmem:[#allocation4 + $0x3e0] sm:$0xff]  ;;  %v5326_v34 = vld [vmem:[#allocation4 + $0x828] sm:$0xff] }
0x1019   : > { %v5317_v27 = vld [vmem:[#allocation4 + $0x7e0] sm:$0xff]  ;;  %v5454_v1 = vld [vmem:[#allocation4 + $0xc28] sm:$0xff] }
0x101a   : > { %6578 = vmatpush1.bf16.msra.mxu0 %v5125_v19  ;;  %6619 = vmatpush1.bf16.msra.mxu1 %v5253_v42  ;;  %v5325_v37 = vld [vmem:[#allocation4 + $0x820] sm:$0xff]  ;;  %v5334_v36 = vld [vmem:[#allocation4 + $0x868] sm:$0xff] }
0x101b   : > { %6579 = vmatprep.subr.bf16.mxu0 %v5134_v44  ;;  %6620 = vmatprep.subr.bf16.mxu1 %v5262_v41  ;;  %v5453_v45 = vld [vmem:[#allocation4 + $0xc20] sm:$0xff]  ;;  %v5462_v19 = vld [vmem:[#allocation4 + $0xc68] sm:$0xff] }
0x101c   : > { %v5333_v42 = vld [vmem:[#allocation4 + $0x860] sm:$0xff]  ;;  %v5342_v41 = vld [vmem:[#allocation4 + $0x8a8] sm:$0xff] }
0x101d   : > { %v5461_v44 = vld [vmem:[#allocation4 + $0xc60] sm:$0xff] }
0x101e   : > { %6580 = vmatpush1.bf16.msra.mxu0 %v5133_v38  ;;  %6621 = vmatpush1.bf16.msra.mxu1 %v5261_v56  ;;  %v5470_v38 = vld [vmem:[#allocation4 + $0xca8] sm:$0xff]  ;;  %v5341_v56 = vld [vmem:[#allocation4 + $0x8a0] sm:$0xff] }
0x101f   : > { %6581 = vmatprep.subr.bf16.mxu0 %v5142_v48  ;;  %6622 = vmatprep.subr.bf16.mxu1 %v5270_v29  ;;  %v5469_v48 = vld [vmem:[#allocation4 + $0xca0] sm:$0xff]  ;;  %v5350_v29 = vld [vmem:[#allocation4 + $0x8e8] sm:$0xff] }
0x1022   : > { %6582 = vmatpush1.bf16.msra.mxu0 %v5141_v8  ;;  %6623 = vmatpush1.bf16.msra.mxu1 %v5269_v23  ;;  %v5478_v8 = vld [vmem:[#allocation4 + $0xce8] sm:$0xff]  ;;  %v5349_v23 = vld [vmem:[#allocation4 + $0x8e0] sm:$0xff] }
0x1023   : > { %6583 = vmatprep.subr.bf16.mxu0 %v5150_v22  ;;  %6624 = vmatprep.subr.bf16.mxu1 %v5278_v47  ;;  %v5477_v22 = vld [vmem:[#allocation4 + $0xce0] sm:$0xff]  ;;  %v5358_v47 = vld [vmem:[#allocation4 + $0x928] sm:$0xff] }
0x1026   : > { %6584 = vmatpush1.bf16.msra.mxu0 %v5149_v24  ;;  %6625 = vmatpush1.bf16.msra.mxu1 %v5277_v6  ;;  %v5486_v24 = vld [vmem:[#allocation4 + $0xd28] sm:$0xff]  ;;  %v5357_v6 = vld [vmem:[#allocation4 + $0x920] sm:$0xff] }
0x1027   : > { %6585 = vmatprep.subr.bf16.mxu0 %v5158_v53  ;;  %6626 = vmatprep.subr.bf16.mxu1 %v5286_v12  ;;  %v5485_v53 = vld [vmem:[#allocation4 + $0xd20] sm:$0xff]  ;;  %v5366_v12 = vld [vmem:[#allocation4 + $0x968] sm:$0xff] }
0x102a   : > { %6586 = vmatpush1.bf16.msra.mxu0 %v5157_v58  ;;  %6627 = vmatpush1.bf16.msra.mxu1 %v5285_v61  ;;  %v5494_v58 = vld [vmem:[#allocation4 + $0xd68] sm:$0xff]  ;;  %v5365_v61 = vld [vmem:[#allocation4 + $0x960] sm:$0xff] }
0x102b   : > { %6587 = vmatprep.subr.bf16.mxu0 %v5166_v54  ;;  %6628 = vmatprep.subr.bf16.mxu1 %v5294_v57  ;;  %v5493_v54 = vld [vmem:[#allocation4 + $0xd60] sm:$0xff] }
0x102e   : > { %6588 = vmatpush1.bf16.msra.mxu0 %v5165_v2  ;;  %6629 = vmatpush1.bf16.msra.mxu1 %v5293_v9  ;;  %v5374_v9 = vld [vmem:[#allocation4 + $0x9a8] sm:$0xff] }
0x102f   : > { %6589 = vmatprep.subr.bf16.mxu0 %v5174_v10  ;;  %6630 = vmatprep.subr.bf16.mxu1 %v5302_v33  ;;  %v5502_v10 = vld [vmem:[#allocation4 + $0xda8] sm:$0xff] }
0x1032   : > { %6590 = vmatpush1.bf16.msra.mxu0 %v5173_v11  ;;  %6631 = vmatpush1.bf16.msra.mxu1 %v5301_v59 }
0x1033   : > { %6591 = vmatprep.subr.bf16.mxu0 %v5182_v13  ;;  %6632 = vmatprep.subr.bf16.mxu1 %v5310_v21 }
0x1036   : > { %6592 = vmatpush1.bf16.msra.mxu0 %v5181_v7  ;;  %6633 = vmatpush1.bf16.msra.mxu1 %v5309_v55 }
0x1037   : > { %6593 = vmatprep.subr.bf16.mxu0 %v5190_v15  ;;  %6634 = vmatprep.subr.bf16.mxu1 %v5318_v16 }
0x103a   : > { %6594 = vmatpush1.bf16.msra.mxu0 %v5189_v17  ;;  %6635 = vmatpush1.bf16.msra.mxu1 %v5317_v27  ;;  %v5373_v17 = vld [vmem:[#allocation4 + $0x9a0] sm:$0xff] }
0x103b   : > { %6645 = vmatprep.subr.bf16.mxu0 %v5326_v34  ;;  %6686 = vmatprep.subr.bf16.mxu1 %v5454_v1  ;;  %v5501_v27 = vld [vmem:[#allocation4 + $0xda0] sm:$0xff]  ;;  %v5382_v1 = vld [vmem:[#allocation4 + $0x9e8] sm:$0xff] }
0x103d   : > { %6596 = vmatmul.mubr.bf16.vlgmr.msra.gmra.mrb[32].mxu0 %v11843_v49  ;;  %6637 = vmatmul.mubr.bf16.vlgmr.msra.gmra.mrb[32].mxu1 %v11847_v0 }
0x103e   : > { %6646 = vmatpush1.bf16.msra.mxu0 %v5325_v37  ;;  %6687 = vmatpush1.bf16.msra.mxu1 %v5453_v45  ;;  %v5509_v37 = vld [vmem:[#allocation4 + $0xde0] sm:$0xff]  ;;  %v5390_v45 = vld [vmem:[#allocation4 + $0xa28] sm:$0xff] }
0x103f   : > { %6647 = vmatprep.subr.bf16.mxu0 %v5334_v36  ;;  %6688 = vmatprep.subr.bf16.mxu1 %v5462_v19  ;;  %v5518_v36 = vld [vmem:[#allocation4 + $0xe28] sm:$0xff]  ;;  %v5389_v19 = vld [vmem:[#allocation4 + $0xa20] sm:$0xff] }
0x1040   : > { %6677 = vmatprep.mubr.bf16.mxu0 %v11849_v52  ;;  %6718 = vmatprep.mubr.bf16.mxu1 %v11851_v14 }
0x1042   : > { %6648 = vmatpush1.bf16.msra.mxu0 %v5333_v42  ;;  %6689 = vmatpush1.bf16.msra.mxu1 %v5461_v44  ;;  %v5517_v42 = vld [vmem:[#allocation4 + $0xe20] sm:$0xff]  ;;  %v5398_v44 = vld [vmem:[#allocation4 + $0xa68] sm:$0xff] }
0x1043   : > { %6649 = vmatprep.subr.bf16.mxu0 %v5342_v41  ;;  %6690 = vmatprep.subr.bf16.mxu1 %v5470_v38  ;;  %v5526_v41 = vld [vmem:[#allocation4 + $0xe68] sm:$0xff]  ;;  %v5397_v38 = vld [vmem:[#allocation4 + $0xa60] sm:$0xff] }
0x1046   : > { %6650 = vmatpush1.bf16.msra.mxu0 %v5341_v56  ;;  %6691 = vmatpush1.bf16.msra.mxu1 %v5469_v48  ;;  %v5525_v56 = vld [vmem:[#allocation4 + $0xe60] sm:$0xff]  ;;  %v5406_v48 = vld [vmem:[#allocation4 + $0xaa8] sm:$0xff] }
0x1047   : > { %6651 = vmatprep.subr.bf16.mxu0 %v5350_v29  ;;  %6692 = vmatprep.subr.bf16.mxu1 %v5478_v8  ;;  %v5534_v29 = vld [vmem:[#allocation4 + $0xea8] sm:$0xff]  ;;  %v5405_v8 = vld [vmem:[#allocation4 + $0xaa0] sm:$0xff] }
0x104a   : > { %6652 = vmatpush1.bf16.msra.mxu0 %v5349_v23  ;;  %6693 = vmatpush1.bf16.msra.mxu1 %v5477_v22  ;;  %v5533_v23 = vld [vmem:[#allocation4 + $0xea0] sm:$0xff]  ;;  %v5414_v22 = vld [vmem:[#allocation4 + $0xae8] sm:$0xff] }
0x104b   : > { %6653 = vmatprep.subr.bf16.mxu0 %v5358_v47  ;;  %6694 = vmatprep.subr.bf16.mxu1 %v5486_v24  ;;  %v5542_v47 = vld [vmem:[#allocation4 + $0xee8] sm:$0xff]  ;;  %v5413_v24 = vld [vmem:[#allocation4 + $0xae0] sm:$0xff] }
0x104e   : > { %6654 = vmatpush1.bf16.msra.mxu0 %v5357_v6  ;;  %6695 = vmatpush1.bf16.msra.mxu1 %v5485_v53  ;;  %v5541_v6 = vld [vmem:[#allocation4 + $0xee0] sm:$0xff]  ;;  %v5422_v53 = vld [vmem:[#allocation4 + $0xb28] sm:$0xff] }
0x104f   : > { %6655 = vmatprep.subr.bf16.mxu0 %v5366_v12  ;;  %6696 = vmatprep.subr.bf16.mxu1 %v5494_v58  ;;  %v5550_v12 = vld [vmem:[#allocation4 + $0xf28] sm:$0xff]  ;;  %v5421_v58 = vld [vmem:[#allocation4 + $0xb20] sm:$0xff] }
0x1050   : > { %v6351_v57 = vpop.f32.mrb[20].mxu0  ;;  %v6392_v2 = vpop.f32.mrb[20].mxu1 }
0x1051   : > { %v6352_v33 = vadd.f32 %v6351_v57, %v11885_v5  ;;  %v6353_v11 = vpop.f32.mrb[21].mxu0  ;;  %v6394_v59 = vpop.f32.mrb[21].mxu1  ;;  %v5510_v5 = vld [vmem:[#allocation4 + $0xde8] sm:$0xff] }
0x1052   : > { %v6354_v13 = vadd.f32 %v6353_v11, %v11889_v3  ;;  %v6355_v21 = vpop.f32.mrb[22].mxu0  ;;  %v6396_v7 = vpop.f32.mrb[22].mxu1  ;;  %6656 = vmatpush1.bf16.msra.mxu0 %v5365_v61  ;;  %6697 = vmatpush1.bf16.msra.mxu1 %v5493_v54  ;;  %v5381_v3 = vld [vmem:[#allocation4 + $0x9e0] sm:$0xff]  ;;  %v5430_v54 = vld [vmem:[#allocation4 + $0xb68] sm:$0xff] }
0x1053   : > { %v11947_v55 = vadd.f32 %v6392_v2, %v6352_v33  ;;  %v6356_v15 = vpop.f32.mrb[23].mxu0  ;;  %v6397_v16 = vpop.f32.mrb[23].mxu1  ;;  %6657 = vmatprep.subr.bf16.mxu0 %v5374_v9  ;;  %6698 = vmatprep.subr.bf16.mxu1 %v5502_v10  ;;  %v5549_v61 = vld [vmem:[#allocation4 + $0xf20] sm:$0xff]  ;;  %v5558_v57 = vld [vmem:[#allocation4 + $0xf68] sm:$0xff] }
0x1054   : > { %v11949_v34 = vadd.f32 %v6394_v59, %v6354_v13  ;;  %v5429_v2 = vld [vmem:[#allocation4 + $0xb60] sm:$0xff]  ;;  %v5438_v10 = vld [vmem:[#allocation4 + $0xba8] sm:$0xff] }
0x1055   : > { %v5557_v9 = vld [vmem:[#allocation4 + $0xf60] sm:$0xff]  ;;  %v5566_v33 = vld [vmem:[#allocation4 + $0xfa8] sm:$0xff] }
0x1056   : > { %6658 = vmatpush1.bf16.msra.mxu0 %v5373_v17  ;;  %6699 = vmatpush1.bf16.msra.mxu1 %v5501_v27  ;;  %v5437_v11 = vld [vmem:[#allocation4 + $0xba0] sm:$0xff]  ;;  %v5446_v13 = vld [vmem:[#allocation4 + $0xbe8] sm:$0xff] }
0x1057   : > { %6659 = vmatprep.subr.bf16.mxu0 %v5382_v1  ;;  %6700 = vmatprep.subr.bf16.mxu1 %v5510_v5  ;;  %v5565_v59 = vld [vmem:[#allocation4 + $0xfa0] sm:$0xff]  ;;  %v5574_v21 = vld [vmem:[#allocation4 + $0xfe8] sm:$0xff] }
0x1058   : > { %v5445_v7 = vld [vmem:[#allocation4 + $0xbe0] sm:$0xff]  ;;  %v5582_v16 = vld [vmem:[#allocation4 + $0x1028] sm:$0xff] }
0x1059   : > { %v5573_v15 = vld [vmem:[#allocation4 + $0xfe0] sm:$0xff]  ;;  %v5710_v17 = vld [vmem:[#allocation4 + $0x1428] sm:$0xff] }
0x105a   : > { %6660 = vmatpush1.bf16.msra.mxu0 %v5381_v3  ;;  %6701 = vmatpush1.bf16.msra.mxu1 %v5509_v37  ;;  %v5581_v27 = vld [vmem:[#allocation4 + $0x1020] sm:$0xff]  ;;  %v5590_v5 = vld [vmem:[#allocation4 + $0x1068] sm:$0xff] }
0x105b   : > { %6661 = vmatprep.subr.bf16.mxu0 %v5390_v45  ;;  %6702 = vmatprep.subr.bf16.mxu1 %v5518_v36  ;;  %v5709_v1 = vld [vmem:[#allocation4 + $0x1420] sm:$0xff]  ;;  %v5718_v3 = vld [vmem:[#allocation4 + $0x1468] sm:$0xff] }
0x105c   : > { %v5589_v37 = vld [vmem:[#allocation4 + $0x1060] sm:$0xff]  ;;  %v5598_v36 = vld [vmem:[#allocation4 + $0x10a8] sm:$0xff] }
0x105d   : > { %v5717_v45 = vld [vmem:[#allocation4 + $0x1460] sm:$0xff] }
0x105e   : > { %6662 = vmatpush1.bf16.msra.mxu0 %v5389_v19  ;;  %6703 = vmatpush1.bf16.msra.mxu1 %v5517_v42  ;;  %v5726_v19 = vld [vmem:[#allocation4 + $0x14a8] sm:$0xff]  ;;  %v5597_v42 = vld [vmem:[#allocation4 + $0x10a0] sm:$0xff] }
0x105f   : > { %6663 = vmatprep.subr.bf16.mxu0 %v5398_v44  ;;  %6704 = vmatprep.subr.bf16.mxu1 %v5526_v41  ;;  %v5725_v44 = vld [vmem:[#allocation4 + $0x14a0] sm:$0xff]  ;;  %v5606_v41 = vld [vmem:[#allocation4 + $0x10e8] sm:$0xff] }
0x1062   : > { %6664 = vmatpush1.bf16.msra.mxu0 %v5397_v38  ;;  %6705 = vmatpush1.bf16.msra.mxu1 %v5525_v56  ;;  %v5734_v38 = vld [vmem:[#allocation4 + $0x14e8] sm:$0xff]  ;;  %v5605_v56 = vld [vmem:[#allocation4 + $0x10e0] sm:$0xff] }
0x1063   : > { %6665 = vmatprep.subr.bf16.mxu0 %v5406_v48  ;;  %6706 = vmatprep.subr.bf16.mxu1 %v5534_v29  ;;  %v5733_v48 = vld [vmem:[#allocation4 + $0x14e0] sm:$0xff]  ;;  %v5614_v29 = vld [vmem:[#allocation4 + $0x1128] sm:$0xff] }
0x1066   : > { %6666 = vmatpush1.bf16.msra.mxu0 %v5405_v8  ;;  %6707 = vmatpush1.bf16.msra.mxu1 %v5533_v23  ;;  %v5742_v8 = vld [vmem:[#allocation4 + $0x1528] sm:$0xff]  ;;  %v5613_v23 = vld [vmem:[#allocation4 + $0x1120] sm:$0xff] }
0x1067   : > { %6667 = vmatprep.subr.bf16.mxu0 %v5414_v22  ;;  %6708 = vmatprep.subr.bf16.mxu1 %v5542_v47  ;;  %v5741_v22 = vld [vmem:[#allocation4 + $0x1520] sm:$0xff]  ;;  %v5622_v47 = vld [vmem:[#allocation4 + $0x1168] sm:$0xff] }
0x106a   : > { %6668 = vmatpush1.bf16.msra.mxu0 %v5413_v24  ;;  %6709 = vmatpush1.bf16.msra.mxu1 %v5541_v6  ;;  %v5750_v24 = vld [vmem:[#allocation4 + $0x1568] sm:$0xff]  ;;  %v5621_v6 = vld [vmem:[#allocation4 + $0x1160] sm:$0xff] }
0x106b   : > { %6669 = vmatprep.subr.bf16.mxu0 %v5422_v53  ;;  %6710 = vmatprep.subr.bf16.mxu1 %v5550_v12  ;;  %v5749_v53 = vld [vmem:[#allocation4 + $0x1560] sm:$0xff] }
0x106e   : > { %6670 = vmatpush1.bf16.msra.mxu0 %v5421_v58  ;;  %6711 = vmatpush1.bf16.msra.mxu1 %v5549_v61  ;;  %v5630_v61 = vld [vmem:[#allocation4 + $0x11a8] sm:$0xff] }
0x106f   : > { %6671 = vmatprep.subr.bf16.mxu0 %v5430_v54  ;;  %6712 = vmatprep.subr.bf16.mxu1 %v5558_v57  ;;  %v5758_v54 = vld [vmem:[#allocation4 + $0x15a8] sm:$0xff] }
0x1072   : > { %6672 = vmatpush1.bf16.msra.mxu0 %v5429_v2  ;;  %6713 = vmatpush1.bf16.msra.mxu1 %v5557_v9 }
0x1073   : > { %6673 = vmatprep.subr.bf16.mxu0 %v5438_v10  ;;  %6714 = vmatprep.subr.bf16.mxu1 %v5566_v33 }
0x1076   : > { %6674 = vmatpush1.bf16.msra.mxu0 %v5437_v11  ;;  %6715 = vmatpush1.bf16.msra.mxu1 %v5565_v59 }
0x1077   : > { %6675 = vmatprep.subr.bf16.mxu0 %v5446_v13  ;;  %6716 = vmatprep.subr.bf16.mxu1 %v5574_v21 }
0x107a   : > { %6676 = vmatpush1.bf16.msra.mxu0 %v5445_v7  ;;  %6717 = vmatpush1.bf16.msra.mxu1 %v5573_v15  ;;  %v5629_v7 = vld [vmem:[#allocation4 + $0x11a0] sm:$0xff] }
0x107b   : > { %6727 = vmatprep.subr.bf16.mxu0 %v5582_v16  ;;  %6768 = vmatprep.subr.bf16.mxu1 %v5710_v17  ;;  %v5757_v15 = vld [vmem:[#allocation4 + $0x15a0] sm:$0xff]  ;;  %v5638_v17 = vld [vmem:[#allocation4 + $0x11e8] sm:$0xff] }
0x107d   : > { %6678 = vmatmul.mubr.bf16.vlgmr.msra.gmra.mrb[36].mxu0 %v11869_v31  ;;  %6719 = vmatmul.mubr.bf16.vlgmr.msra.gmra.mrb[36].mxu1 %v11873_v4 }
0x107e   : > { %6728 = vmatpush1.bf16.msra.mxu0 %v5581_v27  ;;  %6769 = vmatpush1.bf16.msra.mxu1 %v5709_v1  ;;  %v5765_v27 = vld [vmem:[#allocation4 + $0x15e0] sm:$0xff]  ;;  %v5646_v1 = vld [vmem:[#allocation4 + $0x1228] sm:$0xff] }
0x107f   : > { %6729 = vmatprep.subr.bf16.mxu0 %v5590_v5  ;;  %6770 = vmatprep.subr.bf16.mxu1 %v5718_v3  ;;  %v5774_v5 = vld [vmem:[#allocation4 + $0x1628] sm:$0xff]  ;;  %v5645_v3 = vld [vmem:[#allocation4 + $0x1220] sm:$0xff] }
0x1080   : > { %6759 = vmatprep.mubr.bf16.mxu0 %v11875_v20  ;;  %6800 = vmatprep.mubr.bf16.mxu1 %v11877_v43 }
0x1082   : > { %6730 = vmatpush1.bf16.msra.mxu0 %v5589_v37  ;;  %6771 = vmatpush1.bf16.msra.mxu1 %v5717_v45  ;;  %v5773_v37 = vld [vmem:[#allocation4 + $0x1620] sm:$0xff]  ;;  %v5654_v45 = vld [vmem:[#allocation4 + $0x1268] sm:$0xff] }
0x1083   : > { %6731 = vmatprep.subr.bf16.mxu0 %v5598_v36  ;;  %6772 = vmatprep.subr.bf16.mxu1 %v5726_v19  ;;  %v5782_v36 = vld [vmem:[#allocation4 + $0x1668] sm:$0xff]  ;;  %v5653_v19 = vld [vmem:[#allocation4 + $0x1260] sm:$0xff] }
0x1086   : > { %6732 = vmatpush1.bf16.msra.mxu0 %v5597_v42  ;;  %6773 = vmatpush1.bf16.msra.mxu1 %v5725_v44  ;;  %v5781_v42 = vld [vmem:[#allocation4 + $0x1660] sm:$0xff]  ;;  %v5662_v44 = vld [vmem:[#allocation4 + $0x12a8] sm:$0xff] }
0x1087   : > { %6733 = vmatprep.subr.bf16.mxu0 %v5606_v41  ;;  %6774 = vmatprep.subr.bf16.mxu1 %v5734_v38  ;;  %v5790_v41 = vld [vmem:[#allocation4 + $0x16a8] sm:$0xff]  ;;  %v5661_v38 = vld [vmem:[#allocation4 + $0x12a0] sm:$0xff] }
0x108a   : > { %6734 = vmatpush1.bf16.msra.mxu0 %v5605_v56  ;;  %6775 = vmatpush1.bf16.msra.mxu1 %v5733_v48  ;;  %v5789_v56 = vld [vmem:[#allocation4 + $0x16a0] sm:$0xff]  ;;  %v5670_v48 = vld [vmem:[#allocation4 + $0x12e8] sm:$0xff] }
0x108b   : > { %6735 = vmatprep.subr.bf16.mxu0 %v5614_v29  ;;  %6776 = vmatprep.subr.bf16.mxu1 %v5742_v8  ;;  %v5798_v29 = vld [vmem:[#allocation4 + $0x16e8] sm:$0xff]  ;;  %v5669_v8 = vld [vmem:[#allocation4 + $0x12e0] sm:$0xff] }
0x108e   : > { %6736 = vmatpush1.bf16.msra.mxu0 %v5613_v23  ;;  %6777 = vmatpush1.bf16.msra.mxu1 %v5741_v22  ;;  %v5797_v23 = vld [vmem:[#allocation4 + $0x16e0] sm:$0xff]  ;;  %v5678_v22 = vld [vmem:[#allocation4 + $0x1328] sm:$0xff] }
0x108f   : > { %6737 = vmatprep.subr.bf16.mxu0 %v5622_v47  ;;  %6778 = vmatprep.subr.bf16.mxu1 %v5750_v24  ;;  %v5806_v47 = vld [vmem:[#allocation4 + $0x1728] sm:$0xff]  ;;  %v5677_v24 = vld [vmem:[#allocation4 + $0x1320] sm:$0xff] }
0x1090   : > { %v6433_v12 = vpop.f32.mrb[24].mxu0  ;;  %v6474_v58 = vpop.f32.mrb[24].mxu1 }
0x1091   : > { %v6434_v57 = vadd.f32 %v6433_v12, %v11947_v55  ;;  %v6435_v2 = vpop.f32.mrb[25].mxu0  ;;  %v6476_v9 = vpop.f32.mrb[25].mxu1  ;;  %v5766_v55 = vld [vmem:[#allocation4 + $0x15e8] sm:$0xff] }
0x1092   : > { %v6436_v10 = vadd.f32 %v6435_v2, %v11949_v34  ;;  %v6437_v33 = vpop.f32.mrb[26].mxu0  ;;  %v6478_v11 = vpop.f32.mrb[26].mxu1  ;;  %6738 = vmatpush1.bf16.msra.mxu0 %v5621_v6  ;;  %6779 = vmatpush1.bf16.msra.mxu1 %v5749_v53  ;;  %v5637_v34 = vld [vmem:[#allocation4 + $0x11e0] sm:$0xff]  ;;  %v5686_v53 = vld [vmem:[#allocation4 + $0x1368] sm:$0xff] }
0x1093   : > { %v11957_v59 = vadd.f32 %v6474_v58, %v6434_v57  ;;  %v6438_v13 = vpop.f32.mrb[27].mxu0  ;;  %v6479_v21 = vpop.f32.mrb[27].mxu1  ;;  %6739 = vmatprep.subr.bf16.mxu0 %v5630_v61  ;;  %6780 = vmatprep.subr.bf16.mxu1 %v5758_v54  ;;  %v5805_v6 = vld [vmem:[#allocation4 + $0x1720] sm:$0xff]  ;;  %v5814_v12 = vld [vmem:[#allocation4 + $0x1768] sm:$0xff] }
0x1094   : > { %v11959_v16 = vadd.f32 %v6476_v9, %v6436_v10  ;;  %v5685_v58 = vld [vmem:[#allocation4 + $0x1360] sm:$0xff]  ;;  %v5694_v54 = vld [vmem:[#allocation4 + $0x13a8] sm:$0xff]  ;;  %v5072_v21 = vld [vmem:[#allocation4 + $0x38] sm:$0xff] }
0x1095   : > { %v5813_v61 = vld [vmem:[#allocation4 + $0x1760] sm:$0xff]  ;;  %v5822_v57 = vld [vmem:[#allocation4 + $0x17a8] sm:$0xff] }
0x1096   : > { %6740 = vmatpush1.bf16.msra.mxu0 %v5629_v7  ;;  %6781 = vmatpush1.bf16.msra.mxu1 %v5757_v15  ;;  %v5693_v2 = vld [vmem:[#allocation4 + $0x13a0] sm:$0xff]  ;;  %v5702_v10 = vld [vmem:[#allocation4 + $0x13e8] sm:$0xff]  ;;  %v5200_v7 = vld [vmem:[#allocation4 + $0x438] sm:$0xff] }
0x1097   : > { %6741 = vmatprep.subr.bf16.mxu0 %v5638_v17  ;;  %6782 = vmatprep.subr.bf16.mxu1 %v5766_v55  ;;  %v5821_v9 = vld [vmem:[#allocation4 + $0x17a0] sm:$0xff]  ;;  %v5830_v33 = vld [vmem:[#allocation4 + $0x17e8] sm:$0xff]  ;;  %v5071_v15 = vld [vmem:[#allocation4 + $0x30] sm:$0xff] }
0x1098   : > { %v5701_v11 = vld [vmem:[#allocation4 + $0x13e0] sm:$0xff]  ;;  %v5199_v17 = vld [vmem:[#allocation4 + $0x430] sm:$0xff]  ;;  %v5080_v55 = vld [vmem:[#allocation4 + $0x78] sm:$0xff] }
0x1099   : > { %v5829_v13 = vld [vmem:[#allocation4 + $0x17e0] sm:$0xff] }
0x109a   : > { %6742 = vmatpush1.bf16.msra.mxu0 %v5637_v34  ;;  %6783 = vmatpush1.bf16.msra.mxu1 %v5765_v27  ;;  %v5208_v34 = vld [vmem:[#allocation4 + $0x478] sm:$0xff]  ;;  %v5079_v27 = vld [vmem:[#allocation4 + $0x70] sm:$0xff] }
0x109b   : > { %6743 = vmatprep.subr.bf16.mxu0 %v5646_v1  ;;  %6784 = vmatprep.subr.bf16.mxu1 %v5774_v5  ;;  %v5207_v1 = vld [vmem:[#allocation4 + $0x470] sm:$0xff]  ;;  %v5088_v5 = vld [vmem:[#allocation4 + $0xb8] sm:$0xff] }
0x109e   : > { %6744 = vmatpush1.bf16.msra.mxu0 %v5645_v3  ;;  %6785 = vmatpush1.bf16.msra.mxu1 %v5773_v37  ;;  %v5216_v3 = vld [vmem:[#allocation4 + $0x4b8] sm:$0xff]  ;;  %v5087_v37 = vld [vmem:[#allocation4 + $0xb0] sm:$0xff] }
0x109f   : > { %6745 = vmatprep.subr.bf16.mxu0 %v5654_v45  ;;  %6786 = vmatprep.subr.bf16.mxu1 %v5782_v36  ;;  %v5215_v45 = vld [vmem:[#allocation4 + $0x4b0] sm:$0xff]  ;;  %v5096_v36 = vld [vmem:[#allocation4 + $0xf8] sm:$0xff] }
0x10a2   : > { %6746 = vmatpush1.bf16.msra.mxu0 %v5653_v19  ;;  %6787 = vmatpush1.bf16.msra.mxu1 %v5781_v42  ;;  %v5224_v19 = vld [vmem:[#allocation4 + $0x4f8] sm:$0xff]  ;;  %v5095_v42 = vld [vmem:[#allocation4 + $0xf0] sm:$0xff] }
0x10a3   : > { %6747 = vmatprep.subr.bf16.mxu0 %v5662_v44  ;;  %6788 = vmatprep.subr.bf16.mxu1 %v5790_v41  ;;  %v5223_v44 = vld [vmem:[#allocation4 + $0x4f0] sm:$0xff]  ;;  %v5104_v41 = vld [vmem:[#allocation4 + $0x138] sm:$0xff] }
0x10a6   : > { %6748 = vmatpush1.bf16.msra.mxu0 %v5661_v38  ;;  %6789 = vmatpush1.bf16.msra.mxu1 %v5789_v56  ;;  %v5232_v38 = vld [vmem:[#allocation4 + $0x538] sm:$0xff] }
0x10a7   : > { %6749 = vmatprep.subr.bf16.mxu0 %v5670_v48  ;;  %6790 = vmatprep.subr.bf16.mxu1 %v5798_v29  ;;  %v5112_v56 = vld [vmem:[#allocation4 + $0x178] sm:$0xff]  ;;  %v5111_v29 = vld [vmem:[#allocation4 + $0x170] sm:$0xff] }
0x10a8   : > { %v5240_v48 = vld [vmem:[#allocation4 + $0x578] sm:$0xff] }
0x10aa   : > { %6750 = vmatpush1.bf16.msra.mxu0 %v5669_v8  ;;  %6791 = vmatpush1.bf16.msra.mxu1 %v5797_v23  ;;  %v5239_v8 = vld [vmem:[#allocation4 + $0x570] sm:$0xff] }
0x10ab   : > { %6751 = vmatprep.subr.bf16.mxu0 %v5678_v22  ;;  %6792 = vmatprep.subr.bf16.mxu1 %v5806_v47  ;;  %v5120_v47 = vld [vmem:[#allocation4 + $0x1b8] sm:$0xff] }
0x10ae   : > { %6752 = vmatpush1.bf16.msra.mxu0 %v5677_v24  ;;  %6793 = vmatpush1.bf16.msra.mxu1 %v5805_v6  ;;  %v5248_v24 = vld [vmem:[#allocation4 + $0x5b8] sm:$0xff] }
0x10af   : > { %6753 = vmatprep.subr.bf16.mxu0 %v5686_v53  ;;  %6794 = vmatprep.subr.bf16.mxu1 %v5814_v12 }
0x10b2   : > { %6754 = vmatpush1.bf16.msra.mxu0 %v5685_v58  ;;  %6795 = vmatpush1.bf16.msra.mxu1 %v5813_v61 }
0x10b3   : > { %6755 = vmatprep.subr.bf16.mxu0 %v5694_v54  ;;  %6796 = vmatprep.subr.bf16.mxu1 %v5822_v57 }
0x10b6   : > { %6756 = vmatpush1.bf16.msra.mxu0 %v5693_v2  ;;  %6797 = vmatpush1.bf16.msra.mxu1 %v5821_v9 }
0x10b7   : > { %6757 = vmatprep.subr.bf16.mxu0 %v5702_v10  ;;  %6798 = vmatprep.subr.bf16.mxu1 %v5830_v33  ;;  %v5119_v10 = vld [vmem:[#allocation4 + $0x1b0] sm:$0xff] }
0x10b8   : > { %v5247_v33 = vld [vmem:[#allocation4 + $0x5b0] sm:$0xff] }
0x10ba   : > { %6758 = vmatpush1.bf16.msra.mxu0 %v5701_v11  ;;  %6799 = vmatpush1.bf16.msra.mxu1 %v5829_v13  ;;  %v5128_v13 = vld [vmem:[#allocation4 + $0x1f8] sm:$0xff] }
0x10bb   : > { %6809 = vmatprep.subr.bf16.mxu0 %v5072_v21  ;;  %6850 = vmatprep.subr.bf16.mxu1 %v5200_v7  ;;  %v5255_v21 = vld [vmem:[#allocation4 + $0x5f0] sm:$0xff]  ;;  %v5136_v7 = vld [vmem:[#allocation4 + $0x238] sm:$0xff] }
0x10bd   : > { %6760 = vmatmul.mubr.bf16.vlgmr.msra.gmra.mrb[40].mxu0 %v11893_v46  ;;  %6801 = vmatmul.mubr.bf16.vlgmr.msra.gmra.mrb[40].mxu1 %v11897_v63 }
0x10be   : > { %6810 = vmatpush1.bf16.msra.mxu0 %v5071_v15  ;;  %6851 = vmatpush1.bf16.msra.mxu1 %v5199_v17  ;;  %v5264_v15 = vld [vmem:[#allocation4 + $0x638] sm:$0xff]  ;;  %v5135_v17 = vld [vmem:[#allocation4 + $0x230] sm:$0xff] }
0x10bf   : > { %6811 = vmatprep.subr.bf16.mxu0 %v5080_v55  ;;  %6852 = vmatprep.subr.bf16.mxu1 %v5208_v34  ;;  %v5263_v55 = vld [vmem:[#allocation4 + $0x630] sm:$0xff]  ;;  %v5144_v34 = vld [vmem:[#allocation4 + $0x278] sm:$0xff] }
0x10c0   : > { %6841 = vmatprep.mubr.bf16.mxu0 %v11823_v40  ;;  %6882 = vmatprep.mubr.bf16.mxu1 %v11825_v50  ;;  %v5103_v40 = vld [vmem:[#allocation4 + $0x130] sm:$0xff] }
0x10c1   : > { %v5231_v50 = vld [vmem:[#allocation4 + $0x530] sm:$0xff] }
0x10c2   : > { %6812 = vmatpush1.bf16.msra.mxu0 %v5079_v27  ;;  %6853 = vmatpush1.bf16.msra.mxu1 %v5207_v1  ;;  %v5272_v27 = vld [vmem:[#allocation4 + $0x678] sm:$0xff]  ;;  %v5143_v1 = vld [vmem:[#allocation4 + $0x270] sm:$0xff] }
0x10c3   : > { %6813 = vmatprep.subr.bf16.mxu0 %v5088_v5  ;;  %6854 = vmatprep.subr.bf16.mxu1 %v5216_v3  ;;  %v5271_v5 = vld [vmem:[#allocation4 + $0x670] sm:$0xff]  ;;  %v5152_v3 = vld [vmem:[#allocation4 + $0x2b8] sm:$0xff] }
0x10c6   : > { %6814 = vmatpush1.bf16.msra.mxu0 %v5087_v37  ;;  %6855 = vmatpush1.bf16.msra.mxu1 %v5215_v45  ;;  %v5280_v37 = vld [vmem:[#allocation4 + $0x6b8] sm:$0xff]  ;;  %v5151_v45 = vld [vmem:[#allocation4 + $0x2b0] sm:$0xff] }
0x10c7   : > { %6815 = vmatprep.subr.bf16.mxu0 %v5096_v36  ;;  %6856 = vmatprep.subr.bf16.mxu1 %v5224_v19  ;;  %v5279_v36 = vld [vmem:[#allocation4 + $0x6b0] sm:$0xff]  ;;  %v5160_v19 = vld [vmem:[#allocation4 + $0x2f8] sm:$0xff] }
0x10ca   : > { %6816 = vmatpush1.bf16.msra.mxu0 %v5095_v42  ;;  %6857 = vmatpush1.bf16.msra.mxu1 %v5223_v44  ;;  %v5288_v42 = vld [vmem:[#allocation4 + $0x6f8] sm:$0xff]  ;;  %v5159_v44 = vld [vmem:[#allocation4 + $0x2f0] sm:$0xff] }
0x10cb   : > { %6817 = vmatprep.subr.bf16.mxu0 %v5104_v41  ;;  %6858 = vmatprep.subr.bf16.mxu1 %v5232_v38  ;;  %v5287_v41 = vld [vmem:[#allocation4 + $0x6f0] sm:$0xff]  ;;  %v5168_v38 = vld [vmem:[#allocation4 + $0x338] sm:$0xff] }
0x10ce   : > { %6818 = vmatpush1.bf16.msra.mxu0 %v5103_v40  ;;  %6859 = vmatpush1.bf16.msra.mxu1 %v5231_v50  ;;  %v5296_v40 = vld [vmem:[#allocation4 + $0x738] sm:$0xff]  ;;  %v5167_v50 = vld [vmem:[#allocation4 + $0x330] sm:$0xff] }
0x10cf   : > { %6819 = vmatprep.subr.bf16.mxu0 %v5112_v56  ;;  %6860 = vmatprep.subr.bf16.mxu1 %v5240_v48  ;;  %v5295_v56 = vld [vmem:[#allocation4 + $0x730] sm:$0xff]  ;;  %v5176_v48 = vld [vmem:[#allocation4 + $0x378] sm:$0xff] }
0x10d0   : > { %v6515_v23 = vpop.f32.mrb[28].mxu0  ;;  %v6556_v22 = vpop.f32.mrb[28].mxu1 }
0x10d1   : > { %v6516_v6 = vadd.f32 %v6515_v23, %v11957_v59  ;;  %v6517_v53 = vpop.f32.mrb[29].mxu0  ;;  %v6558_v12 = vpop.f32.mrb[29].mxu1  ;;  %v5256_v59 = vld [vmem:[#allocation4 + $0x5f8] sm:$0xff]  ;;  %v5303_v23 = vld [vmem:[#allocation4 + $0x770] sm:$0xff] }
0x10d2   : > { %v6518_v58 = vadd.f32 %v6517_v53, %v11959_v16  ;;  %v6519_v61 = vpop.f32.mrb[30].mxu0  ;;  %v6560_v54 = vpop.f32.mrb[30].mxu1  ;;  %6820 = vmatpush1.bf16.msra.mxu0 %v5111_v29  ;;  %6861 = vmatpush1.bf16.msra.mxu1 %v5239_v8  ;;  %v5127_v16 = vld [vmem:[#allocation4 + $0x1f0] sm:$0xff]  ;;  %v5304_v29 = vld [vmem:[#allocation4 + $0x778] sm:$0xff] }
0x10d3   : > { %v11967_v57 = vadd.f32 %v6556_v22, %v6516_v6  ;;  %v6520_v2 = vpop.f32.mrb[31].mxu0  ;;  %v6561_v9 = vpop.f32.mrb[31].mxu1  ;;  %6821 = vmatprep.subr.bf16.mxu0 %v5120_v47  ;;  %6862 = vmatprep.subr.bf16.mxu1 %v5248_v24  ;;  %v5175_v8 = vld [vmem:[#allocation4 + $0x370] sm:$0xff]  ;;  %v5184_v22 = vld [vmem:[#allocation4 + $0x3b8] sm:$0xff] }
0x10d4   : > { %v11969_v11 = vadd.f32 %v6558_v12, %v6518_v58  ;;  %v5312_v47 = vld [vmem:[#allocation4 + $0x7b8] sm:$0xff]  ;;  %v5183_v24 = vld [vmem:[#allocation4 + $0x3b0] sm:$0xff] }
0x10d5   : > { %v5311_v6 = vld [vmem:[#allocation4 + $0x7b0] sm:$0xff]  ;;  %v5192_v53 = vld [vmem:[#allocation4 + $0x3f8] sm:$0xff] }
0x10d6   : > { %6822 = vmatpush1.bf16.msra.mxu0 %v5119_v10  ;;  %6863 = vmatpush1.bf16.msra.mxu1 %v5247_v33  ;;  %v5320_v12 = vld [vmem:[#allocation4 + $0x7f8] sm:$0xff]  ;;  %v5191_v58 = vld [vmem:[#allocation4 + $0x3f0] sm:$0xff] }
0x10d7   : > { %6823 = vmatprep.subr.bf16.mxu0 %v5128_v13  ;;  %6864 = vmatprep.subr.bf16.mxu1 %v5256_v59  ;;  %v5319_v61 = vld [vmem:[#allocation4 + $0x7f0] sm:$0xff]  ;;  %v5328_v54 = vld [vmem:[#allocation4 + $0x838] sm:$0xff] }
0x10d8   : > { %v5456_v2 = vld [vmem:[#allocation4 + $0xc38] sm:$0xff]  ;;  %v5327_v9 = vld [vmem:[#allocation4 + $0x830] sm:$0xff] }
0x10d9   : > { %v5455_v10 = vld [vmem:[#allocation4 + $0xc30] sm:$0xff]  ;;  %v5336_v33 = vld [vmem:[#allocation4 + $0x878] sm:$0xff] }
0x10da   : > { %6824 = vmatpush1.bf16.msra.mxu0 %v5127_v16  ;;  %6865 = vmatpush1.bf16.msra.mxu1 %v5255_v21  ;;  %v5464_v13 = vld [vmem:[#allocation4 + $0xc78] sm:$0xff]  ;;  %v5335_v59 = vld [vmem:[#allocation4 + $0x870] sm:$0xff] }
0x10db   : > { %6825 = vmatprep.subr.bf16.mxu0 %v5136_v7  ;;  %6866 = vmatprep.subr.bf16.mxu1 %v5264_v15  ;;  %v5463_v16 = vld [vmem:[#allocation4 + $0xc70] sm:$0xff]  ;;  %v5344_v21 = vld [vmem:[#allocation4 + $0x8b8] sm:$0xff] }
0x10dc   : > { %v5472_v7 = vld [vmem:[#allocation4 + $0xcb8] sm:$0xff]  ;;  %v5343_v15 = vld [vmem:[#allocation4 + $0x8b0] sm:$0xff] }
0x10de   : > { %6826 = vmatpush1.bf16.msra.mxu0 %v5135_v17  ;;  %6867 = vmatpush1.bf16.msra.mxu1 %v5263_v55  ;;  %v5352_v17 = vld [vmem:[#allocation4 + $0x8f8] sm:$0xff]  ;;  %v5351_v55 = vld [vmem:[#allocation4 + $0x8f0] sm:$0xff] }
0x10df   : > { %6827 = vmatprep.subr.bf16.mxu0 %v5144_v34  ;;  %6868 = vmatprep.subr.bf16.mxu1 %v5272_v27  ;;  %v5479_v34 = vld [vmem:[#allocation4 + $0xcf0] sm:$0xff]  ;;  %v5360_v27 = vld [vmem:[#allocation4 + $0x938] sm:$0xff] }
0x10e2   : > { %6828 = vmatpush1.bf16.msra.mxu0 %v5143_v1  ;;  %6869 = vmatpush1.bf16.msra.mxu1 %v5271_v5  ;;  %v5488_v1 = vld [vmem:[#allocation4 + $0xd38] sm:$0xff] }
0x10e3   : > { %6829 = vmatprep.subr.bf16.mxu0 %v5152_v3  ;;  %6870 = vmatprep.subr.bf16.mxu1 %v5280_v37  ;;  %v5368_v5 = vld [vmem:[#allocation4 + $0x978] sm:$0xff]  ;;  %v5367_v37 = vld [vmem:[#allocation4 + $0x970] sm:$0xff] }
0x10e4   : > { %v5496_v3 = vld [vmem:[#allocation4 + $0xd78] sm:$0xff] }
0x10e6   : > { %6830 = vmatpush1.bf16.msra.mxu0 %v5151_v45  ;;  %6871 = vmatpush1.bf16.msra.mxu1 %v5279_v36  ;;  %v5495_v45 = vld [vmem:[#allocation4 + $0xd70] sm:$0xff] }
0x10e7   : > { %6831 = vmatprep.subr.bf16.mxu0 %v5160_v19  ;;  %6872 = vmatprep.subr.bf16.mxu1 %v5288_v42  ;;  %v5376_v42 = vld [vmem:[#allocation4 + $0x9b8] sm:$0xff] }
0x10ea   : > { %6832 = vmatpush1.bf16.msra.mxu0 %v5159_v44  ;;  %6873 = vmatpush1.bf16.msra.mxu1 %v5287_v41  ;;  %v5504_v44 = vld [vmem:[#allocation4 + $0xdb8] sm:$0xff] }
0x10eb   : > { %6833 = vmatprep.subr.bf16.mxu0 %v5168_v38  ;;  %6874 = vmatprep.subr.bf16.mxu1 %v5296_v40 }
0x10ee   : > { %6834 = vmatpush1.bf16.msra.mxu0 %v5167_v50  ;;  %6875 = vmatpush1.bf16.msra.mxu1 %v5295_v56 }
0x10ef   : > { %6835 = vmatprep.subr.bf16.mxu0 %v5176_v48  ;;  %6876 = vmatprep.subr.bf16.mxu1 %v5304_v29 }
0x10f2   : > { %6836 = vmatpush1.bf16.msra.mxu0 %v5175_v8  ;;  %6877 = vmatpush1.bf16.msra.mxu1 %v5303_v23 }
0x10f3   : > { %6837 = vmatprep.subr.bf16.mxu0 %v5184_v22  ;;  %6878 = vmatprep.subr.bf16.mxu1 %v5312_v47  ;;  %v5375_v22 = vld [vmem:[#allocation4 + $0x9b0] sm:$0xff] }
0x10f4   : > { %v5503_v47 = vld [vmem:[#allocation4 + $0xdb0] sm:$0xff] }
0x10f6   : > { %6838 = vmatpush1.bf16.msra.mxu0 %v5183_v24  ;;  %6879 = vmatpush1.bf16.msra.mxu1 %v5311_v6  ;;  %v5384_v6 = vld [vmem:[#allocation4 + $0x9f8] sm:$0xff] }
0x10f7   : > { %6839 = vmatprep.subr.bf16.mxu0 %v5192_v53  ;;  %6880 = vmatprep.subr.bf16.mxu1 %v5320_v12  ;;  %v5511_v53 = vld [vmem:[#allocation4 + $0xdf0] sm:$0xff]  ;;  %v5392_v12 = vld [vmem:[#allocation4 + $0xa38] sm:$0xff] }
0x10fa   : > { %6840 = vmatpush1.bf16.msra.mxu0 %v5191_v58  ;;  %6881 = vmatpush1.bf16.msra.mxu1 %v5319_v61  ;;  %v5520_v58 = vld [vmem:[#allocation4 + $0xe38] sm:$0xff]  ;;  %v5391_v61 = vld [vmem:[#allocation4 + $0xa30] sm:$0xff] }
0x10fb   : > { %6891 = vmatprep.subr.bf16.mxu0 %v5328_v54  ;;  %6932 = vmatprep.subr.bf16.mxu1 %v5456_v2  ;;  %v5519_v54 = vld [vmem:[#allocation4 + $0xe30] sm:$0xff]  ;;  %v5400_v2 = vld [vmem:[#allocation4 + $0xa78] sm:$0xff] }
0x10fd   : > { %6842 = vmatmul.mubr.bf16.vlgmr.msra.gmra.mrb[44].mxu0 %v11843_v49  ;;  %6883 = vmatmul.mubr.bf16.vlgmr.msra.gmra.mrb[44].mxu1 %v11847_v0  ;;  %v5471_v49 = vld [vmem:[#allocation4 + $0xcb0] sm:$0xff]  ;;  %v5480_v0 = vld [vmem:[#allocation4 + $0xcf8] sm:$0xff] }
0x10fe   : > { %6892 = vmatpush1.bf16.msra.mxu0 %v5327_v9  ;;  %6933 = vmatpush1.bf16.msra.mxu1 %v5455_v10  ;;  %v5528_v9 = vld [vmem:[#allocation4 + $0xe78] sm:$0xff]  ;;  %v5399_v10 = vld [vmem:[#allocation4 + $0xa70] sm:$0xff] }
0x10ff   : > { %6893 = vmatprep.subr.bf16.mxu0 %v5336_v33  ;;  %6934 = vmatprep.subr.bf16.mxu1 %v5464_v13  ;;  %v5527_v33 = vld [vmem:[#allocation4 + $0xe70] sm:$0xff]  ;;  %v5408_v13 = vld [vmem:[#allocation4 + $0xab8] sm:$0xff] }
0x1100   : > { %6923 = vmatprep.mubr.bf16.mxu0 %v11849_v52  ;;  %6964 = vmatprep.mubr.bf16.mxu1 %v11851_v14  ;;  %v5359_v52 = vld [vmem:[#allocation4 + $0x930] sm:$0xff] }
0x1101   : > { %v5487_v14 = vld [vmem:[#allocation4 + $0xd30] sm:$0xff] }
0x1102   : > { %6894 = vmatpush1.bf16.msra.mxu0 %v5335_v59  ;;  %6935 = vmatpush1.bf16.msra.mxu1 %v5463_v16  ;;  %v5536_v59 = vld [vmem:[#allocation4 + $0xeb8] sm:$0xff]  ;;  %v5407_v16 = vld [vmem:[#allocation4 + $0xab0] sm:$0xff] }
0x1103   : > { %6895 = vmatprep.subr.bf16.mxu0 %v5344_v21  ;;  %6936 = vmatprep.subr.bf16.mxu1 %v5472_v7  ;;  %v5535_v21 = vld [vmem:[#allocation4 + $0xeb0] sm:$0xff]  ;;  %v5416_v7 = vld [vmem:[#allocation4 + $0xaf8] sm:$0xff] }
0x1106   : > { %6896 = vmatpush1.bf16.msra.mxu0 %v5343_v15  ;;  %6937 = vmatpush1.bf16.msra.mxu1 %v5471_v49  ;;  %v5544_v15 = vld [vmem:[#allocation4 + $0xef8] sm:$0xff]  ;;  %v5415_v49 = vld [vmem:[#allocation4 + $0xaf0] sm:$0xff] }
0x1107   : > { %6897 = vmatprep.subr.bf16.mxu0 %v5352_v17  ;;  %6938 = vmatprep.subr.bf16.mxu1 %v5480_v0  ;;  %v5543_v17 = vld [vmem:[#allocation4 + $0xef0] sm:$0xff]  ;;  %v5424_v0 = vld [vmem:[#allocation4 + $0xb38] sm:$0xff] }
0x110a   : > { %6898 = vmatpush1.bf16.msra.mxu0 %v5351_v55  ;;  %6939 = vmatpush1.bf16.msra.mxu1 %v5479_v34  ;;  %v5552_v55 = vld [vmem:[#allocation4 + $0xf38] sm:$0xff]  ;;  %v5423_v34 = vld [vmem:[#allocation4 + $0xb30] sm:$0xff] }
0x110b   : > { %6899 = vmatprep.subr.bf16.mxu0 %v5360_v27  ;;  %6940 = vmatprep.subr.bf16.mxu1 %v5488_v1  ;;  %v5551_v27 = vld [vmem:[#allocation4 + $0xf30] sm:$0xff]  ;;  %v5432_v1 = vld [vmem:[#allocation4 + $0xb78] sm:$0xff] }
0x110e   : > { %6900 = vmatpush1.bf16.msra.mxu0 %v5359_v52  ;;  %6941 = vmatpush1.bf16.msra.mxu1 %v5487_v14  ;;  %v5560_v52 = vld [vmem:[#allocation4 + $0xf78] sm:$0xff]  ;;  %v5431_v14 = vld [vmem:[#allocation4 + $0xb70] sm:$0xff] }
0x110f   : > { %6901 = vmatprep.subr.bf16.mxu0 %v5368_v5  ;;  %6942 = vmatprep.subr.bf16.mxu1 %v5496_v3  ;;  %v5559_v5 = vld [vmem:[#allocation4 + $0xf70] sm:$0xff]  ;;  %v5440_v3 = vld [vmem:[#allocation4 + $0xbb8] sm:$0xff] }
0x1110   : > { %v6597_v36 = vpop.f32.mrb[32].mxu0  ;;  %v6638_v19 = vpop.f32.mrb[32].mxu1 }
0x1111   : > { %v6598_v41 = vadd.f32 %v6597_v36, %v11903_v25  ;;  %v6599_v38 = vpop.f32.mrb[33].mxu0  ;;  %v6640_v40 = vpop.f32.mrb[33].mxu1  ;;  %v5512_v25 = vld [vmem:[#allocation4 + $0xdf8] sm:$0xff]  ;;  %v5567_v36 = vld [vmem:[#allocation4 + $0xfb0] sm:$0xff] }
0x1112   : > { %v6600_v50 = vadd.f32 %v6599_v38, %v11907_v35  ;;  %v6601_v56 = vpop.f32.mrb[34].mxu0  ;;  %v6642_v48 = vpop.f32.mrb[34].mxu1  ;;  %6902 = vmatpush1.bf16.msra.mxu0 %v5367_v37  ;;  %6943 = vmatpush1.bf16.msra.mxu1 %v5495_v45  ;;  %v5383_v35 = vld [vmem:[#allocation4 + $0x9f0] sm:$0xff]  ;;  %v5568_v37 = vld [vmem:[#allocation4 + $0xfb8] sm:$0xff] }
0x1113   : > { %v11977_v29 = vadd.f32 %v6638_v19, %v6598_v41  ;;  %v6602_v8 = vpop.f32.mrb[35].mxu0  ;;  %v6643_v23 = vpop.f32.mrb[35].mxu1  ;;  %6903 = vmatprep.subr.bf16.mxu0 %v5376_v42  ;;  %6944 = vmatprep.subr.bf16.mxu1 %v5504_v44  ;;  %v5439_v45 = vld [vmem:[#allocation4 + $0xbb0] sm:$0xff]  ;;  %v5448_v19 = vld [vmem:[#allocation4 + $0xbf8] sm:$0xff] }
0x1114   : > { %v11979_v24 = vadd.f32 %v6640_v40, %v6600_v50  ;;  %v5576_v42 = vld [vmem:[#allocation4 + $0xff8] sm:$0xff]  ;;  %v5447_v44 = vld [vmem:[#allocation4 + $0xbf0] sm:$0xff] }
0x1115   : > { %v5575_v41 = vld [vmem:[#allocation4 + $0xff0] sm:$0xff]  ;;  %v5584_v38 = vld [vmem:[#allocation4 + $0x1038] sm:$0xff] }
0x1116   : > { %6904 = vmatpush1.bf16.msra.mxu0 %v5375_v22  ;;  %6945 = vmatpush1.bf16.msra.mxu1 %v5503_v47  ;;  %v5712_v40 = vld [vmem:[#allocation4 + $0x1438] sm:$0xff]  ;;  %v5583_v50 = vld [vmem:[#allocation4 + $0x1030] sm:$0xff] }
0x1117   : > { %6905 = vmatprep.subr.bf16.mxu0 %v5384_v6  ;;  %6946 = vmatprep.subr.bf16.mxu1 %v5512_v25  ;;  %v5711_v56 = vld [vmem:[#allocation4 + $0x1430] sm:$0xff]  ;;  %v5592_v48 = vld [vmem:[#allocation4 + $0x1078] sm:$0xff] }
0x1118   : > { %v5720_v8 = vld [vmem:[#allocation4 + $0x1478] sm:$0xff]  ;;  %v5591_v23 = vld [vmem:[#allocation4 + $0x1070] sm:$0xff] }
0x1119   : > { %v5719_v22 = vld [vmem:[#allocation4 + $0x1470] sm:$0xff]  ;;  %v5600_v47 = vld [vmem:[#allocation4 + $0x10b8] sm:$0xff] }
0x111a   : > { %6906 = vmatpush1.bf16.msra.mxu0 %v5383_v35  ;;  %6947 = vmatpush1.bf16.msra.mxu1 %v5511_v53  ;;  %v5728_v6 = vld [vmem:[#allocation4 + $0x14b8] sm:$0xff]  ;;  %v5599_v25 = vld [vmem:[#allocation4 + $0x10b0] sm:$0xff] }
0x111b   : > { %6907 = vmatprep.subr.bf16.mxu0 %v5392_v12  ;;  %6948 = vmatprep.subr.bf16.mxu1 %v5520_v58  ;;  %v5608_v35 = vld [vmem:[#allocation4 + $0x10f8] sm:$0xff]  ;;  %v5607_v53 = vld [vmem:[#allocation4 + $0x10f0] sm:$0xff] }
0x111c   : > { %v5735_v12 = vld [vmem:[#allocation4 + $0x14f0] sm:$0xff]  ;;  %v5616_v58 = vld [vmem:[#allocation4 + $0x1138] sm:$0xff] }
0x111e   : > { %6908 = vmatpush1.bf16.msra.mxu0 %v5391_v61  ;;  %6949 = vmatpush1.bf16.msra.mxu1 %v5519_v54  ;;  %v5744_v61 = vld [vmem:[#allocation4 + $0x1538] sm:$0xff] }
0x111f   : > { %6909 = vmatprep.subr.bf16.mxu0 %v5400_v2  ;;  %6950 = vmatprep.subr.bf16.mxu1 %v5528_v9  ;;  %v5624_v54 = vld [vmem:[#allocation4 + $0x1178] sm:$0xff]  ;;  %v5623_v9 = vld [vmem:[#allocation4 + $0x1170] sm:$0xff] }
0x1120   : > { %v5752_v2 = vld [vmem:[#allocation4 + $0x1578] sm:$0xff] }
0x1122   : > { %6910 = vmatpush1.bf16.msra.mxu0 %v5399_v10  ;;  %6951 = vmatpush1.bf16.msra.mxu1 %v5527_v33  ;;  %v5751_v10 = vld [vmem:[#allocation4 + $0x1570] sm:$0xff] }
0x1123   : > { %6911 = vmatprep.subr.bf16.mxu0 %v5408_v13  ;;  %6952 = vmatprep.subr.bf16.mxu1 %v5536_v59  ;;  %v5632_v59 = vld [vmem:[#allocation4 + $0x11b8] sm:$0xff] }
0x1126   : > { %6912 = vmatpush1.bf16.msra.mxu0 %v5407_v16  ;;  %6953 = vmatpush1.bf16.msra.mxu1 %v5535_v21  ;;  %v5760_v16 = vld [vmem:[#allocation4 + $0x15b8] sm:$0xff] }
0x1127   : > { %6913 = vmatprep.subr.bf16.mxu0 %v5416_v7  ;;  %6954 = vmatprep.subr.bf16.mxu1 %v5544_v15 }
0x112a   : > { %6914 = vmatpush1.bf16.msra.mxu0 %v5415_v49  ;;  %6955 = vmatpush1.bf16.msra.mxu1 %v5543_v17 }
0x112b   : > { %6915 = vmatprep.subr.bf16.mxu0 %v5424_v0  ;;  %6956 = vmatprep.subr.bf16.mxu1 %v5552_v55 }
0x112e   : > { %6916 = vmatpush1.bf16.msra.mxu0 %v5423_v34  ;;  %6957 = vmatpush1.bf16.msra.mxu1 %v5551_v27 }
0x112f   : > { %6917 = vmatprep.subr.bf16.mxu0 %v5432_v1  ;;  %6958 = vmatprep.subr.bf16.mxu1 %v5560_v52  ;;  %v5631_v1 = vld [vmem:[#allocation4 + $0x11b0] sm:$0xff] }
0x1130   : > { %v5759_v52 = vld [vmem:[#allocation4 + $0x15b0] sm:$0xff] }
0x1132   : > { %6918 = vmatpush1.bf16.msra.mxu0 %v5431_v14  ;;  %6959 = vmatpush1.bf16.msra.mxu1 %v5559_v5  ;;  %v5640_v5 = vld [vmem:[#allocation4 + $0x11f8] sm:$0xff] }
0x1133   : > { %6919 = vmatprep.subr.bf16.mxu0 %v5440_v3  ;;  %6960 = vmatprep.subr.bf16.mxu1 %v5568_v37  ;;  %v5767_v3 = vld [vmem:[#allocation4 + $0x15f0] sm:$0xff]  ;;  %v5648_v37 = vld [vmem:[#allocation4 + $0x1238] sm:$0xff] }
0x1136   : > { %6920 = vmatpush1.bf16.msra.mxu0 %v5439_v45  ;;  %6961 = vmatpush1.bf16.msra.mxu1 %v5567_v36  ;;  %v5776_v45 = vld [vmem:[#allocation4 + $0x1638] sm:$0xff]  ;;  %v5647_v36 = vld [vmem:[#allocation4 + $0x1230] sm:$0xff] }
0x1137   : > { %6921 = vmatprep.subr.bf16.mxu0 %v5448_v19  ;;  %6962 = vmatprep.subr.bf16.mxu1 %v5576_v42  ;;  %v5775_v19 = vld [vmem:[#allocation4 + $0x1630] sm:$0xff]  ;;  %v5656_v42 = vld [vmem:[#allocation4 + $0x1278] sm:$0xff] }
0x113a   : > { %6922 = vmatpush1.bf16.msra.mxu0 %v5447_v44  ;;  %6963 = vmatpush1.bf16.msra.mxu1 %v5575_v41  ;;  %v5784_v44 = vld [vmem:[#allocation4 + $0x1678] sm:$0xff]  ;;  %v5655_v41 = vld [vmem:[#allocation4 + $0x1270] sm:$0xff] }
0x113b   : > { %6973 = vmatprep.subr.bf16.mxu0 %v5584_v38  ;;  %7014 = vmatprep.subr.bf16.mxu1 %v5712_v40  ;;  %v5783_v38 = vld [vmem:[#allocation4 + $0x1670] sm:$0xff]  ;;  %v5664_v40 = vld [vmem:[#allocation4 + $0x12b8] sm:$0xff] }
0x113d   : > { %6924 = vmatmul.mubr.bf16.vlgmr.msra.gmra.mrb[48].mxu0 %v11869_v31  ;;  %6965 = vmatmul.mubr.bf16.vlgmr.msra.gmra.mrb[48].mxu1 %v11873_v4  ;;  %v5727_v31 = vld [vmem:[#allocation4 + $0x14b0] sm:$0xff]  ;;  %v5736_v4 = vld [vmem:[#allocation4 + $0x14f8] sm:$0xff] }
0x113e   : > { %6974 = vmatpush1.bf16.msra.mxu0 %v5583_v50  ;;  %7015 = vmatpush1.bf16.msra.mxu1 %v5711_v56  ;;  %v5792_v50 = vld [vmem:[#allocation4 + $0x16b8] sm:$0xff]  ;;  %v5663_v56 = vld [vmem:[#allocation4 + $0x12b0] sm:$0xff] }
0x113f   : > { %6975 = vmatprep.subr.bf16.mxu0 %v5592_v48  ;;  %7016 = vmatprep.subr.bf16.mxu1 %v5720_v8  ;;  %v5791_v48 = vld [vmem:[#allocation4 + $0x16b0] sm:$0xff]  ;;  %v5672_v8 = vld [vmem:[#allocation4 + $0x12f8] sm:$0xff] }
0x1140   : > { %7005 = vmatprep.mubr.bf16.mxu0 %v11875_v20  ;;  %7046 = vmatprep.mubr.bf16.mxu1 %v11877_v43  ;;  %v5615_v20 = vld [vmem:[#allocation4 + $0x1130] sm:$0xff] }
0x1141   : > { %v5743_v43 = vld [vmem:[#allocation4 + $0x1530] sm:$0xff] }
0x1142   : > { %6976 = vmatpush1.bf16.msra.mxu0 %v5591_v23  ;;  %7017 = vmatpush1.bf16.msra.mxu1 %v5719_v22  ;;  %v5800_v23 = vld [vmem:[#allocation4 + $0x16f8] sm:$0xff]  ;;  %v5671_v22 = vld [vmem:[#allocation4 + $0x12f0] sm:$0xff] }
0x1143   : > { %6977 = vmatprep.subr.bf16.mxu0 %v5600_v47  ;;  %7018 = vmatprep.subr.bf16.mxu1 %v5728_v6  ;;  %v5799_v47 = vld [vmem:[#allocation4 + $0x16f0] sm:$0xff]  ;;  %v5680_v6 = vld [vmem:[#allocation4 + $0x1338] sm:$0xff] }
0x1146   : > { %6978 = vmatpush1.bf16.msra.mxu0 %v5599_v25  ;;  %7019 = vmatpush1.bf16.msra.mxu1 %v5727_v31  ;;  %v5808_v25 = vld [vmem:[#allocation4 + $0x1738] sm:$0xff]  ;;  %v5679_v31 = vld [vmem:[#allocation4 + $0x1330] sm:$0xff] }
0x1147   : > { %6979 = vmatprep.subr.bf16.mxu0 %v5608_v35  ;;  %7020 = vmatprep.subr.bf16.mxu1 %v5736_v4  ;;  %v5807_v35 = vld [vmem:[#allocation4 + $0x1730] sm:$0xff]  ;;  %v5688_v4 = vld [vmem:[#allocation4 + $0x1378] sm:$0xff] }
0x114a   : > { %6980 = vmatpush1.bf16.msra.mxu0 %v5607_v53  ;;  %7021 = vmatpush1.bf16.msra.mxu1 %v5735_v12  ;;  %v5816_v53 = vld [vmem:[#allocation4 + $0x1778] sm:$0xff]  ;;  %v11991_v12 = vld [vmem:[#allocation37] sm:$0xff] }
0x114b   : > { %6981 = vmatprep.subr.bf16.mxu0 %v5616_v58  ;;  %7022 = vmatprep.subr.bf16.mxu1 %v5744_v61  ;;  %v5687_v58 = vld [vmem:[#allocation4 + $0x1370] sm:$0xff] }
0x114c   : > { %v5815_v61 = vld [vmem:[#allocation4 + $0x1770] sm:$0xff] }
0x114e   : > { %6982 = vmatpush1.bf16.msra.mxu0 %v5615_v20  ;;  %7023 = vmatpush1.bf16.msra.mxu1 %v5743_v43  ;;  %v7064_v20 = vrot.slane %v11991_v12, %v11615_v32  ;;  %v5696_v43 = vld [vmem:[#allocation4 + $0x13b8] sm:$0xff] }
0x114f   : > { %6983 = vmatprep.subr.bf16.mxu0 %v5624_v54  ;;  %7024 = vmatprep.subr.bf16.mxu1 %v5752_v2  ;;  %v5824_v54 = vld [vmem:[#allocation4 + $0x17b8] sm:$0xff]  ;;  %v5695_v2 = vld [vmem:[#allocation4 + $0x13b0] sm:$0xff] }
0x1150   : > { %v6679_v33 = vpop.f32.mrb[36].mxu0  ;;  %v6720_v13 = vpop.f32.mrb[36].mxu1 }
0x1151   : > { %v6680_v21 = vadd.f32 %v6679_v33, %v11977_v29  ;;  %v6681_v7 = vpop.f32.mrb[37].mxu0  ;;  %v6722_v15 = vpop.f32.mrb[37].mxu1  ;;  %v5768_v29 = vld [vmem:[#allocation4 + $0x15f8] sm:$0xff] }
0x1152   : > { %v6682_v49 = vadd.f32 %v6681_v7, %v11979_v24  ;;  %v6683_v17 = vpop.f32.mrb[38].mxu0  ;;  %v6724_v0 = vpop.f32.mrb[38].mxu1  ;;  %6984 = vmatpush1.bf16.msra.mxu0 %v5623_v9  ;;  %7025 = vmatpush1.bf16.msra.mxu1 %v5751_v10  ;;  %v5639_v24 = vld [vmem:[#allocation4 + $0x11f0] sm:$0xff]  ;;  %v7098_v10 = vadd.f32 %v7064_v20, %v11939_v62  ;;  %v5704_v33 = vld [vmem:[#allocation4 + $0x13f8] sm:$0xff]  ;;  %v7122_v7 = vld [vmem:[#allocation6 + $0x8] sm:$0xff] }
0x1153   : > { %v11987_v55 = vadd.f32 %v6720_v13, %v6680_v21  ;;  %v6684_v34 = vpop.f32.mrb[39].mxu0  ;;  %v6725_v27 = vpop.f32.mrb[39].mxu1  ;;  %6985 = vmatprep.subr.bf16.mxu0 %v5632_v59  ;;  %7026 = vmatprep.subr.bf16.mxu1 %v5760_v16  ;;  %v5823_v9 = vld [vmem:[#allocation4 + $0x17b0] sm:$0xff]  ;;  %v5832_v13 = vld [vmem:[#allocation4 + $0x17f8] sm:$0xff]  ;;  %v7126_v62 = vld [vmem:[#allocation6 + $0x28] sm:$0xff] }
0x1154   : > { %v11989_v14 = vadd.f32 %v6722_v15, %v6682_v49  ;;  %v5703_v59 = vld [vmem:[#allocation4 + $0x13f0] sm:$0xff]  ;;  %v7106_v21 = vmax.f32 %v7098_v10, 0.0  ;;  %v7124_v15 = vld [vmem:[#allocation6 + $0x18] sm:$0xff]  ;;  %v7121_v49 = vld [vmem:[#allocation6] sm:$0xff] }
0x1155   : > { %v5831_v16 = vld [vmem:[#allocation4 + $0x17f0] sm:$0xff]  ;;  %v7128_v34 = vld [vmem:[#allocation6 + $0x38] sm:$0xff]  ;;  %v7125_v27 = vld [vmem:[#allocation6 + $0x20] sm:$0xff] }
0x1156   : > { %6986 = vmatpush1.bf16.msra.mxu0 %v5631_v1  ;;  %7027 = vmatpush1.bf16.msra.mxu1 %v5759_v52  ;;  %v7114_v17 = vpack.c.bf16 %v7106_v21, %v7106_v21  ;;  %v7123_v0 = vld [vmem:[#allocation6 + $0x10] sm:$0xff]  ;;  %v7130_v52 = vld [vmem:[#allocation6 + $0x48] sm:$0xff]  ;;  %v7153_v10 = vld [vmem:[#allocation6 + $0x100] sm:$0xff] }
0x1157   : > { %6987 = vmatprep.subr.bf16.mxu0 %v5640_v5  ;;  %7028 = vmatprep.subr.bf16.mxu1 %v5768_v29  ;;  %v7127_v1 = vld [vmem:[#allocation6 + $0x30] sm:$0xff]  ;;  %v7132_v5 = vld [vmem:[#allocation6 + $0x58] sm:$0xff]  ;;  %v7129_v29 = vld [vmem:[#allocation6 + $0x40] sm:$0xff] }
0x1158   : > { %v7147_v20 = vld [vmem:[#allocation6 + $0xd0] sm:$0xff] }
0x1159   : > { %v7159_v21 = vld [vmem:[#allocation6 + $0x130] sm:$0xff] }
0x115a   : > { %6988 = vmatpush1.bf16.msra.mxu0 %v5639_v24  ;;  %7029 = vmatpush1.bf16.msra.mxu1 %v5767_v3  ;;  %v7134_v24 = vld [vmem:[#allocation6 + $0x68] sm:$0xff]  ;;  %v7133_v3 = vld [vmem:[#allocation6 + $0x60] sm:$0xff] }
0x115b   : > { %6989 = vmatprep.subr.bf16.mxu0 %v5648_v37  ;;  %7030 = vmatprep.subr.bf16.mxu1 %v5776_v45  ;;  %v7135_v37 = vld [vmem:[#allocation6 + $0x70] sm:$0xff]  ;;  %v7138_v45 = vld [vmem:[#allocation6 + $0x88] sm:$0xff] }
0x115e   : > { %6990 = vmatpush1.bf16.msra.mxu0 %v5647_v36  ;;  %7031 = vmatpush1.bf16.msra.mxu1 %v5775_v19  ;;  %v7140_v36 = vld [vmem:[#allocation6 + $0x98] sm:$0xff]  ;;  %v7137_v19 = vld [vmem:[#allocation6 + $0x80] sm:$0xff] }
0x115f   : > { %6991 = vmatprep.subr.bf16.mxu0 %v5656_v42  ;;  %7032 = vmatprep.subr.bf16.mxu1 %v5784_v44  ;;  %v7139_v42 = vld [vmem:[#allocation6 + $0x90] sm:$0xff]  ;;  %v7142_v44 = vld [vmem:[#allocation6 + $0xa8] sm:$0xff] }
0x1162   : > { %6992 = vmatpush1.bf16.msra.mxu0 %v5655_v41  ;;  %7033 = vmatpush1.bf16.msra.mxu1 %v5783_v38  ;;  %v7144_v41 = vld [vmem:[#allocation6 + $0xb8] sm:$0xff]  ;;  %v7141_v38 = vld [vmem:[#allocation6 + $0xa0] sm:$0xff] }
0x1163   : > { %6993 = vmatprep.subr.bf16.mxu0 %v5664_v40  ;;  %7034 = vmatprep.subr.bf16.mxu1 %v5792_v50 }
0x1166   : > { %6994 = vmatpush1.bf16.msra.mxu0 %v5663_v56  ;;  %7035 = vmatpush1.bf16.msra.mxu1 %v5791_v48  ;;  %v7143_v56 = vld [vmem:[#allocation6 + $0xb0] sm:$0xff]  ;;  %v7146_v48 = vld [vmem:[#allocation6 + $0xc8] sm:$0xff] }
0x1167   : > { %6995 = vmatprep.subr.bf16.mxu0 %v5672_v8  ;;  %7036 = vmatprep.subr.bf16.mxu1 %v5800_v23 }
0x116a   : > { %6996 = vmatpush1.bf16.msra.mxu0 %v5671_v22  ;;  %7037 = vmatpush1.bf16.msra.mxu1 %v5799_v47  ;;  %v7148_v47 = vld [vmem:[#allocation6 + $0xd8] sm:$0xff] }
0x116b   : > { %6997 = vmatprep.subr.bf16.mxu0 %v5680_v6  ;;  %7038 = vmatprep.subr.bf16.mxu1 %v5808_v25 }
0x116e   : > { %6998 = vmatpush1.bf16.msra.mxu0 %v5679_v31  ;;  %7039 = vmatpush1.bf16.msra.mxu1 %v5807_v35 }
0x116f   : > { %6999 = vmatprep.subr.bf16.mxu0 %v5688_v4  ;;  %7040 = vmatprep.subr.bf16.mxu1 %v5816_v53 }
0x1172   : > { %7000 = vmatpush1.bf16.msra.mxu0 %v5687_v58  ;;  %7041 = vmatpush1.bf16.msra.mxu1 %v5815_v61  ;;  %v7145_v58 = vld [vmem:[#allocation6 + $0xc0] sm:$0xff] }
0x1173   : > { %7001 = vmatprep.subr.bf16.mxu0 %v5696_v43  ;;  %7042 = vmatprep.subr.bf16.mxu1 %v5824_v54  ;;  %v7152_v43 = vld [vmem:[#allocation6 + $0xf8] sm:$0xff]  ;;  %v7151_v54 = vld [vmem:[#allocation6 + $0xf0] sm:$0xff] }
0x1176   : > { %7002 = vmatpush1.bf16.msra.mxu0 %v5695_v2  ;;  %7043 = vmatpush1.bf16.msra.mxu1 %v5823_v9  ;;  %v7154_v2 = vld [vmem:[#allocation6 + $0x108] sm:$0xff]  ;;  %v7156_v9 = vld [vmem:[#allocation6 + $0x118] sm:$0xff] }
0x1177   : > { %7003 = vmatprep.subr.bf16.mxu0 %v5704_v33  ;;  %7044 = vmatprep.subr.bf16.mxu1 %v5832_v13  ;;  %v7155_v33 = vld [vmem:[#allocation6 + $0x110] sm:$0xff]  ;;  %v7158_v13 = vld [vmem:[#allocation6 + $0x128] sm:$0xff] }
0x117a   : > { %7004 = vmatpush1.bf16.msra.mxu0 %v5703_v59  ;;  %7045 = vmatpush1.bf16.msra.mxu1 %v5831_v16  ;;  %v7160_v59 = vld [vmem:[#allocation6 + $0x138] sm:$0xff]  ;;  %v7157_v16 = vld [vmem:[#allocation6 + $0x120] sm:$0xff] }
0x117b   : > { %7399 = vmatprep.subr.bf16.mxu0 %v7122_v7  ;;  %7563 = vmatprep.subr.bf16.mxu1 %v7124_v15  ;;  %v7162_v7 = vld [vmem:[#allocation6 + $0x148] sm:$0xff]  ;;  %v7164_v15 = vld [vmem:[#allocation6 + $0x158] sm:$0xff] }
0x117d   : > { %7006 = vmatmul.mubr.bf16.vlgmr.msra.gmra.mrb[52].mxu0 %v11893_v46  ;;  %7047 = vmatmul.mubr.bf16.vlgmr.msra.gmra.mrb[52].mxu1 %v11897_v63  ;;  %v7131_v46 = vld [vmem:[#allocation6 + $0x50] sm:$0xff]  ;;  %v7136_v63 = vld [vmem:[#allocation6 + $0x78] sm:$0xff] }
0x117e   : > { %7400 = vmatpush1.bf16.msra.mxu0 %v7121_v49  ;;  %7431 = vmatprep.mubr.bf16.mxu0 %v7114_v17  ;;  %v7161_v49 = vld [vmem:[#allocation6 + $0x140] sm:$0xff] }
0x117f   : > { %7564 = vmatpush1.bf16.msra.mxu1 %v7123_v0  ;;  %7595 = vmatprep.mubr.bf16.mxu1 %v7114_v17  ;;  %v7163_v17 = vld [vmem:[#allocation6 + $0x150] sm:$0xff]  ;;  %v7166_v0 = vld [vmem:[#allocation6 + $0x168] sm:$0xff] }
0x1180   : > { %7401 = vmatprep.subr.bf16.mxu0 %v7126_v62  ;;  %7565 = vmatprep.subr.bf16.mxu1 %v7128_v34  ;;  %v7168_v62 = vld [vmem:[#allocation6 + $0x178] sm:$0xff]  ;;  %v7165_v34 = vld [vmem:[#allocation6 + $0x160] sm:$0xff] }
0x1182   : > { %7402 = vmatpush1.bf16.msra.mxu0 %v7125_v27  ;;  %v7167_v27 = vld [vmem:[#allocation6 + $0x170] sm:$0xff] }
0x1183   : > { %7566 = vmatpush1.bf16.msra.mxu1 %v7127_v1  ;;  %7403 = vmatprep.subr.bf16.mxu0 %v7130_v52  ;;  %v7170_v1 = vld [vmem:[#allocation6 + $0x188] sm:$0xff]  ;;  %v7172_v52 = vld [vmem:[#allocation6 + $0x198] sm:$0xff] }
0x1184   : > { %7567 = vmatprep.subr.bf16.mxu1 %v7132_v5  ;;  %v7169_v5 = vld [vmem:[#allocation6 + $0x180] sm:$0xff] }
0x1186   : > { %7404 = vmatpush1.bf16.msra.mxu0 %v7129_v29  ;;  %v7171_v29 = vld [vmem:[#allocation6 + $0x190] sm:$0xff] }
0x1187   : > { %7568 = vmatpush1.bf16.msra.mxu1 %v7131_v46  ;;  %7405 = vmatprep.subr.bf16.mxu0 %v7134_v24  ;;  %v7174_v46 = vld [vmem:[#allocation6 + $0x1a8] sm:$0xff]  ;;  %v7176_v24 = vld [vmem:[#allocation6 + $0x1b8] sm:$0xff] }
0x1188   : > { %7569 = vmatprep.subr.bf16.mxu1 %v7136_v63  ;;  %v7060_v63 = vrot.slane %v11991_v12, %v11609_v28 }
0x118a   : > { %7406 = vmatpush1.bf16.msra.mxu0 %v7133_v3  ;;  %v7173_v3 = vld [vmem:[#allocation6 + $0x1a0] sm:$0xff] }
0x118b   : > { %7570 = vmatpush1.bf16.msra.mxu1 %v7135_v37  ;;  %7407 = vmatprep.subr.bf16.mxu0 %v7138_v45  ;;  %v7175_v37 = vld [vmem:[#allocation6 + $0x1b0] sm:$0xff]  ;;  %v7178_v45 = vld [vmem:[#allocation6 + $0x1c8] sm:$0xff] }
0x118c   : > { %7571 = vmatprep.subr.bf16.mxu1 %v7140_v36  ;;  %v7072_v36 = vrot.slane %v11991_v12, %v11749_v39 }
0x118e   : > { %7408 = vmatpush1.bf16.msra.mxu0 %v7137_v19  ;;  %v7180_v19 = vld [vmem:[#allocation6 + $0x1d8] sm:$0xff] }
0x118f   : > { %7572 = vmatpush1.bf16.msra.mxu1 %v7139_v42  ;;  %7409 = vmatprep.subr.bf16.mxu0 %v7142_v44  ;;  %v7097_v42 = vadd.f32 %v7060_v63, %v11937_v18  ;;  %v7177_v44 = vld [vmem:[#allocation6 + $0x1c0] sm:$0xff] }
0x1190   : > { %v6761_v40 = vpop.f32.mrb[40].mxu0  ;;  %v6802_v50 = vpop.f32.mrb[40].mxu1  ;;  %7573 = vmatprep.subr.bf16.mxu1 %v7144_v41  ;;  %v7179_v41 = vld [vmem:[#allocation6 + $0x1d0] sm:$0xff] }
0x1191   : > { %v6762_v8 = vadd.f32 %v6761_v40, %v11987_v55  ;;  %v6763_v23 = vpop.f32.mrb[41].mxu0  ;;  %v6804_v22 = vpop.f32.mrb[41].mxu1  ;;  %v7150_v55 = vld [vmem:[#allocation6 + $0xe8] sm:$0xff]  ;;  %v7100_v40 = vadd.f32 %v7072_v36, %v11969_v11  ;;  %v7211_v36 = vld [vmem:[#allocation6 + $0x2d0] sm:$0xff] }
0x1192   : > { %v6764_v6 = vadd.f32 %v6763_v23, %v11989_v14  ;;  %v6765_v25 = vpop.f32.mrb[42].mxu0  ;;  %v6806_v31 = vpop.f32.mrb[42].mxu1  ;;  %7410 = vmatpush1.bf16.msra.mxu0 %v7141_v38  ;;  %v7149_v14 = vld [vmem:[#allocation6 + $0xe0] sm:$0xff]  ;;  %v7182_v38 = vld [vmem:[#allocation6 + $0x1e8] sm:$0xff] }
0x1193   : > { %v12000_v35 = vadd.f32 %v6802_v50, %v6762_v8  ;;  %7574 = vmatpush1.bf16.msra.mxu1 %v7143_v56  ;;  %v6766_v4 = vpop.f32.mrb[43].mxu0  ;;  %v6807_v53 = vpop.f32.mrb[43].mxu1  ;;  %7411 = vmatprep.subr.bf16.mxu0 %v7146_v48  ;;  %v7184_v50 = vld [vmem:[#allocation6 + $0x1f8] sm:$0xff]  ;;  %v7105_v56 = vmax.f32 %v7097_v42, 0.0  ;;  %v7181_v48 = vld [vmem:[#allocation6 + $0x1e0] sm:$0xff]  ;;  %v7183_v8 = vld [vmem:[#allocation6 + $0x1f0] sm:$0xff] }
0x1194   : > { %v12002_v61 = vadd.f32 %v6804_v22, %v6764_v6  ;;  %7575 = vmatprep.subr.bf16.mxu1 %v7148_v47  ;;  %v7186_v23 = vld [vmem:[#allocation6 + $0x208] sm:$0xff]  ;;  %v7108_v22 = vmax.f32 %v7100_v40, 0.0  ;;  %v7188_v47 = vld [vmem:[#allocation6 + $0x218] sm:$0xff]  ;;  %v7185_v6 = vld [vmem:[#allocation6 + $0x200] sm:$0xff] }
0x1195   : > { %v7113_v18 = vpack.c.bf16 %v7105_v56, %v7105_v56  ;;  %v7187_v25 = vld [vmem:[#allocation6 + $0x210] sm:$0xff]  ;;  %v7190_v11 = vld [vmem:[#allocation6 + $0x228] sm:$0xff]  ;;  %v7192_v4 = vld [vmem:[#allocation6 + $0x238] sm:$0xff] }
0x1196   : > { %7412 = vmatpush1.bf16.msra.mxu0 %v7145_v58  ;;  %v7116_v31 = vpack.c.bf16 %v7108_v22, %v7108_v22  ;;  %v7189_v53 = vld [vmem:[#allocation6 + $0x220] sm:$0xff]  ;;  %v7191_v58 = vld [vmem:[#allocation6 + $0x230] sm:$0xff]  ;;  %v7224_v56 = vld [vmem:[#allocation6 + $0x338] sm:$0xff] }
0x1197   : > { %7576 = vmatpush1.bf16.msra.mxu1 %v7147_v20  ;;  %7413 = vmatprep.subr.bf16.mxu0 %v7150_v55  ;;  %v7194_v20 = vld [vmem:[#allocation6 + $0x248] sm:$0xff]  ;;  %v7196_v55 = vld [vmem:[#allocation6 + $0x258] sm:$0xff]  ;;  %v7215_v42 = vld [vmem:[#allocation6 + $0x2f0] sm:$0xff] }
0x1198   : > { %7577 = vmatprep.subr.bf16.mxu1 %v7152_v43  ;;  %v7193_v43 = vld [vmem:[#allocation6 + $0x240] sm:$0xff]  ;;  %v7219_v40 = vld [vmem:[#allocation6 + $0x310] sm:$0xff]  ;;  %v7228_v22 = vld [vmem:[#allocation6 + $0x358] sm:$0xff] }
0x119a   : > { %7414 = vmatpush1.bf16.msra.mxu0 %v7149_v14  ;;  %v7195_v14 = vld [vmem:[#allocation6 + $0x250] sm:$0xff] }
0x119b   : > { %7578 = vmatpush1.bf16.msra.mxu1 %v7151_v54  ;;  %7415 = vmatprep.subr.bf16.mxu0 %v7154_v2  ;;  %v7198_v54 = vld [vmem:[#allocation6 + $0x268] sm:$0xff]  ;;  %v7200_v2 = vld [vmem:[#allocation6 + $0x278] sm:$0xff] }
0x119c   : > { %7579 = vmatprep.subr.bf16.mxu1 %v7156_v9  ;;  %v7197_v9 = vld [vmem:[#allocation6 + $0x260] sm:$0xff] }
0x119e   : > { %7416 = vmatpush1.bf16.msra.mxu0 %v7153_v10  ;;  %v7199_v10 = vld [vmem:[#allocation6 + $0x270] sm:$0xff] }
0x119f   : > { %7580 = vmatpush1.bf16.msra.mxu1 %v7155_v33  ;;  %7417 = vmatprep.subr.bf16.mxu0 %v7158_v13  ;;  %v7202_v33 = vld [vmem:[#allocation6 + $0x288] sm:$0xff]  ;;  %v7204_v13 = vld [vmem:[#allocation6 + $0x298] sm:$0xff] }
0x11a0   : > { %7581 = vmatprep.subr.bf16.mxu1 %v7160_v59  ;;  %v7201_v59 = vld [vmem:[#allocation6 + $0x280] sm:$0xff] }
0x11a2   : > { %7418 = vmatpush1.bf16.msra.mxu0 %v7157_v16  ;;  %v7203_v16 = vld [vmem:[#allocation6 + $0x290] sm:$0xff] }
0x11a3   : > { %7582 = vmatpush1.bf16.msra.mxu1 %v7159_v21  ;;  %7419 = vmatprep.subr.bf16.mxu0 %v7162_v7  ;;  %v7206_v21 = vld [vmem:[#allocation6 + $0x2a8] sm:$0xff]  ;;  %v7208_v7 = vld [vmem:[#allocation6 + $0x2b8] sm:$0xff] }
0x11a4   : > { %7583 = vmatprep.subr.bf16.mxu1 %v7164_v15  ;;  %v7205_v15 = vld [vmem:[#allocation6 + $0x2a0] sm:$0xff] }
0x11a6   : > { %7420 = vmatpush1.bf16.msra.mxu0 %v7161_v49 }
0x11a7   : > { %7584 = vmatpush1.bf16.msra.mxu1 %v7163_v17  ;;  %7421 = vmatprep.subr.bf16.mxu0 %v7166_v0  ;;  %v7207_v0 = vld [vmem:[#allocation6 + $0x2b0] sm:$0xff] }
0x11a8   : > { %7585 = vmatprep.subr.bf16.mxu1 %v7168_v62  ;;  %v7210_v62 = vld [vmem:[#allocation6 + $0x2c8] sm:$0xff] }
0x11aa   : > { %7422 = vmatpush1.bf16.msra.mxu0 %v7165_v34 }
0x11ab   : > { %7586 = vmatpush1.bf16.msra.mxu1 %v7167_v27  ;;  %7423 = vmatprep.subr.bf16.mxu0 %v7170_v1 }
0x11ac   : > { %7587 = vmatprep.subr.bf16.mxu1 %v7172_v52  ;;  %v7212_v52 = vld [vmem:[#allocation6 + $0x2d8] sm:$0xff] }
0x11ae   : > { %7424 = vmatpush1.bf16.msra.mxu0 %v7169_v5 }
0x11af   : > { %7588 = vmatpush1.bf16.msra.mxu1 %v7171_v29  ;;  %7425 = vmatprep.subr.bf16.mxu0 %v7174_v46 }
0x11b0   : > { %7589 = vmatprep.subr.bf16.mxu1 %v7176_v24 }
0x11b2   : > { %7426 = vmatpush1.bf16.msra.mxu0 %v7173_v3 }
0x11b3   : > { %7590 = vmatpush1.bf16.msra.mxu1 %v7175_v37  ;;  %7427 = vmatprep.subr.bf16.mxu0 %v7178_v45  ;;  %v7209_v37 = vld [vmem:[#allocation6 + $0x2c0] sm:$0xff] }
0x11b4   : > { %7591 = vmatprep.subr.bf16.mxu1 %v7180_v19  ;;  %v7216_v19 = vld [vmem:[#allocation6 + $0x2f8] sm:$0xff] }
0x11b6   : > { %7428 = vmatpush1.bf16.msra.mxu0 %v7177_v44  ;;  %v7218_v44 = vld [vmem:[#allocation6 + $0x308] sm:$0xff] }
0x11b7   : > { %7592 = vmatpush1.bf16.msra.mxu1 %v7179_v41  ;;  %7429 = vmatprep.subr.bf16.mxu0 %v7182_v38  ;;  %v7220_v41 = vld [vmem:[#allocation6 + $0x318] sm:$0xff]  ;;  %v7217_v38 = vld [vmem:[#allocation6 + $0x300] sm:$0xff] }
0x11b8   : > { %7593 = vmatprep.subr.bf16.mxu1 %v7184_v50  ;;  %v7222_v50 = vld [vmem:[#allocation6 + $0x328] sm:$0xff] }
0x11ba   : > { %7430 = vmatpush1.bf16.msra.mxu0 %v7181_v48  ;;  %v7221_v48 = vld [vmem:[#allocation6 + $0x320] sm:$0xff] }
0x11bb   : > { %7594 = vmatpush1.bf16.msra.mxu1 %v7183_v8  ;;  %7440 = vmatprep.subr.bf16.mxu0 %v7186_v23  ;;  %v7223_v8 = vld [vmem:[#allocation6 + $0x330] sm:$0xff]  ;;  %v7226_v23 = vld [vmem:[#allocation6 + $0x348] sm:$0xff] }
0x11bc   : > { %7604 = vmatprep.subr.bf16.mxu1 %v7188_v47  ;;  %v7225_v47 = vld [vmem:[#allocation6 + $0x340] sm:$0xff] }
0x11bd   : > { %7432 = vmatmul.mubr.bf16.vlgmr.msra.gmra.mrb[56].mxu0 %v7113_v18 }
0x11be   : > { %7596 = vmatmul.mubr.bf16.vlgmr.msra.gmra.mrb[56].mxu1 %v7113_v18  ;;  %7441 = vmatpush1.bf16.msra.mxu0 %v7185_v6  ;;  %v7227_v18 = vld [vmem:[#allocation6 + $0x350] sm:$0xff]  ;;  %v7230_v6 = vld [vmem:[#allocation6 + $0x368] sm:$0xff] }
0x11bf   : > { %7472 = vmatprep.mubr.bf16.mxu0 %v7116_v31  ;;  %7605 = vmatpush1.bf16.msra.mxu1 %v7187_v25  ;;  %v7232_v25 = vld [vmem:[#allocation6 + $0x378] sm:$0xff] }
0x11c0   : > { %7636 = vmatprep.mubr.bf16.mxu1 %v7116_v31  ;;  %7442 = vmatprep.subr.bf16.mxu0 %v7190_v11  ;;  %v7229_v31 = vld [vmem:[#allocation6 + $0x360] sm:$0xff]  ;;  %v7231_v11 = vld [vmem:[#allocation6 + $0x370] sm:$0xff] }
0x11c1   : > { %7606 = vmatprep.subr.bf16.mxu1 %v7192_v4  ;;  %v7234_v4 = vld [vmem:[#allocation6 + $0x388] sm:$0xff] }
0x11c2   : > { %7443 = vmatpush1.bf16.msra.mxu0 %v7189_v53  ;;  %v7236_v53 = vld [vmem:[#allocation6 + $0x398] sm:$0xff] }
0x11c3   : > { %7607 = vmatpush1.bf16.msra.mxu1 %v7191_v58  ;;  %7444 = vmatprep.subr.bf16.mxu0 %v7194_v20  ;;  %v7233_v58 = vld [vmem:[#allocation6 + $0x380] sm:$0xff]  ;;  %v7235_v20 = vld [vmem:[#allocation6 + $0x390] sm:$0xff] }
0x11c4   : > { %7608 = vmatprep.subr.bf16.mxu1 %v7196_v55  ;;  %v7238_v55 = vld [vmem:[#allocation6 + $0x3a8] sm:$0xff] }
0x11c6   : > { %7445 = vmatpush1.bf16.msra.mxu0 %v7193_v43  ;;  %v7079_v43 = vsub.s32 5, %v11606_v30 }
0x11c7   : > { %7609 = vmatpush1.bf16.msra.mxu1 %v7195_v14  ;;  %7446 = vmatprep.subr.bf16.mxu0 %v7198_v54  ;;  %v7240_v14 = vld [vmem:[#allocation6 + $0x3b8] sm:$0xff]  ;;  %v7068_v54 = vrot.slane %v11991_v12, %v11633_v26 }
0x11c8   : > { %7610 = vmatprep.subr.bf16.mxu1 %v7200_v2  ;;  %v7237_v2 = vld [vmem:[#allocation6 + $0x3a0] sm:$0xff] }
0x11ca   : > { %7447 = vmatpush1.bf16.msra.mxu0 %v7197_v9  ;;  %v7239_v9 = vld [vmem:[#allocation6 + $0x3b0] sm:$0xff] }
0x11cb   : > { %7611 = vmatpush1.bf16.msra.mxu1 %v7199_v10  ;;  %7448 = vmatprep.subr.bf16.mxu0 %v7202_v33  ;;  %v7242_v10 = vld [vmem:[#allocation6 + $0x3c8] sm:$0xff]  ;;  %v7080_v33 = vrot.slane %v11991_v12, %v7079_v43 }
0x11cc   : > { %7612 = vmatprep.subr.bf16.mxu1 %v7204_v13  ;;  %v7244_v13 = vld [vmem:[#allocation6 + $0x3d8] sm:$0xff] }
0x11ce   : > { %7449 = vmatpush1.bf16.msra.mxu0 %v7201_v59  ;;  %v7099_v59 = vadd.f32 %v7068_v54, %v11967_v57  ;;  %v7273_v54 = vld [vmem:[#allocation6 + $0x4c0] sm:$0xff] }
0x11cf   : > { %7613 = vmatpush1.bf16.msra.mxu1 %v7203_v16  ;;  %7450 = vmatprep.subr.bf16.mxu0 %v7206_v21  ;;  %v7241_v16 = vld [vmem:[#allocation6 + $0x3c0] sm:$0xff]  ;;  %v7243_v21 = vld [vmem:[#allocation6 + $0x3d0] sm:$0xff] }
0x11d0   : > { %v6843_v49 = vpop.f32.mrb[44].mxu0  ;;  %v6884_v17 = vpop.f32.mrb[44].mxu1  ;;  %7614 = vmatprep.subr.bf16.mxu1 %v7208_v7  ;;  %v7246_v7 = vld [vmem:[#allocation6 + $0x3e8] sm:$0xff] }
0x11d1   : > { %v6844_v34 = vadd.f32 %v6843_v49, %v11905_v51  ;;  %v6845_v27 = vpop.f32.mrb[45].mxu0  ;;  %v6886_v1 = vpop.f32.mrb[45].mxu1  ;;  %v7214_v51 = vld [vmem:[#allocation6 + $0x2e8] sm:$0xff]  ;;  %v7248_v49 = vld [vmem:[#allocation6 + $0x3f8] sm:$0xff] }
0x11d2   : > { %v6846_v5 = vadd.f32 %v6845_v27, %v11909_v60  ;;  %v6847_v29 = vpop.f32.mrb[46].mxu0  ;;  %v6888_v46 = vpop.f32.mrb[46].mxu1  ;;  %7451 = vmatpush1.bf16.msra.mxu0 %v7205_v15  ;;  %v7213_v60 = vld [vmem:[#allocation6 + $0x2e0] sm:$0xff]  ;;  %v7102_v15 = vadd.f32 %v7080_v33, %v12002_v61  ;;  %v7254_v61 = vld [vmem:[#allocation6 + $0x428] sm:$0xff]  ;;  %v7279_v33 = vld [vmem:[#allocation6 + $0x4f0] sm:$0xff] }
0x11d3   : > { %v12012_v24 = vadd.f32 %v6884_v17, %v6844_v34  ;;  %7615 = vmatpush1.bf16.msra.mxu1 %v7207_v0  ;;  %v6848_v63 = vpop.f32.mrb[47].mxu0  ;;  %v6889_v3 = vpop.f32.mrb[47].mxu1  ;;  %7452 = vmatprep.subr.bf16.mxu0 %v7210_v62  ;;  %v7107_v17 = vmax.f32 %v7099_v59, 0.0  ;;  %v7245_v0 = vld [vmem:[#allocation6 + $0x3e0] sm:$0xff]  ;;  %v7247_v62 = vld [vmem:[#allocation6 + $0x3f0] sm:$0xff]  ;;  %v7250_v34 = vld [vmem:[#allocation6 + $0x408] sm:$0xff] }
0x11d4   : > { %v12014_v45 = vadd.f32 %v6886_v1, %v6846_v5  ;;  %7616 = vmatprep.subr.bf16.mxu1 %v7212_v52  ;;  %v7110_v27 = vmax.f32 %v7102_v15, 0.0  ;;  %v7252_v1 = vld [vmem:[#allocation6 + $0x418] sm:$0xff]  ;;  %v7249_v52 = vld [vmem:[#allocation6 + $0x400] sm:$0xff]  ;;  %v7251_v5 = vld [vmem:[#allocation6 + $0x410] sm:$0xff] }
0x11d5   : > { %v7115_v57 = vpack.c.bf16 %v7107_v17, %v7107_v17  ;;  %v7256_v46 = vld [vmem:[#allocation6 + $0x438] sm:$0xff]  ;;  %v7253_v63 = vld [vmem:[#allocation6 + $0x420] sm:$0xff]  ;;  %v7255_v3 = vld [vmem:[#allocation6 + $0x430] sm:$0xff] }
0x11d6   : > { %7453 = vmatpush1.bf16.msra.mxu0 %v7209_v37  ;;  %v7118_v29 = vpack.c.bf16 %v7110_v27, %v7110_v27  ;;  %v7258_v37 = vld [vmem:[#allocation6 + $0x448] sm:$0xff]  ;;  %v7284_v59 = vld [vmem:[#allocation6 + $0x518] sm:$0xff]  ;;  %v7287_v17 = vld [vmem:[#allocation6 + $0x530] sm:$0xff] }
0x11d7   : > { %7617 = vmatpush1.bf16.msra.mxu1 %v7211_v36  ;;  %7454 = vmatprep.subr.bf16.mxu0 %v7214_v51  ;;  %v7260_v36 = vld [vmem:[#allocation6 + $0x458] sm:$0xff]  ;;  %v7257_v51 = vld [vmem:[#allocation6 + $0x440] sm:$0xff]  ;;  %v7291_v27 = vld [vmem:[#allocation6 + $0x550] sm:$0xff] }
0x11d8   : > { %7618 = vmatprep.subr.bf16.mxu1 %v7216_v19  ;;  %v7259_v19 = vld [vmem:[#allocation6 + $0x450] sm:$0xff]  ;;  %v7288_v15 = vld [vmem:[#allocation6 + $0x538] sm:$0xff] }
0x11da   : > { %7455 = vmatpush1.bf16.msra.mxu0 %v7213_v60  ;;  %v7262_v60 = vld [vmem:[#allocation6 + $0x468] sm:$0xff] }
0x11db   : > { %7619 = vmatpush1.bf16.msra.mxu1 %v7215_v42  ;;  %7456 = vmatprep.subr.bf16.mxu0 %v7218_v44  ;;  %v7264_v42 = vld [vmem:[#allocation6 + $0x478] sm:$0xff]  ;;  %v7261_v44 = vld [vmem:[#allocation6 + $0x460] sm:$0xff] }
0x11dc   : > { %7620 = vmatprep.subr.bf16.mxu1 %v7220_v41  ;;  %v7263_v41 = vld [vmem:[#allocation6 + $0x470] sm:$0xff] }
0x11de   : > { %7457 = vmatpush1.bf16.msra.mxu0 %v7217_v38  ;;  %v7266_v38 = vld [vmem:[#allocation6 + $0x488] sm:$0xff] }
0x11df   : > { %7621 = vmatpush1.bf16.msra.mxu1 %v7219_v40  ;;  %7458 = vmatprep.subr.bf16.mxu0 %v7222_v50  ;;  %v7268_v40 = vld [vmem:[#allocation6 + $0x498] sm:$0xff]  ;;  %v7265_v50 = vld [vmem:[#allocation6 + $0x480] sm:$0xff] }
0x11e0   : > { %7622 = vmatprep.subr.bf16.mxu1 %v7224_v56  ;;  %v7267_v56 = vld [vmem:[#allocation6 + $0x490] sm:$0xff] }
0x11e2   : > { %7459 = vmatpush1.bf16.msra.mxu0 %v7221_v48  ;;  %v7270_v48 = vld [vmem:[#allocation6 + $0x4a8] sm:$0xff] }
0x11e3   : > { %7623 = vmatpush1.bf16.msra.mxu1 %v7223_v8  ;;  %7460 = vmatprep.subr.bf16.mxu0 %v7226_v23  ;;  %v7272_v8 = vld [vmem:[#allocation6 + $0x4b8] sm:$0xff]  ;;  %v7269_v23 = vld [vmem:[#allocation6 + $0x4a0] sm:$0xff] }
0x11e4   : > { %7624 = vmatprep.subr.bf16.mxu1 %v7228_v22 }
0x11e6   : > { %7461 = vmatpush1.bf16.msra.mxu0 %v7225_v47 }
0x11e7   : > { %7625 = vmatpush1.bf16.msra.mxu1 %v7227_v18  ;;  %7462 = vmatprep.subr.bf16.mxu0 %v7230_v6  ;;  %v7271_v18 = vld [vmem:[#allocation6 + $0x4b0] sm:$0xff]  ;;  %v7274_v6 = vld [vmem:[#allocation6 + $0x4c8] sm:$0xff] }
0x11e8   : > { %7626 = vmatprep.subr.bf16.mxu1 %v7232_v25 }
0x11ea   : > { %7463 = vmatpush1.bf16.msra.mxu0 %v7229_v31 }
0x11eb   : > { %7627 = vmatpush1.bf16.msra.mxu1 %v7231_v11  ;;  %7464 = vmatprep.subr.bf16.mxu0 %v7234_v4  ;;  %v7276_v4 = vld [vmem:[#allocation6 + $0x4d8] sm:$0xff] }
0x11ec   : > { %7628 = vmatprep.subr.bf16.mxu1 %v7236_v53 }
0x11ee   : > { %7465 = vmatpush1.bf16.msra.mxu0 %v7233_v58 }
0x11ef   : > { %7629 = vmatpush1.bf16.msra.mxu1 %v7235_v20  ;;  %7466 = vmatprep.subr.bf16.mxu0 %v7238_v55 }
0x11f0   : > { %7630 = vmatprep.subr.bf16.mxu1 %v7240_v14 }
0x11f2   : > { %7467 = vmatpush1.bf16.msra.mxu0 %v7237_v2 }
0x11f3   : > { %7631 = vmatpush1.bf16.msra.mxu1 %v7239_v9  ;;  %7468 = vmatprep.subr.bf16.mxu0 %v7242_v10  ;;  %v7275_v9 = vld [vmem:[#allocation6 + $0x4d0] sm:$0xff]  ;;  %v7280_v10 = vld [vmem:[#allocation6 + $0x4f8] sm:$0xff] }
0x11f4   : > { %7632 = vmatprep.subr.bf16.mxu1 %v7244_v13  ;;  %v7282_v13 = vld [vmem:[#allocation6 + $0x508] sm:$0xff] }
0x11f6   : > { %7469 = vmatpush1.bf16.msra.mxu0 %v7241_v16  ;;  %v7281_v16 = vld [vmem:[#allocation6 + $0x500] sm:$0xff] }
0x11f7   : > { %7633 = vmatpush1.bf16.msra.mxu1 %v7243_v21  ;;  %7470 = vmatprep.subr.bf16.mxu0 %v7246_v7  ;;  %v7283_v21 = vld [vmem:[#allocation6 + $0x510] sm:$0xff]  ;;  %v7286_v7 = vld [vmem:[#allocation6 + $0x528] sm:$0xff] }
0x11f8   : > { %7634 = vmatprep.subr.bf16.mxu1 %v7248_v49  ;;  %v7285_v49 = vld [vmem:[#allocation6 + $0x520] sm:$0xff] }
0x11fa   : > { %7471 = vmatpush1.bf16.msra.mxu0 %v7245_v0  ;;  %v7290_v0 = vld [vmem:[#allocation6 + $0x548] sm:$0xff] }
0x11fb   : > { %7635 = vmatpush1.bf16.msra.mxu1 %v7247_v62  ;;  %7481 = vmatprep.subr.bf16.mxu0 %v7250_v34  ;;  %v7292_v62 = vld [vmem:[#allocation6 + $0x558] sm:$0xff]  ;;  %v7289_v34 = vld [vmem:[#allocation6 + $0x540] sm:$0xff] }
0x11fc   : > { %7645 = vmatprep.subr.bf16.mxu1 %v7252_v1  ;;  %v7294_v1 = vld [vmem:[#allocation6 + $0x568] sm:$0xff] }
0x11fd   : > { %7473 = vmatmul.mubr.bf16.vlgmr.msra.gmra.mrb[56].mxu0 %v7115_v57 }
0x11fe   : > { %7637 = vmatmul.mubr.bf16.vlgmr.msra.gmra.mrb[56].mxu1 %v7115_v57  ;;  %7482 = vmatpush1.bf16.msra.mxu0 %v7249_v52  ;;  %v7296_v57 = vld [vmem:[#allocation6 + $0x578] sm:$0xff]  ;;  %v7293_v52 = vld [vmem:[#allocation6 + $0x560] sm:$0xff] }
0x11ff   : > { %7513 = vmatprep.mubr.bf16.mxu0 %v7118_v29  ;;  %7646 = vmatpush1.bf16.msra.mxu1 %v7251_v5  ;;  %v7295_v5 = vld [vmem:[#allocation6 + $0x570] sm:$0xff] }
0x1200   : > { %7677 = vmatprep.mubr.bf16.mxu1 %v7118_v29  ;;  %7483 = vmatprep.subr.bf16.mxu0 %v7254_v61  ;;  %v7298_v29 = vld [vmem:[#allocation6 + $0x588] sm:$0xff]  ;;  %v7300_v61 = vld [vmem:[#allocation6 + $0x598] sm:$0xff] }
0x1201   : > { %7647 = vmatprep.subr.bf16.mxu1 %v7256_v46  ;;  %v7075_v46 = vsub.s32 4, %v11606_v30 }
0x1202   : > { %7484 = vmatpush1.bf16.msra.mxu0 %v7253_v63  ;;  %v7297_v63 = vld [vmem:[#allocation6 + $0x580] sm:$0xff] }
0x1203   : > { %7648 = vmatpush1.bf16.msra.mxu1 %v7255_v3  ;;  %7485 = vmatprep.subr.bf16.mxu0 %v7258_v37  ;;  %v7299_v3 = vld [vmem:[#allocation6 + $0x590] sm:$0xff]  ;;  %v7302_v37 = vld [vmem:[#allocation6 + $0x5a8] sm:$0xff] }
0x1204   : > { %7649 = vmatprep.subr.bf16.mxu1 %v7260_v36  ;;  %v7304_v36 = vld [vmem:[#allocation6 + $0x5b8] sm:$0xff] }
0x1206   : > { %7486 = vmatpush1.bf16.msra.mxu0 %v7257_v51  ;;  %v7076_v51 = vrot.slane %v11991_v12, %v7075_v46  ;;  %v7309_v12 = vld [vmem:[#allocation6 + $0x5e0] sm:$0xff] }
0x1207   : > { %7650 = vmatpush1.bf16.msra.mxu1 %v7259_v19  ;;  %7487 = vmatprep.subr.bf16.mxu0 %v7262_v60  ;;  %v7301_v19 = vld [vmem:[#allocation6 + $0x5a0] sm:$0xff]  ;;  %v7303_v60 = vld [vmem:[#allocation6 + $0x5b0] sm:$0xff] }
0x1208   : > { %7651 = vmatprep.subr.bf16.mxu1 %v7264_v42  ;;  %v7306_v42 = vld [vmem:[#allocation6 + $0x5c8] sm:$0xff] }
0x120a   : > { %7488 = vmatpush1.bf16.msra.mxu0 %v7261_v44  ;;  %v7308_v44 = vld [vmem:[#allocation6 + $0x5d8] sm:$0xff] }
0x120b   : > { %7652 = vmatpush1.bf16.msra.mxu1 %v7263_v41  ;;  %7489 = vmatprep.subr.bf16.mxu0 %v7266_v38  ;;  %v7101_v41 = vadd.f32 %v7076_v51, %v12000_v35  ;;  %v7305_v38 = vld [vmem:[#allocation6 + $0x5c0] sm:$0xff]  ;;  %v7344_v51 = vld [vmem:[#allocation6 + $0x6f8] sm:$0xff] }
0x120c   : > { %7653 = vmatprep.subr.bf16.mxu1 %v7268_v40  ;;  %v7307_v40 = vld [vmem:[#allocation6 + $0x5d0] sm:$0xff]  ;;  %v7313_v35 = vld [vmem:[#allocation6 + $0x600] sm:$0xff] }
0x120e   : > { %7490 = vmatpush1.bf16.msra.mxu0 %v7265_v50  ;;  %v7310_v50 = vld [vmem:[#allocation6 + $0x5e8] sm:$0xff] }
0x120f   : > { %7654 = vmatpush1.bf16.msra.mxu1 %v7267_v56  ;;  %7491 = vmatprep.subr.bf16.mxu0 %v7270_v48  ;;  %v7312_v56 = vld [vmem:[#allocation6 + $0x5f8] sm:$0xff]  ;;  %v7109_v48 = vmax.f32 %v7101_v41, 0.0 }
0x1210   : > { %v6925_v22 = vpop.f32.mrb[48].mxu0  ;;  %v6966_v47 = vpop.f32.mrb[48].mxu1  ;;  %7655 = vmatprep.subr.bf16.mxu1 %v7272_v8  ;;  %v7311_v8 = vld [vmem:[#allocation6 + $0x5f0] sm:$0xff] }
0x1211   : > { %v6926_v25 = vadd.f32 %v6925_v22, %v12012_v24  ;;  %v6927_v31 = vpop.f32.mrb[49].mxu0  ;;  %v6968_v11 = vpop.f32.mrb[49].mxu1  ;;  %v7278_v24 = vld [vmem:[#allocation6 + $0x4e8] sm:$0xff]  ;;  %v7316_v22 = vld [vmem:[#allocation6 + $0x618] sm:$0xff] }
0x1212   : > { %v6928_v53 = vadd.f32 %v6927_v31, %v12014_v45  ;;  %v6929_v58 = vpop.f32.mrb[50].mxu0  ;;  %v6970_v20 = vpop.f32.mrb[50].mxu1  ;;  %7492 = vmatpush1.bf16.msra.mxu0 %v7269_v23  ;;  %v7277_v45 = vld [vmem:[#allocation6 + $0x4e0] sm:$0xff]  ;;  %v7314_v23 = vld [vmem:[#allocation6 + $0x608] sm:$0xff] }
0x1213   : > { %v12024_v55 = vadd.f32 %v6966_v47, %v6926_v25  ;;  %7656 = vmatpush1.bf16.msra.mxu1 %v7271_v18  ;;  %v6930_v43 = vpop.f32.mrb[51].mxu0  ;;  %v6971_v14 = vpop.f32.mrb[51].mxu1  ;;  %7493 = vmatprep.subr.bf16.mxu0 %v7274_v6  ;;  %v7117_v47 = vpack.c.bf16 %v7109_v48, %v7109_v48  ;;  %v7315_v18 = vld [vmem:[#allocation6 + $0x610] sm:$0xff]  ;;  %v7318_v6 = vld [vmem:[#allocation6 + $0x628] sm:$0xff]  ;;  %v7320_v25 = vld [vmem:[#allocation6 + $0x638] sm:$0xff] }
0x1214   : > { %v12026_v2 = vadd.f32 %v6968_v11, %v6928_v53  ;;  %7657 = vmatprep.subr.bf16.mxu1 %v7276_v4  ;;  %v7317_v31 = vld [vmem:[#allocation6 + $0x620] sm:$0xff]  ;;  %v7319_v11 = vld [vmem:[#allocation6 + $0x630] sm:$0xff]  ;;  %v7322_v4 = vld [vmem:[#allocation6 + $0x648] sm:$0xff] }
0x1215   : > { %v7324_v53 = vld [vmem:[#allocation6 + $0x658] sm:$0xff]  ;;  %v7321_v58 = vld [vmem:[#allocation6 + $0x640] sm:$0xff]  ;;  %v7323_v20 = vld [vmem:[#allocation6 + $0x650] sm:$0xff] }
0x1216   : > { %7494 = vmatpush1.bf16.msra.mxu0 %v7273_v54  ;;  %v7326_v43 = vld [vmem:[#allocation6 + $0x668] sm:$0xff]  ;;  %v7328_v14 = vld [vmem:[#allocation6 + $0x678] sm:$0xff]  ;;  %v7325_v54 = vld [vmem:[#allocation6 + $0x660] sm:$0xff] }
0x1217   : > { %7658 = vmatpush1.bf16.msra.mxu1 %v7275_v9  ;;  %7495 = vmatprep.subr.bf16.mxu0 %v7278_v24  ;;  %v7327_v9 = vld [vmem:[#allocation6 + $0x670] sm:$0xff]  ;;  %v7330_v24 = vld [vmem:[#allocation6 + $0x688] sm:$0xff]  ;;  %v7352_v48 = vld [vmem:[#allocation6 + $0x738] sm:$0xff] }
0x1218   : > { %7659 = vmatprep.subr.bf16.mxu1 %v7280_v10  ;;  %v7332_v10 = vld [vmem:[#allocation6 + $0x698] sm:$0xff] }
0x121a   : > { %7496 = vmatpush1.bf16.msra.mxu0 %v7277_v45  ;;  %v7329_v45 = vld [vmem:[#allocation6 + $0x680] sm:$0xff] }
0x121b   : > { %7660 = vmatpush1.bf16.msra.mxu1 %v7279_v33  ;;  %7497 = vmatprep.subr.bf16.mxu0 %v7282_v13  ;;  %v7331_v33 = vld [vmem:[#allocation6 + $0x690] sm:$0xff]  ;;  %v7334_v13 = vld [vmem:[#allocation6 + $0x6a8] sm:$0xff] }
0x121c   : > { %7661 = vmatprep.subr.bf16.mxu1 %v7284_v59  ;;  %v7336_v59 = vld [vmem:[#allocation6 + $0x6b8] sm:$0xff] }
0x121e   : > { %7498 = vmatpush1.bf16.msra.mxu0 %v7281_v16  ;;  %v7087_v16 = vsub.s32 7, %v11606_v30 }
0x121f   : > { %7662 = vmatpush1.bf16.msra.mxu1 %v7283_v21  ;;  %7499 = vmatprep.subr.bf16.mxu0 %v7286_v7  ;;  %v7333_v21 = vld [vmem:[#allocation6 + $0x6a0] sm:$0xff] }
0x1220   : > { %7663 = vmatprep.subr.bf16.mxu1 %v7288_v15 }
0x1222   : > { %7500 = vmatpush1.bf16.msra.mxu0 %v7285_v49  ;;  %v7335_v49 = vld [vmem:[#allocation6 + $0x6b0] sm:$0xff] }
0x1223   : > { %7664 = vmatpush1.bf16.msra.mxu1 %v7287_v17  ;;  %7501 = vmatprep.subr.bf16.mxu0 %v7290_v0  ;;  %v7338_v17 = vld [vmem:[#allocation6 + $0x6c8] sm:$0xff] }
0x1224   : > { %7665 = vmatprep.subr.bf16.mxu1 %v7292_v62 }
0x1226   : > { %7502 = vmatpush1.bf16.msra.mxu0 %v7289_v34 }
0x1227   : > { %7666 = vmatpush1.bf16.msra.mxu1 %v7291_v27  ;;  %7503 = vmatprep.subr.bf16.mxu0 %v7294_v1  ;;  %v7340_v27 = vld [vmem:[#allocation6 + $0x6d8] sm:$0xff] }
0x1228   : > { %7667 = vmatprep.subr.bf16.mxu1 %v7296_v57  ;;  %v12034_v57 = vld [vmem:[#allocation37] sm:$0xff] }
0x122a   : > { %7504 = vmatpush1.bf16.msra.mxu0 %v7293_v52  ;;  %v7088_v52 = vrot.slane %v12034_v57, %v7087_v16  ;;  %v7376_v16 = vld [vmem:[#allocation6 + $0x7f8] sm:$0xff] }
0x122b   : > { %7668 = vmatpush1.bf16.msra.mxu1 %v7295_v5  ;;  %7505 = vmatprep.subr.bf16.mxu0 %v7298_v29 }
0x122c   : > { %7669 = vmatprep.subr.bf16.mxu1 %v7300_v61 }
0x122e   : > { %7506 = vmatpush1.bf16.msra.mxu0 %v7297_v63 }
0x122f   : > { %7670 = vmatpush1.bf16.msra.mxu1 %v7299_v3  ;;  %7507 = vmatprep.subr.bf16.mxu0 %v7302_v37  ;;  %v7337_v3 = vld [vmem:[#allocation6 + $0x6c0] sm:$0xff]  ;;  %v7339_v37 = vld [vmem:[#allocation6 + $0x6d0] sm:$0xff] }
0x1230   : > { %7671 = vmatprep.subr.bf16.mxu1 %v7304_v36  ;;  %v7342_v36 = vld [vmem:[#allocation6 + $0x6e8] sm:$0xff] }
0x1232   : > { %7508 = vmatpush1.bf16.msra.mxu0 %v7301_v19  ;;  %v7341_v19 = vld [vmem:[#allocation6 + $0x6e0] sm:$0xff] }
0x1233   : > { %7672 = vmatpush1.bf16.msra.mxu1 %v7303_v60  ;;  %7509 = vmatprep.subr.bf16.mxu0 %v7306_v42  ;;  %v7343_v42 = vld [vmem:[#allocation6 + $0x6f0] sm:$0xff] }
0x1234   : > { %7673 = vmatprep.subr.bf16.mxu1 %v7308_v44  ;;  %v7346_v44 = vld [vmem:[#allocation6 + $0x708] sm:$0xff] }
0x1236   : > { %7510 = vmatpush1.bf16.msra.mxu0 %v7305_v38  ;;  %v7348_v38 = vld [vmem:[#allocation6 + $0x718] sm:$0xff] }
0x1237   : > { %7674 = vmatpush1.bf16.msra.mxu1 %v7307_v40  ;;  %7511 = vmatprep.subr.bf16.mxu0 %v7310_v50  ;;  %v7345_v40 = vld [vmem:[#allocation6 + $0x700] sm:$0xff]  ;;  %v7347_v50 = vld [vmem:[#allocation6 + $0x710] sm:$0xff] }
0x1238   : > { %7675 = vmatprep.subr.bf16.mxu1 %v7312_v56  ;;  %v7350_v56 = vld [vmem:[#allocation6 + $0x728] sm:$0xff] }
0x123a   : > { %7512 = vmatpush1.bf16.msra.mxu0 %v7309_v12  ;;  %v7349_v12 = vld [vmem:[#allocation6 + $0x720] sm:$0xff] }
0x123b   : > { %7676 = vmatpush1.bf16.msra.mxu1 %v7311_v8  ;;  %7522 = vmatprep.subr.bf16.mxu0 %v7314_v23  ;;  %v7351_v8 = vld [vmem:[#allocation6 + $0x730] sm:$0xff]  ;;  %v7354_v23 = vld [vmem:[#allocation6 + $0x748] sm:$0xff] }
0x123c   : > { %7686 = vmatprep.subr.bf16.mxu1 %v7316_v22  ;;  %v7356_v22 = vld [vmem:[#allocation6 + $0x758] sm:$0xff] }
0x123d   : > { %7514 = vmatmul.mubr.bf16.vlgmr.msra.gmra.mrb[56].mxu0 %v7117_v47 }
0x123e   : > { %7678 = vmatmul.mubr.bf16.vlgmr.msra.gmra.mrb[56].mxu1 %v7117_v47  ;;  %7523 = vmatpush1.bf16.msra.mxu0 %v7313_v35  ;;  %v7353_v47 = vld [vmem:[#allocation6 + $0x740] sm:$0xff]  ;;  %v7355_v35 = vld [vmem:[#allocation6 + $0x750] sm:$0xff] }
0x123f   : > { %7687 = vmatpush1.bf16.msra.mxu1 %v7315_v18  ;;  %7524 = vmatprep.subr.bf16.mxu0 %v7318_v6  ;;  %v7358_v18 = vld [vmem:[#allocation6 + $0x768] sm:$0xff]  ;;  %v7360_v6 = vld [vmem:[#allocation6 + $0x778] sm:$0xff] }
0x1240   : > { %7688 = vmatprep.subr.bf16.mxu1 %v7320_v25  ;;  %v7357_v25 = vld [vmem:[#allocation6 + $0x760] sm:$0xff] }
0x1242   : > { %7525 = vmatpush1.bf16.msra.mxu0 %v7317_v31  ;;  %v7359_v31 = vld [vmem:[#allocation6 + $0x770] sm:$0xff] }
0x1243   : > { %7689 = vmatpush1.bf16.msra.mxu1 %v7319_v11  ;;  %7526 = vmatprep.subr.bf16.mxu0 %v7322_v4  ;;  %v7362_v11 = vld [vmem:[#allocation6 + $0x788] sm:$0xff]  ;;  %v7364_v4 = vld [vmem:[#allocation6 + $0x798] sm:$0xff] }
0x1244   : > { %7690 = vmatprep.subr.bf16.mxu1 %v7324_v53  ;;  %v7083_v53 = vsub.s32 6, %v11606_v30 }
0x1246   : > { %7527 = vmatpush1.bf16.msra.mxu0 %v7321_v58  ;;  %v7361_v58 = vld [vmem:[#allocation6 + $0x780] sm:$0xff] }
0x1247   : > { %7691 = vmatpush1.bf16.msra.mxu1 %v7323_v20  ;;  %7528 = vmatprep.subr.bf16.mxu0 %v7326_v43  ;;  %v7363_v20 = vld [vmem:[#allocation6 + $0x790] sm:$0xff]  ;;  %v7366_v43 = vld [vmem:[#allocation6 + $0x7a8] sm:$0xff] }
0x1248   : > { %7692 = vmatprep.subr.bf16.mxu1 %v7328_v14  ;;  %v7368_v14 = vld [vmem:[#allocation6 + $0x7b8] sm:$0xff] }
0x124a   : > { %7529 = vmatpush1.bf16.msra.mxu0 %v7325_v54  ;;  %v7084_v54 = vrot.slane %v12034_v57, %v7083_v53  ;;  %v7736_v57 = vld [vmem:[#allocation7 + $0x8] sm:$0xff] }
0x124b   : > { %7693 = vmatpush1.bf16.msra.mxu1 %v7327_v9  ;;  %7530 = vmatprep.subr.bf16.mxu0 %v7330_v24  ;;  %v7365_v9 = vld [vmem:[#allocation6 + $0x7a0] sm:$0xff]  ;;  %v7367_v24 = vld [vmem:[#allocation6 + $0x7b0] sm:$0xff] }
0x124c   : > { %7694 = vmatprep.subr.bf16.mxu1 %v7332_v10  ;;  %v7370_v10 = vld [vmem:[#allocation6 + $0x7c8] sm:$0xff] }
0x124e   : > { %7531 = vmatpush1.bf16.msra.mxu0 %v7329_v45  ;;  %v7372_v45 = vld [vmem:[#allocation6 + $0x7d8] sm:$0xff] }
0x124f   : > { %7695 = vmatpush1.bf16.msra.mxu1 %v7331_v33  ;;  %7532 = vmatprep.subr.bf16.mxu0 %v7334_v13  ;;  %v7369_v33 = vld [vmem:[#allocation6 + $0x7c0] sm:$0xff]  ;;  %v7371_v13 = vld [vmem:[#allocation6 + $0x7d0] sm:$0xff] }
0x1250   : > { %v7007_v7 = vpop.f32.mrb[52].mxu0  ;;  %v7048_v15 = vpop.f32.mrb[52].mxu1  ;;  %7696 = vmatprep.subr.bf16.mxu1 %v7336_v59  ;;  %v7374_v59 = vld [vmem:[#allocation6 + $0x7e8] sm:$0xff] }
0x1251   : > { %v7008_v0 = vadd.f32 %v7007_v7, %v12024_v55  ;;  %v7009_v62 = vpop.f32.mrb[53].mxu0  ;;  %v7050_v34 = vpop.f32.mrb[53].mxu1  ;;  %v7373_v7 = vld [vmem:[#allocation6 + $0x7e0] sm:$0xff] }
0x1252   : > { %v7010_v1 = vadd.f32 %v7009_v62, %v12026_v2  ;;  %v7011_v5 = vpop.f32.mrb[54].mxu0  ;;  %v7052_v29 = vpop.f32.mrb[54].mxu1  ;;  %7533 = vmatpush1.bf16.msra.mxu0 %v7333_v21  ;;  %v7735_v62 = vld [vmem:[#allocation7] sm:$0xff] }
0x1253   : > { %v12037_v61 = vadd.f32 %v7048_v15, %v7008_v0  ;;  %7697 = vmatpush1.bf16.msra.mxu1 %v7335_v49  ;;  %v7012_v46 = vpop.f32.mrb[55].mxu0  ;;  %v7053_v63 = vpop.f32.mrb[55].mxu1  ;;  %7534 = vmatprep.subr.bf16.mxu0 %v7338_v17  ;;  %v7375_v15 = vld [vmem:[#allocation6 + $0x7f0] sm:$0xff]  ;;  %v7743_v49 = vld [vmem:[#allocation7 + $0x40] sm:$0xff] }
0x1254   : > { %v7051_v55 = vadd.f32 %v7050_v34, %v7010_v1  ;;  %7698 = vmatprep.subr.bf16.mxu1 %v7340_v27  ;;  %v7759_v17 = vld [vmem:[#allocation7 + $0xc0] sm:$0xff]  ;;  %v7744_v27 = vld [vmem:[#allocation7 + $0x48] sm:$0xff]  ;;  %v7745_v5 = vld [vmem:[#allocation7 + $0x50] sm:$0xff] }
0x1255   : > { %v7103_v30 = vadd.f32 %v7084_v54, %v12037_v61  ;;  %v7751_v34 = vld [vmem:[#allocation7 + $0x80] sm:$0xff]  ;;  %v7760_v1 = vld [vmem:[#allocation7 + $0xc8] sm:$0xff]  ;;  %v7761_v29 = vld [vmem:[#allocation7 + $0xd0] sm:$0xff] }
0x1256   : > { %v7104_v2 = vadd.f32 %v7088_v52, %v7051_v55  ;;  %7535 = vmatpush1.bf16.msra.mxu0 %v7337_v3  ;;  %v7752_v52 = vld [vmem:[#allocation7 + $0x88] sm:$0xff]  ;;  %v7737_v61 = vld [vmem:[#allocation7 + $0x10] sm:$0xff]  ;;  %v7746_v63 = vld [vmem:[#allocation7 + $0x58] sm:$0xff] }
0x1257   : > { %7699 = vmatpush1.bf16.msra.mxu1 %v7339_v37  ;;  %7536 = vmatprep.subr.bf16.mxu0 %v7342_v36  ;;  %v7111_v21 = vmax.f32 %v7103_v30, 0.0  ;;  %v7753_v46 = vld [vmem:[#allocation7 + $0x90] sm:$0xff]  ;;  %v7762_v3 = vld [vmem:[#allocation7 + $0xd8] sm:$0xff]  ;;  %v7747_v36 = vld [vmem:[#allocation7 + $0x60] sm:$0xff] }
0x1258   : > { %v7112_v60 = vmax.f32 %v7104_v2, 0.0  ;;  %7700 = vmatprep.subr.bf16.mxu1 %v7344_v51  ;;  %v7738_v55 = vld [vmem:[#allocation7 + $0x18] sm:$0xff]  ;;  %v7763_v51 = vld [vmem:[#allocation7 + $0xe0] sm:$0xff] }
0x1259   : > { %v7119_v0 = vpack.c.bf16 %v7111_v21, %v7111_v21  ;;  %v7754_v37 = vld [vmem:[#allocation7 + $0x98] sm:$0xff]  ;;  %v7739_v2 = vld [vmem:[#allocation7 + $0x20] sm:$0xff] }
0x125a   : > { %v7120_v41 = vpack.c.bf16 %v7112_v60, %v7112_v60  ;;  %7537 = vmatpush1.bf16.msra.mxu0 %v7341_v19  ;;  %v7755_v19 = vld [vmem:[#allocation7 + $0xa0] sm:$0xff]  ;;  %v7748_v60 = vld [vmem:[#allocation7 + $0x68] sm:$0xff] }
0x125b   : > { %7701 = vmatpush1.bf16.msra.mxu1 %v7343_v42  ;;  %7538 = vmatprep.subr.bf16.mxu0 %v7346_v44  ;;  %v7764_v42 = vld [vmem:[#allocation7 + $0xe8] sm:$0xff] }
0x125c   : > { %7554 = vmatprep.mubr.bf16.mxu0 %v7120_v41  ;;  %7718 = vmatprep.mubr.bf16.mxu1 %v7120_v41  ;;  %v7740_v44 = vld [vmem:[#allocation7 + $0x28] sm:$0xff] }
0x125d   : > { %7702 = vmatprep.subr.bf16.mxu1 %v7348_v38  ;;  %v7756_v41 = vld [vmem:[#allocation7 + $0xa8] sm:$0xff]  ;;  %v7749_v38 = vld [vmem:[#allocation7 + $0x70] sm:$0xff] }
0x125e   : > { %7539 = vmatpush1.bf16.msra.mxu0 %v7345_v40  ;;  %v7765_v40 = vld [vmem:[#allocation7 + $0xf0] sm:$0xff] }
0x125f   : > { %7703 = vmatpush1.bf16.msra.mxu1 %v7347_v50  ;;  %7540 = vmatprep.subr.bf16.mxu0 %v7350_v56  ;;  %v7741_v50 = vld [vmem:[#allocation7 + $0x30] sm:$0xff] }
0x1260   : > { %7704 = vmatprep.subr.bf16.mxu1 %v7352_v48  ;;  %v7757_v56 = vld [vmem:[#allocation7 + $0xb0] sm:$0xff]  ;;  %v7750_v48 = vld [vmem:[#allocation7 + $0x78] sm:$0xff] }
0x1262   : > { %7541 = vmatpush1.bf16.msra.mxu0 %v7349_v12  ;;  %v7766_v12 = vld [vmem:[#allocation7 + $0xf8] sm:$0xff] }
0x1263   : > { %7705 = vmatpush1.bf16.msra.mxu1 %v7351_v8  ;;  %7542 = vmatprep.subr.bf16.mxu0 %v7354_v23  ;;  %v7742_v8 = vld [vmem:[#allocation7 + $0x38] sm:$0xff] }
0x1264   : > { %7706 = vmatprep.subr.bf16.mxu1 %v7356_v22  ;;  %v7758_v23 = vld [vmem:[#allocation7 + $0xb8] sm:$0xff]  ;;  %v7377_v22 = vld [vmem:[#allocation38] sm:$0xf] }
0x1266   : > { %7543 = vmatpush1.bf16.msra.mxu0 %v7353_v47  ;;  %v7382_v47 = vrot.slane %v7377_v22, %v11609_v28 }
0x1267   : > { %7707 = vmatpush1.bf16.msra.mxu1 %v7355_v35  ;;  %7544 = vmatprep.subr.bf16.mxu0 %v7358_v18  ;;  %v7390_v35 = vrot.slane %v7377_v22, %v11633_v26  ;;  %v7386_v18 = vrot.slane %v7377_v22, %v11615_v32 }
0x1268   : > { %7708 = vmatprep.subr.bf16.mxu1 %v7360_v6  ;;  %v7394_v6 = vrot.slane %v7377_v22, %v11749_v39 }
0x126a   : > { %7545 = vmatpush1.bf16.msra.mxu0 %v7357_v25 }
0x126b   : > { %7709 = vmatpush1.bf16.msra.mxu1 %v7359_v31  ;;  %7546 = vmatprep.subr.bf16.mxu0 %v7362_v11 }
0x126c   : > { %7710 = vmatprep.subr.bf16.mxu1 %v7364_v4 }
0x126e   : > { %7547 = vmatpush1.bf16.msra.mxu0 %v7361_v58 }
0x126f   : > { %7711 = vmatpush1.bf16.msra.mxu1 %v7363_v20  ;;  %7548 = vmatprep.subr.bf16.mxu0 %v7366_v43 }
0x1270   : > { %7712 = vmatprep.subr.bf16.mxu1 %v7368_v14 }
0x1272   : > { %7549 = vmatpush1.bf16.msra.mxu0 %v7365_v9 }
0x1273   : > { %7713 = vmatpush1.bf16.msra.mxu1 %v7367_v24  ;;  %7550 = vmatprep.subr.bf16.mxu0 %v7370_v10 }
0x1274   : > { %7714 = vmatprep.subr.bf16.mxu1 %v7372_v45 }
0x1276   : > { %7551 = vmatpush1.bf16.msra.mxu0 %v7369_v33 }
0x1277   : > { %7715 = vmatpush1.bf16.msra.mxu1 %v7371_v13  ;;  %7552 = vmatprep.subr.bf16.mxu0 %v7374_v59 }
0x1278   : > { %7716 = vmatprep.subr.bf16.mxu1 %v7376_v16  ;;  %v8695_v16 = vld [vmem:[#allocation39] ss:$0 sm:$0xff] }
0x127a   : > { %7553 = vmatpush1.bf16.msra.mxu0 %v7373_v7 }
0x127b   : > { %7717 = vmatpush1.bf16.msra.mxu1 %v7375_v15  ;;  %8801 = vmatprep.subr.bf16.mxu0 %v7743_v49 }
0x127c   : > { %8823 = vmatprep.subr.bf16.mxu1 %v7759_v17 }
0x127d   : > { %7555 = vmatmul.mubr.bf16.vlgmr.msra.gmra.mrb[56].mxu0 %v7119_v0 }
0x127e   : > { %7719 = vmatmul.mubr.bf16.vlgmr.msra.gmra.mrb[56].mxu1 %v7119_v0  ;;  %8802 = vmatpush3.bf16.msra.mxu0 %v7735_v62 }
0x127f   : > { %8824 = vmatpush3.bf16.msra.mxu1 %v7751_v34  ;;  %8803 = vmatprep.subr.bf16.mxu0 %v7744_v27 }
0x1280   : > { %8825 = vmatprep.subr.bf16.mxu1 %v7760_v1 }
0x1282   : > { %8804 = vmatpush3.bf16.msra.mxu0 %v7736_v57 }
0x1283   : > { %8826 = vmatpush3.bf16.msra.mxu1 %v7752_v52  ;;  %8805 = vmatprep.subr.bf16.mxu0 %v7745_v5 }
0x1284   : > { %8827 = vmatprep.subr.bf16.mxu1 %v7761_v29 }
0x1286   : > { %8806 = vmatpush3.bf16.msra.mxu0 %v7737_v61 }
0x1287   : > { %8828 = vmatpush3.bf16.msra.mxu1 %v7753_v46  ;;  %8807 = vmatprep.subr.bf16.mxu0 %v7746_v63 }
0x1288   : > { %8829 = vmatprep.subr.bf16.mxu1 %v7762_v3 }
0x128a   : > { %8808 = vmatpush3.bf16.msra.mxu0 %v7738_v55 }
0x128b   : > { %8830 = vmatpush3.bf16.msra.mxu1 %v7754_v37  ;;  %8809 = vmatprep.subr.bf16.mxu0 %v7747_v36 }
0x128c   : > { %8831 = vmatprep.subr.bf16.mxu1 %v7763_v51 }
0x128e   : > { %8810 = vmatpush3.bf16.msra.mxu0 %v7739_v2 }
0x128f   : > { %8832 = vmatpush3.bf16.msra.mxu1 %v7755_v19  ;;  %8811 = vmatprep.subr.bf16.mxu0 %v7748_v60 }
0x1290   : > { %8833 = vmatprep.subr.bf16.mxu1 %v7764_v42 }
0x1292   : > { %8812 = vmatpush3.bf16.msra.mxu0 %v7740_v44 }
0x1293   : > { %8834 = vmatpush3.bf16.msra.mxu1 %v7756_v41  ;;  %8813 = vmatprep.subr.bf16.mxu0 %v7749_v38 }
0x1294   : > { %8835 = vmatprep.subr.bf16.mxu1 %v7765_v40 }
0x1296   : > { %8814 = vmatpush3.bf16.msra.mxu0 %v7741_v50 }
0x1297   : > { %8836 = vmatpush3.bf16.msra.mxu1 %v7757_v56  ;;  %8815 = vmatprep.subr.bf16.mxu0 %v7750_v48 }
0x1298   : > { %8837 = vmatprep.subr.bf16.mxu1 %v7766_v12 }
0x129a   : > { %8816 = vmatpush3.bf16.msra.mxu0 %v7742_v8 }
0x129b   : > { %8838 = vmatpush3.bf16.msra.mxu1 %v7758_v23 }
0x1350   : > { %v7556_v25 = vpop.f32.mrb[56].mxu0 }
0x1351   : > { %v8919_v31 = vadd.f32 %v7556_v25, %v7382_v47  ;;  %v7720_v11 = vpop.f32.mrb[56].mxu1  ;;  %v7558_v4 = vpop.f32.mrb[57].mxu0 }
0x1352   : > { %v8921_v53 = vadd.f32 %v7720_v11, %v7390_v35  ;;  %v8920_v58 = vadd.f32 %v7558_v4, %v7386_v18  ;;  %v7722_v20 = vpop.f32.mrb[57].mxu1  ;;  %v7560_v43 = vpop.f32.mrb[58].mxu0 }
0x1353   : > { %v7727_v14 = vmax.f32 %v8919_v31, 0.0  ;;  %v8922_v54 = vadd.f32 %v7722_v20, %v7394_v6  ;;  %v7724_v9 = vpop.f32.mrb[58].mxu1  ;;  %v7561_v24 = vpop.f32.mrb[59].mxu0 }
0x1354   : > { %v7729_v10 = vmax.f32 %v8921_v53, 0.0  ;;  %v7728_v28 = vmax.f32 %v8920_v58, 0.0  ;;  %v7725_v45 = vpop.f32.mrb[59].mxu1 }
0x1355   : > { %v7730_v26 = vmax.f32 %v8922_v54, 0.0  ;;  %v7731_v32 = vpack.c.bf16 %v7727_v14, %v7727_v14 }
0x1356   : > { %v7732_v30 = vpack.c.bf16 %v7728_v28, %v7728_v28  ;;  %v7733_v39 = vpack.c.bf16 %v7729_v10, %v7729_v10 }
0x1357   : > { %v7734_v33 = vpack.c.bf16 %v7730_v26, %v7730_v26 }
0x1358   : > { %7806 = vmatprep.mubr.bf16.mxu0 %v7732_v30 }
0x1359   : > { %7846 = vmatprep.mubr.bf16.mxu1 %v7734_v33  ;;  %7807 = vmatmul.mubr.bf16.vlgmr.msra.gmra.mrb[60].mxu0 %v7731_v32 }
0x135a   : > { %7847 = vmatmul.mubr.bf16.vlgmr.msra.gmra.mrb[60].mxu1 %v7733_v39 }
0x142c   : > { %v8817_v13 = vpop.f32.mrb[60].mxu0 }
0x142d   : > { %v8839_v59 = vpop.f32.mrb[60].mxu1  ;;  %v8818_v21 = vpop.f32.mrb[61].mxu0 }
0x142e   : > { %v8819_v7 = vadd.f32 %v8818_v21, %v8817_v13  ;;  %v8840_v15 = vpop.f32.mrb[61].mxu1  ;;  %v8820_v49 = vpop.f32.mrb[62].mxu0 }
0x142f   : > { %v8841_v17 = vadd.f32 %v8840_v15, %v8839_v59  ;;  %v8842_v0 = vpop.f32.mrb[62].mxu1  ;;  %v8821_v62 = vpop.f32.mrb[63].mxu0 }
0x1430   : > { %v7809_v34 = vadd.f32 %v8819_v7, %v8695_v16  ;;  %v8843_v27 = vpop.f32.mrb[63].mxu1 }
0x1432   : > { %v7849_v1 = vadd.f32 %v8841_v17, %v7809_v34 }
0x1434   : > { %7854 = vst [vmem:[#allocation41] sm:$0x3] %v7849_v1 }
0x1435 PF: > { %s12274_s15 = sld [smem:[#allocation97_spill]]  ;;  %s10740_s2 = smov [#allocation41]  }
0x1436   : > { %s7862_s18 = sshll.u32 %s10740_s2, 4  ;;  %s7863_s18 = int_to_ptr.vmem [resolvable:$true] %s7862_s18 }
0x1437   : > { %s10538_s23 = scalar_lea.vmem %s7863_s18, 32  ;;  %p10545_p6 = scmp.lt.s32.totalorder %s7863_s18, %s7863_s18 }
0x1438   : > { %p10539_p5 = scmp.ne.s32.totalorder %s7863_s18, %s10538_s23  ;;  %p10546_p0 = scmp.lt.s32.totalorder %s10538_s23, %s10538_s23 }
0x143a   : > { %p10547_p8 = por %p10546_p0, %p10545_p6 }
0x143b   : > { %p9137_p11 = scmp.eq.s32.totalorder %s12274_s15, 5 }
0x143d   : > { %p10540_p1 = pnand %p10539_p5, %p9137_p11 }
0x143f   : > { %p10541_p13 = pneg %p10540_p1 }
0x1441   : > { %p10548_p10 = pnand %p10547_p8, %p10541_p13 }
0x1443   : > { %10551 = shalt.err (!%p10548_p10)
}
0x1444   : > { %s12275_s1 = sld [smem:[#allocation94_spill]] }
0x144a   : > { %s10552_s13 = scalar_lea.hbm %s12275_s1, 32 }
0x144b   : > { %p10553_p7 = scmp.ne.s32.totalorder %s12275_s1, %s10552_s13  ;;  %p10558_p2 = scmp.lt.u32.totalorder %s10552_s13, %s12275_s1 }
0x144d   : > { %p10554_p9 = pnand %p10553_p7, %p9137_p11 }
0x144f   : > { %p10555_p4 = pneg %p10554_p9 }
0x1451   : > { %p10560_p12 = pnand %p10558_p2, %p10555_p4 }
0x1453   : > { %10563 = shalt.err (!%p10560_p12)
}
0x1454   : > { %9030 = dma.vmem_to_hbm [thread:$0]  (%p9137_p11), %s7863_s18, 32, %s12275_s1, [#allocation11]  }
0x1455   : > { %10633 = dma.done.wait (%p9137_p11), [#allocation11], 32  }
0x1456   : > { %10635 = vsyncadd (%p9137_p11), [#allocation11], 4294967264 }
0x1457 PF: > { %s12276_s22 = sld [smem:[#allocation99_spill]]  ;;  %s12277_s15 = sld [smem:[#allocation95_spill]] }
0x1458   : > { %s12278_s16 = sld [smem:[#allocation96_spill]]  ;;  %s12279_s18 = sld [smem:[#allocation100_spill]] }
0x145d   : > { %p75_p3 = scmp.ge.s32.totalorder %s12276_s22, 8  }
0x145f   :  { %77 = sbr.rel (!%p75_p3) target bundleno = 72 (0x48), region = 408 }
0x1466   :  { %7875 = vsyncpa [#allocation10], 1 }
0x1467   :  { %7877 = vsyncpa [#allocation10 + $0x1], 1 }
0x1468   :  { %7878 = vsyncpa [#allocation13], 1 }
0x1469   :  { %7879 = vsyncpa [#allocation16], 1 }
0x146a   :  { %7880 = vsyncpa [#allocation19], 1 }
0x146b   :  { %7881 = vsyncpa [#allocation22], 1 }
0x146c   :  { %7882 = vsyncpa [#allocation40], 1 }
0x146d   :  { %7883 = vsyncpa [#allocation11], 1 }
0x146e   :  { %7885 = vsyncpa [#allocation11 + $0x1], 1 }
0x146f   :  { %7886 = vsyncmov [#allocation8] }
0x1472   :  { %s7887_s8 = vpop.sfrf %7886 }
0x1473   :  { %p8700_p11 = scmp.ne.s32.totalorder %s7887_s8, 0 }
0x1475   :  { %7891 = shalt.err (%p8700_p11)  }
0x1476   :  { %7893 = vsyncmov [#allocation8 + $0x1] }
0x1479   :  { %s7894_s9 = vpop.sfrf %7893 }
0x147a   :  { %p8701_p5 = scmp.ne.s32.totalorder %s7894_s9, 0 }
0x147c   :  { %7898 = shalt.err (%p8701_p5)  }
0x147d   :  { %7900 = vsyncmov [#allocation8 + $0x2] }
0x1480   :  { %s7901_s19 = vpop.sfrf %7900 }
0x1481   :  { %p8702_p1 = scmp.ne.s32.totalorder %s7901_s19, 0 }
0x1483   :  { %7905 = shalt.err (%p8702_p1)  }
0x1484   :  { %7907 = vsyncmov [#allocation8 + $0x3] }
0x1487   :  { %s7908_s21 = vpop.sfrf %7907 }
0x1488   :  { %p8703_p13 = scmp.ne.s32.totalorder %s7908_s21, 0 }
0x148a   :  { %7912 = shalt.err (%p8703_p13)  }

</bundles_post_ra>
